<compile_context>
chip_gen: v7x
topology: tpu7x:2x2x1
jax: 0.10.0
libtpu: 0.0.40
codegen_flags: <defaults>
</compile_context>

<pallas_src>
import functools

import jax
import jax.numpy as jnp
from jax.experimental import pallas as pl
from jax.experimental.pallas import tpu as pltpu

_LANE = 128      # vreg lane width
_SUBLANE = 8     # f32 sublane height


def _round_up(x, m):
    return (x + m - 1) // m * m


def _mlp_kernel(x_ref, w1_ref, b1_ref, w2_ref, b2_ref, o_ref, *,
                mxu_dtype, precision):
    # x:  (TM, D)  f32            w1: (D, HP)  f32 or bf16 (stored dtype)
    # b1: (1, HP)  f32            w2: (HP, CP) f32          b2: (1, CP) f32
    # o:  (TM, CP) f32
    x = x_ref[...]
    w1 = w1_ref[...]
    if mxu_dtype is not None:            # cast in VMEM (no extra HBM pass)
        x = x.astype(mxu_dtype)
        w1 = w1.astype(mxu_dtype)
    h = jnp.dot(x, w1, preferred_element_type=jnp.float32, precision=precision)
    h = jnp.maximum(h + b1_ref[...], 0.0)          # bias + ReLU on VPU (f32)

    w2 = w2_ref[...]
    if mxu_dtype is not None:
        h = h.astype(mxu_dtype)
        w2 = w2.astype(mxu_dtype)
    out = jnp.dot(h, w2, preferred_element_type=jnp.float32, precision=precision)
    o_ref[...] = (out + b2_ref[...]).astype(o_ref.dtype)


def cifar10_logistic_2nn(x_nchw, w1, b1, w2, b2, *,
                         mxu_dtype=jnp.bfloat16, tm_max=1024):
    """Forward pass.

    x_nchw: (B, C, H, W).  w1: (D,100), w2: (100,10) laid out (in, out)
    (i.e. the transpose of torch's nn.Linear.weight).

    mxu_dtype=jnp.bfloat16 (default): single-pass MXU, f32 accumulation.
    mxu_dtype=None: exact f32 semantics via precision=HIGHEST on the MXU.
    """
    B = x_nchw.shape[0]
    D, H = w1.shape
    C = w2.shape[1]
    HP = _round_up(H, _LANE)      # 100 -> 128
    CP = _round_up(C, _LANE)      # 10  -> 128

    # Flatten exactly like torch .view(-1, input_size).  This is a contiguous
    # reshape (layout bitcast under jit) -- no copy, no pad, no cast of x here.
    x2d = x_nchw.reshape(B, D)

    exact = mxu_dtype is None
    w1_store = jnp.float32 if exact else mxu_dtype   # weights-only bf16 in HBM
    w1p = jnp.pad(w1, ((0, 0), (0, HP - H))).astype(w1_store)
    b1p = jnp.pad(b1.reshape(1, H), ((0, 0), (0, HP - H))).astype(jnp.float32)
    w2p = jnp.pad(w2, ((0, HP - H), (0, CP - C))).astype(jnp.float32)
    b2p = jnp.pad(b2.reshape(1, C), ((0, 0), (0, CP - C))).astype(jnp.float32)

    # Batch tile: multiple of the f32 sublane, capped for VMEM.  The ragged
    # last block (B % TM != 0, or TM > B) is handled by Pallas's clamped DMAs.
    TM = min(tm_max, _round_up(B, _SUBLANE))
    if pl.cdiv(B, TM) == 1 and B >= 64:
        # Split a single mega-tile so v7x's 2 TensorCores both get work.
        TM = _round_up(pl.cdiv(B, 2), _SUBLANE)
    grid = (pl.cdiv(B, TM),)

    precision = jax.lax.Precision.HIGHEST if exact else None
    kernel = functools.partial(_mlp_kernel, mxu_dtype=mxu_dtype,
                               precision=precision)

    x_bytes = jnp.dtype(x2d.dtype).itemsize
    w1_bytes = jnp.dtype(w1_store).itemsize
    cost = pl.CostEstimate(
        flops=2 * B * D * HP + 2 * B * HP * CP,
        transcendentals=0,
        bytes_accessed=(B * D * x_bytes + D * HP * w1_bytes
                        + HP * CP * 4 + (HP + CP) * 4 + B * CP * 4),
    )

    out_padded = pl.pallas_call(
        kernel,
        out_shape=jax.ShapeDtypeStruct((B, CP), jnp.float32),
        grid=grid,
        in_specs=[
            pl.BlockSpec((TM, D), lambda i: (i, 0)),    # x: tiled over batch
            pl.BlockSpec((D, HP), lambda i: (0, 0)),    # w1: VMEM-resident
            pl.BlockSpec((1, HP), lambda i: (0, 0)),    # b1
            pl.BlockSpec((HP, CP), lambda i: (0, 0)),   # w2
            pl.BlockSpec((1, CP), lambda i: (0, 0)),    # b2
        ],
        out_specs=pl.BlockSpec((TM, CP), lambda i: (i, 0)),
        compiler_params=pltpu.CompilerParams(
            dimension_semantics=("parallel",),          # shard batch on v7x TCs
            vmem_limit_bytes=48 * 1024 * 1024),
        cost_estimate=cost,
    )(x2d, w1p, b1p, w2p, b2p)

    # Strip class padding (padded columns are exact zeros + b2 pad = 0).
    return out_padded[:, :C]


def init_params(key, input_size=32 * 32 * 3, hidden=100, num_classes=10):
    """Synthetic params mimicking nn.Linear; built as (in, out) = transpose of torch."""
    k1, k2, k3, k4 = jax.random.split(key, 4)
    s1 = 1.0 / jnp.sqrt(jnp.float32(input_size))
    s2 = 1.0 / jnp.sqrt(jnp.float32(hidden))
    w1 = jax.random.uniform(k1, (input_size, hidden), jnp.float32, -s1, s1)
    b1 = jax.random.uniform(k2, (hidden,), jnp.float32, -s1, s1)
    w2 = jax.random.uniform(k3, (hidden, num_classes), jnp.float32, -s2, s2)
    b2 = jax.random.uniform(k4, (num_classes,), jnp.float32, -s2, s2)
    return w1, b1, w2, b2


if __name__ == "__main__":
    key = jax.random.PRNGKey(0)
    kx, kp = jax.random.split(key)

    B, C_in, HW = 2, 3, 32                       # CIFAR-10 sized input, batch=2
    input_size = C_in * HW * HW                  # 3072
    hidden, num_classes = 100, 10

    x = jax.random.normal(kx, (B, C_in, HW, HW), jnp.float32)   # NCHW
    w1, b1, w2, b2 = init_params(kp, input_size, hidden, num_classes)

    # Reference in plain JAX (same math as the PyTorch module, f32 HIGHEST).
    hi = jax.lax.Precision.HIGHEST
    x2d = x.reshape(B, input_size)
    ref = jnp.dot(jnp.maximum(jnp.dot(x2d, w1, precision=hi) + b1, 0.0),
                  w2, precision=hi) + b2

    fwd = jax.jit(cifar10_logistic_2nn, static_argnames=("mxu_dtype", "tm_max"))

    # Exact f32 path: PyTorch-matching module semantics (MXU precision=HIGHEST).
    out_f32 = jax.block_until_ready(fwd(x, w1, b1, w2, b2, mxu_dtype=None))
    assert out_f32.shape == (B, num_classes)
    assert jnp.allclose(out_f32, ref, atol=1e-4, rtol=1e-4)

    # Default fast path: bf16 MXU inputs, f32 accumulation (single-pass MXU,
    # half the w1 HBM read).  Loose numerical check.
    out = jax.block_until_ready(fwd(x, w1, b1, w2, b2))
    assert out.shape == (B, num_classes)
    assert bool(jnp.all(jnp.isfinite(out)))
    assert jnp.allclose(out, ref, atol=5e-2, rtol=5e-2)

    print("KERNEL_OK")
</pallas_src>

<mosaic_0001>
module attributes {stable_mosaic.version = 11 : i64} {
  func.func @_mlp_kernel(%arg0: i32, %arg1: memref<8x3072xf32, #tpu.memory_space<vmem>>, %arg2: memref<3072x128xf32, #tpu.memory_space<vmem>>, %arg3: memref<1x128xf32, #tpu.memory_space<vmem>>, %arg4: memref<128x128xf32, #tpu.memory_space<vmem>>, %arg5: memref<1x128xf32, #tpu.memory_space<vmem>>, %arg6: memref<8x128xf32, #tpu.memory_space<vmem>>) attributes {dimension_semantics = [#tpu.dimension_semantics<parallel>], iteration_bounds = array<i64: 1>, scalar_prefetch = 0 : i64, scratch_operands = 0 : i64, tpu.core_type = #tpu.core_type<tc>, window_params = [{transform_indices = @transform_0, window_bounds = array<i64: 8, 3072>}, {pipeline_mode = #tpu.pipeline_mode<synchronous>, transform_indices = @transform_1, window_bounds = array<i64: 3072, 128>}, {pipeline_mode = #tpu.pipeline_mode<synchronous>, transform_indices = @transform_2, window_bounds = array<i64: 1, 128>}, {pipeline_mode = #tpu.pipeline_mode<synchronous>, transform_indices = @transform_3, window_bounds = array<i64: 128, 128>}, {pipeline_mode = #tpu.pipeline_mode<synchronous>, transform_indices = @transform_4, window_bounds = array<i64: 1, 128>}, {transform_indices = @transform_5, window_bounds = array<i64: 8, 128>}]} {
    %c0 = arith.constant 0 : index
    %c0_0 = arith.constant 0 : index
    %0 = vector.load %arg1[%c0, %c0_0] : memref<8x3072xf32, #tpu.memory_space<vmem>>, vector<8x3072xf32>
    %c0_1 = arith.constant 0 : index
    %c0_2 = arith.constant 0 : index
    %1 = vector.load %arg2[%c0_1, %c0_2] : memref<3072x128xf32, #tpu.memory_space<vmem>>, vector<3072x128xf32>
    %cst = arith.constant dense<0.000000e+00> : vector<8x128xf32>
    %2 = tpu.matmul %0, %1, %cst {dimension_numbers = #tpu.dot_dimension_numbers<[1], [0], [0], [1], [0, 0, 1, 1], [], []>, precision = #tpu.contract_precision<fp32>} : vector<8x3072xf32>, vector<3072x128xf32>, vector<8x128xf32> -> vector<8x128xf32>
    %c0_3 = arith.constant 0 : index
    %c0_4 = arith.constant 0 : index
    %3 = vector.load %arg3[%c0_3, %c0_4] : memref<1x128xf32, #tpu.memory_space<vmem>>, vector<1x128xf32>
    %4 = vector.broadcast %3 : vector<1x128xf32> to vector<8x128xf32>
    %5 = arith.addf %2, %4 : vector<8x128xf32>
    %cst_5 = arith.constant 0.000000e+00 : f32
    %6 = vector.broadcast %cst_5 : f32 to vector<8x128xf32>
    %7 = arith.maximumf %5, %6 : vector<8x128xf32>
    %c0_6 = arith.constant 0 : index
    %c0_7 = arith.constant 0 : index
    %8 = vector.load %arg4[%c0_6, %c0_7] : memref<128x128xf32, #tpu.memory_space<vmem>>, vector<128x128xf32>
    %cst_8 = arith.constant dense<0.000000e+00> : vector<8x128xf32>
    %9 = tpu.matmul %7, %8, %cst_8 {dimension_numbers = #tpu.dot_dimension_numbers<[1], [0], [0], [1], [0, 0, 1, 1], [], []>, precision = #tpu.contract_precision<fp32>} : vector<8x128xf32>, vector<128x128xf32>, vector<8x128xf32> -> vector<8x128xf32>
    %c0_9 = arith.constant 0 : index
    %c0_10 = arith.constant 0 : index
    %10 = vector.load %arg5[%c0_9, %c0_10] : memref<1x128xf32, #tpu.memory_space<vmem>>, vector<1x128xf32>
    %11 = vector.broadcast %10 : vector<1x128xf32> to vector<8x128xf32>
    %12 = arith.addf %9, %11 : vector<8x128xf32>
    %c0_11 = arith.constant 0 : index
    %c0_12 = arith.constant 0 : index
    %13 = vector.load %arg6[%c0_11, %c0_12] : memref<8x128xf32, #tpu.memory_space<vmem>>, vector<8x128xf32>
    tpu.vector_store %arg6[%c0_11, %c0_12], %12 {strides = array<i32>} : memref<8x128xf32, #tpu.memory_space<vmem>>, vector<8x128xf32>,
    return
  }
  func.func @transform_0(%arg0: i32) -> (i32, i32) {
    %c0_i32 = arith.constant 0 : i32
    %c0_i32_0 = arith.constant 0 : i32
    return %arg0, %c0_i32 : i32, i32
  }
  func.func @transform_1(%arg0: i32) -> (i32, i32) {
    %c0_i32 = arith.constant 0 : i32
    %c0_i32_0 = arith.constant 0 : i32
    %c0_i32_1 = arith.constant 0 : i32
    return %c0_i32, %c0_i32_0 : i32, i32
  }
  func.func @transform_2(%arg0: i32) -> (i32, i32) {
    %c0_i32 = arith.constant 0 : i32
    %c0_i32_0 = arith.constant 0 : i32
    %c0_i32_1 = arith.constant 0 : i32
    return %c0_i32, %c0_i32_0 : i32, i32
  }
  func.func @transform_3(%arg0: i32) -> (i32, i32) {
    %c0_i32 = arith.constant 0 : i32
    %c0_i32_0 = arith.constant 0 : i32
    %c0_i32_1 = arith.constant 0 : i32
    return %c0_i32, %c0_i32_0 : i32, i32
  }
  func.func @transform_4(%arg0: i32) -> (i32, i32) {
    %c0_i32 = arith.constant 0 : i32
    %c0_i32_0 = arith.constant 0 : i32
    %c0_i32_1 = arith.constant 0 : i32
    return %c0_i32, %c0_i32_0 : i32, i32
  }
  func.func @transform_5(%arg0: i32) -> (i32, i32) {
    %c0_i32 = arith.constant 0 : i32
    %c0_i32_0 = arith.constant 0 : i32
    return %arg0, %c0_i32 : i32, i32
  }
}

</mosaic_0001>

<bundles_post_ra>
// kernel: cifar10_logistic_2nn.1
= control target key start
LH: loop header
LB: loop body
LE: loop exit
PB: predicated region body
PF: predicated region fallthrough
CT: control target
= control target key end

     0   :  { %10 = vsyncpa [#allocation3], 0  ;;  %v17086_v18 = vmov 1983009808   ;;  %v467_v20 = vlaneseq  ;;  %vm17088_vm0 = vmmov 0   ;;  %s24463_s0 = inlined_call_operand.vmem [shape: f32[2,3072], index: 0, kind: input, shape index: {}]   ;;  %s24464_s1 = inlined_call_operand.vmem [shape: f32[3072,128], index: 1, kind: input, shape index: {}]   ;;  %s24465_s2 = inlined_call_operand.vmem [shape: f32[1,128], index: 2, kind: input, shape index: {}]   ;;  %s24466_s3 = inlined_call_operand.vmem [shape: f32[128,128], index: 3, kind: input, shape index: {}]   ;;  %s24467_s4 = inlined_call_operand.vmem [shape: f32[1,128], index: 4, kind: input, shape index: {}]   ;;  %s24468_s5 = inlined_call_operand.hbm [shape: f32[2,128], index: 5, kind: output, shape index: {}]  }
   0x1   :  { %v61_v0 = vld [vmem:[%s24464_s1 + $0x80] sm:$0xff]  ;;  %v62_v1 = vld [vmem:[%s24464_s1 + $0x88] sm:$0xff]  ;;  %v63_v6 = vld [vmem:[%s24464_s1 + $0x90] sm:$0xff]  ;;  %v17158_v19 = vunpack.c.l.s4 %v17086_v18 }
   0x2   :  { %v749_v2 = vand.u32 4294901760, %v61_v0  ;;  %v752_v3 = vand.u32 4294901760, %v62_v1  ;;  %v45_v4 = vld [vmem:[%s24464_s1] sm:$0xff]  ;;  %v46_v5 = vld [vmem:[%s24464_s1 + $0x8] sm:$0xff]  ;;  %v64_v9 = vld [vmem:[%s24464_s1 + $0x98] sm:$0xff]  ;;  %v755_v10 = vand.u32 4294901760, %v63_v6 }
   0x3   :  { %v701_v7 = vand.u32 4294901760, %v45_v4  ;;  %v704_v8 = vand.u32 4294901760, %v46_v5  ;;  %v47_v11 = vld [vmem:[%s24464_s1 + $0x10] sm:$0xff]  ;;  %v48_v12 = vld [vmem:[%s24464_s1 + $0x18] sm:$0xff]  ;;  %v758_v14 = vand.u32 4294901760, %v64_v9  ;;  %v65_v15 = vld [vmem:[%s24464_s1 + $0xa0] sm:$0xff] }
   0x4   :  { %v17147_v13 = vpack.c.bf16 %v752_v3, %v749_v2  ;;  %v66_v16 = vld [vmem:[%s24464_s1 + $0xa8] sm:$0xff]  ;;  %v49_v17 = vld [vmem:[%s24464_s1 + $0x20] sm:$0xff]  ;;  %v17160_v21 = vsub.f32 %v61_v0, %v749_v2  ;;  %v17162_v22 = vsub.f32 %v62_v1, %v752_v3  ;;  %v67_v26 = vld [vmem:[%s24464_s1 + $0xb0] sm:$0xff]  ;;  %v707_v29 = vand.u32 4294901760, %v47_v11 }
   0x5   :  { %v17164_v23 = vpack.c.bf16 %v704_v8, %v701_v7  ;;  %v17166_v24 = vsub.f32 %v45_v4, %v701_v7  ;;  %v50_v25 = vld [vmem:[%s24464_s1 + $0x28] sm:$0xff]  ;;  %v17175_v27 = vsub.f32 %v46_v5, %v704_v8  ;;  %v17177_v28 = vpack.c.bf16 %v758_v14, %v755_v10  ;;  %v68_v35 = vld [vmem:[%s24464_s1 + $0xb8] sm:$0xff]  ;;  %v51_v36 = vld [vmem:[%s24464_s1 + $0x30] sm:$0xff] }
   0x6   :  { %25314 = vst [vmem:[#allocation5_spill] sm:$0xff] %v17147_v13  ;;  %14561 = vmatprep.subr.bf16.mxu1 %v17147_v13  ;;  %v710_v30 = vand.u32 4294901760, %v48_v12  ;;  %v761_v31 = vand.u32 4294901760, %v65_v15  ;;  %v764_v32 = vand.u32 4294901760, %v66_v16  ;;  %v713_v33 = vand.u32 4294901760, %v49_v17  ;;  %v52_v41 = vld [vmem:[%s24464_s1 + $0x38] sm:$0xff] }
   0x7   :  { %25315 = vst [vmem:[#allocation6_spill] sm:$0xff] %v17164_v23  ;;  %25316 = vst [vmem:[#allocation7_spill] sm:$0xff] %v17177_v28  ;;  %14563 = vmatpush3.bf16.msra.mxu1 %v17164_v23  ;;  %v716_v34 = vand.u32 4294901760, %v50_v25  ;;  %v17187_v37 = vsub.f32 %v63_v6, %v755_v10  ;;  %v17189_v38 = vsub.f32 %v64_v9, %v758_v14  ;;  %v767_v40 = vand.u32 4294901760, %v67_v26  ;;  %v69_v42 = vld [vmem:[%s24464_s1 + $0xc0] sm:$0xff]  ;;  %v70_v43 = vld [vmem:[%s24464_s1 + $0xc8] sm:$0xff] }
   0x8   :  { %14565 = vmatprep.subr.bf16.mxu1 %v17177_v28  ;;  %v17191_v39 = vpack.c.bf16 %v710_v30, %v707_v29  ;;  %v17202_v44 = vsub.f32 %v47_v11, %v707_v29  ;;  %v17204_v45 = vsub.f32 %v48_v12, %v710_v30  ;;  %v17206_v46 = vpack.c.bf16 %v764_v32, %v761_v31  ;;  %v53_v48 = vld [vmem:[%s24464_s1 + $0x40] sm:$0xff]  ;;  %v54_v49 = vld [vmem:[%s24464_s1 + $0x48] sm:$0xff]  ;;  %v71_v54 = vld [vmem:[%s24464_s1 + $0xd0] sm:$0xff] }
   0x9   :  { %v17208_v47 = vsub.f32 %v65_v15, %v761_v31  ;;  %v17216_v50 = vsub.f32 %v66_v16, %v764_v32  ;;  %v17218_v51 = vpack.c.bf16 %v716_v34, %v713_v33  ;;  %v17220_v52 = vsub.f32 %v49_v17, %v713_v33  ;;  %v72_v55 = vld [vmem:[%s24464_s1 + $0xd8] sm:$0xff]  ;;  %v55_v56 = vld [vmem:[%s24464_s1 + $0x50] sm:$0xff]  ;;  %v73_v62 = vld [vmem:[%s24464_s1 + $0xe0] sm:$0xff] }
   0xa   :  { %25317 = vst [vmem:[#allocation8_spill] sm:$0xff] %v17191_v39  ;;  %25318 = vst [vmem:[#allocation9_spill] sm:$0xff] %v17206_v46  ;;  %v770_v53 = vand.u32 4294901760, %v68_v35  ;;  %v719_v57 = vand.u32 4294901760, %v51_v36  ;;  %v722_v58 = vand.u32 4294901760, %v52_v41  ;;  %v773_v59 = vand.u32 4294901760, %v69_v42 }
   0xb   :  { %25319 = vst [vmem:[#allocation10_spill] sm:$0xff] %v17218_v51  ;;  %14567 = vmatpush3.bf16.msra.mxu1 %v17191_v39  ;;  %v776_v60 = vand.u32 4294901760, %v70_v43  ;;  %v56_v61 = vld [vmem:[%s24464_s1 + $0x58] sm:$0xff]  ;;  %v17239_v63 = vsub.f32 %v50_v25, %v716_v34  ;;  %v725_v1 = vand.u32 4294901760, %v53_v48  ;;  %v728_v2 = vand.u32 4294901760, %v54_v49  ;;  %v74_v3 = vld [vmem:[%s24464_s1 + $0xe8] sm:$0xff] }
   0xc   :  { %14569 = vmatprep.subr.bf16.mxu1 %v17206_v46  ;;  %v17241_v0 = vpack.c.bf16 %v770_v53, %v767_v40  ;;  %v57_v4 = vld [vmem:[%s24464_s1 + $0x60] sm:$0xff]  ;;  %v17249_v5 = vsub.f32 %v67_v26, %v767_v40  ;;  %v17251_v6 = vsub.f32 %v68_v35, %v770_v53  ;;  %v17253_v7 = vpack.c.bf16 %v722_v58, %v719_v57  ;;  %v58_v14 = vld [vmem:[%s24464_s1 + $0x68] sm:$0xff]  ;;  %v75_v15 = vld [vmem:[%s24464_s1 + $0xf0] sm:$0xff] }
   0xd   :  { %v17255_v8 = vsub.f32 %v51_v36, %v719_v57  ;;  %v17257_v9 = vsub.f32 %v52_v41, %v722_v58  ;;  %v17259_v10 = vpack.c.bf16 %v776_v60, %v773_v59  ;;  %v17261_v11 = vsub.f32 %v69_v42, %v773_v59  ;;  %v76_v26 = vld [vmem:[%s24464_s1 + $0xf8] sm:$0xff]  ;;  %v59_v29 = vld [vmem:[%s24464_s1 + $0x70] sm:$0xff] }
   0xe   :  { %25320 = vst [vmem:[#allocation11_spill] sm:$0xff] %v17241_v0  ;;  %25321 = vst [vmem:[#allocation12_spill] sm:$0xff] %v17253_v7  ;;  %v17263_v12 = vsub.f32 %v70_v43, %v776_v60  ;;  %v17272_v16 = vpack.c.bf16 %v728_v2, %v725_v1  ;;  %v779_v17 = vand.u32 4294901760, %v71_v54  ;;  %v782_v18 = vand.u32 4294901760, %v72_v55  ;;  %v60_v34 = vld [vmem:[%s24464_s1 + $0x78] sm:$0xff] }
   0xf   :  { %25322 = vst [vmem:[#allocation13_spill] sm:$0xff] %v17259_v10  ;;  %14571 = vmatpush3.bf16.msra.mxu1 %v17218_v51  ;;  %v731_v25 = vand.u32 4294901760, %v55_v56  ;;  %v17281_v30 = vsub.f32 %v53_v48, %v725_v1  ;;  %v734_v31 = vand.u32 4294901760, %v56_v61  ;;  %v785_v32 = vand.u32 4294901760, %v73_v62 }
  0x10   :  { %25323 = vst [vmem:[#allocation14_spill] sm:$0xff] %v17272_v16  ;;  %14573 = vmatprep.subr.bf16.mxu1 %v17241_v0  ;;  %v788_v33 = vand.u32 4294901760, %v74_v3  ;;  %v17286_v35 = vsub.f32 %v54_v49, %v728_v2  ;;  %v17288_v36 = vpack.c.bf16 %v782_v18, %v779_v17  ;;  %v17290_v40 = vsub.f32 %v71_v54, %v779_v17  ;;  %v17026_v54 = vld [vmem:[%s24463_s0] ss:$48 sps:$4 sm:$0xff]  }
  0x11   :  { %v737_v41 = vand.u32 4294901760, %v57_v4  ;;  %v17292_v42 = vsub.f32 %v72_v55, %v782_v18  ;;  %v17294_v43 = vpack.c.bf16 %v734_v31, %v731_v25  ;;  %v17296_v48 = vsub.f32 %v55_v56, %v731_v25 }
  0x12   :  { %25324 = vst [vmem:[#allocation15_spill] sm:$0xff] %v17288_v36  ;;  %v17298_v53 = vsub.f32 %v56_v61, %v734_v31  ;;  %v17301_v57 = vpack.c.bf16 %v788_v33, %v785_v32  ;;  %v17303_v58 = vsub.f32 %v73_v62, %v785_v32  ;;  %v740_v49 = vand.u32 4294901760, %v58_v14  ;;  %v17028_v62 = vld [vmem:[%s24463_s0 + $0x60] ss:$48 sps:$4 sm:$0xff]  }
  0x13   :  { %25325 = vst [vmem:[#allocation16_spill] sm:$0xff] %v17294_v43  ;;  %14575 = vmatpush3.bf16.msra.mxu1 %v17253_v7  ;;  %v791_v59 = vand.u32 4294901760, %v75_v15  ;;  %v794_v55 = vand.u32 4294901760, %v76_v26  ;;  %v743_v60 = vand.u32 4294901760, %v59_v29  ;;  %v746_v56 = vand.u32 4294901760, %v60_v34 }
  0x14   :  { %25326 = vst [vmem:[#allocation17_spill] sm:$0xff] %v17301_v57  ;;  %14577 = vmatprep.subr.bf16.mxu1 %v17259_v10  ;;  %v466_v61 = vunpack.c.0.s8 %v17158_v19  ;;  %v17310_v1 = vsub.f32 %v74_v3, %v788_v33  ;;  %v17312_v2 = vpack.c.bf16 %v740_v49, %v737_v41  ;;  %v17314_v17 = vsub.f32 %v57_v4, %v737_v41 }
  0x15   :  { %v468_v18 = vshrl.u32 %v467_v20, 7  ;;  %v17320_v25 = vsub.f32 %v58_v14, %v740_v49  ;;  %v17322_v31 = vpack.c.bf16 %v794_v55, %v791_v59  ;;  %v17324_v32 = vsub.f32 %v75_v15, %v791_v59 }
  0x16   :  { %25327 = vst [vmem:[#allocation18_spill] sm:$0xff] %v17312_v2  ;;  %25328 = vst [vmem:[#allocation19_spill] sm:$0xff] %v17314_v17  ;;  %v17326_v10 = vsub.f32 %v76_v26, %v794_v55  ;;  %v17329_v19 = vpack.c.bf16 %v746_v56, %v743_v60  ;;  %v24471_v4 = vand.u32 4294901760, %v17160_v21  ;;  %v24472_v33 = vand.u32 4294901760, %v17162_v22 }
  0x17   :  { %25329 = vst [vmem:[#allocation20_spill] sm:$0xff] %v17320_v25  ;;  %25330 = vst [vmem:[#allocation21_spill] sm:$0xff] %v17322_v31  ;;  %14579 = vmatpush3.bf16.msra.mxu1 %v17272_v16  ;;  %v17331_v3 = vsub.s32 %v466_v61, %v468_v18  ;;  %v24477_v20 = vand.u32 4294901760, %v17166_v24  ;;  %v24480_v14 = vand.u32 4294901760, %v17175_v27  ;;  %v24485_v15 = vand.u32 4294901760, %v17187_v37 }
  0x18   :  { %25331 = vst [vmem:[#allocation22_spill] sm:$0xff] %v17324_v32  ;;  %25332 = vst [vmem:[#allocation23_spill] sm:$0xff] %v17326_v10  ;;  %14581 = vmatprep.subr.bf16.mxu1 %v17288_v36  ;;  %v24488_v26 = vand.u32 4294901760, %v17189_v38  ;;  %v928_v59 = vsub.f32 %v17160_v21, %v24471_v4  ;;  %v935_v55 = vsub.f32 %v17162_v22, %v24472_v33  ;;  %v24524_v23 = vand.u32 4294901760, %v17292_v42 }
  0x19   :  { %25333 = vst [vmem:[#allocation24_spill] sm:$0xff] %v17329_v19  ;;  %25334 = vst [vmem:[#allocation25_spill] sm:$0xff] %v17331_v3  ;;  %v470_v41 = vrot.slane %v17026_v54, %v17331_v3  ;;  %v484_v49 = vrot.slane %v17028_v62, %v17331_v3  ;;  %v816_v61 = vsub.f32 %v17166_v24, %v24477_v20 }
  0x1a   :  { %v823_v18 = vsub.f32 %v17175_v27, %v24480_v14  ;;  %v942_v54 = vsub.f32 %v17187_v37, %v24485_v15  ;;  %v949_v62 = vsub.f32 %v17189_v38, %v24488_v26  ;;  %v929_v36 = vand.u32 4294901760, %v928_v59 }
  0x1b   :  { %14583 = vmatpush3.bf16.msra.mxu1 %v17294_v43  ;;  %v493_v4 = vcombine.high %v470_v41, %v484_v49  ;;  %v492_v33 = vcombine.low %v470_v41, %v484_v49  ;;  %v936_v16 = vand.u32 4294901760, %v935_v55  ;;  %v17362_v20 = vsub.f32 %v59_v29, %v743_v60 }
  0x1c   :  { %14585 = vmatprep.subr.bf16.mxu1 %v17301_v57  ;;  %v17364_v7 = vsub.f32 %v60_v34, %v746_v56  ;;  %v817_v14 = vand.u32 4294901760, %v816_v61  ;;  %v824_v0 = vand.u32 4294901760, %v823_v18  ;;  %v943_v46 = vand.u32 4294901760, %v942_v54 }
  0x1d   :  { %25335 = vst [vmem:[#allocation26_spill] sm:$0xff] %v17362_v20  ;;  %v17366_v51 = vand.u32 4294901760, %v493_v4  ;;  %v17368_v15 = vand.u32 4294901760, %v492_v33  ;;  %v24497_v26 = vand.u32 4294901760, %v17202_v44  ;;  %v14592_v43 = vpack.c.bf16 %v936_v16, %v929_v36 }
  0x1e   :  { %25336 = vst [vmem:[#allocation27_spill] sm:$0xff] %v17364_v7  ;;  %v950_v39 = vand.u32 4294901760, %v949_v62  ;;  %v24493_v41 = vand.u32 4294901760, %v17204_v45  ;;  %v24494_v49 = vand.u32 4294901760, %v17208_v47  ;;  %v24495_v56 = vand.u32 4294901760, %v17216_v50 }
  0x1f   :  { %25337 = vst [vmem:[#allocation28_spill] sm:$0xff] %v17366_v51  ;;  %25338 = vst [vmem:[#allocation29_spill] sm:$0xff] %v17368_v15  ;;  %14587 = vmatpush3.bf16.msra.mxu1 %v17312_v2  ;;  %v17375_v29 = vsub.f32 %v493_v4, %v17366_v51  ;;  %v17378_v34 = vsub.f32 %v492_v33, %v17368_v15  ;;  %v830_v60 = vsub.f32 %v17202_v44, %v24497_v26 }
  0x20   :  { %14589 = vmatprep.subr.bf16.mxu1 %v17322_v31  ;;  %v837_v16 = vsub.f32 %v17204_v45, %v24493_v41  ;;  %v956_v36 = vsub.f32 %v17208_v47, %v24494_v49  ;;  %v24496_v4 = vand.u32 4294901760, %v17220_v52  ;;  %v24500_v33 = vand.u32 4294901760, %v17239_v63 }
  0x21   :  { %25339 = vst [vmem:[#allocation30_spill] sm:$0xff] %v17375_v29  ;;  %25340 = vst [vmem:[#allocation31_spill] sm:$0xff] %v17378_v34  ;;  %v24505_v59 = vand.u32 4294901760, %v17375_v29  ;;  %v24508_v55 = vand.u32 4294901760, %v17378_v34  ;;  %v831_v61 = vand.u32 4294901760, %v830_v60  ;;  %v963_v18 = vsub.f32 %v17216_v50, %v24495_v56 }
  0x22   :  { %v14594_v54 = vpack.c.bf16 %v824_v0, %v817_v14  ;;  %v838_v62 = vand.u32 4294901760, %v837_v16  ;;  %v844_v41 = vsub.f32 %v17220_v52, %v24496_v4  ;;  %v851_v49 = vsub.f32 %v17239_v63, %v24500_v33 }
  0x23   :  { %14591 = vmatpush3.bf16.msra.mxu1 %v17329_v19  ;;  %v799_v60 = vsub.f32 %v17375_v29, %v24505_v59  ;;  %v805_v56 = vsub.f32 %v17378_v34, %v24508_v55  ;;  %v14596_v0 = vpack.c.bf16 %v950_v39, %v943_v46  ;;  %v24513_v14 = vand.u32 4294901760, %v17249_v5 }
  0x24   :  { %14593 = vmatprep.subr.bf16.mxu1 %v14592_v43  ;;  %v14598_v16 = vpack.c.bf16 %v838_v62, %v831_v61  ;;  %v957_v4 = vand.u32 4294901760, %v956_v36  ;;  %v964_v26 = vand.u32 4294901760, %v963_v18  ;;  %v24512_v31 = vand.u32 4294901760, %v17251_v6 }
  0x25   :  { %v800_v33 = vand.u32 4294901760, %v799_v60  ;;  %v806_v2 = vand.u32 4294901760, %v805_v56  ;;  %v845_v19 = vand.u32 4294901760, %v844_v41  ;;  %v970_v59 = vsub.f32 %v17249_v5, %v24513_v14 }
  0x26   :  { %v852_v57 = vand.u32 4294901760, %v851_v49  ;;  %v977_v39 = vsub.f32 %v17251_v6, %v24512_v31  ;;  %v24511_v46 = vand.u32 4294901760, %v17255_v8  ;;  %v24509_v43 = vand.u32 4294901760, %v17257_v9 }
  0x27   :  { %801 = vmatprep.mubr.f32.mxu1 %v800_v33  ;;  %v971_v36 = vand.u32 4294901760, %v970_v59  ;;  %v24510_v61 = vand.u32 4294901760, %v17261_v11  ;;  %v24514_v56 = vand.u32 4294901760, %v17263_v12  ;;  %v24515_v41 = vand.u32 4294901760, %v17281_v30 }
  0x28   :  { %807 = vmatmul.mubr.f32.vlgmr.msra.gmra.mrb[0].mxu1 %v806_v2  ;;  %v978_v18 = vand.u32 4294901760, %v977_v39  ;;  %v858_v49 = vsub.f32 %v17255_v8, %v24511_v46  ;;  %v865_v62 = vsub.f32 %v17257_v9, %v24509_v43  ;;  %v24526_v60 = vand.u32 4294901760, %v17286_v35 }
  0x29   :  { %14595 = vmatpush3.bf16.msra.mxu1 %v14594_v54  ;;  %v984_v33 = vsub.f32 %v17261_v11, %v24510_v61  ;;  %v991_v2 = vsub.f32 %v17263_v12, %v24514_v56  ;;  %v872_v59 = vsub.f32 %v17281_v30, %v24515_v41  ;;  %v24525_v39 = vand.u32 4294901760, %v17290_v40  ;;  %1037 = vmatprep.mubr.f32.mxu1 %v17366_v51 }
  0x2a   :  { %14597 = vmatprep.subr.bf16.mxu1 %v14596_v0  ;;  %v14600_v55 = vpack.c.bf16 %v964_v26, %v957_v4  ;;  %v859_v43 = vand.u32 4294901760, %v858_v49  ;;  %v866_v54 = vand.u32 4294901760, %v865_v62  ;;  %v879_v61 = vsub.f32 %v17286_v35, %v24526_v60 }
  0x2b   :  { %v14602_v46 = vpack.c.bf16 %v852_v57, %v845_v19  ;;  %v14604_v31 = vpack.c.bf16 %v978_v18, %v971_v36  ;;  %v985_v14 = vand.u32 4294901760, %v984_v33  ;;  %v998_v56 = vsub.f32 %v17290_v40, %v24525_v39 }
  0x2c   :  { %v992_v41 = vand.u32 4294901760, %v991_v2  ;;  %v873_v28 = vand.u32 4294901760, %v872_v59  ;;  %v24520_v0 = vand.u32 4294901760, %v17296_v48  ;;  %v14606_v26 = vpack.c.bf16 %v866_v54, %v859_v43 }
  0x2d   :  { %14599 = vmatpush3.bf16.msra.mxu1 %v14598_v16  ;;  %v880_v4 = vand.u32 4294901760, %v879_v61  ;;  %v24521_v49 = vand.u32 4294901760, %v17298_v53  ;;  %v24522_v62 = vand.u32 4294901760, %v17303_v58  ;;  %v999_v57 = vand.u32 4294901760, %v998_v56 }
  0x2e   :  { %14601 = vmatprep.subr.bf16.mxu1 %v14600_v55  ;;  %v1005_v19 = vsub.f32 %v17292_v42, %v24524_v23  ;;  %v886_v36 = vsub.f32 %v17296_v48, %v24520_v0  ;;  %v24523_v18 = vand.u32 4294901760, %v17310_v1  ;;  %v24527_v55 = vand.u32 4294901760, %v17314_v17 }
  0x2f   :  { %v893_v16 = vsub.f32 %v17298_v53, %v24521_v49  ;;  %v1012_v43 = vsub.f32 %v17303_v58, %v24522_v62  ;;  %v24530_v61 = vand.u32 4294901760, %v17320_v25  ;;  %v24531_v59 = vand.u32 4294901760, %v17324_v32 }
  0x30   :  { %v1006_v56 = vand.u32 4294901760, %v1005_v19  ;;  %v887_v33 = vand.u32 4294901760, %v886_v36  ;;  %v1019_v2 = vsub.f32 %v17310_v1, %v24523_v18  ;;  %v900_v49 = vsub.f32 %v17314_v17, %v24527_v55 }
  0x31   :  { %14603 = vmatpush3.bf16.msra.mxu1 %v14602_v46  ;;  %v894_v54 = vand.u32 4294901760, %v893_v16  ;;  %v1013_v0 = vand.u32 4294901760, %v1012_v43  ;;  %v907_v62 = vsub.f32 %v17320_v25, %v24530_v61  ;;  %v14608_v19 = vpack.c.bf16 %v992_v41, %v985_v14 }
  0x32   :  { %14605 = vmatprep.subr.bf16.mxu1 %v14604_v31  ;;  %v1020_v36 = vand.u32 4294901760, %v1019_v2  ;;  %v1026_v18 = vsub.f32 %v17324_v32, %v24531_v59  ;;  %v1032_v23 = vand.u32 4294901760, %v17326_v10  ;;  %v14610_v46 = vpack.c.bf16 %v880_v4, %v873_v28 }
  0x33   :  { %v901_v16 = vand.u32 4294901760, %v900_v49  ;;  %v908_v43 = vand.u32 4294901760, %v907_v62  ;;  %v913_v39 = vand.u32 4294901760, %v17362_v20  ;;  %v14612_v60 = vpack.c.bf16 %v1006_v56, %v999_v57 }
  0x34   :  { %v1027_v55 = vand.u32 4294901760, %v1026_v18  ;;  %v1033_v51 = vsub.f32 %v17326_v10, %v1032_v23  ;;  %v920_v61 = vand.u32 4294901760, %v17364_v7  ;;  %v14614_v31 = vpack.c.bf16 %v894_v54, %v887_v33 }
  0x35   :  { %14607 = vmatpush3.bf16.msra.mxu1 %v14606_v26  ;;  %v14616_v14 = vpack.c.bf16 %v1020_v36, %v1013_v0  ;;  %v14618_v41 = vpack.c.bf16 %v908_v43, %v901_v16  ;;  %v914_v2 = vsub.f32 %v17362_v20, %v913_v39  ;;  %v25348_v16 = vand.u32 4294901760, %v17189_v38  ;;  %v100_v20 = vld [vmem:[%s24464_s1 + $0x1b8] sm:$0xff] }
  0x36   :  { %14609 = vmatprep.subr.bf16.mxu1 %v14608_v19  ;;  %v1034_v59 = vand.u32 4294901760, %v1033_v51  ;;  %v921_v28 = vsub.f32 %v17364_v7, %v920_v61  ;;  %v25350_v43 = vand.u32 4294901760, %v17202_v44  ;;  %v25351_v19 = vand.u32 4294901760, %v17204_v45  ;;  %v83_v7 = vld [vmem:[%s24464_s1 + $0x130] sm:$0xff] }
  0x37   :  { %v915_v62 = vand.u32 4294901760, %v914_v2  ;;  %v25341_v2 = vand.u32 4294901760, %v17160_v21  ;;  %v25357_v33 = vand.u32 4294901760, %v17239_v63  ;;  %v25360_v56 = vand.u32 4294901760, %v17251_v6 }
  0x38   :  { %v14620_v18 = vpack.c.bf16 %v1034_v59, %v1027_v55  ;;  %v922_v51 = vand.u32 4294901760, %v921_v28  ;;  %v25342_v28 = vand.u32 4294901760, %v17162_v22  ;;  %v25344_v55 = vand.u32 4294901760, %v17166_v24 }
  0x39   :  { %14611 = vmatpush3.bf16.msra.mxu1 %v14610_v46  ;;  %v17538_v54 = vpack.c.bf16 %v25351_v19, %v25350_v43  ;;  %v25359_v43 = vand.u32 4294901760, %v17249_v5  ;;  %v25362_v0 = vand.u32 4294901760, %v17255_v8  ;;  %v25363_v57 = vand.u32 4294901760, %v17257_v9 }
  0x3a   :  { %14613 = vmatprep.subr.bf16.mxu1 %v14612_v60  ;;  %v17508_v59 = vpack.c.bf16 %v922_v51, %v915_v62  ;;  %v17520_v36 = vpack.c.bf16 %v25342_v28, %v25341_v2  ;;  %v25345_v60 = vand.u32 4294901760, %v17175_v27  ;;  %v25347_v51 = vand.u32 4294901760, %v17187_v37  ;;  %v93_v2 = vld [vmem:[%s24464_s1 + $0x180] sm:$0xff] }
  0x3b   :  { %25352 = vst [vmem:[#allocation35_spill] sm:$0xff] %v17538_v54  ;;  %v25353_v28 = vand.u32 4294901760, %v17208_v47  ;;  %v17562_v26 = vpack.c.bf16 %v25360_v56, %v25359_v43  ;;  %v17568_v49 = vpack.c.bf16 %v25363_v57, %v25362_v0  ;;  %v25365_v56 = vand.u32 4294901760, %v17261_v11 }
  0x3c   :  { %25343 = vst [vmem:[#allocation32_spill] sm:$0xff] %v17520_v36  ;;  %v17526_v62 = vpack.c.bf16 %v25345_v60, %v25344_v55  ;;  %v17532_v46 = vpack.c.bf16 %v25348_v16, %v25347_v51  ;;  %v94_v55 = vld [vmem:[%s24464_s1 + $0x188] sm:$0xff]  ;;  %v25354_v60 = vand.u32 4294901760, %v17216_v50  ;;  %v25356_v51 = vand.u32 4294901760, %v17220_v52 }
  0x3d   :  { %25361 = vst [vmem:[#allocation38_spill] sm:$0xff] %v17562_v26  ;;  %25364 = vst [vmem:[#allocation39_spill] sm:$0xff] %v17568_v49  ;;  %14615 = vmatpush3.bf16.msra.mxu1 %v14614_v31  ;;  %v25368_v57 = vand.u32 4294901760, %v17281_v30  ;;  %v25369_v0 = vand.u32 4294901760, %v17286_v35  ;;  %v25371_v49 = vand.u32 4294901760, %v17290_v40  ;;  %v25372_v26 = vand.u32 4294901760, %v17292_v42 }
  0x3e   :  { %25346 = vst [vmem:[#allocation33_spill] sm:$0xff] %v17526_v62  ;;  %25349 = vst [vmem:[#allocation34_spill] sm:$0xff] %v17532_v46  ;;  %v17550_v16 = vpack.c.bf16 %v25354_v60, %v25353_v28  ;;  %v17556_v19 = vpack.c.bf16 %v25357_v33, %v25356_v51  ;;  %v77_v28 = vld [vmem:[%s24464_s1 + $0x100] sm:$0xff]  ;;  %v78_v33 = vld [vmem:[%s24464_s1 + $0x108] sm:$0xff]  ;;  %v25366_v51 = vand.u32 4294901760, %v17263_v12  ;;  %v25374_v31 = vand.u32 4294901760, %v17296_v48  ;;  %14617 = vmatprep.subr.bf16.mxu1 %v14616_v14 }
  0x3f   :  { %v95_v60 = vld [vmem:[%s24464_s1 + $0x190] sm:$0xff]  ;;  %v17589_v4 = vpack.c.bf16 %v25369_v0, %v25368_v57  ;;  %v80_v57 = vld [vmem:[%s24464_s1 + $0x118] sm:$0xff]  ;;  %v1611_v46 = vand.u32 4294901760, %v93_v2  ;;  %v1614_v14 = vand.u32 4294901760, %v94_v55  ;;  %v1563_v62 = vand.u32 4294901760, %v77_v28 }
  0x40   :  { %25355 = vst [vmem:[#allocation36_spill] sm:$0xff] %v17550_v16  ;;  %25358 = vst [vmem:[#allocation37_spill] sm:$0xff] %v17556_v19  ;;  %v17583_v43 = vpack.c.bf16 %v25366_v51, %v25365_v56  ;;  %v17595_v19 = vpack.c.bf16 %v25372_v26, %v25371_v49  ;;  %v25375_v16 = vand.u32 4294901760, %v17298_v53  ;;  %v96_v56 = vld [vmem:[%s24464_s1 + $0x198] sm:$0xff]  ;;  %v79_v51 = vld [vmem:[%s24464_s1 + $0x110] sm:$0xff]  ;;  %v25377_v49 = vand.u32 4294901760, %v17303_v58 }
  0x41   :  { %25370 = vst [vmem:[#allocation41_spill] sm:$0xff] %v17589_v4  ;;  %v25378_v26 = vand.u32 4294901760, %v17310_v1  ;;  %v1566_v36 = vand.u32 4294901760, %v78_v33  ;;  %v1617_v34 = vand.u32 4294901760, %v95_v60  ;;  %v1620_v13 = vand.u32 4294901760, %v96_v56  ;;  %14619 = vmatpush3.bf16.msra.mxu1 %v14618_v41  ;;  %v99_v41 = vld [vmem:[%s24464_s1 + $0x1b0] sm:$0xff] }
  0x42   :  { %25367 = vst [vmem:[#allocation40_spill] sm:$0xff] %v17583_v43  ;;  %25373 = vst [vmem:[#allocation42_spill] sm:$0xff] %v17595_v19  ;;  %v17601_v54 = vpack.c.bf16 %v25375_v16, %v25374_v31  ;;  %v25380_v16 = vand.u32 4294901760, %v17314_v17  ;;  %v25381_v31 = vand.u32 4294901760, %v17320_v25  ;;  %v25383_v19 = vand.u32 4294901760, %v17324_v32  ;;  %14621 = vmatprep.subr.bf16.mxu1 %v14620_v18  ;;  %v84_v18 = vld [vmem:[%s24464_s1 + $0x138] sm:$0xff] }
  0x43   :  { %v17616_v0 = vpack.c.bf16 %v25378_v26, %v25377_v49  ;;  %v17628_v43 = vpack.c.bf16 %v920_v61, %v913_v39  ;;  %v1569_v49 = vand.u32 4294901760, %v79_v51  ;;  %v1572_v26 = vand.u32 4294901760, %v80_v57  ;;  %v85_v25 = vld [vmem:[%s24464_s1 + $0x140] sm:$0xff] }
  0x44   :  { %25376 = vst [vmem:[#allocation43_spill] sm:$0xff] %v17601_v54  ;;  %v17622_v54 = vpack.c.bf16 %v25381_v31, %v25380_v16  ;;  %v17626_v4 = vpack.c.bf16 %v1032_v23, %v25383_v19  ;;  %v98_v16 = vld [vmem:[%s24464_s1 + $0x1a8] sm:$0xff]  ;;  %v17640_v61 = vpack.c.bf16 %v1614_v14, %v1611_v46  ;;  %v17642_v19 = vpack.c.bf16 %v1566_v36, %v1563_v62  ;;  %v81_v31 = vld [vmem:[%s24464_s1 + $0x120] sm:$0xff] }
  0x45   :  { %25379 = vst [vmem:[#allocation44_spill] sm:$0xff] %v17616_v0  ;;  %25385 = vst [vmem:[#allocation47_spill] sm:$0xff] %v17628_v43  ;;  %v97_v0 = vld [vmem:[%s24464_s1 + $0x1a0] sm:$0xff]  ;;  %v82_v43 = vld [vmem:[%s24464_s1 + $0x128] sm:$0xff]  ;;  %v17653_v23 = vsub.f32 %v93_v2, %v1611_v46  ;;  %v17655_v39 = vsub.f32 %v94_v55, %v1614_v14  ;;  %v17671_v46 = vsub.f32 %v78_v33, %v1566_v36  ;;  %v1626_v14 = vand.u32 4294901760, %v98_v16 }
  0x46   :  { %25382 = vst [vmem:[#allocation45_spill] sm:$0xff] %v17622_v54  ;;  %25384 = vst [vmem:[#allocation46_spill] sm:$0xff] %v17626_v4  ;;  %v17657_v4 = vsub.f32 %v77_v28, %v1563_v62  ;;  %v17659_v54 = vpack.c.bf16 %v1620_v13, %v1617_v34  ;;  %14753 = vmatprep.subr.bf16.mxu0 %v17640_v61  ;;  %v17673_v62 = vsub.f32 %v95_v60, %v1617_v34 }
  0x47   :  { %25386 = vst [vmem:[#allocation48_spill] sm:$0xff] %v17640_v61  ;;  %25387 = vst [vmem:[#allocation49_spill] sm:$0xff] %v17642_v19  ;;  %v17675_v2 = vsub.f32 %v96_v56, %v1620_v13  ;;  %v17677_v55 = vpack.c.bf16 %v1572_v26, %v1569_v49  ;;  %14755 = vmatpush3.bf16.msra.mxu0 %v17642_v19  ;;  %v1623_v28 = vand.u32 4294901760, %v97_v0  ;;  %v1575_v32 = vand.u32 4294901760, %v81_v31  ;;  %v101_v13 = vld [vmem:[%s24464_s1 + $0x1c0] sm:$0xff] }
  0x48   :  { %25388 = vst [vmem:[#allocation50_spill] sm:$0xff] %v17659_v54  ;;  %v1578_v10 = vand.u32 4294901760, %v82_v43  ;;  %14623 = vmatpush3.bf16.msra.mxu1 %v17508_v59  ;;  %14757 = vmatprep.subr.bf16.mxu0 %v17659_v54  ;;  %v1629_v17 = vand.u32 4294901760, %v99_v41  ;;  %v1632_v61 = vand.u32 4294901760, %v100_v20  ;;  %v1581_v36 = vand.u32 4294901760, %v83_v7  ;;  %v102_v54 = vld [vmem:[%s24464_s1 + $0x1c8] sm:$0xff] }
  0x49   :  { %25389 = vst [vmem:[#allocation51_spill] sm:$0xff] %v17677_v55  ;;  %v1584_v33 = vand.u32 4294901760, %v84_v18  ;;  %v25390_v34 = vpack.c.bf16 %v17162_v22, %v17160_v21  ;;  %v17688_v60 = vsub.f32 %v79_v51, %v1569_v49  ;;  %v17690_v56 = vsub.f32 %v80_v57, %v1572_v26  ;;  %v86_v21 = vld [vmem:[%s24464_s1 + $0x148] sm:$0xff]  ;;  %v103_v49 = vld [vmem:[%s24464_s1 + $0x1d0] sm:$0xff]  ;;  %v104_v26 = vld [vmem:[%s24464_s1 + $0x1d8] sm:$0xff] }
  0x4a   :  { %v17692_v19 = vpack.c.bf16 %v1626_v14, %v1623_v28  ;;  %v17694_v59 = vsub.f32 %v97_v0, %v1623_v28  ;;  %v17705_v22 = vsub.f32 %v98_v16, %v1626_v14  ;;  %v17707_v51 = vpack.c.bf16 %v1578_v10, %v1575_v32 }
  0x4b   :  { %14625 = vmatprep.subr.bf16.mxu1 %v25390_v34  ;;  %v17709_v57 = vsub.f32 %v81_v31, %v1575_v32  ;;  %v17711_v0 = vsub.f32 %v82_v43, %v1578_v10  ;;  %1039 = vmatmul.mubr.f32.vlgmr.msra.gmra.mrb[2].mxu1 %v17368_v15  ;;  %v17721_v16 = vpack.c.bf16 %v1632_v61, %v1629_v17  ;;  %v1635_v10 = vand.u32 4294901760, %v101_v13  ;;  %v87_v43 = vld [vmem:[%s24464_s1 + $0x150] sm:$0xff] }
  0x4c   :  { %25391 = vst [vmem:[#allocation52_spill] sm:$0xff] %v17692_v19  ;;  %25392 = vst [vmem:[#allocation53_spill] sm:$0xff] %v17707_v51  ;;  %14759 = vmatpush3.bf16.msra.mxu0 %v17677_v55  ;;  %v17723_v28 = vsub.f32 %v99_v41, %v1629_v17  ;;  %v17725_v32 = vsub.f32 %v100_v20, %v1632_v61  ;;  %v25395_v31 = vpack.c.bf16 %v17175_v27, %v17166_v24  ;;  %v88_v17 = vld [vmem:[%s24464_s1 + $0x158] sm:$0xff] }
  0x4d   :  { %25393 = vst [vmem:[#allocation54_spill] sm:$0xff] %v17721_v16  ;;  %1174 = vmatprep.mubr.f32.mxu1 %v17375_v29  ;;  %v17734_v14 = vpack.c.bf16 %v1584_v33, %v1581_v36  ;;  %v1638_v34 = vand.u32 4294901760, %v102_v54  ;;  %v1587_v55 = vand.u32 4294901760, %v85_v25  ;;  %v1590_v15 = vand.u32 4294901760, %v86_v21  ;;  %14761 = vmatprep.subr.bf16.mxu0 %v17692_v19  ;;  %v106_v29 = vld [vmem:[%s24464_s1 + $0x1e8] sm:$0xff]  ;;  %v108_v19 = vld [vmem:[%s24464_s1 + $0x1f8] sm:$0xff] }
  0x4e   :  { %25394 = vst [vmem:[#allocation55_spill] sm:$0xff] %v17725_v32  ;;  %14627 = vmatpush3.bf16.msra.mxu1 %v25395_v31  ;;  %v25397_v20 = vpack.c.bf16 %v17189_v38, %v17187_v37  ;;  %v17743_v61 = vsub.f32 %v83_v7, %v1581_v36  ;;  %v17745_v24 = vsub.f32 %v84_v18, %v1584_v33  ;;  %v1641_v27 = vand.u32 4294901760, %v103_v49  ;;  %v105_v31 = vld [vmem:[%s24464_s1 + $0x1e0] sm:$0xff]  ;;  %v90_v33 = vld [vmem:[%s24464_s1 + $0x168] sm:$0xff] }
  0x4f   :  { %25396 = vst [vmem:[#allocation56_spill] sm:$0xff] %v17734_v14  ;;  %v1644_v41 = vand.u32 4294901760, %v104_v26  ;;  %v89_v37 = vld [vmem:[%s24464_s1 + $0x160] sm:$0xff]  ;;  %v17756_v38 = vpack.c.bf16 %v1638_v34, %v1635_v10  ;;  %v17758_v7 = vsub.f32 %v101_v13, %v1635_v10  ;;  %v17760_v18 = vsub.f32 %v102_v54, %v1638_v34 }
  0x50   :  { %14629 = vmatprep.subr.bf16.mxu1 %v25397_v20  ;;  %25398 = vst [vmem:[#allocation57_spill] sm:$0xff] %v17743_v61  ;;  %25399 = vst [vmem:[#allocation58_spill] sm:$0xff] %v17745_v24  ;;  %v1593_v36 = vand.u32 4294901760, %v87_v43  ;;  %v107_v20 = vld [vmem:[%s24464_s1 + $0x1f0] sm:$0xff]  ;;  %14763 = vmatpush3.bf16.msra.mxu0 %v17707_v51  ;;  %v17772_v24 = vpack.c.bf16 %v1590_v15, %v1587_v55  ;;  %v17774_v13 = vsub.f32 %v85_v25, %v1587_v55 }
  0x51   :  { %25400 = vst [vmem:[#allocation59_spill] sm:$0xff] %v17756_v38  ;;  %25401 = vst [vmem:[#allocation60_spill] sm:$0xff] %v17758_v7  ;;  %v17776_v54 = vsub.f32 %v86_v21, %v1590_v15  ;;  %v17778_v10 = vpack.c.bf16 %v1644_v41, %v1641_v27  ;;  %v25405_v34 = vpack.c.bf16 %v17204_v45, %v17202_v44  ;;  %14765 = vmatprep.subr.bf16.mxu0 %v17721_v16  ;;  %v17030_v44 = vld [vmem:[%s24463_s0 + $0x4] ss:$48 sps:$4 sm:$0xff]  }
  0x52   :  { %25402 = vst [vmem:[#allocation61_spill] sm:$0xff] %v17760_v18  ;;  %25403 = vst [vmem:[#allocation62_spill] sm:$0xff] %v17772_v24  ;;  %v17784_v18 = vsub.f32 %v103_v49, %v1641_v27  ;;  %v1596_v7 = vand.u32 4294901760, %v88_v17  ;;  %v1647_v61 = vand.u32 4294901760, %v105_v31  ;;  %v1650_v32 = vand.u32 4294901760, %v106_v29 }
  0x53   :  { %25404 = vst [vmem:[#allocation63_spill] sm:$0xff] %v17778_v10  ;;  %14631 = vmatpush3.bf16.msra.mxu1 %v25405_v34  ;;  %v25406_v51 = vpack.c.bf16 %v17216_v50, %v17208_v47  ;;  %v1599_v25 = vand.u32 4294901760, %v89_v37  ;;  %v1602_v15 = vand.u32 4294901760, %v90_v33  ;;  %v1653_v55 = vand.u32 4294901760, %v107_v20  ;;  %v91_v47 = vld [vmem:[%s24464_s1 + $0x170] sm:$0xff] }
  0x54   :  { %v1656_v21 = vand.u32 4294901760, %v108_v19  ;;  %v17792_v45 = vsub.f32 %v104_v26, %v1644_v41  ;;  %v17794_v34 = vpack.c.bf16 %v1596_v7, %v1593_v36  ;;  %v17796_v49 = vsub.f32 %v87_v43, %v1593_v36  ;;  %v17031_v50 = vld [vmem:[%s24463_s0 + $0x64] ss:$48 sps:$4 sm:$0xff]   ;;  %14767 = vmatpush3.bf16.msra.mxu0 %v17734_v14 }
  0x55   :  { %14633 = vmatprep.subr.bf16.mxu1 %v25406_v51  ;;  %v17798_v27 = vsub.f32 %v88_v17, %v1596_v7  ;;  %v17807_v51 = vpack.c.bf16 %v1650_v32, %v1647_v61  ;;  %v17809_v26 = vsub.f32 %v105_v31, %v1647_v61  ;;  %v17811_v41 = vsub.f32 %v106_v29, %v1650_v32  ;;  %v92_v17 = vld [vmem:[%s24464_s1 + $0x178] sm:$0xff] }
  0x56   :  { %25407 = vst [vmem:[#allocation64_spill] sm:$0xff] %v17794_v34  ;;  %v17813_v43 = vpack.c.bf16 %v1602_v15, %v1599_v25  ;;  %v25410_v7 = vpack.c.bf16 %v17239_v63, %v17220_v52  ;;  %14769 = vmatprep.subr.bf16.mxu0 %v17756_v38  ;;  %v17822_v36 = vsub.f32 %v89_v37, %v1599_v25  ;;  %v1605_v32 = vand.u32 4294901760, %v91_v47 }
  0x57   :  { %25408 = vst [vmem:[#allocation65_spill] sm:$0xff] %v17807_v51  ;;  %v17824_v14 = vsub.f32 %v90_v33, %v1602_v15  ;;  %v17826_v61 = vpack.c.bf16 %v1656_v21, %v1653_v55  ;;  %v25412_v29 = vpack.c.bf16 %v17251_v6, %v17249_v5  ;;  %v24567_v31 = vand.u32 4294901760, %v17653_v23 }
  0x58   :  { %25409 = vst [vmem:[#allocation66_spill] sm:$0xff] %v17813_v43  ;;  %14635 = vmatpush3.bf16.msra.mxu1 %v25410_v7  ;;  %v24566_v16 = vand.u32 4294901760, %v17655_v39  ;;  %v477_v52 = vrot.slane %v17030_v44, %v17331_v3  ;;  %v1608_v63 = vand.u32 4294901760, %v92_v17  ;;  %v491_v7 = vrot.slane %v17031_v50, %v17331_v3  ;;  %14771 = vmatpush3.bf16.msra.mxu0 %v17772_v24 }
  0x59   :  { %25411 = vst [vmem:[#allocation67_spill] sm:$0xff] %v17826_v61  ;;  %14637 = vmatprep.subr.bf16.mxu1 %v25412_v29  ;;  %v24568_v37 = vand.u32 4294901760, %v17657_v4  ;;  %v24571_v33 = vand.u32 4294901760, %v17671_v46  ;;  %v17838_v25 = vsub.f32 %v107_v20, %v1653_v55  ;;  %v17840_v5 = vsub.f32 %v108_v19, %v1656_v21  ;;  %14773 = vmatprep.subr.bf16.mxu0 %v17778_v10 }
  0x5a   :  { %v1790_v6 = vsub.f32 %v17653_v23, %v24567_v31  ;;  %v1797_v15 = vsub.f32 %v17655_v39, %v24566_v16  ;;  %v25413_v44 = vpack.c.bf16 %v17257_v9, %v17255_v8  ;;  %v495_v50 = vcombine.high %v477_v52, %v491_v7 }
  0x5b   :  { %v1678_v19 = vsub.f32 %v17657_v4, %v24568_v37  ;;  %v1685_v20 = vsub.f32 %v17671_v46, %v24571_v33  ;;  %v25414_v21 = vpack.c.bf16 %v17263_v12, %v17261_v11  ;;  %v17862_v29 = vsub.f32 %v91_v47, %v1605_v32 }
  0x5c   :  { %14639 = vmatpush3.bf16.msra.mxu1 %v25413_v44  ;;  %v1791_v8 = vand.u32 4294901760, %v1790_v6  ;;  %v1798_v9 = vand.u32 4294901760, %v1797_v15  ;;  %v494_v44 = vcombine.low %v477_v52, %v491_v7  ;;  %v17864_v16 = vpack.c.bf16 %v1608_v63, %v1605_v32  ;;  %14775 = vmatpush3.bf16.msra.mxu0 %v17794_v34 }
  0x5d   :  { %14641 = vmatprep.subr.bf16.mxu1 %v25414_v21  ;;  %v17866_v31 = vand.u32 4294901760, %v495_v50  ;;  %v1679_v37 = vand.u32 4294901760, %v1678_v19  ;;  %v1686_v10 = vand.u32 4294901760, %v1685_v20  ;;  %v25419_v11 = vand.u32 4294901760, %v17673_v62  ;;  %14777 = vmatprep.subr.bf16.mxu0 %v17807_v51  ;;  %v25446_v51 = vld [vmem:[#allocation5_spill] sm:$0xff] }
  0x5e   :  { %25415 = vst [vmem:[#allocation68_spill] sm:$0xff] %v17864_v16  ;;  %v17869_v33 = vpack.c.bf16 %v1798_v9, %v1791_v8  ;;  %v17871_v55 = vand.u32 4294901760, %v494_v44  ;;  %v24579_v47 = vand.u32 4294901760, %v17675_v2  ;;  %v25420_v32 = vpack.c.bf16 %v17286_v35, %v17281_v30 }
  0x5f   :  { %25416 = vst [vmem:[#allocation69_spill] sm:$0xff] %v17866_v31  ;;  %v1804_v12 = vsub.f32 %v17673_v62, %v25419_v11  ;;  %v17882_v52 = vsub.f32 %v495_v50, %v17866_v31  ;;  %v17884_v7 = vpack.c.bf16 %v1686_v10, %v1679_v37  ;;  %v24578_v6 = vand.u32 4294901760, %v17688_v60 }
  0x60   :  { %25417 = vst [vmem:[#allocation70_spill] sm:$0xff] %v17869_v33  ;;  %25418 = vst [vmem:[#allocation71_spill] sm:$0xff] %v17871_v55  ;;  %14643 = vmatpush3.bf16.msra.mxu1 %v25420_v32  ;;  %v24577_v15 = vand.u32 4294901760, %v17690_v56  ;;  %v25423_v19 = vpack.c.bf16 %v17292_v42, %v17290_v40  ;;  %v17891_v20 = vsub.f32 %v92_v17, %v1608_v63  ;;  %14779 = vmatpush3.bf16.msra.mxu0 %v17813_v43  ;;  %v17034_v33 = vld [vmem:[%s24463_s0 + $0x68] ss:$48 sps:$4 sm:$0xff]  }
  0x61   :  { %25421 = vst [vmem:[#allocation72_spill] sm:$0xff] %v17882_v52  ;;  %25422 = vst [vmem:[#allocation73_spill] sm:$0xff] %v17884_v7  ;;  %v17894_v30 = vsub.f32 %v494_v44, %v17871_v55  ;;  %v1805_v35 = vand.u32 4294901760, %v1804_v12  ;;  %v1811_v50 = vsub.f32 %v17675_v2, %v24579_v47  ;;  %v24573_v10 = vand.u32 4294901760, %v17882_v52  ;;  %14781 = vmatprep.subr.bf16.mxu0 %v17826_v61  ;;  %v25445_v61 = vld [vmem:[#allocation61_spill] sm:$0xff] }
  0x62   :  { %14645 = vmatprep.subr.bf16.mxu1 %v25423_v19  ;;  %v14816_v37 = vpack.c.bf16 %v17655_v39, %v17653_v23  ;;  %v1692_v40 = vsub.f32 %v17688_v60, %v24578_v6  ;;  %v1699_v42 = vsub.f32 %v17690_v56, %v24577_v15  ;;  %v24574_v21 = vand.u32 4294901760, %v17694_v59  ;;  %v25433_v15 = vld [vmem:[#allocation22_spill] sm:$0xff] }
  0x63   :  { %25424 = vst [vmem:[#allocation74_spill] sm:$0xff] %v17894_v30  ;;  %v24572_v17 = vand.u32 4294901760, %v17894_v30  ;;  %v1812_v63 = vand.u32 4294901760, %v1811_v50  ;;  %v24575_v8 = vand.u32 4294901760, %v17705_v22  ;;  %v25425_v9 = vpack.c.bf16 %v17298_v53, %v17296_v48 }
  0x64   :  { %v1661_v44 = vsub.f32 %v17882_v52, %v24573_v10  ;;  %v1693_v11 = vand.u32 4294901760, %v1692_v40  ;;  %v1700_v12 = vand.u32 4294901760, %v1699_v42  ;;  %v24576_v32 = vand.u32 4294901760, %v17709_v57  ;;  %14783 = vmatpush3.bf16.msra.mxu0 %v17864_v16  ;;  %v25429_v10 = vld [vmem:[#allocation20_spill] sm:$0xff]  ;;  %v25442_v16 = vld [vmem:[#allocation26_spill] sm:$0xff] }
  0x65   :  { %14647 = vmatpush3.bf16.msra.mxu1 %v25425_v9  ;;  %v25426_v19 = vpack.c.bf16 %v17310_v1, %v17303_v58  ;;  %v1667_v50 = vsub.f32 %v17894_v30, %v24572_v17  ;;  %v17926_v48 = vpack.c.bf16 %v1812_v63, %v1805_v35  ;;  %v1818_v53 = vsub.f32 %v17694_v59, %v24574_v21  ;;  %v25430_v21 = vld [vmem:[#allocation19_spill] sm:$0xff] }
  0x66   :  { %v1825_v40 = vsub.f32 %v17705_v22, %v24575_v8  ;;  %v1662_v42 = vand.u32 4294901760, %v1661_v44  ;;  %v17934_v9 = vpack.c.bf16 %v1700_v12, %v1693_v11  ;;  %v1706_v58 = vsub.f32 %v17709_v57, %v24576_v32  ;;  %v25432_v32 = vld [vmem:[#allocation23_spill] sm:$0xff]  ;;  %14817 = vmatprep.subr.bf16.mxu0 %v14816_v37 }
  0x67   :  { %14649 = vmatprep.subr.bf16.mxu1 %v25426_v19  ;;  %25427 = vst [vmem:[#allocation75_spill] sm:$0xff] %v17926_v48  ;;  %v24580_v1 = vand.u32 4294901760, %v17711_v0  ;;  %v1668_v35 = vand.u32 4294901760, %v1667_v50  ;;  %v14818_v63 = vpack.c.bf16 %v17671_v46, %v17657_v4  ;;  %v1819_v19 = vand.u32 4294901760, %v1818_v53 }
  0x68   :  { %25428 = vst [vmem:[#allocation76_spill] sm:$0xff] %v17934_v9  ;;  %v1826_v17 = vand.u32 4294901760, %v1825_v40  ;;  %v25431_v8 = vpack.c.bf16 %v25429_v10, %v25430_v21  ;;  %1663 = vmatprep.mubr.f32.mxu0 %v1662_v42  ;;  %v14820_v44 = vpack.c.bf16 %v17675_v2, %v17673_v62  ;;  %v1707_v11 = vand.u32 4294901760, %v1706_v58  ;;  %v25436_v10 = vld [vmem:[#allocation55_spill] sm:$0xff]  ;;  %v25438_v42 = vld [vmem:[#allocation58_spill] sm:$0xff] }
  0x69   :  { %v1713_v12 = vsub.f32 %v17711_v0, %v24580_v1  ;;  %v25434_v6 = vpack.c.bf16 %v25432_v32, %v25433_v15  ;;  %v24583_v21 = vand.u32 4294901760, %v25436_v10  ;;  %v24593_v47 = vand.u32 4294901760, %v25438_v42  ;;  %1669 = vmatmul.mubr.f32.vlgmr.msra.gmra.mrb[0].mxu0 %v1668_v35  ;;  %v25440_v35 = vld [vmem:[#allocation60_spill] sm:$0xff] }
  0x6a   :  { %14651 = vmatpush3.bf16.msra.mxu1 %v25431_v8  ;;  %v17955_v53 = vpack.c.bf16 %v1826_v17, %v1819_v19  ;;  %v25437_v8 = vld [vmem:[#allocation57_spill] sm:$0xff]  ;;  %v14822_v58 = vpack.c.bf16 %v17690_v56, %v17688_v60  ;;  %v14824_v50 = vpack.c.bf16 %v17705_v22, %v17694_v59  ;;  %v25439_v15 = vand.u32 4294901760, %v17723_v28  ;;  %14819 = vmatpush3.bf16.msra.mxu0 %v14818_v63 }
  0x6b   :  { %14653 = vmatprep.subr.bf16.mxu1 %v25434_v6  ;;  %v24588_v40 = vand.u32 4294901760, %v25437_v8  ;;  %v1714_v1 = vand.u32 4294901760, %v1713_v12  ;;  %v1839_v37 = vsub.f32 %v25436_v10, %v24583_v21  ;;  %v1727_v32 = vsub.f32 %v25438_v42, %v24593_v47  ;;  %2036 = vmatprep.mubr.f32.mxu0 %v17882_v52  ;;  %v25441_v12 = vld [vmem:[#allocation27_spill] sm:$0xff] }
  0x6c   :  { %25435 = vst [vmem:[#allocation20_spill] sm:$0xff] %v17955_v53  ;;  %v1832_v6 = vsub.f32 %v17723_v28, %v25439_v15  ;;  %v24599_v19 = vand.u32 4294901760, %v25440_v35  ;;  %v25443_v15 = vpack.c.bf16 %v25441_v12, %v25442_v16  ;;  %14821 = vmatprep.subr.bf16.mxu0 %v14820_v44  ;;  %v24598_v43 = vand.u32 4294901760, %v25445_v61 }
  0x6d   :  { %v1720_v17 = vsub.f32 %v25437_v8, %v24588_v40  ;;  %v17981_v63 = vpack.c.bf16 %v1714_v1, %v1707_v11  ;;  %v24601_v40 = vand.u32 4294901760, %v17774_v13  ;;  %v1840_v34 = vand.u32 4294901760, %v1839_v37 }
  0x6e   :  { %14655 = vmatpush3.bf16.msra.mxu1 %v25443_v15  ;;  %v1833_v21 = vand.u32 4294901760, %v1832_v6  ;;  %v1728_v24 = vand.u32 4294901760, %v1727_v32  ;;  %v1846_v38 = vsub.f32 %v25440_v35, %v24599_v19  ;;  %v14826_v16 = vpack.c.bf16 %v17711_v0, %v17709_v57  ;;  %v25447_v6 = vld [vmem:[#allocation31_spill] sm:$0xff]  ;;  %14823 = vmatpush3.bf16.msra.mxu0 %v14822_v58  ;;  %v25450_v15 = vld [vmem:[#allocation6_spill] sm:$0xff] }
  0x6f   :  { %25444 = vst [vmem:[#allocation19_spill] sm:$0xff] %v17981_v63  ;;  %14657 = vmatprep.subr.bf16.mxu1 %v25446_v51  ;;  %v1721_v47 = vand.u32 4294901760, %v1720_v17  ;;  %v1853_v1 = vsub.f32 %v25445_v61, %v24598_v43  ;;  %v1734_v44 = vsub.f32 %v17774_v13, %v24601_v40  ;;  %v24602_v11 = vand.u32 4294901760, %v17776_v54  ;;  %v25451_v43 = vld [vmem:[#allocation30_spill] sm:$0xff]  ;;  %14825 = vmatprep.subr.bf16.mxu0 %v14824_v50 }
  0x70   :  { %v17999_v37 = vpack.c.bf16 %v1840_v34, %v1833_v21  ;;  %v14828_v32 = vpack.c.bf16 %v25436_v10, %v17723_v28  ;;  %v1847_v12 = vand.u32 4294901760, %v1846_v38  ;;  %v25452_v19 = vand.u32 4294901760, %v25451_v43  ;;  %v25453_v21 = vld [vmem:[#allocation7_spill] sm:$0xff] }
  0x71   :  { %1177 = vmatmul.mubr.f32.vlgmr.msra.gmra.mrb[4].mxu1 %v25447_v6  ;;  %v18001_v17 = vpack.c.bf16 %v1728_v24, %v1721_v47  ;;  %v1854_v52 = vand.u32 4294901760, %v1853_v1  ;;  %v1735_v40 = vand.u32 4294901760, %v1734_v44  ;;  %v1741_v63 = vsub.f32 %v17776_v54, %v24602_v11 }
  0x72   :  { %25448 = vst [vmem:[#allocation23_spill] sm:$0xff] %v17999_v37  ;;  %14659 = vmatpush3.bf16.msra.mxu1 %v25450_v15  ;;  %1281 = vmatprep.mubr.f32.mxu1 %v25452_v19  ;;  %v24603_v34 = vand.u32 4294901760, %v17784_v18  ;;  %v14830_v24 = vpack.c.bf16 %v25438_v42, %v25437_v8  ;;  %v24604_v38 = vand.u32 4294901760, %v17792_v45  ;;  %v24605_v47 = vand.u32 4294901760, %v17796_v49 }
  0x73   :  { %25449 = vst [vmem:[#allocation22_spill] sm:$0xff] %v18001_v17  ;;  %14661 = vmatprep.subr.bf16.mxu1 %v25453_v21  ;;  %v24606_v43 = vand.u32 4294901760, %v17798_v27  ;;  %v18018_v58 = vpack.c.bf16 %v1854_v52, %v1847_v12  ;;  %v1742_v19 = vand.u32 4294901760, %v1741_v63  ;;  %v14832_v1 = vpack.c.bf16 %v25445_v61, %v25440_v35  ;;  %14827 = vmatpush3.bf16.msra.mxu0 %v14826_v16  ;;  %v25455_v12 = vld [vmem:[#allocation8_spill] sm:$0xff]  ;;  %v25457_v17 = vld [vmem:[#allocation9_spill] sm:$0xff] }
  0x74   :  { %v1860_v44 = vsub.f32 %v17784_v18, %v24603_v34  ;;  %v1867_v50 = vsub.f32 %v17792_v45, %v24604_v38  ;;  %v1748_v11 = vsub.f32 %v17796_v49, %v24605_v47  ;;  %v24607_v63 = vand.u32 4294901760, %v17809_v26  ;;  %14829 = vmatprep.subr.bf16.mxu0 %v14828_v32 }
  0x75   :  { %25454 = vst [vmem:[#allocation55_spill] sm:$0xff] %v18018_v58  ;;  %v1755_v52 = vsub.f32 %v17798_v27, %v24606_v43  ;;  %v18036_v58 = vpack.c.bf16 %v1742_v19, %v1735_v40  ;;  %v24608_v34 = vand.u32 4294901760, %v17811_v41  ;;  %v24609_v38 = vand.u32 4294901760, %v17822_v36 }
  0x76   :  { %14663 = vmatpush3.bf16.msra.mxu1 %v25455_v12  ;;  %v1861_v16 = vand.u32 4294901760, %v1860_v44  ;;  %v1868_v37 = vand.u32 4294901760, %v1867_v50  ;;  %v1749_v47 = vand.u32 4294901760, %v1748_v11  ;;  %v1874_v43 = vsub.f32 %v17809_v26, %v24607_v63  ;;  %v25460_v63 = vld [vmem:[#allocation10_spill] sm:$0xff] }
  0x77   :  { %25456 = vst [vmem:[#allocation57_spill] sm:$0xff] %v18036_v58  ;;  %14665 = vmatprep.subr.bf16.mxu1 %v25457_v17  ;;  %v1756_v53 = vand.u32 4294901760, %v1755_v52  ;;  %v14834_v9 = vpack.c.bf16 %v17776_v54, %v17774_v13  ;;  %v1881_v40 = vsub.f32 %v17811_v41, %v24608_v34  ;;  %v1762_v32 = vsub.f32 %v17822_v36, %v24609_v38 }
  0x78   :  { %v24610_v19 = vand.u32 4294901760, %v17824_v14  ;;  %14831 = vmatpush3.bf16.msra.mxu0 %v14830_v24  ;;  %v18053_v11 = vpack.c.bf16 %v1868_v37, %v1861_v16  ;;  %v14836_v50 = vpack.c.bf16 %v17792_v45, %v17784_v18  ;;  %v1875_v52 = vand.u32 4294901760, %v1874_v43  ;;  %v25461_v24 = vld [vmem:[#allocation11_spill] sm:$0xff] }
  0x79   :  { %v18055_v44 = vpack.c.bf16 %v1756_v53, %v1749_v47  ;;  %14833 = vmatprep.subr.bf16.mxu0 %v14832_v1  ;;  %v1882_v58 = vand.u32 4294901760, %v1881_v40  ;;  %v1763_v34 = vand.u32 4294901760, %v1762_v32  ;;  %v24611_v48 = vand.u32 4294901760, %v17838_v25 }
  0x7a   :  { %25458 = vst [vmem:[#allocation58_spill] sm:$0xff] %v18053_v11  ;;  %14667 = vmatpush3.bf16.msra.mxu1 %v25460_v63  ;;  %v1769_v38 = vsub.f32 %v17824_v14, %v24610_v19  ;;  %v24612_v53 = vand.u32 4294901760, %v17840_v5  ;;  %v24613_v37 = vand.u32 4294901760, %v17862_v29  ;;  %v24614_v47 = vand.u32 4294901760, %v17891_v20 }
  0x7b   :  { %25459 = vst [vmem:[#allocation60_spill] sm:$0xff] %v18055_v44  ;;  %14669 = vmatprep.subr.bf16.mxu1 %v25461_v24  ;;  %v18068_v43 = vpack.c.bf16 %v1882_v58, %v1875_v52  ;;  %v1888_v1 = vsub.f32 %v17838_v25, %v24611_v48  ;;  %v14838_v40 = vpack.c.bf16 %v17798_v27, %v17796_v49  ;;  %v25463_v58 = vld [vmem:[#allocation12_spill] sm:$0xff] }
  0x7c   :  { %v1770_v16 = vand.u32 4294901760, %v1769_v38  ;;  %14835 = vmatpush3.bf16.msra.mxu0 %v14834_v9  ;;  %v1895_v32 = vsub.f32 %v17840_v5, %v24612_v53  ;;  %v1776_v19 = vsub.f32 %v17862_v29, %v24613_v37  ;;  %v1783_v38 = vsub.f32 %v17891_v20, %v24614_v47  ;;  %v25530_v24 = vld [vmem:[#allocation44_spill] sm:$0xff] }
  0x7d   :  { %25462 = vst [vmem:[#allocation27_spill] sm:$0xff] %v18068_v43  ;;  %14837 = vmatprep.subr.bf16.mxu0 %v14836_v50  ;;  %v14840_v9 = vpack.c.bf16 %v17811_v41, %v17809_v26  ;;  %v1889_v48 = vand.u32 4294901760, %v1888_v1  ;;  %v25465_v43 = vld [vmem:[#allocation13_spill] sm:$0xff]  ;;  %v14842_v37 = vpack.c.bf16 %v17824_v14, %v17822_v36  ;;  %v25468_v50 = vld [vmem:[#allocation14_spill] sm:$0xff]  ;;  %v25470_v1 = vld [vmem:[#allocation16_spill] sm:$0xff] }
  0x7e   :  { %14671 = vmatpush3.bf16.msra.mxu1 %v25463_v58  ;;  %v18085_v52 = vpack.c.bf16 %v1770_v16, %v1763_v34  ;;  %v1896_v53 = vand.u32 4294901760, %v1895_v32  ;;  %v1777_v44 = vand.u32 4294901760, %v1776_v19  ;;  %v1784_v11 = vand.u32 4294901760, %v1783_v38  ;;  %v25469_v16 = vld [vmem:[#allocation15_spill] sm:$0xff] }
  0x7f   :  { %14673 = vmatprep.subr.bf16.mxu1 %v25465_v43  ;;  %v14844_v34 = vpack.c.bf16 %v17840_v5, %v17838_v25  ;;  %v14846_v19 = vpack.c.bf16 %v17891_v20, %v17862_v29  ;;  %v25475_v32 = vand.u32 4294901760, %v17671_v46  ;;  %v25482_v46 = vld [vmem:[#allocation24_spill] sm:$0xff] }
  0x80   :  { %25464 = vst [vmem:[#allocation26_spill] sm:$0xff] %v18085_v52  ;;  %14839 = vmatpush3.bf16.msra.mxu0 %v14838_v40  ;;  %v18092_v7 = vpack.c.bf16 %v1896_v53, %v1889_v48  ;;  %v18094_v47 = vpack.c.bf16 %v1784_v11, %v1777_v44  ;;  %v25471_v48 = vand.u32 4294901760, %v17653_v23  ;;  %v25472_v11 = vand.u32 4294901760, %v17655_v39  ;;  %v25473_v53 = vld [vmem:[#allocation17_spill] sm:$0xff]  ;;  %v119_v52 = vld [vmem:[%s24464_s1 + $0x250] sm:$0xff] }
  0x81   :  { %14841 = vmatprep.subr.bf16.mxu0 %v14840_v9  ;;  %v25474_v40 = vand.u32 4294901760, %v17657_v4  ;;  %v25477_v9 = vand.u32 4294901760, %v17673_v62  ;;  %v25479_v23 = vld [vmem:[#allocation21_spill] sm:$0xff]  ;;  %v25480_v39 = vand.u32 4294901760, %v17688_v60  ;;  %v25481_v4 = vand.u32 4294901760, %v17690_v56 }
  0x82   :  { %25466 = vst [vmem:[#allocation61_spill] sm:$0xff] %v18092_v7  ;;  %25467 = vst [vmem:[#allocation5_spill] sm:$0xff] %v18094_v47  ;;  %14675 = vmatpush3.bf16.msra.mxu1 %v25468_v50  ;;  %v14880_v44 = vpack.c.bf16 %v25472_v11, %v25471_v48  ;;  %v25483_v48 = vld [vmem:[#allocation32_spill] sm:$0xff]  ;;  %v25484_v62 = vand.u32 4294901760, %v17694_v59  ;;  %v25487_v60 = vand.u32 4294901760, %v17709_v57  ;;  %v25488_v56 = vand.u32 4294901760, %v17711_v0 }
  0x83   :  { %14677 = vmatprep.subr.bf16.mxu1 %v25469_v16  ;;  %v14882_v38 = vpack.c.bf16 %v25475_v32, %v25474_v40  ;;  %v25489_v32 = vld [vmem:[#allocation33_spill] sm:$0xff]  ;;  %v25492_v59 = vand.u32 4294901760, %v25436_v10  ;;  %v25495_v57 = vand.u32 4294901760, %v25438_v42  ;;  %v125_v0 = vld [vmem:[%s24464_s1 + $0x280] sm:$0xff]  ;;  %v25497_v10 = vand.u32 4294901760, %v25440_v35  ;;  %v25528_v16 = vld [vmem:[#allocation43_spill] sm:$0xff] }
  0x84   :  { %14843 = vmatpush3.bf16.msra.mxu0 %v14842_v37  ;;  %v25476_v37 = vld [vmem:[#allocation18_spill] sm:$0xff]  ;;  %v14890_v40 = vpack.c.bf16 %v25488_v56, %v25487_v60  ;;  %v109_v42 = vld [vmem:[%s24464_s1 + $0x200] sm:$0xff]  ;;  %v25500_v35 = vand.u32 4294901760, %v17774_v13  ;;  %v25502_v56 = vand.u32 4294901760, %v17784_v18  ;;  %v25505_v13 = vand.u32 4294901760, %v17796_v49 }
  0x85   :  { %14845 = vmatprep.subr.bf16.mxu0 %v14844_v34  ;;  %v25478_v34 = vand.u32 4294901760, %v17675_v2  ;;  %v25485_v2 = vand.u32 4294901760, %v17705_v22  ;;  %v25493_v22 = vld [vmem:[#allocation34_spill] sm:$0xff]  ;;  %v25507_v18 = vand.u32 4294901760, %v17809_v26  ;;  %v25510_v49 = vand.u32 4294901760, %v17822_v36  ;;  %v114_v36 = vld [vmem:[%s24464_s1 + $0x228] sm:$0xff] }
  0x86   :  { %14679 = vmatpush3.bf16.msra.mxu1 %v25470_v1  ;;  %v520_v1 = vrot.slane %v17034_v33, %v17331_v3  ;;  %v137_v33 = vld [vmem:[%s24464_s1 + $0x2e0] sm:$0xff] }
  0x87   :  { %14681 = vmatprep.subr.bf16.mxu1 %v25473_v53  ;;  %v14884_v47 = vpack.c.bf16 %v25478_v34, %v25477_v9  ;;  %v14888_v11 = vpack.c.bf16 %v25485_v2, %v25484_v62  ;;  %v2473_v62 = vand.u32 4294901760, %v125_v0 }
  0x88   :  { %14847 = vmatpush3.bf16.msra.mxu0 %v14846_v19  ;;  %v14886_v19 = vpack.c.bf16 %v25481_v4, %v25480_v39  ;;  %v25496_v39 = vld [vmem:[#allocation35_spill] sm:$0xff]  ;;  %v25498_v4 = vand.u32 4294901760, %v25445_v61 }
  0x89   :  { %14881 = vmatprep.subr.bf16.mxu0 %v14880_v44  ;;  %v25486_v44 = vand.u32 4294901760, %v25447_v6  ;;  %v25494_v6 = vand.u32 4294901760, %v25437_v8  ;;  %v25499_v8 = vld [vmem:[#allocation36_spill] sm:$0xff]  ;;  %v128_v61 = vld [vmem:[%s24464_s1 + $0x298] sm:$0xff] }
  0x8a   :  { %14683 = vmatpush3.bf16.msra.mxu1 %v25476_v37 }
  0x8b   :  { %14685 = vmatprep.subr.bf16.mxu1 %v25479_v23  ;;  %2039 = vmatmul.mubr.f32.vlgmr.msra.gmra.mrb[2].mxu0 %v17894_v30  ;;  %v14894_v34 = vpack.c.bf16 %v25495_v57, %v25494_v6  ;;  %v2425_v57 = vand.u32 4294901760, %v109_v42  ;;  %v2455_v23 = vand.u32 4294901760, %v119_v52 }
  0x8c   :  { %14883 = vmatpush3.bf16.msra.mxu0 %v14882_v38  ;;  %2313 = vmatprep.mubr.f32.mxu0 %v17866_v31  ;;  %v25490_v38 = vld [vmem:[#allocation28_spill] sm:$0xff]  ;;  %v120_v31 = vld [vmem:[%s24464_s1 + $0x258] sm:$0xff] }
  0x8d   :  { %14885 = vmatprep.subr.bf16.mxu0 %v14884_v47  ;;  %v25491_v47 = vand.u32 4294901760, %v17723_v28  ;;  %v126_v28 = vld [vmem:[%s24464_s1 + $0x288] sm:$0xff]  ;;  %v2458_v37 = vand.u32 4294901760, %v120_v31 }
  0x8e   :  { %14687 = vmatpush3.bf16.msra.mxu1 %v25482_v46  ;;  %v2476_v2 = vand.u32 4294901760, %v126_v28 }
  0x8f   :  { %14689 = vmatprep.subr.bf16.mxu1 %v25483_v48  ;;  %v14892_v9 = vpack.c.bf16 %v25492_v59, %v25491_v47  ;;  %v110_v48 = vld [vmem:[%s24464_s1 + $0x208] sm:$0xff]  ;;  %v111_v47 = vld [vmem:[%s24464_s1 + $0x210] sm:$0xff]  ;;  %v112_v59 = vld [vmem:[%s24464_s1 + $0x218] sm:$0xff] }
  0x90   :  { %14887 = vmatpush3.bf16.msra.mxu0 %v14886_v19  ;;  %v14896_v19 = vpack.c.bf16 %v25498_v4, %v25497_v10  ;;  %v130_v10 = vld [vmem:[%s24464_s1 + $0x2a8] sm:$0xff]  ;;  %v25509_v4 = vld [vmem:[#allocation38_spill] sm:$0xff] }
  0x91   :  { %1285 = vmatmul.mubr.f32.vlgmr.msra.gmra.mrb[6].mxu1 %v25486_v44  ;;  %14889 = vmatprep.subr.bf16.mxu0 %v14888_v11  ;;  %v127_v11 = vld [vmem:[%s24464_s1 + $0x290] sm:$0xff]  ;;  %v25501_v44 = vand.u32 4294901760, %v17776_v54  ;;  %v25506_v54 = vand.u32 4294901760, %v17798_v27  ;;  %v25511_v27 = vand.u32 4294901760, %v17824_v14  ;;  %v25514_v14 = vand.u32 4294901760, %v17862_v29 }
  0x92   :  { %14691 = vmatpush3.bf16.msra.mxu1 %v25489_v32  ;;  %1451 = vmatprep.mubr.f32.mxu1 %v25490_v38  ;;  %v18235_v29 = vsub.f32 %v126_v28, %v2476_v2 }
  0x93   :  { %14693 = vmatprep.subr.bf16.mxu1 %v25493_v22  ;;  %v14898_v60 = vpack.c.bf16 %v25501_v44, %v25500_v35  ;;  %v14902_v22 = vpack.c.bf16 %v25506_v54, %v25505_v13  ;;  %v18205_v26 = vpack.c.bf16 %v25511_v27, %v25510_v49  ;;  %v2479_v35 = vand.u32 4294901760, %v127_v11  ;;  %v131_v54 = vld [vmem:[%s24464_s1 + $0x2b0] sm:$0xff]  ;;  %v25517_v49 = vld [vmem:[#allocation39_spill] sm:$0xff] }
  0x94   :  { %14891 = vmatpush3.bf16.msra.mxu0 %v14890_v40  ;;  %v25503_v40 = vand.u32 4294901760, %v17792_v45  ;;  %v25508_v45 = vand.u32 4294901760, %v17811_v41  ;;  %v25512_v41 = vand.u32 4294901760, %v17838_v25  ;;  %v2482_v44 = vand.u32 4294901760, %v128_v61 }
  0x95   :  { %14893 = vmatprep.subr.bf16.mxu0 %v14892_v9  ;;  %v25504_v9 = vld [vmem:[#allocation37_spill] sm:$0xff]  ;;  %v18225_v25 = vpack.c.bf16 %v2476_v2, %v2473_v62  ;;  %v2434_v13 = vand.u32 4294901760, %v112_v59  ;;  %v116_v2 = vld [vmem:[%s24464_s1 + $0x238] sm:$0xff] }
  0x96   :  { %14695 = vmatpush3.bf16.msra.mxu1 %v25496_v39  ;;  %v14900_v32 = vpack.c.bf16 %v25503_v40, %v25502_v56  ;;  %v14904_v6 = vpack.c.bf16 %v25508_v45, %v25507_v18  ;;  %v129_v39 = vld [vmem:[%s24464_s1 + $0x2a0] sm:$0xff]  ;;  %v25515_v40 = vand.u32 4294901760, %v17891_v20  ;;  %v132_v18 = vld [vmem:[%s24464_s1 + $0x2b8] sm:$0xff]  ;;  %v18233_v45 = vsub.f32 %v125_v0, %v2473_v62  ;;  %v115_v62 = vld [vmem:[%s24464_s1 + $0x230] sm:$0xff] }
  0x97   :  { %14697 = vmatprep.subr.bf16.mxu1 %v25499_v8  ;;  %v113_v56 = vld [vmem:[%s24464_s1 + $0x220] sm:$0xff]  ;;  %25516 = vst [vmem:[#allocation31_spill] sm:$0xff] %v18225_v25  ;;  %v2485_v20 = vand.u32 4294901760, %v129_v39  ;;  %v2491_v0 = vand.u32 4294901760, %v131_v54  ;;  %v2494_v28 = vand.u32 4294901760, %v132_v18 }
  0x98   :  { %14895 = vmatpush3.bf16.msra.mxu0 %v14894_v34  ;;  %v2428_v34 = vand.u32 4294901760, %v110_v48 }
  0x99   :  { %14897 = vmatprep.subr.bf16.mxu0 %v14896_v19  ;;  %v25513_v19 = vand.u32 4294901760, %v17840_v5  ;;  %v2431_v5 = vand.u32 4294901760, %v111_v47  ;;  %v18314_v50 = vsub.f32 %v131_v54, %v2491_v0  ;;  %v18316_v43 = vsub.f32 %v132_v18, %v2494_v28 }
  0x9a   :  { %14699 = vmatpush3.bf16.msra.mxu1 %v25504_v9  ;;  %v18223_v9 = vpack.c.bf16 %v25515_v40, %v25514_v14  ;;  %v18238_v27 = vpack.c.bf16 %v2428_v34, %v2425_v57  ;;  %v2440_v14 = vand.u32 4294901760, %v114_v36  ;;  %v25519_v40 = vld [vmem:[#allocation40_spill] sm:$0xff]  ;;  %v18243_v30 = vsub.f32 %v110_v48, %v2428_v34 }
  0x9b   :  { %14701 = vmatprep.subr.bf16.mxu1 %v25509_v4  ;;  %v18211_v8 = vpack.c.bf16 %v25513_v19, %v25512_v41  ;;  %v2488_v4 = vand.u32 4294901760, %v130_v10  ;;  %v18240_v41 = vsub.f32 %v109_v42, %v2425_v57  ;;  %v2437_v19 = vand.u32 4294901760, %v113_v56  ;;  %v133_v34 = vld [vmem:[%s24464_s1 + $0x2c0] sm:$0xff] }
  0x9c   :  { %14899 = vmatpush3.bf16.msra.mxu0 %v14898_v60  ;;  %25518 = vst [vmem:[#allocation6_spill] sm:$0xff] %v18238_v27  ;;  %v18245_v60 = vpack.c.bf16 %v2482_v44, %v2479_v35  ;;  %v18253_v42 = vsub.f32 %v127_v11, %v2479_v35  ;;  %v18257_v57 = vpack.c.bf16 %v2434_v13, %v2431_v5  ;;  %v118_v35 = vld [vmem:[%s24464_s1 + $0x248] sm:$0xff] }
  0x9d   :  { %14901 = vmatprep.subr.bf16.mxu0 %v14900_v32  ;;  %v18255_v32 = vsub.f32 %v128_v61, %v2482_v44  ;;  %v18259_v48 = vsub.f32 %v111_v47, %v2431_v5  ;;  %v18269_v7 = vpack.c.bf16 %v2488_v4, %v2485_v20  ;;  %v18271_v11 = vsub.f32 %v129_v39, %v2485_v20  ;;  %v117_v47 = vld [vmem:[%s24464_s1 + $0x240] sm:$0xff]  ;;  %v25523_v44 = vld [vmem:[#allocation41_spill] sm:$0xff] }
  0x9e   :  { %14703 = vmatpush3.bf16.msra.mxu1 %v25517_v49  ;;  %25520 = vst [vmem:[#allocation30_spill] sm:$0xff] %v18245_v60  ;;  %25521 = vst [vmem:[#allocation7_spill] sm:$0xff] %v18257_v57  ;;  %v134_v49 = vld [vmem:[%s24464_s1 + $0x2c8] sm:$0xff]  ;;  %v18273_v61 = vsub.f32 %v130_v10, %v2488_v4  ;;  %v2443_v5 = vand.u32 4294901760, %v115_v62  ;;  %v2446_v39 = vand.u32 4294901760, %v116_v2  ;;  %v135_v10 = vld [vmem:[%s24464_s1 + $0x2d0] sm:$0xff] }
  0x9f   :  { %14705 = vmatprep.subr.bf16.mxu1 %v25519_v40  ;;  %v18267_v40 = vsub.f32 %v112_v59, %v2434_v13  ;;  %25522 = vst [vmem:[#allocation8_spill] sm:$0xff] %v18269_v7  ;;  %v18284_v59 = vsub.f32 %v113_v56, %v2437_v19  ;;  %v136_v13 = vld [vmem:[%s24464_s1 + $0x2d8] sm:$0xff]  ;;  %v25525_v4 = vld [vmem:[#allocation42_spill] sm:$0xff]  ;;  %v18298_v56 = vpack.c.bf16 %v2494_v28, %v2491_v0  ;;  %v2449_v46 = vand.u32 4294901760, %v117_v47  ;;  %v121_v28 = vld [vmem:[%s24464_s1 + $0x260] sm:$0xff] }
  0xa0   :  { %14903 = vmatpush3.bf16.msra.mxu0 %v14902_v22  ;;  %v18282_v22 = vpack.c.bf16 %v2440_v14, %v2437_v19  ;;  %v17032_v20 = vld [vmem:[%s24463_s0 + $0x8] ss:$48 sps:$4 sm:$0xff]   ;;  %v2497_v19 = vand.u32 4294901760, %v133_v34  ;;  %v18318_v58 = vpack.c.bf16 %v2446_v39, %v2443_v5  ;;  %v18321_v63 = vsub.f32 %v115_v62, %v2443_v5 }
  0xa1   :  { %14905 = vmatprep.subr.bf16.mxu0 %v14904_v6  ;;  %v18296_v6 = vsub.f32 %v114_v36, %v2440_v14  ;;  %25527 = vst [vmem:[#allocation33_spill] sm:$0xff] %v18298_v56  ;;  %v2503_v36 = vand.u32 4294901760, %v135_v10  ;;  %v2506_v14 = vand.u32 4294901760, %v136_v13  ;;  %v506_v53 = vrot.slane %v17032_v20, %v17331_v3  ;;  %v122_v62 = vld [vmem:[%s24464_s1 + $0x268] sm:$0xff]  ;;  %v139_v20 = vld [vmem:[%s24464_s1 + $0x2f0] sm:$0xff] }
  0xa2   :  { %14707 = vmatpush3.bf16.msra.mxu1 %v25523_v44  ;;  %25524 = vst [vmem:[#allocation9_spill] sm:$0xff] %v18282_v22  ;;  %v2500_v44 = vand.u32 4294901760, %v134_v49  ;;  %25529 = vst [vmem:[#allocation28_spill] sm:$0xff] %v18318_v58  ;;  %v18333_v54 = vsub.f32 %v133_v34, %v2497_v19  ;;  %v18339_v0 = vsub.f32 %v117_v47, %v2449_v46  ;;  %v2509_v47 = vand.u32 4294901760, %v137_v33 }
  0xa3   :  { %14709 = vmatprep.subr.bf16.mxu1 %v25525_v4  ;;  %25526 = vst [vmem:[#allocation32_spill] sm:$0xff] %v18296_v6  ;;  %v2452_v4 = vand.u32 4294901760, %v118_v35  ;;  %v18350_v34 = vpack.c.bf16 %v2506_v14, %v2503_v36  ;;  %v18363_v3 = vcombine.low %v506_v53, %v520_v1  ;;  %v18366_v5 = vsub.f32 %v136_v13, %v2506_v14  ;;  %v25541_v13 = vld [vmem:[#allocation47_spill] sm:$0xff] }
  0xa4   :  { %14907 = vmatpush3.bf16.msra.mxu0 %v18205_v26  ;;  %v18323_v26 = vsub.f32 %v116_v2, %v2446_v39  ;;  %v18325_v6 = vpack.c.bf16 %v2500_v44, %v2497_v19  ;;  %v18335_v18 = vsub.f32 %v134_v49, %v2500_v44  ;;  %v18352_v49 = vpack.c.bf16 %v2458_v37, %v2455_v23  ;;  %v25537_v44 = vld [vmem:[#allocation46_spill] sm:$0xff] }
  0xa5   :  { %14909 = vmatprep.subr.bf16.mxu0 %v18211_v8  ;;  %v529_v8 = vcombine.high %v506_v53, %v520_v1  ;;  %v18348_v2 = vsub.f32 %v118_v35, %v2452_v4  ;;  %25533 = vst [vmem:[#allocation36_spill] sm:$0xff] %v18350_v34  ;;  %v2461_v35 = vand.u32 4294901760, %v121_v28  ;;  %v140_v1 = vld [vmem:[%s24464_s1 + $0x2f8] sm:$0xff]  ;;  %v25539_v53 = vand.u32 4294901760, %v18235_v29 }
  0xa6   :  { %14711 = vmatpush3.bf16.msra.mxu1 %v25528_v16  ;;  %25531 = vst [vmem:[#allocation34_spill] sm:$0xff] %v18325_v6  ;;  %v138_v16 = vld [vmem:[%s24464_s1 + $0x2e8] sm:$0xff]  ;;  %25534 = vst [vmem:[#allocation37_spill] sm:$0xff] %v18352_v49  ;;  %v18394_v14 = vsub.f32 %v137_v33, %v2509_v47  ;;  %v18409_v33 = vld [vmem:[%s24464_s1 + $0x278] sm:$0xff] }
  0xa7   :  { %14713 = vmatprep.subr.bf16.mxu1 %v25530_v24  ;;  %v18337_v24 = vpack.c.bf16 %v2452_v4, %v2449_v46  ;;  %v25535_v46 = vld [vmem:[#allocation45_spill] sm:$0xff]  ;;  %v2512_v39 = vand.u32 4294901760, %v138_v16  ;;  %v18358_v19 = vand.u32 4294901760, %v529_v8  ;;  %v2464_v4 = vand.u32 4294901760, %v122_v62 }
  0xa8   :  { %14911 = vmatpush3.bf16.msra.mxu0 %v18223_v9  ;;  %v18361_v9 = vsub.f32 %v135_v10, %v2503_v36 }
  0xa9   :  { %25532 = vst [vmem:[#allocation35_spill] sm:$0xff] %v18337_v24  ;;  %14945 = vmatprep.subr.bf16.mxu0 %v18225_v25  ;;  %25536 = vst [vmem:[#allocation38_spill] sm:$0xff] %v18358_v19  ;;  %v18370_v25 = vsub.f32 %v120_v31, %v2458_v37  ;;  %v18386_v31 = vsub.f32 %v529_v8, %v18358_v19  ;;  %v18392_v36 = vpack.c.bf16 %v2512_v39, %v2509_v47 }
  0xaa   :  { %14715 = vmatpush3.bf16.msra.mxu1 %v25535_v46  ;;  %v18368_v46 = vsub.f32 %v119_v52, %v2455_v23  ;;  %v2659_v52 = vsub.f32 %v18235_v29, %v25539_v53  ;;  %v18399_v53 = vpack.c.bf16 %v2464_v4, %v2461_v35  ;;  %v18401_v8 = vsub.f32 %v121_v28, %v2461_v35  ;;  %v25547_v35 = vld [vmem:[#allocation29_spill] sm:$0xff] }
  0xab   :  { %14717 = vmatprep.subr.bf16.mxu1 %v25537_v44  ;;  %2315 = vmatmul.mubr.f32.vlgmr.msra.gmra.mrb[4].mxu0 %v17871_v55  ;;  %v25538_v44 = vand.u32 4294901760, %v18233_v45  ;;  %25540 = vst [vmem:[#allocation39_spill] sm:$0xff] %v18386_v31  ;;  %25542 = vst [vmem:[#allocation40_spill] sm:$0xff] %v18392_v36  ;;  %v2515_v37 = vand.u32 4294901760, %v139_v20  ;;  %v25546_v28 = vand.u32 4294901760, %v18243_v30  ;;  %v24632_v55 = vand.u32 4294901760, %v18253_v42 }
  0xac   :  { %14947 = vmatpush3.bf16.msra.mxu0 %v18238_v27  ;;  %25543 = vst [vmem:[#allocation41_spill] sm:$0xff] %v18399_v53  ;;  %25544 = vst [vmem:[#allocation42_spill] sm:$0xff] %v18401_v8  ;;  %v2660_v23 = vand.u32 4294901760, %v2659_v52  ;;  %v25549_v19 = vand.u32 4294901760, %v18386_v31 }
  0xad   :  { %v2652_v10 = vsub.f32 %v18233_v45, %v25538_v44  ;;  %14949 = vmatprep.subr.bf16.mxu0 %v18245_v60  ;;  %v18396_v44 = vsub.f32 %v138_v16, %v2512_v39  ;;  %v2518_v60 = vand.u32 4294901760, %v140_v1  ;;  %v2547_v39 = vsub.f32 %v18243_v30, %v25546_v28 }
  0xae   :  { %14719 = vmatpush3.bf16.msra.mxu1 %v25541_v13  ;;  %v123_v13 = vld [vmem:[%s24464_s1 + $0x270] sm:$0xff]  ;;  %v24633_v16 = vand.u32 4294901760, %v18255_v32  ;;  %v2523_v28 = vsub.f32 %v18386_v31, %v25549_v19 }
  0xaf   :  { %v2653_v27 = vand.u32 4294901760, %v2652_v10  ;;  %14721 = vmatprep.subr.bf16.mxu1 %v25446_v51  ;;  %v25545_v51 = vand.u32 4294901760, %v18240_v41  ;;  %v18420_v10 = vsub.f32 %v122_v62, %v2464_v4  ;;  %v2548_v8 = vand.u32 4294901760, %v2547_v39 }
  0xb0   :  { %14951 = vmatpush3.bf16.msra.mxu0 %v18257_v57  ;;  %v2666_v62 = vsub.f32 %v18253_v42, %v24632_v55  ;;  %v18441_v4 = vpack.c.bf16 %v2518_v60, %v2515_v37  ;;  %v2524_v19 = vand.u32 4294901760, %v2523_v28  ;;  %v18455_v28 = vsub.f32 %v139_v20, %v2515_v37  ;;  %v25555_v37 = vld [vmem:[#allocation32_spill] sm:$0xff] }
  0xb1   :  { %v2540_v47 = vsub.f32 %v18240_v41, %v25545_v51  ;;  %1453 = vmatmul.mubr.f32.vlgmr.msra.gmra.mrb[8].mxu1 %v25547_v35  ;;  %v18422_v52 = vpack.c.bf16 %v2660_v23, %v2653_v27  ;;  %v2467_v51 = vand.u32 4294901760, %v123_v13  ;;  %14953 = vmatprep.subr.bf16.mxu0 %v18269_v7  ;;  %v2470_v27 = vand.u32 4294901760, %v18409_v33 }
  0xb2   :  { %14723 = vmatpush3.bf16.msra.mxu1 %v25450_v15  ;;  %1555 = vmatprep.mubr.f32.mxu1 %v25490_v38  ;;  %v2673_v15 = vsub.f32 %v18255_v32, %v24633_v16  ;;  %v24636_v38 = vand.u32 4294901760, %v18259_v48  ;;  %25550 = vst [vmem:[#allocation44_spill] sm:$0xff] %v18441_v4  ;;  %v2667_v39 = vand.u32 4294901760, %v2666_v62 }
  0xb3   :  { %25548 = vst [vmem:[#allocation43_spill] sm:$0xff] %v18422_v52  ;;  %v2541_v35 = vand.u32 4294901760, %v2540_v47  ;;  %14725 = vmatprep.subr.bf16.mxu1 %v25453_v21  ;;  %v24637_v21 = vand.u32 4294901760, %v18267_v40  ;;  %v18448_v47 = vand.u32 4294901760, %v18363_v3  ;;  %2525 = vmatprep.mubr.f32.mxu0 %v2524_v19  ;;  %v18468_v20 = vpack.c.bf16 %v2470_v27, %v2467_v51 }
  0xb4   :  { %14955 = vmatpush3.bf16.msra.mxu0 %v18282_v22  ;;  %v2674_v55 = vand.u32 4294901760, %v2673_v15  ;;  %v2554_v16 = vsub.f32 %v18259_v48, %v24636_v38  ;;  %v24638_v22 = vand.u32 4294901760, %v18271_v11  ;;  %v24646_v38 = vand.u32 4294901760, %v18284_v59 }
  0xb5   :  { %v18443_v23 = vpack.c.bf16 %v2548_v8, %v2541_v35  ;;  %25552 = vst [vmem:[#allocation46_spill] sm:$0xff] %v18448_v47  ;;  %14957 = vmatprep.subr.bf16.mxu0 %v18298_v56  ;;  %v18457_v8 = vsub.f32 %v140_v1, %v2518_v60  ;;  %v2561_v35 = vsub.f32 %v18267_v40, %v24637_v21  ;;  %25554 = vst [vmem:[#allocation77_spill] sm:$0xff] %v18468_v20 }
  0xb6   :  { %14727 = vmatpush3.bf16.msra.mxu1 %v25455_v12  ;;  %v18464_v62 = vpack.c.bf16 %v2674_v55, %v2667_v39  ;;  %v2555_v15 = vand.u32 4294901760, %v2554_v16  ;;  %v24641_v12 = vand.u32 4294901760, %v18273_v61  ;;  %v2680_v1 = vsub.f32 %v18271_v11, %v24638_v22  ;;  %v25557_v39 = vld [vmem:[#allocation10_spill] sm:$0xff] }
  0xb7   :  { %25551 = vst [vmem:[#allocation45_spill] sm:$0xff] %v18443_v23  ;;  %14729 = vmatprep.subr.bf16.mxu1 %v25457_v17  ;;  %v2562_v60 = vand.u32 4294901760, %v2561_v35  ;;  %v24651_v21 = vand.u32 4294901760, %v25555_v37  ;;  %v18477_v55 = vsub.f32 %v18363_v3, %v18448_v47  ;;  %v2568_v16 = vsub.f32 %v18284_v59, %v24646_v38 }
  0xb8   :  { %25553 = vst [vmem:[#allocation47_spill] sm:$0xff] %v18464_v62  ;;  %14959 = vmatpush3.bf16.msra.mxu0 %v18318_v58  ;;  %v2687_v17 = vsub.f32 %v18273_v61, %v24641_v12  ;;  %v24649_v19 = vand.u32 4294901760, %v18314_v50  ;;  %v18488_v35 = vsub.f32 %v123_v13, %v2467_v51  ;;  %v2681_v3 = vand.u32 4294901760, %v2680_v1  ;;  %v25559_v12 = vld [vmem:[#allocation11_spill] sm:$0xff] }
  0xb9   :  { %25556 = vst [vmem:[#allocation32_spill] sm:$0xff] %v18477_v55  ;;  %14961 = vmatprep.subr.bf16.mxu0 %v18325_v6  ;;  %v18490_v22 = vpack.c.bf16 %v2562_v60, %v2555_v15  ;;  %v2575_v58 = vsub.f32 %v25555_v37, %v24651_v21  ;;  %v2569_v7 = vand.u32 4294901760, %v2568_v16  ;;  %v24652_v13 = vand.u32 4294901760, %v18321_v63  ;;  %v25561_v16 = vld [vmem:[#allocation12_spill] sm:$0xff] }
  0xba   :  { %14731 = vmatpush3.bf16.msra.mxu1 %v25557_v39  ;;  %v2688_v56 = vand.u32 4294901760, %v2687_v17  ;;  %v2694_v38 = vsub.f32 %v18314_v50, %v24649_v19  ;;  %v24650_v39 = vand.u32 4294901760, %v18316_v43  ;;  %v24653_v51 = vand.u32 4294901760, %v18323_v26 }
  0xbb   :  { %25558 = vst [vmem:[#allocation10_spill] sm:$0xff] %v18490_v22  ;;  %14733 = vmatprep.subr.bf16.mxu1 %v25559_v12  ;;  %v2576_v6 = vand.u32 4294901760, %v2575_v58  ;;  %v24655_v15 = vand.u32 4294901760, %v18333_v54  ;;  %v2582_v19 = vsub.f32 %v18321_v63, %v24652_v13 }
  0xbc   :  { %14963 = vmatpush3.bf16.msra.mxu0 %v18337_v24  ;;  %v18505_v12 = vpack.c.bf16 %v2688_v56, %v2681_v3  ;;  %v2695_v1 = vand.u32 4294901760, %v2694_v38  ;;  %v2701_v17 = vsub.f32 %v18316_v43, %v24650_v39  ;;  %v2589_v56 = vsub.f32 %v18323_v26, %v24653_v51  ;;  %v25563_v3 = vld [vmem:[#allocation13_spill] sm:$0xff] }
  0xbd   :  { %14965 = vmatprep.subr.bf16.mxu0 %v18350_v34  ;;  %v18512_v58 = vpack.c.bf16 %v2576_v6, %v2569_v7  ;;  %v24654_v38 = vand.u32 4294901760, %v18335_v18  ;;  %v18523_v39 = vsub.f32 %v18409_v33, %v2470_v27  ;;  %v2708_v7 = vsub.f32 %v18333_v54, %v24655_v15 }
  0xbe   :  { %25560 = vst [vmem:[#allocation11_spill] sm:$0xff] %v18505_v12  ;;  %14735 = vmatpush3.bf16.msra.mxu1 %v25561_v16  ;;  %v2702_v16 = vand.u32 4294901760, %v2701_v17  ;;  %v24658_v6 = vand.u32 4294901760, %v18339_v0  ;;  %v2583_v21 = vand.u32 4294901760, %v2582_v19  ;;  %v2590_v13 = vand.u32 4294901760, %v2589_v56  ;;  %v25565_v19 = vld [vmem:[#allocation14_spill] sm:$0xff] }
  0xbf   :  { %25562 = vst [vmem:[#allocation12_spill] sm:$0xff] %v18512_v58  ;;  %14737 = vmatprep.subr.bf16.mxu1 %v25563_v3  ;;  %v2715_v51 = vsub.f32 %v18335_v18, %v24654_v38  ;;  %v15008_v33 = vpack.c.bf16 %v18235_v29, %v18233_v45  ;;  %v2709_v17 = vand.u32 4294901760, %v2708_v7  ;;  %v25566_v56 = vand.u32 4294901760, %v18477_v55 }
  0xc0   :  { %14967 = vmatpush3.bf16.msra.mxu0 %v18352_v49  ;;  %v18536_v27 = vpack.c.bf16 %v2702_v16, %v2695_v1  ;;  %v2596_v3 = vsub.f32 %v18339_v0, %v24658_v6  ;;  %v18546_v15 = vpack.c.bf16 %v2590_v13, %v2583_v21  ;;  %v25568_v49 = vand.u32 4294901760, %v18348_v2  ;;  %v25569_v16 = vld [vmem:[#allocation15_spill] sm:$0xff]  ;;  %v25573_v13 = vld [vmem:[#allocation17_spill] sm:$0xff] }
  0xc1   :  { %14969 = vmatprep.subr.bf16.mxu0 %v18392_v36  ;;  %v2529_v38 = vsub.f32 %v18477_v55, %v25566_v56  ;;  %v2716_v60 = vand.u32 4294901760, %v2715_v51  ;;  %v24665_v6 = vand.u32 4294901760, %v18361_v9  ;;  %v24671_v36 = vand.u32 4294901760, %v18368_v46 }
  0xc2   :  { %25564 = vst [vmem:[#allocation13_spill] sm:$0xff] %v18536_v27  ;;  %14739 = vmatpush3.bf16.msra.mxu1 %v25565_v19  ;;  %25567 = vst [vmem:[#allocation14_spill] sm:$0xff] %v18546_v15  ;;  %v2603_v1 = vsub.f32 %v18348_v2, %v25568_v49  ;;  %v2597_v7 = vand.u32 4294901760, %v2596_v3  ;;  %v24666_v19 = vand.u32 4294901760, %v18366_v5  ;;  %v24672_v21 = vand.u32 4294901760, %v18370_v25  ;;  %v152_v15 = vld [vmem:[%s24464_s1 + $0x358] sm:$0xff] }
  0xc3   :  { %14741 = vmatprep.subr.bf16.mxu1 %v25569_v16  ;;  %v18555_v34 = vpack.c.bf16 %v2716_v60, %v2709_v17  ;;  %v15010_v49 = vpack.c.bf16 %v18243_v30, %v18240_v41  ;;  %v2722_v51 = vsub.f32 %v18361_v9, %v24665_v6  ;;  %v2610_v60 = vsub.f32 %v18368_v46, %v24671_v36  ;;  %v25571_v17 = vld [vmem:[#allocation16_spill] sm:$0xff]  ;;  %v17037_v27 = vld [vmem:[%s24463_s0 + $0x6c] ss:$48 sps:$4 sm:$0xff]  }
  0xc4   :  { %v2604_v24 = vand.u32 4294901760, %v2603_v1  ;;  %14971 = vmatpush3.bf16.msra.mxu0 %v18399_v53  ;;  %v2729_v3 = vsub.f32 %v18366_v5, %v24666_v19  ;;  %v2530_v56 = vand.u32 4294901760, %v2529_v38  ;;  %v2617_v16 = vsub.f32 %v18370_v25, %v24672_v21  ;;  %v25575_v38 = vld [vmem:[#allocation42_spill] sm:$0xff] }
  0xc5   :  { %25570 = vst [vmem:[#allocation15_spill] sm:$0xff] %v18555_v34  ;;  %14973 = vmatprep.subr.bf16.mxu0 %v18441_v4  ;;  %v24673_v6 = vand.u32 4294901760, %v18396_v44  ;;  %v2723_v19 = vand.u32 4294901760, %v2722_v51  ;;  %v2611_v57 = vand.u32 4294901760, %v2610_v60  ;;  %v25574_v36 = vand.u32 4294901760, %v18394_v14 }
  0xc6   :  { %14743 = vmatpush3.bf16.msra.mxu1 %v25571_v17  ;;  %v18573_v1 = vpack.c.bf16 %v2604_v24, %v2597_v7  ;;  %v2730_v53 = vand.u32 4294901760, %v2729_v3  ;;  %v2618_v34 = vand.u32 4294901760, %v2617_v16  ;;  %v2623_v7 = vand.u32 4294901760, %v25575_v38 }
  0xc7   :  { %14745 = vmatprep.subr.bf16.mxu1 %v25573_v13  ;;  %v2736_v17 = vsub.f32 %v18394_v14, %v25574_v36  ;;  %v2743_v24 = vsub.f32 %v18396_v44, %v24673_v6  ;;  %v15012_v13 = vpack.c.bf16 %v18255_v32, %v18253_v42  ;;  %v24678_v60 = vand.u32 4294901760, %v18455_v28  ;;  %v25577_v36 = vld [vmem:[#allocation18_spill] sm:$0xff] }
  0xc8   :  { %25572 = vst [vmem:[#allocation16_spill] sm:$0xff] %v18573_v1  ;;  %14975 = vmatpush3.bf16.msra.mxu0 %v18468_v20  ;;  %v18591_v51 = vpack.c.bf16 %v2730_v53, %v2723_v19  ;;  %v18595_v16 = vpack.c.bf16 %v2618_v34, %v2611_v57  ;;  %v2624_v21 = vsub.f32 %v25575_v38, %v2623_v7  ;;  %v25579_v20 = vand.u32 4294901760, %v18420_v10  ;;  %v25580_v1 = vld [vmem:[#allocation21_spill] sm:$0xff] }
  0xc9   :  { %v2737_v3 = vand.u32 4294901760, %v2736_v17  ;;  %15009 = vmatprep.subr.bf16.mxu0 %v15008_v33  ;;  %v2744_v6 = vand.u32 4294901760, %v2743_v24  ;;  %v2750_v53 = vsub.f32 %v18455_v28, %v24678_v60  ;;  %v24679_v19 = vand.u32 4294901760, %v18457_v8 }
  0xca   :  { %25576 = vst [vmem:[#allocation17_spill] sm:$0xff] %v18591_v51  ;;  %14747 = vmatpush3.bf16.msra.mxu1 %v25577_v36  ;;  %25578 = vst [vmem:[#allocation42_spill] sm:$0xff] %v18595_v16  ;;  %v2631_v4 = vsub.f32 %v18420_v10, %v25579_v20  ;;  %v24680_v57 = vand.u32 4294901760, %v18488_v35  ;;  %v2625_v33 = vand.u32 4294901760, %v2624_v21  ;;  %v24681_v24 = vand.u32 4294901760, %v18523_v39  ;;  %v25655_v51 = vld [vmem:[#allocation63_spill] sm:$0xff] }
  0xcb   :  { %14749 = vmatprep.subr.bf16.mxu1 %v25580_v1  ;;  %2531 = vmatmul.mubr.f32.vlgmr.msra.gmra.mrb[6].mxu0 %v2530_v56  ;;  %v18609_v34 = vpack.c.bf16 %v2744_v6, %v2737_v3  ;;  %v15014_v20 = vpack.c.bf16 %v18267_v40, %v18259_v48  ;;  %v2751_v1 = vand.u32 4294901760, %v2750_v53  ;;  %v2757_v36 = vsub.f32 %v18457_v8, %v24679_v19  ;;  %v25582_v6 = vld [vmem:[#allocation24_spill] sm:$0xff]  ;;  %v17036_v16 = vld [vmem:[%s24463_s0 + $0xc] ss:$48 sps:$4 sm:$0xff]  }
  0xcc   :  { %v2632_v17 = vand.u32 4294901760, %v2631_v4  ;;  %15011 = vmatpush3.bf16.msra.mxu0 %v15010_v49  ;;  %v2638_v60 = vsub.f32 %v18488_v35, %v24680_v57  ;;  %2898 = vmatprep.mubr.f32.mxu0 %v18386_v31  ;;  %v2645_v21 = vsub.f32 %v18523_v39, %v24681_v24  ;;  %v25584_v49 = vld [vmem:[#allocation70_spill] sm:$0xff]  ;;  %v15016_v56 = vpack.c.bf16 %v18273_v61, %v18271_v11  ;;  %v25585_v57 = vld [vmem:[#allocation29_spill] sm:$0xff] }
  0xcd   :  { %25581 = vst [vmem:[#allocation18_spill] sm:$0xff] %v18609_v34  ;;  %15013 = vmatprep.subr.bf16.mxu0 %v15012_v13  ;;  %v2758_v3 = vand.u32 4294901760, %v2757_v36  ;;  %v15018_v13 = vpack.c.bf16 %v25555_v37, %v18284_v59  ;;  %v25590_v36 = vld [vmem:[#allocation75_spill] sm:$0xff]  ;;  %v3320_v23 = vand.u32 4294901760, %v152_v15 }
  0xce   :  { %14751 = vmatpush3.bf16.msra.mxu1 %v25582_v6  ;;  %v18622_v4 = vpack.c.bf16 %v2632_v17, %v2625_v33  ;;  %v2639_v53 = vand.u32 4294901760, %v2638_v60  ;;  %v2646_v19 = vand.u32 4294901760, %v2645_v21  ;;  %v25587_v17 = vld [vmem:[#allocation73_spill] sm:$0xff]  ;;  %v15022_v60 = vpack.c.bf16 %v18323_v26, %v18321_v63  ;;  %v25593_v21 = vld [vmem:[#allocation19_spill] sm:$0xff] }
  0xcf   :  { %14785 = vmatprep.subr.bf16.mxu1 %v25584_v49  ;;  %v18633_v33 = vpack.c.bf16 %v2758_v3, %v2751_v1  ;;  %v25588_v6 = vld [vmem:[#allocation69_spill] sm:$0xff]  ;;  %v15020_v49 = vpack.c.bf16 %v18316_v43, %v18314_v50  ;;  %v25592_v1 = vld [vmem:[#allocation20_spill] sm:$0xff]  ;;  %v25594_v3 = vld [vmem:[#allocation23_spill] sm:$0xff] }
  0xd0   :  { %25583 = vst [vmem:[#allocation21_spill] sm:$0xff] %v18622_v4  ;;  %15015 = vmatpush3.bf16.msra.mxu0 %v15014_v20  ;;  %v18639_v24 = vpack.c.bf16 %v2646_v19, %v2639_v53  ;;  %v15024_v20 = vpack.c.bf16 %v18335_v18, %v18333_v54  ;;  %v15026_v19 = vpack.c.bf16 %v18348_v2, %v18339_v0 }
  0xd1   :  { %1557 = vmatmul.mubr.f32.vlgmr.msra.gmra.mrb[10].mxu1 %v25585_v57  ;;  %25586 = vst [vmem:[#allocation24_spill] sm:$0xff] %v18633_v33  ;;  %15017 = vmatprep.subr.bf16.mxu0 %v15016_v56  ;;  %v25591_v57 = vld [vmem:[#allocation76_spill] sm:$0xff]  ;;  %v15028_v56 = vpack.c.bf16 %v18366_v5, %v18361_v9  ;;  %v15030_v53 = vpack.c.bf16 %v18370_v25, %v18368_v46  ;;  %v147_v33 = vld [vmem:[%s24464_s1 + $0x330] sm:$0xff] }
  0xd2   :  { %14787 = vmatpush3.bf16.msra.mxu1 %v25587_v17  ;;  %1899 = vmatprep.mubr.f32.mxu1 %v25588_v6  ;;  %25589 = vst [vmem:[#allocation70_spill] sm:$0xff] %v18639_v24  ;;  %v15032_v17 = vpack.c.bf16 %v18396_v44, %v18394_v14 }
  0xd3   :  { %14789 = vmatprep.subr.bf16.mxu1 %v25590_v36  ;;  %v15034_v36 = vpack.c.bf16 %v18420_v10, %v25575_v38  ;;  %v145_v38 = vld [vmem:[%s24464_s1 + $0x320] sm:$0xff] }
  0xd4   :  { %15019 = vmatpush3.bf16.msra.mxu0 %v15018_v13  ;;  %v25595_v13 = vld [vmem:[#allocation22_spill] sm:$0xff] }
  0xd5   :  { %15021 = vmatprep.subr.bf16.mxu0 %v15020_v49  ;;  %v25596_v49 = vld [vmem:[#allocation55_spill] sm:$0xff] }
  0xd6   :  { %14791 = vmatpush3.bf16.msra.mxu1 %v25591_v57  ;;  %v15036_v57 = vpack.c.bf16 %v18457_v8, %v18455_v28 }
  0xd7   :  { %14793 = vmatprep.subr.bf16.mxu1 %v25592_v1  ;;  %v15038_v1 = vpack.c.bf16 %v18523_v39, %v18488_v35 }
  0xd8   :  { %15023 = vmatpush3.bf16.msra.mxu0 %v15022_v60  ;;  %v25597_v60 = vld [vmem:[#allocation57_spill] sm:$0xff] }
  0xd9   :  { %15025 = vmatprep.subr.bf16.mxu0 %v15024_v20  ;;  %v25598_v20 = vld [vmem:[#allocation58_spill] sm:$0xff] }
  0xda   :  { %14795 = vmatpush3.bf16.msra.mxu1 %v25593_v21  ;;  %v25600_v21 = vand.u32 4294901760, %v18233_v45  ;;  %v25608_v45 = vld [vmem:[#allocation61_spill] sm:$0xff] }
  0xdb   :  { %14797 = vmatprep.subr.bf16.mxu1 %v25594_v3 }
  0xdc   :  { %15027 = vmatpush3.bf16.msra.mxu0 %v15026_v19  ;;  %v25599_v19 = vld [vmem:[#allocation60_spill] sm:$0xff] }
  0xdd   :  { %15029 = vmatprep.subr.bf16.mxu0 %v15028_v56  ;;  %v25601_v56 = vand.u32 4294901760, %v18235_v29  ;;  %v25609_v29 = vand.u32 4294901760, %v18259_v48  ;;  %v25617_v48 = vand.u32 4294901760, %v18284_v59  ;;  %v157_v59 = vld [vmem:[%s24464_s1 + $0x380] sm:$0xff] }
  0xde   :  { %14799 = vmatpush3.bf16.msra.mxu1 %v25595_v13  ;;  %v25603_v13 = vand.u32 4294901760, %v18240_v41  ;;  %v25610_v41 = vand.u32 4294901760, %v18267_v40  ;;  %v25618_v40 = vand.u32 4294901760, %v25555_v37  ;;  %v158_v37 = vld [vmem:[%s24464_s1 + $0x388] sm:$0xff] }
  0xdf   :  { %14801 = vmatprep.subr.bf16.mxu1 %v25596_v49  ;;  %v15072_v3 = vpack.c.bf16 %v25601_v56, %v25600_v21  ;;  %v25613_v21 = vld [vmem:[#allocation48_spill] sm:$0xff] }
  0xe0   :  { %15031 = vmatpush3.bf16.msra.mxu0 %v15030_v53  ;;  %v25602_v53 = vld [vmem:[#allocation27_spill] sm:$0xff] }
  0xe1   :  { %15033 = vmatprep.subr.bf16.mxu0 %v15032_v17  ;;  %v25604_v17 = vand.u32 4294901760, %v18243_v30  ;;  %v25611_v30 = vld [vmem:[#allocation38_spill] sm:$0xff] }
  0xe2   :  { %14803 = vmatpush3.bf16.msra.mxu1 %v25597_v60  ;;  %v25606_v60 = vand.u32 4294901760, %v18253_v42  ;;  %v25614_v42 = vand.u32 4294901760, %v18271_v11  ;;  %v25623_v11 = vand.u32 4294901760, %v18316_v43  ;;  %v25628_v43 = vand.u32 4294901760, %v18333_v54  ;;  %v160_v54 = vld [vmem:[%s24464_s1 + $0x398] sm:$0xff] }
  0xe3   :  { %14805 = vmatprep.subr.bf16.mxu1 %v25598_v20  ;;  %v15074_v49 = vpack.c.bf16 %v25604_v17, %v25603_v13  ;;  %v25619_v13 = vld [vmem:[#allocation49_spill] sm:$0xff]  ;;  %v25620_v17 = vld [vmem:[#allocation72_spill] sm:$0xff] }
  0xe4   :  { %15035 = vmatpush3.bf16.msra.mxu0 %v15034_v36  ;;  %v25605_v36 = vld [vmem:[#allocation26_spill] sm:$0xff] }
  0xe5   :  { %15037 = vmatprep.subr.bf16.mxu0 %v15036_v57  ;;  %v25607_v57 = vand.u32 4294901760, %v18255_v32  ;;  %v25615_v32 = vand.u32 4294901760, %v18273_v61  ;;  %v25624_v61 = vld [vmem:[#allocation50_spill] sm:$0xff] }
  0xe6   :  { %14807 = vmatpush3.bf16.msra.mxu1 %v25599_v19  ;;  %v25612_v19 = vld [vmem:[#allocation5_spill] sm:$0xff] }
  0xe7   :  { %14809 = vmatprep.subr.bf16.mxu1 %v25602_v53  ;;  %v15076_v20 = vpack.c.bf16 %v25607_v57, %v25606_v60  ;;  %v15080_v56 = vpack.c.bf16 %v25615_v32, %v25614_v42  ;;  %v15082_v53 = vpack.c.bf16 %v25618_v40, %v25617_v48  ;;  %v25625_v57 = vand.u32 4294901760, %v18321_v63  ;;  %v141_v32 = vld [vmem:[%s24464_s1 + $0x300] sm:$0xff]  ;;  %v142_v63 = vld [vmem:[%s24464_s1 + $0x308] sm:$0xff] }
  0xe8   :  { %15039 = vmatpush3.bf16.msra.mxu0 %v15038_v1  ;;  %v15078_v1 = vpack.c.bf16 %v25610_v41, %v25609_v29  ;;  %v25629_v29 = vand.u32 4294901760, %v18335_v18  ;;  %v3338_v42 = vand.u32 4294901760, %v158_v37  ;;  %v25631_v18 = vand.u32 4294901760, %v18339_v0  ;;  %v143_v0 = vld [vmem:[%s24464_s1 + $0x310] sm:$0xff] }
  0xe9   :  { %15073 = vmatprep.subr.bf16.mxu0 %v15072_v3  ;;  %v25616_v3 = vld [vmem:[#allocation71_spill] sm:$0xff]  ;;  %v25633_v40 = vand.u32 4294901760, %v18361_v9  ;;  %v25639_v9 = vld [vmem:[#allocation53_spill] sm:$0xff] }
  0xea   :  { %14811 = vmatpush3.bf16.msra.mxu1 %v25605_v36  ;;  %v25622_v36 = vand.u32 4294901760, %v18314_v50  ;;  %v15088_v41 = vpack.c.bf16 %v25629_v29, %v25628_v43  ;;  %v3287_v43 = vand.u32 4294901760, %v141_v32  ;;  %v3290_v29 = vand.u32 4294901760, %v142_v63 }
  0xeb   :  { %14813 = vmatprep.subr.bf16.mxu1 %v25608_v45  ;;  %2901 = vmatmul.mubr.f32.vlgmr.msra.gmra.mrb[8].mxu0 %v18477_v55  ;;  %v25627_v45 = vld [vmem:[#allocation51_spill] sm:$0xff] }
  0xec   :  { %15075 = vmatpush3.bf16.msra.mxu0 %v15074_v49  ;;  %3175 = vmatprep.mubr.f32.mxu0 %v25611_v30  ;;  %v25621_v49 = vand.u32 4294901760, %v25620_v17  ;;  %v15084_v60 = vpack.c.bf16 %v25623_v11, %v25622_v36  ;;  %v25636_v36 = vand.u32 4294901760, %v18370_v25  ;;  %v25640_v25 = vand.u32 4294901760, %v18420_v10  ;;  %v146_v10 = vld [vmem:[%s24464_s1 + $0x328] sm:$0xff] }
  0xed   :  { %15077 = vmatprep.subr.bf16.mxu0 %v15076_v20  ;;  %v25626_v20 = vand.u32 4294901760, %v18323_v26  ;;  %v159_v26 = vld [vmem:[%s24464_s1 + $0x390] sm:$0xff] }
  0xee   :  { %14815 = vmatpush3.bf16.msra.mxu1 %v25612_v19  ;;  %v3335_v19 = vand.u32 4294901760, %v157_v59 }
  0xef   :  { %14849 = vmatprep.subr.bf16.mxu1 %v25613_v21  ;;  %v15086_v50 = vpack.c.bf16 %v25626_v20, %v25625_v57  ;;  %v25638_v57 = vand.u32 4294901760, %v18396_v44  ;;  %v25642_v44 = vand.u32 4294901760, %v18457_v8  ;;  %v25645_v8 = vand.u32 4294901760, %v18523_v39 }
  0xf0   :  { %15079 = vmatpush3.bf16.msra.mxu0 %v15078_v1  ;;  %v25630_v1 = vld [vmem:[#allocation52_spill] sm:$0xff] }
  0xf1   :  { %1901 = vmatmul.mubr.f32.vlgmr.msra.gmra.mrb[12].mxu1 %v25616_v3  ;;  %15081 = vmatprep.subr.bf16.mxu0 %v15080_v56  ;;  %v25632_v56 = vand.u32 4294901760, %v18348_v2  ;;  %v144_v2 = vld [vmem:[%s24464_s1 + $0x318] sm:$0xff]  ;;  %v25658_v3 = vld [vmem:[#allocation25_spill] sm:$0xff] }
  0xf2   :  { %14851 = vmatpush3.bf16.msra.mxu1 %v25619_v13  ;;  %2143 = vmatprep.mubr.f32.mxu1 %v25621_v49  ;;  %v25635_v49 = vand.u32 4294901760, %v18368_v46  ;;  %v18767_v46 = vpack.c.bf16 %v25640_v25, %v2623_v7  ;;  %v25643_v7 = vld [vmem:[#allocation54_spill] sm:$0xff]  ;;  %v513_v52 = vrot.slane %v17036_v16, %v25658_v3 }
  0xf3   :  { %14853 = vmatprep.subr.bf16.mxu1 %v25624_v61  ;;  %v15090_v48 = vpack.c.bf16 %v25632_v56, %v25631_v18  ;;  %v162_v18 = vld [vmem:[%s24464_s1 + $0x3a8] sm:$0xff]  ;;  %v18791_v56 = vpack.c.bf16 %v3338_v42, %v3335_v19  ;;  %v163_v25 = vld [vmem:[%s24464_s1 + $0x3b0] sm:$0xff] }
  0xf4   :  { %15083 = vmatpush3.bf16.msra.mxu0 %v15082_v53  ;;  %v25634_v53 = vand.u32 4294901760, %v18366_v5  ;;  %v15094_v11 = vpack.c.bf16 %v25636_v36, %v25635_v49  ;;  %v161_v5 = vld [vmem:[%s24464_s1 + $0x3a0] sm:$0xff]  ;;  %v18793_v49 = vsub.f32 %v157_v59, %v3335_v19  ;;  %v18795_v36 = vsub.f32 %v158_v37, %v3338_v42  ;;  %v25649_v42 = vld [vmem:[#allocation59_spill] sm:$0xff] }
  0xf5   :  { %15085 = vmatprep.subr.bf16.mxu0 %v15084_v60  ;;  %v25637_v60 = vand.u32 4294901760, %v18394_v14  ;;  %v25641_v14 = vand.u32 4294901760, %v18455_v28  ;;  %v25644_v28 = vand.u32 4294901760, %v18488_v35  ;;  %25646 = vst [vmem:[#allocation29_spill] sm:$0xff] %v18791_v56  ;;  %v164_v35 = vld [vmem:[%s24464_s1 + $0x3b8] sm:$0xff]  ;;  %v3347_v39 = vand.u32 4294901760, %v161_v5 }
  0xf6   :  { %14855 = vmatpush3.bf16.msra.mxu1 %v25627_v45  ;;  %v15092_v17 = vpack.c.bf16 %v25634_v53, %v25633_v40  ;;  %v3341_v40 = vand.u32 4294901760, %v159_v26  ;;  %v3344_v53 = vand.u32 4294901760, %v160_v54  ;;  %v18804_v59 = vpack.c.bf16 %v3290_v29, %v3287_v43 }
  0xf7   :  { %14857 = vmatprep.subr.bf16.mxu1 %v25630_v1  ;;  %v15096_v20 = vpack.c.bf16 %v25638_v57, %v25637_v60  ;;  %v3293_v60 = vand.u32 4294901760, %v143_v0  ;;  %v3296_v57 = vand.u32 4294901760, %v144_v2  ;;  %v18806_v37 = vsub.f32 %v141_v32, %v3287_v43 }
  0xf8   :  { %15087 = vmatpush3.bf16.msra.mxu0 %v15086_v50  ;;  %v18773_v50 = vpack.c.bf16 %v25642_v44, %v25641_v14  ;;  %v3350_v14 = vand.u32 4294901760, %v162_v18  ;;  %v3299_v44 = vand.u32 4294901760, %v145_v38  ;;  %25648 = vst [vmem:[#allocation73_spill] sm:$0xff] %v18804_v59  ;;  %v18808_v19 = vsub.f32 %v142_v63, %v3290_v29 }
  0xf9   :  { %15089 = vmatprep.subr.bf16.mxu0 %v15088_v41  ;;  %v18789_v41 = vpack.c.bf16 %v25645_v8, %v25644_v28  ;;  %v3302_v28 = vand.u32 4294901760, %v146_v10  ;;  %v25647_v8 = vld [vmem:[#allocation56_spill] sm:$0xff]  ;;  %v18811_v55 = vpack.c.bf16 %v3344_v53, %v3341_v40  ;;  %v18813_v31 = vsub.f32 %v159_v26, %v3341_v40  ;;  %v166_v40 = vld [vmem:[%s24464_s1 + $0x3c8] sm:$0xff] }
  0xfa   :  { %14859 = vmatpush3.bf16.msra.mxu1 %v25639_v9  ;;  %v3356_v24 = vand.u32 4294901760, %v164_v35  ;;  %v18821_v32 = vsub.f32 %v160_v54, %v3344_v53  ;;  %v18823_v63 = vpack.c.bf16 %v3296_v57, %v3293_v60  ;;  %v18825_v43 = vsub.f32 %v143_v0, %v3293_v60  ;;  %v165_v26 = vld [vmem:[%s24464_s1 + $0x3c0] sm:$0xff]  ;;  %v25654_v60 = vld [vmem:[#allocation62_spill] sm:$0xff] }
  0xfb   :  { %14861 = vmatprep.subr.bf16.mxu1 %v25643_v7  ;;  %25650 = vst [vmem:[#allocation69_spill] sm:$0xff] %v18811_v55  ;;  %v18827_v29 = vsub.f32 %v144_v2, %v3296_v57  ;;  %v18835_v4 = vpack.c.bf16 %v3350_v14, %v3347_v39  ;;  %v18837_v34 = vsub.f32 %v161_v5, %v3347_v39  ;;  %v149_v0 = vld [vmem:[%s24464_s1 + $0x340] sm:$0xff]  ;;  %v150_v2 = vld [vmem:[%s24464_s1 + $0x348] sm:$0xff]  ;;  %v3305_v5 = vand.u32 4294901760, %v147_v33  ;;  %v167_v39 = vld [vmem:[%s24464_s1 + $0x3d0] sm:$0xff]  ;;  %v11760_v58 = vpop.f32.mrb[0].mxu1 }
  0xfc   :  { %15091 = vmatpush3.bf16.msra.mxu0 %v15090_v48  ;;  %v3353_v48 = vand.u32 4294901760, %v163_v25  ;;  %25651 = vst [vmem:[#allocation75_spill] sm:$0xff] %v18823_v63  ;;  %v18839_v54 = vsub.f32 %v162_v18, %v3350_v14  ;;  %v18841_v53 = vpack.c.bf16 %v3302_v28, %v3299_v44  ;;  %v18852_v57 = vsub.f32 %v146_v10, %v3302_v28  ;;  %v168_v14 = vld [vmem:[%s24464_s1 + $0x3d8] sm:$0xff]  ;;  %v151_v28 = vld [vmem:[%s24464_s1 + $0x350] sm:$0xff]  ;;  %v169_v9 = vld [vmem:[%s24464_s1 + $0x3e0] sm:$0xff] }
  0xfd   :  { %15093 = vmatprep.subr.bf16.mxu0 %v15092_v17  ;;  %v148_v17 = vld [vmem:[%s24464_s1 + $0x338] sm:$0xff]  ;;  %25652 = vst [vmem:[#allocation76_spill] sm:$0xff] %v18835_v4  ;;  %v3359_v10 = vand.u32 4294901760, %v165_v26  ;;  %v3311_v12 = vand.u32 4294901760, %v149_v0  ;;  %v3314_v22 = vand.u32 4294901760, %v150_v2  ;;  %v3365_v62 = vand.u32 4294901760, %v167_v39 }
  0xfe   :  { %14863 = vmatpush3.bf16.msra.mxu1 %v25647_v8  ;;  %25653 = vst [vmem:[#allocation20_spill] sm:$0xff] %v18841_v53  ;;  %v3308_v18 = vand.u32 4294901760, %v148_v17  ;;  %v3317_v30 = vand.u32 4294901760, %v151_v28  ;;  %v18882_v8 = vsub.f32 %v164_v35, %v3356_v24 }
  0xff   :  { %14865 = vmatprep.subr.bf16.mxu1 %v25649_v42  ;;  %v25659_v42 = vld [vmem:[#allocation64_spill] sm:$0xff] }
 0x100   :  { %15095 = vmatpush3.bf16.msra.mxu0 %v15094_v11  ;;  %v18850_v11 = vsub.f32 %v145_v38, %v3299_v44  ;;  %v18866_v38 = vsub.f32 %v163_v25, %v3353_v48  ;;  %v3362_v44 = vand.u32 4294901760, %v166_v40  ;;  %v3368_v25 = vand.u32 4294901760, %v168_v14 }
 0x101   :  { %15097 = vmatprep.subr.bf16.mxu0 %v15096_v20  ;;  %v18864_v20 = vpack.c.bf16 %v3356_v24, %v3353_v48  ;;  %v11761_v48 = vpop.f32.mrb[1].mxu1  ;;  %v18884_v7 = vpack.c.bf16 %v3308_v18, %v3305_v5  ;;  %v18892_v16 = vsub.f32 %v148_v17, %v3308_v18  ;;  %v170_v24 = vld [vmem:[%s24464_s1 + $0x3e8] sm:$0xff]  ;;  %v18910_v17 = vsub.f32 %v150_v2, %v3314_v22 }
 0x102   :  { %14867 = vmatpush3.bf16.msra.mxu1 %v25654_v60  ;;  %25657 = vst [vmem:[#allocation23_spill] sm:$0xff] %v18866_v38  ;;  %v11762_v60 = vadd.f32 %v11761_v48, %v11760_v58  ;;  %v18890_v38 = vsub.f32 %v147_v33, %v3305_v5  ;;  %v18896_v58 = vsub.f32 %v165_v26, %v3359_v10  ;;  %v153_v26 = vld [vmem:[%s24464_s1 + $0x360] sm:$0xff]  ;;  %v154_v5 = vld [vmem:[%s24464_s1 + $0x368] sm:$0xff]  ;;  %v24691_v2 = vand.u32 4294901760, %v18795_v36 }
 0x103   :  { %14869 = vmatprep.subr.bf16.mxu1 %v25655_v51  ;;  %25656 = vst [vmem:[#allocation19_spill] sm:$0xff] %v18864_v20  ;;  %v527_v51 = vrot.slane %v17037_v27, %v25658_v3  ;;  %25660 = vst [vmem:[#allocation22_spill] sm:$0xff] %v18884_v7  ;;  %v18894_v27 = vpack.c.bf16 %v3362_v44, %v3359_v10  ;;  %v18904_v35 = vsub.f32 %v166_v40, %v3362_v44 }
 0x104   :  { %15099 = vmatpush3.bf16.msra.mxu0 %v18767_v46  ;;  %v25661_v46 = vld [vmem:[#allocation65_spill] sm:$0xff]  ;;  %v18906_v48 = vpack.c.bf16 %v3314_v22, %v3311_v12  ;;  %v18908_v33 = vsub.f32 %v149_v0, %v3311_v12  ;;  %25665 = vst [vmem:[#allocation60_spill] sm:$0xff] %v18910_v17  ;;  %v18919_v18 = vpack.c.bf16 %v3368_v25, %v3365_v62  ;;  %v3371_v10 = vand.u32 4294901760, %v169_v9  ;;  %v25668_v12 = vld [vmem:[#allocation66_spill] sm:$0xff] }
 0x105   :  { %15101 = vmatprep.subr.bf16.mxu0 %v18773_v50  ;;  %25662 = vst [vmem:[#allocation55_spill] sm:$0xff] %v18894_v27  ;;  %v11726_v50 = vld [vmem:[%s24465_s2] ss:$0 sm:$0xff]  ;;  %v18921_v40 = vpack.c.bf16 %v3320_v23, %v3317_v30  ;;  %v531_v44 = vcombine.high %v513_v52, %v527_v51  ;;  %v3374_v22 = vand.u32 4294901760, %v170_v24  ;;  %v24692_v0 = vand.u32 4294901760, %v18793_v49 }
 0x106   :  { %14871 = vmatpush3.bf16.msra.mxu1 %v25659_v42  ;;  %25663 = vst [vmem:[#allocation57_spill] sm:$0xff] %v18906_v48  ;;  %25664 = vst [vmem:[#allocation58_spill] sm:$0xff] %v18908_v33  ;;  %v18927_v3 = vcombine.low %v513_v52, %v527_v51  ;;  %v18932_v42 = vsub.f32 %v167_v39, %v3365_v62  ;;  %v3326_v17 = vand.u32 4294901760, %v154_v5  ;;  %v171_v52 = vld [vmem:[%s24464_s1 + $0x3f0] sm:$0xff]  ;;  %v172_v62 = vld [vmem:[%s24464_s1 + $0x3f8] sm:$0xff] }
 0x107   :  { %14873 = vmatprep.subr.bf16.mxu1 %v25661_v46  ;;  %25666 = vst [vmem:[#allocation27_spill] sm:$0xff] %v18919_v18  ;;  %25667 = vst [vmem:[#allocation26_spill] sm:$0xff] %v18921_v40  ;;  %v18929_v46 = vadd.f32 %v11762_v60, %v11726_v50  ;;  %v3323_v40 = vand.u32 4294901760, %v153_v26  ;;  %v18939_v33 = vsub.f32 %v152_v15, %v3320_v23  ;;  %v18954_v23 = vand.u32 4294901760, %v531_v44  ;;  %v25671_v39 = vld [vmem:[#allocation68_spill] sm:$0xff]  ;;  %v155_v60 = vld [vmem:[%s24464_s1 + $0x370] sm:$0xff] }
 0x108   :  { %15103 = vmatpush3.bf16.msra.mxu0 %v18789_v41  ;;  %v25669_v41 = vld [vmem:[#allocation67_spill] sm:$0xff]  ;;  %v3514_v51 = vsub.f32 %v18793_v49, %v24692_v0  ;;  %v3377_v15 = vand.u32 4294901760, %v171_v52 }
 0x109   :  { %15137 = vmatprep.subr.bf16.mxu0 %v18791_v56  ;;  %v18937_v56 = vsub.f32 %v151_v28, %v3317_v30  ;;  %v3521_v30 = vsub.f32 %v18795_v36, %v24691_v2  ;;  %25670 = vst [vmem:[#allocation61_spill] sm:$0xff] %v18954_v23  ;;  %v18962_v28 = vsub.f32 %v169_v9, %v3371_v10  ;;  %v18977_v9 = vld [vmem:[%s24464_s1 + $0x378] sm:$0xff] }
 0x10a   :  { %14875 = vmatpush3.bf16.msra.mxu1 %v25668_v12  ;;  %v18935_v12 = vsub.f32 %v168_v14, %v3368_v25  ;;  %v18960_v14 = vpack.c.bf16 %v3374_v22, %v3371_v10  ;;  %v18964_v25 = vsub.f32 %v170_v24, %v3374_v22  ;;  %v3515_v50 = vand.u32 4294901760, %v3514_v51  ;;  %v25677_v22 = vld [vmem:[#allocation74_spill] sm:$0xff] }
 0x10b   :  { %14877 = vmatprep.subr.bf16.mxu1 %v25669_v41  ;;  %3177 = vmatmul.mubr.f32.vlgmr.msra.gmra.mrb[10].mxu0 %v18448_v47  ;;  %v18967_v2 = vpack.c.bf16 %v3326_v17, %v3323_v40  ;;  %v18969_v0 = vsub.f32 %v153_v26, %v3323_v40  ;;  %v18980_v24 = vsub.f32 %v531_v44, %v18954_v23  ;;  %v25676_v40 = vand.u32 4294901760, %v18808_v19 }
 0x10c   :  { %15139 = vmatpush3.bf16.msra.mxu0 %v18804_v59  ;;  %25672 = vst [vmem:[#allocation5_spill] sm:$0xff] %v18960_v14  ;;  %v3522_v59 = vand.u32 4294901760, %v3521_v30  ;;  %v25678_v51 = vand.u32 4294901760, %v25677_v22  ;;  %v18991_v30 = vsub.f32 %v154_v5, %v3326_v17  ;;  %v24701_v44 = vand.u32 4294901760, %v18813_v31 }
 0x10d   :  { %15141 = vmatprep.subr.bf16.mxu0 %v18811_v55  ;;  %25673 = vst [vmem:[#allocation48_spill] sm:$0xff] %v18967_v2  ;;  %v3380_v55 = vand.u32 4294901760, %v172_v62  ;;  %25674 = vst [vmem:[#allocation49_spill] sm:$0xff] %v18980_v24  ;;  %v3409_v10 = vsub.f32 %v18808_v19, %v25676_v40  ;;  %v24702_v23 = vand.u32 4294901760, %v18821_v32  ;;  %v24703_v40 = vand.u32 4294901760, %v18980_v24 }
 0x10e   :  { %14879 = vmatpush3.bf16.msra.mxu1 %v25671_v39  ;;  %v18993_v47 = vpack.c.bf16 %v3522_v59, %v3515_v50  ;;  %v3332_v59 = vand.u32 4294901760, %v18977_v9  ;;  %v3528_v17 = vsub.f32 %v18813_v31, %v24701_v44 }
 0x10f   :  { %14913 = vmatprep.subr.bf16.mxu1 %v25613_v21  ;;  %v25675_v21 = vand.u32 4294901760, %v18806_v37  ;;  %v3410_v22 = vand.u32 4294901760, %v3409_v10  ;;  %v19010_v5 = vpack.c.bf16 %v3380_v55, %v3377_v15  ;;  %v19020_v10 = vand.u32 4294901760, %v18927_v3 }
 0x110   :  { %15143 = vmatpush3.bf16.msra.mxu0 %v18823_v63  ;;  %25679 = vst [vmem:[#allocation72_spill] sm:$0xff] %v18993_v47 }
 0x111   :  { %v3402_v26 = vsub.f32 %v18806_v37, %v25675_v21  ;;  %2147 = vmatmul.mubr.f32.vlgmr.msra.gmra.mrb[14].mxu1 %v25678_v51  ;;  %v3329_v21 = vand.u32 4294901760, %v155_v60  ;;  %15145 = vmatprep.subr.bf16.mxu0 %v18835_v4  ;;  %25680 = vst [vmem:[#allocation50_spill] sm:$0xff] %v19010_v5  ;;  %25682 = vst [vmem:[#allocation52_spill] sm:$0xff] %v19020_v10  ;;  %v3529_v51 = vand.u32 4294901760, %v3528_v17 }
 0x112   :  { %14915 = vmatpush3.bf16.msra.mxu1 %v25619_v13  ;;  %2417 = vmatprep.mubr.f32.mxu1 %v25588_v6  ;;  %v3535_v13 = vsub.f32 %v18821_v32, %v24702_v23  ;;  %v24706_v6 = vand.u32 4294901760, %v18825_v43 }
 0x113   :  { %v3403_v39 = vand.u32 4294901760, %v3402_v26  ;;  %14917 = vmatprep.subr.bf16.mxu1 %v25624_v61  ;;  %v3385_v61 = vsub.f32 %v18980_v24, %v24703_v40  ;;  %v24710_v26 = vand.u32 4294901760, %v18827_v29  ;;  %v19027_v40 = vsub.f32 %v171_v52, %v3377_v15 }
 0x114   :  { %15147 = vmatpush3.bf16.msra.mxu0 %v18841_v53  ;;  %v3536_v44 = vand.u32 4294901760, %v3535_v13  ;;  %v3416_v23 = vsub.f32 %v18825_v43, %v24706_v6  ;;  %v24709_v6 = vand.u32 4294901760, %v18837_v34  ;;  %v19039_v4 = vpack.c.bf16 %v3332_v59, %v3329_v21 }
 0x115   :  { %v19015_v50 = vpack.c.bf16 %v3410_v22, %v3403_v39  ;;  %15149 = vmatprep.subr.bf16.mxu0 %v18864_v20  ;;  %v19029_v39 = vsub.f32 %v172_v62, %v3380_v55  ;;  %v3386_v22 = vand.u32 4294901760, %v3385_v61  ;;  %v3423_v53 = vsub.f32 %v18827_v29, %v24710_v26  ;;  %v25687_v61 = vld [vmem:[#allocation53_spill] sm:$0xff]  ;;  %v25689_v26 = vld [vmem:[#allocation54_spill] sm:$0xff] }
 0x116   :  { %14919 = vmatpush3.bf16.msra.mxu1 %v25627_v45  ;;  %v19035_v17 = vpack.c.bf16 %v3536_v44, %v3529_v51  ;;  %v3417_v13 = vand.u32 4294901760, %v3416_v23  ;;  %v24711_v45 = vand.u32 4294901760, %v18839_v54  ;;  %25684 = vst [vmem:[#allocation74_spill] sm:$0xff] %v19039_v4  ;;  %v24716_v55 = vand.u32 4294901760, %v18850_v11  ;;  %v25686_v44 = vld [vmem:[#allocation23_spill] sm:$0xff] }
 0x117   :  { %25681 = vst [vmem:[#allocation51_spill] sm:$0xff] %v19015_v50  ;;  %14921 = vmatprep.subr.bf16.mxu1 %v25630_v1  ;;  %3387 = vmatprep.mubr.f32.mxu0 %v3386_v22  ;;  %v3424_v52 = vand.u32 4294901760, %v3423_v53  ;;  %v24717_v62 = vand.u32 4294901760, %v18852_v57  ;;  %v19046_v1 = vsub.f32 %v18927_v3, %v19020_v10  ;;  %v3542_v23 = vsub.f32 %v18837_v34, %v24709_v6 }
 0x118   :  { %25683 = vst [vmem:[#allocation67_spill] sm:$0xff] %v19035_v17  ;;  %15151 = vmatpush3.bf16.msra.mxu0 %v18884_v7  ;;  %v3549_v15 = vsub.f32 %v18839_v54, %v24711_v45  ;;  %v3430_v3 = vsub.f32 %v18850_v11, %v24716_v55  ;;  %v24718_v6 = vand.u32 4294901760, %v18882_v8  ;;  %v19067_v45 = vsub.f32 %v155_v60, %v3329_v21 }
 0x119   :  { %25685 = vst [vmem:[#allocation78_spill] sm:$0xff] %v19046_v1  ;;  %15153 = vmatprep.subr.bf16.mxu0 %v18894_v27  ;;  %v19057_v51 = vpack.c.bf16 %v3424_v52, %v3417_v13  ;;  %v3437_v22 = vsub.f32 %v18852_v57, %v24717_v62  ;;  %v3543_v53 = vand.u32 4294901760, %v3542_v23  ;;  %v25690_v27 = vand.u32 4294901760, %v25686_v44 }
 0x11a   :  { %14923 = vmatpush3.bf16.msra.mxu1 %v25687_v61  ;;  %v3550_v61 = vand.u32 4294901760, %v3549_v15  ;;  %v3431_v52 = vand.u32 4294901760, %v3430_v3  ;;  %v3563_v55 = vsub.f32 %v18882_v8, %v24718_v6  ;;  %v24721_v62 = vand.u32 4294901760, %v18890_v38  ;;  %v25692_v15 = vld [vmem:[#allocation56_spill] sm:$0xff] }
 0x11b   :  { %25688 = vst [vmem:[#allocation23_spill] sm:$0xff] %v19057_v51  ;;  %14925 = vmatprep.subr.bf16.mxu1 %v25689_v26  ;;  %v3556_v13 = vsub.f32 %v25686_v44, %v25690_v27  ;;  %v3438_v7 = vand.u32 4294901760, %v3437_v22  ;;  %v19078_v26 = vsub.f32 %v18977_v9, %v3332_v59  ;;  %v24722_v23 = vand.u32 4294901760, %v18892_v16  ;;  %v25694_v9 = vld [vmem:[#allocation59_spill] sm:$0xff] }
 0x11c   :  { %15155 = vmatpush3.bf16.msra.mxu0 %v18906_v48  ;;  %v19080_v60 = vpack.c.bf16 %v3550_v61, %v3543_v53  ;;  %v3564_v22 = vand.u32 4294901760, %v3563_v55  ;;  %v3444_v6 = vsub.f32 %v18890_v38, %v24721_v62  ;;  %v24725_v53 = vand.u32 4294901760, %v18896_v58  ;;  %v25697_v55 = vld [vmem:[#allocation60_spill] sm:$0xff]  ;;  %v25698_v62 = vld [vmem:[#allocation26_spill] sm:$0xff] }
 0x11d   :  { %v3557_v21 = vand.u32 4294901760, %v3556_v13  ;;  %15157 = vmatprep.subr.bf16.mxu0 %v18919_v18  ;;  %v19086_v3 = vpack.c.bf16 %v3438_v7, %v3431_v52  ;;  %v3451_v59 = vsub.f32 %v18892_v16, %v24722_v23  ;;  %v24726_v61 = vand.u32 4294901760, %v18904_v35  ;;  %v25695_v13 = vld [vmem:[#allocation58_spill] sm:$0xff] }
 0x11e   :  { %25691 = vst [vmem:[#allocation53_spill] sm:$0xff] %v19080_v60  ;;  %14927 = vmatpush3.bf16.msra.mxu1 %v25692_v15  ;;  %v24727_v15 = vand.u32 4294901760, %v25695_v13  ;;  %v3445_v7 = vand.u32 4294901760, %v3444_v6  ;;  %v24734_v52 = vand.u32 4294901760, %v25697_v55  ;;  %v3570_v23 = vsub.f32 %v18896_v58, %v24725_v53  ;;  %v25699_v6 = vld [vmem:[#allocation62_spill] sm:$0xff]  ;;  %v11795_v63 = vpop.f32.mrb[2].mxu1 }
 0x11f   :  { %25693 = vst [vmem:[#allocation54_spill] sm:$0xff] %v19086_v3  ;;  %14929 = vmatprep.subr.bf16.mxu1 %v25694_v9  ;;  %v19098_v27 = vpack.c.bf16 %v3564_v22, %v3557_v21  ;;  %v3452_v9 = vand.u32 4294901760, %v3451_v59  ;;  %v3577_v48 = vsub.f32 %v18904_v35, %v24726_v61  ;;  %v25700_v22 = vand.u32 4294901760, %v19046_v1  ;;  %v11796_v51 = vpop.f32.mrb[3].mxu1 }
 0x120   :  { %15159 = vmatpush3.bf16.msra.mxu0 %v25698_v62  ;;  %v3458_v21 = vsub.f32 %v25695_v13, %v24727_v15  ;;  %v15200_v18 = vpack.c.bf16 %v18795_v36, %v18793_v49  ;;  %v3465_v53 = vsub.f32 %v25697_v55, %v24734_v52  ;;  %v24735_v61 = vand.u32 4294901760, %v18935_v12  ;;  %v25701_v62 = vld [vmem:[#allocation63_spill] sm:$0xff]  ;;  %v25707_v52 = vld [vmem:[#allocation65_spill] sm:$0xff] }
 0x121   :  { %25696 = vst [vmem:[#allocation56_spill] sm:$0xff] %v19098_v27  ;;  %15161 = vmatprep.subr.bf16.mxu0 %v18960_v14  ;;  %v3391_v59 = vsub.f32 %v19046_v1, %v25700_v22  ;;  %v19124_v15 = vpack.c.bf16 %v3452_v9, %v3445_v7  ;;  %v3578_v20 = vand.u32 4294901760, %v3577_v48  ;;  %v25703_v22 = vand.u32 4294901760, %v18932_v42  ;;  %v25705_v9 = vld [vmem:[#allocation64_spill] sm:$0xff] }
 0x122   :  { %14931 = vmatpush3.bf16.msra.mxu1 %v25699_v6  ;;  %v3571_v6 = vand.u32 4294901760, %v3570_v23  ;;  %v3459_v14 = vand.u32 4294901760, %v3458_v21  ;;  %v3466_v27 = vand.u32 4294901760, %v3465_v53  ;;  %v3591_v60 = vsub.f32 %v18935_v12, %v24735_v61 }
 0x123   :  { %14933 = vmatprep.subr.bf16.mxu1 %v25701_v62  ;;  %25702 = vst [vmem:[#allocation59_spill] sm:$0xff] %v19124_v15  ;;  %v3584_v3 = vsub.f32 %v18932_v42, %v25703_v22  ;;  %v15202_v62 = vpack.c.bf16 %v18808_v19, %v18806_v37  ;;  %v24745_v23 = vand.u32 4294901760, %v18939_v33  ;;  %v24743_v53 = vand.u32 4294901760, %v18962_v28 }
 0x124   :  { %15163 = vmatpush3.bf16.msra.mxu0 %v18967_v2  ;;  %v19136_v48 = vpack.c.bf16 %v3578_v20, %v3571_v6  ;;  %v11797_v7 = vadd.f32 %v11796_v51, %v11795_v63  ;;  %v19142_v21 = vpack.c.bf16 %v3466_v27, %v3459_v14  ;;  %v3592_v61 = vand.u32 4294901760, %v3591_v60 }
 0x125   :  { %15165 = vmatprep.subr.bf16.mxu0 %v19010_v5  ;;  %v3585_v22 = vand.u32 4294901760, %v3584_v3  ;;  %v3392_v2 = vand.u32 4294901760, %v3391_v59  ;;  %v25708_v15 = vand.u32 4294901760, %v18937_v56  ;;  %v3479_v6 = vsub.f32 %v18939_v33, %v24745_v23  ;;  %v25719_v23 = vld [vmem:[#allocation38_spill] sm:$0xff] }
 0x126   :  { %25704 = vst [vmem:[#allocation58_spill] sm:$0xff] %v19136_v48  ;;  %14935 = vmatpush3.bf16.msra.mxu1 %v25705_v9  ;;  %25706 = vst [vmem:[#allocation60_spill] sm:$0xff] %v19142_v21  ;;  %v3598_v63 = vsub.f32 %v18962_v28, %v24743_v53  ;;  %v19155_v14 = vadd.f32 %v11797_v7, %v18929_v46  ;;  %v24738_v60 = vand.u32 4294901760, %v18964_v25  ;;  %v24739_v27 = vand.u32 4294901760, %v18969_v0  ;;  %v25710_v9 = vld [vmem:[#allocation66_spill] sm:$0xff] }
 0x127   :  { %14937 = vmatprep.subr.bf16.mxu1 %v25707_v52  ;;  %v3472_v20 = vsub.f32 %v18937_v56, %v25708_v15  ;;  %v19157_v51 = vpack.c.bf16 %v3592_v61, %v3585_v22  ;;  %v15204_v3 = vpack.c.bf16 %v18821_v32, %v18813_v31  ;;  %v3480_v52 = vand.u32 4294901760, %v3479_v6 }
 0x128   :  { %15167 = vmatpush3.bf16.msra.mxu0 %v19039_v4  ;;  %v24740_v59 = vand.u32 4294901760, %v18991_v30  ;;  %v3599_v46 = vand.u32 4294901760, %v3598_v63  ;;  %v3605_v61 = vsub.f32 %v18964_v25, %v24738_v60  ;;  %v3486_v7 = vsub.f32 %v18969_v0, %v24739_v27 }
 0x129   :  { %25709 = vst [vmem:[#allocation62_spill] sm:$0xff] %v19157_v51  ;;  %v3473_v15 = vand.u32 4294901760, %v3472_v20  ;;  %15201 = vmatprep.subr.bf16.mxu0 %v15200_v18  ;;  %v24741_v22 = vand.u32 4294901760, %v19027_v40  ;;  %v24742_v18 = vand.u32 4294901760, %v19029_v39  ;;  %v24744_v27 = vand.u32 4294901760, %v19067_v45 }
 0x12a   :  { %14939 = vmatpush3.bf16.msra.mxu1 %v25710_v9  ;;  %v3493_v6 = vsub.f32 %v18991_v30, %v24740_v59  ;;  %v3606_v63 = vand.u32 4294901760, %v3605_v61  ;;  %v3487_v9 = vand.u32 4294901760, %v3486_v7  ;;  %v24746_v59 = vand.u32 4294901760, %v19078_v26 }
 0x12b   :  { %14941 = vmatprep.subr.bf16.mxu1 %v25669_v41  ;;  %v19174_v20 = vpack.c.bf16 %v3480_v52, %v3473_v15  ;;  %3393 = vmatmul.mubr.f32.vlgmr.msra.gmra.mrb[12].mxu0 %v3392_v2  ;;  %v3612_v60 = vsub.f32 %v19027_v40, %v24741_v22  ;;  %v15206_v41 = vpack.c.bf16 %v18827_v29, %v18825_v43  ;;  %v25712_v2 = vld [vmem:[#allocation68_spill] sm:$0xff]  ;;  %v25714_v22 = vld [vmem:[#allocation43_spill] sm:$0xff] }
 0x12c   :  { %15203 = vmatpush3.bf16.msra.mxu0 %v15202_v62  ;;  %v3494_v15 = vand.u32 4294901760, %v3493_v6  ;;  %v3619_v52 = vsub.f32 %v19029_v39, %v24742_v18  ;;  %3760 = vmatprep.mubr.f32.mxu0 %v18980_v24  ;;  %v19192_v61 = vpack.c.bf16 %v3606_v63, %v3599_v46  ;;  %v3500_v62 = vsub.f32 %v19067_v45, %v24744_v27  ;;  %v25716_v46 = vld [vmem:[#allocation71_spill] sm:$0xff]  ;;  %v25718_v27 = vld [vmem:[#allocation45_spill] sm:$0xff] }
 0x12d   :  { %25711 = vst [vmem:[#allocation63_spill] sm:$0xff] %v19174_v20  ;;  %15205 = vmatprep.subr.bf16.mxu0 %v15204_v3  ;;  %v3613_v7 = vand.u32 4294901760, %v3612_v60  ;;  %v15208_v6 = vpack.c.bf16 %v18839_v54, %v18837_v34  ;;  %v15210_v60 = vpack.c.bf16 %v18852_v57, %v18850_v11 }
 0x12e   :  { %14943 = vmatpush3.bf16.msra.mxu1 %v25712_v2  ;;  %25713 = vst [vmem:[#allocation64_spill] sm:$0xff] %v19192_v61  ;;  %v19200_v18 = vpack.c.bf16 %v3494_v15, %v3487_v9  ;;  %v3620_v53 = vand.u32 4294901760, %v3619_v52  ;;  %v3507_v2 = vsub.f32 %v19078_v26, %v24746_v59  ;;  %v3501_v3 = vand.u32 4294901760, %v3500_v62  ;;  %v25720_v15 = vld [vmem:[#allocation47_spill] sm:$0xff]  ;;  %v25722_v62 = vld [vmem:[#allocation10_spill] sm:$0xff] }
 0x12f   :  { %14977 = vmatprep.subr.bf16.mxu1 %v25714_v22  ;;  %v15212_v9 = vpack.c.bf16 %v18882_v8, %v25686_v44 }
 0x130   :  { %25715 = vst [vmem:[#allocation65_spill] sm:$0xff] %v19200_v18  ;;  %15207 = vmatpush3.bf16.msra.mxu0 %v15206_v41  ;;  %v19208_v63 = vpack.c.bf16 %v3620_v53, %v3613_v7  ;;  %v3508_v22 = vand.u32 4294901760, %v3507_v2  ;;  %v15214_v41 = vpack.c.bf16 %v18892_v16, %v18890_v38  ;;  %v15216_v53 = vpack.c.bf16 %v18904_v35, %v18896_v58  ;;  %v25724_v2 = vld [vmem:[#allocation12_spill] sm:$0xff] }
 0x131   :  { %2419 = vmatmul.mubr.f32.vlgmr.msra.gmra.mrb[16].mxu1 %v25716_v46  ;;  %15209 = vmatprep.subr.bf16.mxu0 %v15208_v6  ;;  %v15218_v7 = vpack.c.bf16 %v25697_v55, %v25695_v13  ;;  %v15220_v6 = vpack.c.bf16 %v18935_v12, %v18932_v42  ;;  %v15222_v46 = vpack.c.bf16 %v18939_v33, %v18937_v56 }
 0x132   :  { %25717 = vst [vmem:[#allocation66_spill] sm:$0xff] %v19208_v63  ;;  %14979 = vmatpush3.bf16.msra.mxu1 %v25718_v27  ;;  %2761 = vmatprep.mubr.f32.mxu1 %v25719_v23  ;;  %v19215_v52 = vpack.c.bf16 %v3508_v22, %v3501_v3  ;;  %v25723_v27 = vld [vmem:[#allocation11_spill] sm:$0xff]  ;;  %v25725_v3 = vld [vmem:[#allocation13_spill] sm:$0xff]  ;;  %v15224_v22 = vpack.c.bf16 %v18964_v25, %v18962_v28 }
 0x133   :  { %14981 = vmatprep.subr.bf16.mxu1 %v25720_v15 }
 0x134   :  { %25721 = vst [vmem:[#allocation68_spill] sm:$0xff] %v19215_v52  ;;  %15211 = vmatpush3.bf16.msra.mxu0 %v15210_v60  ;;  %v25726_v60 = vld [vmem:[#allocation14_spill] sm:$0xff] }
 0x135   :  { %15213 = vmatprep.subr.bf16.mxu0 %v15212_v9  ;;  %v25727_v9 = vld [vmem:[#allocation15_spill] sm:$0xff] }
 0x136   :  { %14983 = vmatpush3.bf16.msra.mxu1 %v25722_v62 }
 0x137   :  { %14985 = vmatprep.subr.bf16.mxu1 %v25723_v27  ;;  %v25729_v27 = vld [vmem:[#allocation16_spill] sm:$0xff] }
 0x138   :  { %15215 = vmatpush3.bf16.msra.mxu0 %v15214_v41 }
 0x139   :  { %15217 = vmatprep.subr.bf16.mxu0 %v15216_v53  ;;  %v15226_v53 = vpack.c.bf16 %v18991_v30, %v18969_v0 }
 0x13a   :  { %14987 = vmatpush3.bf16.msra.mxu1 %v25724_v2  ;;  %v25730_v2 = vld [vmem:[#allocation17_spill] sm:$0xff] }
 0x13b   :  { %14989 = vmatprep.subr.bf16.mxu1 %v25725_v3 }
 0x13c   :  { %15219 = vmatpush3.bf16.msra.mxu0 %v15218_v7  ;;  %v11970_v15 = vpop.f32.mrb[0].mxu0  ;;  %v15228_v7 = vpack.c.bf16 %v19029_v39, %v19027_v40 }
 0x13d   :  { %15221 = vmatprep.subr.bf16.mxu0 %v15220_v6  ;;  %v11971_v41 = vpop.f32.mrb[1].mxu0 }
 0x13e   :  { %14991 = vmatpush3.bf16.msra.mxu1 %v25726_v60  ;;  %v19235_v62 = vadd.f32 %v11971_v41, %v11970_v15  ;;  %v15230_v60 = vpack.c.bf16 %v19078_v26, %v19067_v45  ;;  %v25731_v15 = vld [vmem:[#allocation42_spill] sm:$0xff]  ;;  %v25733_v41 = vand.u32 4294901760, %v18795_v36 }
 0x13f   :  { %14993 = vmatprep.subr.bf16.mxu1 %v25727_v9 }
 0x140   :  { %25728 = vst [vmem:[#allocation43_spill] sm:$0xff] %v19235_v62  ;;  %15223 = vmatpush3.bf16.msra.mxu0 %v15222_v46  ;;  %v25732_v46 = vand.u32 4294901760, %v18793_v49  ;;  %v25739_v49 = vand.u32 4294901760, %v18821_v32  ;;  %v25747_v32 = vand.u32 4294901760, %v18839_v54  ;;  %v25756_v54 = vld [vmem:[#allocation30_spill] sm:$0xff] }
 0x141   :  { %15225 = vmatprep.subr.bf16.mxu0 %v15224_v22 }
 0x142   :  { %14995 = vmatpush3.bf16.msra.mxu1 %v25729_v27  ;;  %v15264_v22 = vpack.c.bf16 %v25733_v41, %v25732_v46  ;;  %v25734_v27 = vld [vmem:[#allocation18_spill] sm:$0xff] }
 0x143   :  { %14997 = vmatprep.subr.bf16.mxu1 %v25730_v2  ;;  %v25736_v2 = vand.u32 4294901760, %v18808_v19  ;;  %v25743_v19 = vld [vmem:[#allocation61_spill] sm:$0xff]  ;;  %v25748_v41 = vld [vmem:[#allocation46_spill] sm:$0xff] }
 0x144   :  { %v11830_v6 = vpop.f32.mrb[4].mxu1  ;;  %15227 = vmatpush3.bf16.msra.mxu0 %v15226_v53  ;;  %v25735_v53 = vand.u32 4294901760, %v18806_v37  ;;  %v25742_v37 = vand.u32 4294901760, %v18827_v29 }
 0x145   :  { %v11831_v3 = vpop.f32.mrb[5].mxu1  ;;  %15229 = vmatprep.subr.bf16.mxu0 %v15228_v7  ;;  %v25738_v7 = vand.u32 4294901760, %v18813_v31  ;;  %v25746_v31 = vand.u32 4294901760, %v18837_v34  ;;  %v25755_v34 = vand.u32 4294901760, %v18882_v8  ;;  %v25760_v8 = vand.u32 4294901760, %v18896_v58  ;;  %v192_v58 = vld [vmem:[%s24464_s1 + $0x498] sm:$0xff] }
 0x146   :  { %v11832_v9 = vadd.f32 %v11831_v3, %v11830_v6  ;;  %14999 = vmatpush3.bf16.msra.mxu1 %v25731_v15  ;;  %v15266_v4 = vpack.c.bf16 %v25736_v2, %v25735_v53  ;;  %v25737_v6 = vld [vmem:[#allocation21_spill] sm:$0xff]  ;;  %v25740_v3 = vld [vmem:[#allocation24_spill] sm:$0xff]  ;;  %v25745_v15 = vld [vmem:[#allocation31_spill] sm:$0xff]  ;;  %v25754_v2 = vand.u32 4294901760, %v25686_v44 }
 0x147   :  { %15001 = vmatprep.subr.bf16.mxu1 %v25734_v27  ;;  %v15268_v36 = vpack.c.bf16 %v25739_v49, %v25738_v7  ;;  %v15272_v46 = vpack.c.bf16 %v25747_v32, %v25746_v31  ;;  %v25752_v27 = vld [vmem:[#allocation39_spill] sm:$0xff]  ;;  %v25757_v7 = vand.u32 4294901760, %v18890_v38  ;;  %v25758_v49 = vand.u32 4294901760, %v18892_v16  ;;  %v25762_v38 = vld [vmem:[#allocation8_spill] sm:$0xff]  ;;  %v191_v31 = vld [vmem:[%s24464_s1 + $0x490] sm:$0xff] }
 0x148   :  { %v19252_v59 = vadd.f32 %v11832_v9, %v19155_v14  ;;  %15231 = vmatpush3.bf16.msra.mxu0 %v15230_v60  ;;  %v25741_v14 = vand.u32 4294901760, %v18825_v43  ;;  %v25744_v9 = vld [vmem:[#allocation70_spill] sm:$0xff]  ;;  %v25750_v43 = vand.u32 4294901760, %v18852_v57  ;;  %v25753_v53 = vand.u32 4294901760, %v25752_v27  ;;  %v190_v57 = vld [vmem:[%s24464_s1 + $0x488] sm:$0xff] }
 0x149   :  { %15265 = vmatprep.subr.bf16.mxu0 %v15264_v22  ;;  %v25751_v22 = vld [vmem:[#allocation6_spill] sm:$0xff]  ;;  %v15278_v44 = vpack.c.bf16 %v25758_v49, %v25757_v7  ;;  %v25764_v32 = vand.u32 4294901760, %v25697_v55  ;;  %v25771_v7 = vand.u32 4294901760, %v18964_v25  ;;  %v25775_v25 = vand.u32 4294901760, %v19027_v40 }
 0x14a   :  { %15003 = vmatpush3.bf16.msra.mxu1 %v25737_v6  ;;  %v15270_v60 = vpack.c.bf16 %v25742_v37, %v25741_v14  ;;  %v15276_v6 = vpack.c.bf16 %v25755_v34, %v25754_v2  ;;  %v173_v37 = vld [vmem:[%s24464_s1 + $0x400] sm:$0xff]  ;;  %v175_v2 = vld [vmem:[%s24464_s1 + $0x410] sm:$0xff]  ;;  %v176_v34 = vld [vmem:[%s24464_s1 + $0x418] sm:$0xff] }
 0x14b   :  { %15005 = vmatprep.subr.bf16.mxu1 %v25740_v3  ;;  %3763 = vmatmul.mubr.f32.vlgmr.msra.gmra.mrb[14].mxu0 %v19046_v1  ;;  %v25761_v3 = vand.u32 4294901760, %v18904_v35  ;;  %v25763_v35 = vand.u32 4294901760, %v25695_v13  ;;  %v4149_v27 = vand.u32 4294901760, %v173_v37  ;;  %v25768_v13 = vand.u32 4294901760, %v18937_v56 }
 0x14c   :  { %15267 = vmatpush3.bf16.msra.mxu0 %v15266_v4  ;;  %4037 = vmatprep.mubr.f32.mxu0 %v25743_v19  ;;  %v25749_v4 = vand.u32 4294901760, %v18850_v11  ;;  %v189_v11 = vld [vmem:[%s24464_s1 + $0x480] sm:$0xff]  ;;  %v25773_v56 = vand.u32 4294901760, %v18969_v0  ;;  %v25795_v19 = vld [vmem:[#allocation25_spill] sm:$0xff] }
 0x14d   :  { %15269 = vmatprep.subr.bf16.mxu0 %v15268_v36  ;;  %v25759_v36 = vld [vmem:[#allocation7_spill] sm:$0xff]  ;;  %v15280_v14 = vpack.c.bf16 %v25761_v3, %v25760_v8  ;;  %v4197_v16 = vand.u32 4294901760, %v189_v11  ;;  %v4206_v8 = vand.u32 4294901760, %v192_v58  ;;  %v193_v3 = vld [vmem:[%s24464_s1 + $0x4a0] sm:$0xff] }
 0x14e   :  { %15007 = vmatpush3.bf16.msra.mxu1 %v25744_v9  ;;  %v15274_v29 = vpack.c.bf16 %v25750_v43, %v25749_v4  ;;  %v4200_v9 = vand.u32 4294901760, %v190_v57  ;;  %v25765_v4 = vand.u32 4294901760, %v18932_v42  ;;  %v25766_v43 = vand.u32 4294901760, %v18935_v12  ;;  %v177_v0 = vld [vmem:[%s24464_s1 + $0x420] sm:$0xff] }
 0x14f   :  { %15041 = vmatprep.subr.bf16.mxu1 %v25745_v15  ;;  %v25769_v42 = vand.u32 4294901760, %v18939_v33  ;;  %v25770_v12 = vand.u32 4294901760, %v18962_v28  ;;  %v25774_v33 = vand.u32 4294901760, %v18991_v30  ;;  %v178_v30 = vld [vmem:[%s24464_s1 + $0x428] sm:$0xff]  ;;  %v19373_v40 = vsub.f32 %v189_v11, %v4197_v16 }
 0x150   :  { %15271 = vmatpush3.bf16.msra.mxu0 %v15270_v60  ;;  %v174_v60 = vld [vmem:[%s24464_s1 + $0x408] sm:$0xff]  ;;  %v19401_v24 = vsub.f32 %v192_v58, %v4206_v8  ;;  %v197_v58 = vld [vmem:[%s24464_s1 + $0x4c0] sm:$0xff] }
 0x151   :  { %2763 = vmatmul.mubr.f32.vlgmr.msra.gmra.mrb[18].mxu1 %v25748_v41  ;;  %15273 = vmatprep.subr.bf16.mxu0 %v15272_v46  ;;  %v15282_v46 = vpack.c.bf16 %v25764_v32, %v25763_v35  ;;  %v15286_v55 = vpack.c.bf16 %v25769_v42, %v25768_v13  ;;  %v15288_v49 = vpack.c.bf16 %v25771_v7, %v25770_v12  ;;  %v25772_v35 = vld [vmem:[#allocation33_spill] sm:$0xff]  ;;  %v25776_v32 = vand.u32 4294901760, %v19029_v39 }
 0x152   :  { %15043 = vmatpush3.bf16.msra.mxu1 %v25751_v22  ;;  %3005 = vmatprep.mubr.f32.mxu1 %v25753_v53  ;;  %v4152_v53 = vand.u32 4294901760, %v174_v60  ;;  %v19351_v28 = vpack.c.bf16 %v25774_v33, %v25773_v56  ;;  %v25778_v13 = vand.u32 4294901760, %v19078_v26  ;;  %v19365_v12 = vpack.c.bf16 %v4200_v9, %v4197_v16  ;;  %v195_v26 = vld [vmem:[%s24464_s1 + $0x4b0] sm:$0xff]  ;;  %v196_v56 = vld [vmem:[%s24464_s1 + $0x4b8] sm:$0xff]  ;;  %v25796_v41 = vld [vmem:[#allocation37_spill] sm:$0xff] }
 0x153   :  { %15045 = vmatprep.subr.bf16.mxu1 %v25756_v54  ;;  %v19375_v39 = vsub.f32 %v190_v57, %v4200_v9  ;;  %v4155_v7 = vand.u32 4294901760, %v175_v2  ;;  %v179_v57 = vld [vmem:[%s24464_s1 + $0x430] sm:$0xff]  ;;  %v180_v16 = vld [vmem:[%s24464_s1 + $0x438] sm:$0xff]  ;;  %v25781_v9 = vld [vmem:[#allocation28_spill] sm:$0xff]  ;;  %v4215_v52 = vand.u32 4294901760, %v195_v26  ;;  %v4218_v63 = vand.u32 4294901760, %v196_v56 }
 0x154   :  { %15275 = vmatpush3.bf16.msra.mxu0 %v15274_v29  ;;  %v15284_v29 = vpack.c.bf16 %v25766_v43, %v25765_v4  ;;  %v19357_v4 = vpack.c.bf16 %v25776_v32, %v25775_v25  ;;  %v25777_v43 = vand.u32 4294901760, %v19067_v45  ;;  %25779 = vst [vmem:[#allocation71_spill] sm:$0xff] %v19365_v12  ;;  %v4158_v45 = vand.u32 4294901760, %v176_v34 }
 0x155   :  { %15277 = vmatprep.subr.bf16.mxu0 %v15276_v6  ;;  %v25767_v6 = vld [vmem:[#allocation9_spill] sm:$0xff]  ;;  %v19383_v33 = vpack.c.bf16 %v4152_v53, %v4149_v27  ;;  %v19385_v25 = vsub.f32 %v173_v37, %v4149_v27  ;;  %v4209_v32 = vand.u32 4294901760, %v193_v3  ;;  %v4164_v37 = vand.u32 4294901760, %v178_v30  ;;  %v25783_v27 = vld [vmem:[#allocation34_spill] sm:$0xff] }
 0x156   :  { %15047 = vmatpush3.bf16.msra.mxu1 %v25759_v36  ;;  %v19363_v42 = vpack.c.bf16 %v25778_v13, %v25777_v43  ;;  %v19394_v43 = vsub.f32 %v174_v60, %v4152_v53  ;;  %v4161_v13 = vand.u32 4294901760, %v177_v0  ;;  %v19403_v62 = vpack.c.bf16 %v4158_v45, %v4155_v7 }
 0x157   :  { %15049 = vmatprep.subr.bf16.mxu1 %v25762_v38  ;;  %25780 = vst [vmem:[#allocation45_spill] sm:$0xff] %v19383_v33  ;;  %v19405_v61 = vsub.f32 %v175_v2, %v4155_v7  ;;  %v4167_v60 = vand.u32 4294901760, %v179_v57  ;;  %v19409_v20 = vsub.f32 %v176_v34, %v4158_v45  ;;  %v198_v2 = vld [vmem:[%s24464_s1 + $0x4c8] sm:$0xff]  ;;  %v25789_v7 = vld [vmem:[#allocation36_spill] sm:$0xff]  ;;  %v19444_v45 = vsub.f32 %v196_v56, %v4218_v63  ;;  %v184_v56 = vld [vmem:[%s24464_s1 + $0x458] sm:$0xff] }
 0x158   :  { %15279 = vmatpush3.bf16.msra.mxu0 %v15278_v44  ;;  %v4203_v44 = vand.u32 4294901760, %v191_v31  ;;  %25784 = vst [vmem:[#allocation47_spill] sm:$0xff] %v19403_v62  ;;  %v19426_v34 = vsub.f32 %v177_v0, %v4161_v13  ;;  %v19442_v0 = vsub.f32 %v195_v26, %v4215_v52  ;;  %v183_v26 = vld [vmem:[%s24464_s1 + $0x450] sm:$0xff] }
 0x159   :  { %15281 = vmatprep.subr.bf16.mxu0 %v15280_v14  ;;  %v194_v14 = vld [vmem:[%s24464_s1 + $0x4a8] sm:$0xff]  ;;  %25792 = vst [vmem:[#allocation15_spill] sm:$0xff] %v19444_v45 }
 0x15a   :  { %15051 = vmatpush3.bf16.msra.mxu1 %v25767_v6  ;;  %v4212_v11 = vand.u32 4294901760, %v194_v14  ;;  %v19399_v5 = vsub.f32 %v191_v31, %v4203_v44  ;;  %v19413_v31 = vsub.f32 %v193_v3, %v4209_v32  ;;  %v17038_v3 = vld [vmem:[%s24463_s0 + $0x10] ss:$48 sps:$4 sm:$0xff]   ;;  %25791 = vst [vmem:[#allocation14_spill] sm:$0xff] %v19442_v0  ;;  %v25802_v0 = vld [vmem:[#allocation41_spill] sm:$0xff] }
 0x15b   :  { %15053 = vmatprep.subr.bf16.mxu1 %v25772_v35  ;;  %v542_v50 = vrot.slane %v17038_v3, %v25795_v19  ;;  %v25798_v3 = vld [vmem:[#allocation40_spill] sm:$0xff] }
 0x15c   :  { %15283 = vmatpush3.bf16.msra.mxu0 %v15282_v46  ;;  %v19396_v46 = vpack.c.bf16 %v4206_v8, %v4203_v44  ;;  %v19411_v51 = vpack.c.bf16 %v4212_v11, %v4209_v32  ;;  %v25787_v44 = vld [vmem:[#allocation35_spill] sm:$0xff]  ;;  %v182_v8 = vld [vmem:[%s24464_s1 + $0x448] sm:$0xff]  ;;  %v199_v32 = vld [vmem:[%s24464_s1 + $0x4d0] sm:$0xff] }
 0x15d   :  { %15285 = vmatprep.subr.bf16.mxu0 %v15284_v29  ;;  %v4170_v29 = vand.u32 4294901760, %v180_v16  ;;  %v4176_v17 = vand.u32 4294901760, %v182_v8 }
 0x15e   :  { %15055 = vmatpush3.bf16.msra.mxu1 %v25781_v9  ;;  %25782 = vst [vmem:[#allocation38_spill] sm:$0xff] %v19396_v46  ;;  %v12040_v1 = vpop.f32.mrb[2].mxu0  ;;  %25786 = vst [vmem:[#allocation11_spill] sm:$0xff] %v19411_v51 }
 0x15f   :  { %15057 = vmatprep.subr.bf16.mxu1 %v25783_v27  ;;  %v12041_v18 = vpop.f32.mrb[3].mxu0  ;;  %v19470_v47 = vsub.f32 %v180_v16, %v4170_v29  ;;  %v201_v27 = vld [vmem:[%s24464_s1 + $0x4e0] sm:$0xff]  ;;  %v186_v16 = vld [vmem:[%s24464_s1 + $0x468] sm:$0xff] }
 0x160   :  { %v19407_v53 = vadd.f32 %v12041_v18, %v12040_v1  ;;  %15287 = vmatpush3.bf16.msra.mxu0 %v15286_v55  ;;  %v19422_v1 = vsub.f32 %v194_v14, %v4212_v11  ;;  %v19424_v18 = vpack.c.bf16 %v4164_v37, %v4161_v13  ;;  %v181_v55 = vld [vmem:[%s24464_s1 + $0x440] sm:$0xff]  ;;  %v19440_v14 = vpack.c.bf16 %v4218_v63, %v4215_v52  ;;  %v200_v11 = vld [vmem:[%s24464_s1 + $0x4d8] sm:$0xff] }
 0x161   :  { %15289 = vmatprep.subr.bf16.mxu0 %v15288_v49  ;;  %v19438_v49 = vsub.f32 %v178_v30, %v4164_v37  ;;  %v17040_v13 = vld [vmem:[%s24463_s0 + $0x70] ss:$48 sps:$4 sm:$0xff]   ;;  %v19455_v37 = vpack.c.bf16 %v4170_v29, %v4167_v60  ;;  %v4221_v52 = vand.u32 4294901760, %v197_v58  ;;  %v4224_v63 = vand.u32 4294901760, %v198_v2  ;;  %25797 = vst [vmem:[#allocation42_spill] sm:$0xff] %v19470_v47 }
 0x162   :  { %25785 = vst [vmem:[#allocation10_spill] sm:$0xff] %v19407_v53  ;;  %15059 = vmatpush3.bf16.msra.mxu1 %v25787_v44  ;;  %25788 = vst [vmem:[#allocation12_spill] sm:$0xff] %v19424_v18  ;;  %v19457_v53 = vsub.f32 %v179_v57, %v4167_v60  ;;  %v4173_v48 = vand.u32 4294901760, %v181_v55  ;;  %v556_v57 = vrot.slane %v17040_v13, %v25795_v19  ;;  %v4230_v44 = vand.u32 4294901760, %v200_v11 }
 0x163   :  { %15061 = vmatprep.subr.bf16.mxu1 %v25789_v7  ;;  %25790 = vst [vmem:[#allocation13_spill] sm:$0xff] %v19440_v14  ;;  %25793 = vst [vmem:[#allocation16_spill] sm:$0xff] %v19455_v37  ;;  %v4227_v7 = vand.u32 4294901760, %v199_v32  ;;  %v4179_v13 = vand.u32 4294901760, %v183_v26  ;;  %v19490_v9 = vsub.f32 %v197_v58, %v4221_v52  ;;  %v19493_v47 = vsub.f32 %v198_v2, %v4224_v63 }
 0x164   :  { %v11865_v30 = vpop.f32.mrb[6].mxu1  ;;  %25794 = vst [vmem:[#allocation17_spill] sm:$0xff] %v19457_v53  ;;  %15291 = vmatpush3.bf16.msra.mxu0 %v19351_v28  ;;  %v202_v28 = vld [vmem:[%s24464_s1 + $0x4e8] sm:$0xff]  ;;  %v19495_v53 = vpack.c.bf16 %v4176_v17, %v4173_v48  ;;  %v19512_v45 = vcombine.low %v542_v50, %v556_v57 }
 0x165   :  { %v11866_v21 = vpop.f32.mrb[7].mxu1  ;;  %15293 = vmatprep.subr.bf16.mxu0 %v19357_v4  ;;  %v4236_v19 = vand.u32 4294901760, %v202_v28  ;;  %v185_v4 = vld [vmem:[%s24464_s1 + $0x460] sm:$0xff]  ;;  %v19515_v35 = vsub.f32 %v199_v32, %v4227_v7 }
 0x166   :  { %v11867_v60 = vadd.f32 %v11866_v21, %v11865_v30  ;;  %15063 = vmatpush3.bf16.msra.mxu1 %v25796_v41  ;;  %v4182_v21 = vand.u32 4294901760, %v184_v56  ;;  %v4233_v30 = vand.u32 4294901760, %v201_v27  ;;  %v19488_v41 = vpack.c.bf16 %v4224_v63, %v4221_v52  ;;  %25801 = vst [vmem:[#allocation24_spill] sm:$0xff] %v19495_v53 }
 0x167   :  { %15065 = vmatprep.subr.bf16.mxu1 %v25798_v3  ;;  %v565_v3 = vcombine.high %v542_v50, %v556_v57  ;;  %v4185_v58 = vand.u32 4294901760, %v185_v4  ;;  %v4188_v52 = vand.u32 4294901760, %v186_v16  ;;  %v19529_v50 = vsub.f32 %v183_v26, %v4179_v13 }
 0x168   :  { %v19486_v29 = vadd.f32 %v11867_v60, %v19252_v59  ;;  %25800 = vst [vmem:[#allocation21_spill] sm:$0xff] %v19488_v41  ;;  %15295 = vmatpush3.bf16.msra.mxu0 %v19363_v42  ;;  %v19501_v59 = vsub.f32 %v181_v55, %v4173_v48  ;;  %v19503_v60 = vsub.f32 %v182_v8, %v4176_v17  ;;  %v203_v17 = vld [vmem:[%s24464_s1 + $0x4f0] sm:$0xff]  ;;  %v204_v55 = vld [vmem:[%s24464_s1 + $0x4f8] sm:$0xff] }
 0x169   :  { %15329 = vmatprep.subr.bf16.mxu0 %v19365_v12  ;;  %v19506_v42 = vpack.c.bf16 %v4230_v44, %v4227_v7  ;;  %v19508_v2 = vpack.c.bf16 %v4182_v21, %v4179_v13  ;;  %v19510_v63 = vpack.c.bf16 %v4236_v19, %v4233_v30  ;;  %v19517_v48 = vsub.f32 %v200_v11, %v4230_v44 }
 0x16a   :  { %25799 = vst [vmem:[#allocation18_spill] sm:$0xff] %v19486_v29  ;;  %15067 = vmatpush3.bf16.msra.mxu1 %v25802_v0  ;;  %v25803_v29 = vld [vmem:[#allocation44_spill] sm:$0xff]  ;;  %v19525_v8 = vand.u32 4294901760, %v565_v3  ;;  %v19531_v7 = vsub.f32 %v184_v56, %v4182_v21  ;;  %v25808_v44 = vand.u32 4294901760, %v19373_v40  ;;  %v25809_v11 = vand.u32 4294901760, %v19375_v39  ;;  %v187_v56 = vld [vmem:[%s24464_s1 + $0x470] sm:$0xff] }
 0x16b   :  { %15069 = vmatprep.subr.bf16.mxu1 %v25803_v29  ;;  %25804 = vst [vmem:[#allocation70_spill] sm:$0xff] %v19506_v42  ;;  %25805 = vst [vmem:[#allocation31_spill] sm:$0xff] %v19508_v2  ;;  %4039 = vmatmul.mubr.f32.vlgmr.msra.gmra.mrb[16].mxu0 %v19020_v10  ;;  %v25810_v10 = vld [vmem:[#allocation77_spill] sm:$0xff]  ;;  %v19541_v29 = vsub.f32 %v201_v27, %v4233_v30  ;;  %v19543_v12 = vsub.f32 %v202_v28, %v4236_v19  ;;  %v24766_v13 = vand.u32 4294901760, %v19394_v43  ;;  %v188_v19 = vld [vmem:[%s24464_s1 + $0x478] sm:$0xff] }
 0x16c   :  { %25806 = vst [vmem:[#allocation6_spill] sm:$0xff] %v19510_v63  ;;  %25807 = vst [vmem:[#allocation39_spill] sm:$0xff] %v19525_v8  ;;  %15331 = vmatpush3.bf16.msra.mxu0 %v19383_v33  ;;  %v4376_v32 = vsub.f32 %v19373_v40, %v25808_v44  ;;  %v4383_v57 = vsub.f32 %v19375_v39, %v25809_v11  ;;  %v19545_v26 = vpack.c.bf16 %v4188_v52, %v4185_v58 }
 0x16d   :  { %15333 = vmatprep.subr.bf16.mxu0 %v19396_v46  ;;  %v19552_v21 = vsub.f32 %v185_v4, %v4185_v58  ;;  %v4239_v44 = vand.u32 4294901760, %v203_v17  ;;  %v4242_v11 = vand.u32 4294901760, %v204_v55  ;;  %v19558_v28 = vsub.f32 %v565_v3, %v19525_v8  ;;  %v25814_v4 = vld [vmem:[#allocation32_spill] sm:$0xff] }
 0x16e   :  { %15071 = vmatpush3.bf16.msra.mxu1 %v25810_v10  ;;  %25811 = vst [vmem:[#allocation30_spill] sm:$0xff] %v19545_v26  ;;  %v4377_v33 = vand.u32 4294901760, %v4376_v32  ;;  %v4384_v27 = vand.u32 4294901760, %v4383_v57  ;;  %v25813_v30 = vand.u32 4294901760, %v19385_v25  ;;  %v25815_v58 = vand.u32 4294901760, %v25814_v4 }
 0x16f   :  { %15105 = vmatprep.subr.bf16.mxu1 %v25745_v15  ;;  %25812 = vst [vmem:[#allocation7_spill] sm:$0xff] %v19558_v28  ;;  %v4271_v15 = vsub.f32 %v19394_v43, %v24766_v13  ;;  %v19569_v32 = vsub.f32 %v186_v16, %v4188_v52  ;;  %v4191_v10 = vand.u32 4294901760, %v187_v56  ;;  %v24769_v57 = vand.u32 4294901760, %v19399_v5 }
 0x170   :  { %v4264_v46 = vsub.f32 %v19385_v25, %v25813_v30  ;;  %15335 = vmatpush3.bf16.msra.mxu0 %v19403_v62  ;;  %v24771_v3 = vand.u32 4294901760, %v19401_v24  ;;  %v19575_v30 = vpack.c.bf16 %v4384_v27, %v4377_v33  ;;  %v24770_v13 = vand.u32 4294901760, %v19558_v28 }
 0x171   :  { %3009 = vmatmul.mubr.f32.vlgmr.msra.gmra.mrb[20].mxu1 %v25815_v58  ;;  %v4272_v4 = vand.u32 4294901760, %v4271_v15  ;;  %15337 = vmatprep.subr.bf16.mxu0 %v19411_v51  ;;  %v19580_v16 = vpack.c.bf16 %v4242_v11, %v4239_v44  ;;  %v4194_v52 = vand.u32 4294901760, %v188_v19  ;;  %v4390_v58 = vsub.f32 %v19399_v5, %v24769_v57 }
 0x172   :  { %15107 = vmatpush3.bf16.msra.mxu1 %v25751_v22  ;;  %3279 = vmatprep.mubr.f32.mxu1 %v25719_v23  ;;  %25816 = vst [vmem:[#allocation8_spill] sm:$0xff] %v19575_v30  ;;  %v4265_v8 = vand.u32 4294901760, %v4264_v46  ;;  %v24774_v22 = vand.u32 4294901760, %v19405_v61  ;;  %v4247_v23 = vsub.f32 %v19558_v28, %v24770_v13  ;;  %v24777_v46 = vand.u32 4294901760, %v19409_v20  ;;  %v25936_v30 = vld [vmem:[#allocation26_spill] sm:$0xff] }
 0x173   :  { %15109 = vmatprep.subr.bf16.mxu1 %v25756_v54  ;;  %25817 = vst [vmem:[#allocation9_spill] sm:$0xff] %v19580_v16  ;;  %v4397_v54 = vsub.f32 %v19401_v24, %v24771_v3  ;;  %v19596_v27 = vsub.f32 %v203_v17, %v4239_v44  ;;  %v19599_v15 = vand.u32 4294901760, %v19512_v45  ;;  %v4391_v57 = vand.u32 4294901760, %v4390_v58 }
 0x174   :  { %v19589_v33 = vpack.c.bf16 %v4272_v4, %v4265_v8  ;;  %15339 = vmatpush3.bf16.msra.mxu0 %v19424_v18  ;;  %v4278_v13 = vsub.f32 %v19405_v61, %v24774_v22  ;;  %v19606_v8 = vsub.f32 %v204_v55, %v4242_v11  ;;  %v4248_v4 = vand.u32 4294901760, %v4247_v23 }
 0x175   :  { %25819 = vst [vmem:[#allocation32_spill] sm:$0xff] %v19599_v15  ;;  %15341 = vmatprep.subr.bf16.mxu0 %v19440_v14  ;;  %v4398_v3 = vand.u32 4294901760, %v4397_v54  ;;  %v4285_v17 = vsub.f32 %v19409_v20, %v24777_v46  ;;  %v19612_v44 = vpack.c.bf16 %v4194_v52, %v4191_v10  ;;  %v24775_v18 = vand.u32 4294901760, %v19413_v31  ;;  %v25826_v46 = vld [vmem:[#allocation15_spill] sm:$0xff] }
 0x176   :  { %25818 = vst [vmem:[#allocation41_spill] sm:$0xff] %v19589_v33  ;;  %15111 = vmatpush3.bf16.msra.mxu1 %v25759_v36  ;;  %v4279_v58 = vand.u32 4294901760, %v4278_v13  ;;  %v24776_v22 = vand.u32 4294901760, %v19422_v1  ;;  %4249 = vmatprep.mubr.f32.mxu0 %v4248_v4  ;;  %v24780_v11 = vand.u32 4294901760, %v19426_v34  ;;  %v24785_v23 = vand.u32 4294901760, %v19438_v49 }
 0x177   :  { %15113 = vmatprep.subr.bf16.mxu1 %v25762_v38  ;;  %25820 = vst [vmem:[#allocation79_spill] sm:$0xff] %v19612_v44  ;;  %v19616_v36 = vpack.c.bf16 %v4398_v3, %v4391_v57  ;;  %v4286_v55 = vand.u32 4294901760, %v4285_v17  ;;  %v19621_v54 = vsub.f32 %v187_v56, %v4191_v10  ;;  %v19625_v38 = vsub.f32 %v19512_v45, %v19599_v15  ;;  %v25824_v56 = vld [vmem:[#allocation14_spill] sm:$0xff]  ;;  %v25825_v17 = vld [vmem:[#allocation33_spill] sm:$0xff] }
 0x178   :  { %15343 = vmatpush3.bf16.msra.mxu0 %v19455_v37  ;;  %v4404_v13 = vsub.f32 %v19413_v31, %v24775_v18  ;;  %v4411_v57 = vsub.f32 %v19422_v1, %v24776_v22  ;;  %v4292_v10 = vsub.f32 %v19426_v34, %v24780_v11  ;;  %v4299_v45 = vsub.f32 %v19438_v49, %v24785_v23  ;;  %v25827_v37 = vld [vmem:[#allocation17_spill] sm:$0xff] }
 0x179   :  { %25821 = vst [vmem:[#allocation80_spill] sm:$0xff] %v19616_v36  ;;  %25822 = vst [vmem:[#allocation81_spill] sm:$0xff] %v19625_v38  ;;  %15345 = vmatprep.subr.bf16.mxu0 %v19488_v41  ;;  %v19635_v3 = vpack.c.bf16 %v4286_v55, %v4279_v58  ;;  %v24786_v4 = vand.u32 4294901760, %v25824_v56  ;;  %v19645_v18 = vsub.f32 %v188_v19, %v4194_v52  ;;  %v24789_v41 = vand.u32 4294901760, %v25826_v46  ;;  %v25829_v52 = vld [vmem:[#allocation42_spill] sm:$0xff] }
 0x17a   :  { %15115 = vmatpush3.bf16.msra.mxu1 %v25767_v6  ;;  %v4405_v22 = vand.u32 4294901760, %v4404_v13  ;;  %v4412_v6 = vand.u32 4294901760, %v4411_v57  ;;  %v4293_v58 = vand.u32 4294901760, %v4292_v10  ;;  %v4300_v55 = vand.u32 4294901760, %v4299_v45  ;;  %v25830_v57 = vld [vmem:[#allocation28_spill] sm:$0xff] }
 0x17b   :  { %25823 = vst [vmem:[#allocation82_spill] sm:$0xff] %v19635_v3  ;;  %15117 = vmatprep.subr.bf16.mxu1 %v25825_v17  ;;  %v4418_v11 = vsub.f32 %v25824_v56, %v24786_v4  ;;  %v24792_v14 = vand.u32 4294901760, %v25827_v37  ;;  %v4425_v19 = vsub.f32 %v25826_v46, %v24789_v41  ;;  %v24795_v13 = vand.u32 4294901760, %v25829_v52 }
 0x17c   :  { %15347 = vmatpush3.bf16.msra.mxu0 %v19495_v53  ;;  %v19655_v17 = vpack.c.bf16 %v4412_v6, %v4405_v22  ;;  %v19664_v45 = vpack.c.bf16 %v4300_v55, %v4293_v58  ;;  %v25832_v6 = vld [vmem:[#allocation34_spill] sm:$0xff] }
 0x17d   :  { %15349 = vmatprep.subr.bf16.mxu0 %v19506_v42  ;;  %v4419_v4 = vand.u32 4294901760, %v4418_v11  ;;  %v4306_v22 = vsub.f32 %v25827_v37, %v24792_v14  ;;  %v4426_v53 = vand.u32 4294901760, %v4425_v19  ;;  %v4313_v41 = vsub.f32 %v25829_v52, %v24795_v13  ;;  %v25835_v42 = vld [vmem:[#allocation35_spill] sm:$0xff] }
 0x17e   :  { %25828 = vst [vmem:[#allocation14_spill] sm:$0xff] %v19655_v17  ;;  %15119 = vmatpush3.bf16.msra.mxu1 %v25830_v57  ;;  %25831 = vst [vmem:[#allocation33_spill] sm:$0xff] %v19664_v45  ;;  %v12110_v23 = vpop.f32.mrb[4].mxu0  ;;  %v24796_v57 = vand.u32 4294901760, %v19490_v9  ;;  %v24801_v11 = vand.u32 4294901760, %v19501_v59  ;;  %v15394_v14 = vpack.c.bf16 %v19394_v43, %v19385_v25 }
 0x17f   :  { %15121 = vmatprep.subr.bf16.mxu1 %v25832_v6  ;;  %v12111_v10 = vpop.f32.mrb[5].mxu0  ;;  %v4307_v58 = vand.u32 4294901760, %v4306_v22  ;;  %v19681_v19 = vpack.c.bf16 %v4426_v53, %v4419_v4  ;;  %v4314_v6 = vand.u32 4294901760, %v4313_v41  ;;  %v25836_v22 = vand.u32 4294901760, %v19493_v47 }
 0x180   :  { %v19678_v51 = vadd.f32 %v12111_v10, %v12110_v23  ;;  %15351 = vmatpush3.bf16.msra.mxu0 %v19508_v2  ;;  %v4432_v13 = vsub.f32 %v19490_v9, %v24796_v57  ;;  %v4320_v23 = vsub.f32 %v19501_v59, %v24801_v11  ;;  %v25837_v53 = vand.u32 4294901760, %v19503_v60  ;;  %v25838_v10 = vld [vmem:[#allocation36_spill] sm:$0xff] }
 0x181   :  { %25834 = vst [vmem:[#allocation17_spill] sm:$0xff] %v19681_v19  ;;  %15353 = vmatprep.subr.bf16.mxu0 %v19510_v63  ;;  %v4439_v55 = vsub.f32 %v19493_v47, %v25836_v22  ;;  %v19704_v22 = vpack.c.bf16 %v4314_v6, %v4307_v58 }
 0x182   :  { %25833 = vst [vmem:[#allocation15_spill] sm:$0xff] %v19678_v51  ;;  %15123 = vmatpush3.bf16.msra.mxu1 %v25835_v42  ;;  %v4327_v41 = vsub.f32 %v19503_v60, %v25837_v53  ;;  %v25839_v42 = vand.u32 4294901760, %v19625_v38  ;;  %v4433_v63 = vand.u32 4294901760, %v4432_v13  ;;  %v4321_v62 = vand.u32 4294901760, %v4320_v23  ;;  %v25843_v23 = vld [vmem:[#allocation37_spill] sm:$0xff] }
 0x183   :  { %15125 = vmatprep.subr.bf16.mxu1 %v25838_v10  ;;  %25840 = vst [vmem:[#allocation42_spill] sm:$0xff] %v19704_v22  ;;  %v4440_v11 = vand.u32 4294901760, %v4439_v55  ;;  %v25841_v53 = vand.u32 4294901760, %v19515_v35  ;;  %v15396_v10 = vpack.c.bf16 %v19401_v24, %v19399_v5  ;;  %v24810_v13 = vand.u32 4294901760, %v19529_v50  ;;  %v25846_v22 = vld [vmem:[#allocation40_spill] sm:$0xff] }
 0x184   :  { %v4253_v57 = vsub.f32 %v19625_v38, %v25839_v42  ;;  %v11900_v2 = vpop.f32.mrb[8].mxu1  ;;  %v4328_v19 = vand.u32 4294901760, %v4327_v41  ;;  %15355 = vmatpush3.bf16.msra.mxu0 %v19545_v26  ;;  %v25842_v42 = vand.u32 4294901760, %v19517_v48  ;;  %v24808_v55 = vand.u32 4294901760, %v19531_v7 }
 0x185   :  { %v4446_v4 = vsub.f32 %v19515_v35, %v25841_v53  ;;  %v11901_v45 = vpop.f32.mrb[9].mxu1  ;;  %15357 = vmatprep.subr.bf16.mxu0 %v19580_v16  ;;  %v19719_v41 = vpack.c.bf16 %v4440_v11, %v4433_v63  ;;  %v24806_v63 = vand.u32 4294901760, %v19541_v29  ;;  %v24809_v11 = vand.u32 4294901760, %v19552_v21 }
 0x186   :  { %v4453_v58 = vsub.f32 %v19517_v48, %v25842_v42  ;;  %v11902_v6 = vadd.f32 %v11901_v45, %v11900_v2  ;;  %15127 = vmatpush3.bf16.msra.mxu1 %v25843_v23  ;;  %v19721_v53 = vpack.c.bf16 %v4328_v19, %v4321_v62  ;;  %v4254_v17 = vand.u32 4294901760, %v4253_v57  ;;  %v25847_v45 = vld [vmem:[#allocation18_spill] sm:$0xff] }
 0x187   :  { %25844 = vst [vmem:[#allocation28_spill] sm:$0xff] %v19719_v41  ;;  %v4447_v26 = vand.u32 4294901760, %v4446_v4  ;;  %15129 = vmatprep.subr.bf16.mxu1 %v25846_v22  ;;  %v4334_v42 = vsub.f32 %v19529_v50, %v24810_v13  ;;  %v4341_v2 = vsub.f32 %v19531_v7, %v24808_v55  ;;  %v24807_v62 = vand.u32 4294901760, %v19543_v12  ;;  %v25928_v41 = vld [vmem:[#allocation57_spill] sm:$0xff] }
 0x188   :  { %25845 = vst [vmem:[#allocation34_spill] sm:$0xff] %v19721_v53  ;;  %v4454_v3 = vand.u32 4294901760, %v4453_v58  ;;  %v19731_v23 = vadd.f32 %v11902_v6, %v25847_v45  ;;  %15359 = vmatpush3.bf16.msra.mxu0 %v19612_v44  ;;  %v24817_v22 = vand.u32 4294901760, %v19569_v32  ;;  %v25849_v58 = vpack.c.bf16 %v19375_v39, %v19373_v40 }
 0x189   :  { %v4335_v19 = vand.u32 4294901760, %v4334_v42  ;;  %v4342_v4 = vand.u32 4294901760, %v4341_v2  ;;  %v4460_v6 = vsub.f32 %v19541_v29, %v24806_v63  ;;  %v4467_v45 = vsub.f32 %v19543_v12, %v24807_v62  ;;  %v25850_v42 = vld [vmem:[#allocation44_spill] sm:$0xff] }
 0x18a   :  { %v19737_v57 = vpack.c.bf16 %v4454_v3, %v4447_v26  ;;  %15131 = vmatpush3.bf16.msra.mxu1 %v25802_v0  ;;  %15393 = vmatprep.subr.bf16.mxu0 %v25849_v58  ;;  %v4348_v26 = vsub.f32 %v19552_v21, %v24809_v11  ;;  %v24813_v3 = vand.u32 4294901760, %v19596_v27  ;;  %v15398_v0 = vpack.c.bf16 %v19409_v20, %v19405_v61 }
 0x18b   :  { %15133 = vmatprep.subr.bf16.mxu1 %v25850_v42  ;;  %v19757_v2 = vpack.c.bf16 %v4342_v4, %v4335_v19  ;;  %v4355_v58 = vsub.f32 %v19569_v32, %v24817_v22  ;;  %4255 = vmatmul.mubr.f32.vlgmr.msra.gmra.mrb[18].mxu0 %v4254_v17  ;;  %v4461_v63 = vand.u32 4294901760, %v4460_v6  ;;  %v4468_v62 = vand.u32 4294901760, %v4467_v45  ;;  %v25852_v4 = vld [vmem:[#allocation77_spill] sm:$0xff] }
 0x18c   :  { %25848 = vst [vmem:[#allocation35_spill] sm:$0xff] %v19737_v57  ;;  %v4349_v55 = vand.u32 4294901760, %v4348_v26  ;;  %v4474_v11 = vsub.f32 %v19596_v27, %v24813_v3  ;;  %15395 = vmatpush3.bf16.msra.mxu0 %v15394_v14  ;;  %v24815_v42 = vand.u32 4294901760, %v19606_v8  ;;  %v24814_v44 = vand.u32 4294901760, %v19621_v54  ;;  %4622 = vmatprep.mubr.f32.mxu0 %v19558_v28  ;;  %v25854_v26 = vld [vmem:[#allocation72_spill] sm:$0xff]  ;;  %v25877_v28 = vld [vmem:[#allocation43_spill] sm:$0xff] }
 0x18d   :  { %25851 = vst [vmem:[#allocation36_spill] sm:$0xff] %v19757_v2  ;;  %v4356_v13 = vand.u32 4294901760, %v4355_v58  ;;  %v24816_v19 = vand.u32 4294901760, %v19645_v18  ;;  %15397 = vmatprep.subr.bf16.mxu0 %v15396_v10  ;;  %v15400_v17 = vpack.c.bf16 %v19422_v1, %v19413_v31  ;;  %v19772_v6 = vpack.c.bf16 %v4468_v62, %v4461_v63 }
 0x18e   :  { %15135 = vmatpush3.bf16.msra.mxu1 %v25852_v4  ;;  %v4475_v45 = vand.u32 4294901760, %v4474_v11  ;;  %v4481_v58 = vsub.f32 %v19606_v8, %v24815_v42  ;;  %v4362_v3 = vsub.f32 %v19621_v54, %v24814_v44  ;;  %v25856_v4 = vld [vmem:[#allocation46_spill] sm:$0xff]  ;;  %v15402_v63 = vpack.c.bf16 %v19438_v49, %v19426_v34  ;;  %v25857_v11 = vld [vmem:[#allocation51_spill] sm:$0xff] }
 0x18f   :  { %25853 = vst [vmem:[#allocation37_spill] sm:$0xff] %v19772_v6  ;;  %15169 = vmatprep.subr.bf16.mxu1 %v25854_v26  ;;  %v19775_v14 = vpack.c.bf16 %v4356_v13, %v4349_v55  ;;  %v4369_v10 = vsub.f32 %v19645_v18, %v24816_v19  ;;  %v25858_v26 = vld [vmem:[#allocation61_spill] sm:$0xff]  ;;  %v15404_v44 = vpack.c.bf16 %v25826_v46, %v25824_v56  ;;  %v25859_v42 = vld [vmem:[#allocation67_spill] sm:$0xff]  ;;  %v229_v6 = vld [vmem:[%s24464_s1 + $0x5c0] sm:$0xff] }
 0x190   :  { %15399 = vmatpush3.bf16.msra.mxu0 %v15398_v0  ;;  %v4482_v13 = vand.u32 4294901760, %v4481_v58  ;;  %v4363_v55 = vand.u32 4294901760, %v4362_v3  ;;  %v15406_v0 = vpack.c.bf16 %v25829_v52, %v25827_v37  ;;  %v25862_v3 = vld [vmem:[#allocation23_spill] sm:$0xff]  ;;  %v15408_v58 = vpack.c.bf16 %v19493_v47, %v19490_v9 }
 0x191   :  { %25855 = vst [vmem:[#allocation40_spill] sm:$0xff] %v19775_v14  ;;  %3281 = vmatmul.mubr.f32.vlgmr.msra.gmra.mrb[22].mxu1 %v25856_v4  ;;  %v4370_v62 = vand.u32 4294901760, %v4369_v10  ;;  %15401 = vmatprep.subr.bf16.mxu0 %v15400_v17  ;;  %v25863_v10 = vld [vmem:[#allocation53_spill] sm:$0xff]  ;;  %v25864_v17 = vld [vmem:[#allocation54_spill] sm:$0xff] }
 0x192   :  { %15171 = vmatpush3.bf16.msra.mxu1 %v25857_v11  ;;  %3623 = vmatprep.mubr.f32.mxu1 %v25858_v26  ;;  %v19794_v19 = vpack.c.bf16 %v4482_v13, %v4475_v45  ;;  %v15412_v45 = vpack.c.bf16 %v19517_v48, %v19515_v35  ;;  %v25866_v13 = vld [vmem:[#allocation59_spill] sm:$0xff] }
 0x193   :  { %15173 = vmatprep.subr.bf16.mxu1 %v25859_v42  ;;  %v19796_v4 = vpack.c.bf16 %v4370_v62, %v4363_v55  ;;  %v15410_v42 = vpack.c.bf16 %v19503_v60, %v19501_v59  ;;  %v15416_v55 = vpack.c.bf16 %v19543_v12, %v19541_v29  ;;  %v25867_v62 = vld [vmem:[#allocation58_spill] sm:$0xff] }
 0x194   :  { %25860 = vst [vmem:[#allocation18_spill] sm:$0xff] %v19794_v19  ;;  %15403 = vmatpush3.bf16.msra.mxu0 %v15402_v63  ;;  %v25865_v63 = vld [vmem:[#allocation56_spill] sm:$0xff] }
 0x195   :  { %25861 = vst [vmem:[#allocation44_spill] sm:$0xff] %v19796_v4  ;;  %15405 = vmatprep.subr.bf16.mxu0 %v15404_v44  ;;  %v15414_v44 = vpack.c.bf16 %v19531_v7, %v19529_v50 }
 0x196   :  { %15175 = vmatpush3.bf16.msra.mxu1 %v25862_v3 }
 0x197   :  { %15177 = vmatprep.subr.bf16.mxu1 %v25863_v10  ;;  %v25869_v10 = vld [vmem:[#allocation60_spill] sm:$0xff] }
 0x198   :  { %15407 = vmatpush3.bf16.msra.mxu0 %v15406_v0 }
 0x199   :  { %15409 = vmatprep.subr.bf16.mxu0 %v15408_v58  ;;  %v15418_v58 = vpack.c.bf16 %v19569_v32, %v19552_v21 }
 0x19a   :  { %15179 = vmatpush3.bf16.msra.mxu1 %v25864_v17  ;;  %v25870_v17 = vld [vmem:[#allocation62_spill] sm:$0xff] }
 0x19b   :  { %15181 = vmatprep.subr.bf16.mxu1 %v25865_v63 }
 0x19c   :  { %15411 = vmatpush3.bf16.msra.mxu0 %v15410_v42  ;;  %v15420_v42 = vpack.c.bf16 %v19606_v8, %v19596_v27 }
 0x19d   :  { %15413 = vmatprep.subr.bf16.mxu0 %v15412_v45 }
 0x19e   :  { %15183 = vmatpush3.bf16.msra.mxu1 %v25866_v13  ;;  %v12180_v11 = vpop.f32.mrb[6].mxu0  ;;  %v15422_v13 = vpack.c.bf16 %v19645_v18, %v19621_v54 }
 0x19f   :  { %15185 = vmatprep.subr.bf16.mxu1 %v25867_v62  ;;  %v12181_v0 = vpop.f32.mrb[7].mxu0 }
 0x1a0   :  { %v19816_v3 = vadd.f32 %v12181_v0, %v12180_v11  ;;  %15415 = vmatpush3.bf16.msra.mxu0 %v15414_v44  ;;  %v25871_v11 = vld [vmem:[#allocation63_spill] sm:$0xff]  ;;  %v25872_v44 = vand.u32 4294901760, %v19373_v40  ;;  %v25873_v0 = vand.u32 4294901760, %v19375_v39  ;;  %v25879_v40 = vand.u32 4294901760, %v19399_v5 }
 0x1a1   :  { %15417 = vmatprep.subr.bf16.mxu0 %v15416_v55  ;;  %v25880_v39 = vand.u32 4294901760, %v19401_v24  ;;  %v25887_v24 = vand.u32 4294901760, %v19413_v31  ;;  %v25888_v5 = vand.u32 4294901760, %v19422_v1  ;;  %v25896_v31 = vand.u32 4294901760, %v25826_v46  ;;  %v25897_v1 = vld [vmem:[#allocation69_spill] sm:$0xff] }
 0x1a2   :  { %25868 = vst [vmem:[#allocation77_spill] sm:$0xff] %v19816_v3  ;;  %15187 = vmatpush3.bf16.msra.mxu1 %v25869_v10  ;;  %v15456_v55 = vpack.c.bf16 %v25873_v0, %v25872_v44  ;;  %v25874_v10 = vld [vmem:[#allocation64_spill] sm:$0xff]  ;;  %v25892_v0 = vld [vmem:[#allocation73_spill] sm:$0xff]  ;;  %v25901_v46 = vand.u32 4294901760, %v19490_v9  ;;  %v224_v9 = vld [vmem:[%s24464_s1 + $0x598] sm:$0xff] }
 0x1a3   :  { %15189 = vmatprep.subr.bf16.mxu1 %v25870_v17  ;;  %v25875_v17 = vand.u32 4294901760, %v19385_v25  ;;  %v25882_v25 = vand.u32 4294901760, %v19405_v61  ;;  %v25889_v44 = vld [vmem:[#allocation52_spill] sm:$0xff]  ;;  %v25890_v61 = vand.u32 4294901760, %v19426_v34  ;;  %v25899_v34 = vand.u32 4294901760, %v25829_v52  ;;  %v206_v52 = vld [vmem:[%s24464_s1 + $0x508] sm:$0xff] }
 0x1a4   :  { %v11935_v45 = vpop.f32.mrb[10].mxu1  ;;  %15419 = vmatpush3.bf16.msra.mxu0 %v15418_v58  ;;  %v25876_v58 = vand.u32 4294901760, %v19394_v43  ;;  %v25883_v43 = vand.u32 4294901760, %v19409_v20  ;;  %v25891_v20 = vand.u32 4294901760, %v19438_v49 }
 0x1a5   :  { %v11936_v63 = vpop.f32.mrb[11].mxu1  ;;  %15421 = vmatprep.subr.bf16.mxu0 %v15420_v42  ;;  %v15460_v42 = vpack.c.bf16 %v25880_v39, %v25879_v40  ;;  %v221_v40 = vld [vmem:[%s24464_s1 + $0x580] sm:$0xff]  ;;  %v25900_v39 = vld [vmem:[#allocation75_spill] sm:$0xff] }
 0x1a6   :  { %v11937_v62 = vadd.f32 %v11936_v63, %v11935_v45  ;;  %15191 = vmatpush3.bf16.msra.mxu1 %v25871_v11  ;;  %v15458_v16 = vpack.c.bf16 %v25876_v58, %v25875_v17  ;;  %v25878_v63 = vld [vmem:[#allocation65_spill] sm:$0xff]  ;;  %v25881_v11 = vld [vmem:[#allocation66_spill] sm:$0xff]  ;;  %v25895_v17 = vand.u32 4294901760, %v25824_v56 }
 0x1a7   :  { %15193 = vmatprep.subr.bf16.mxu1 %v25874_v10  ;;  %v222_v56 = vld [vmem:[%s24464_s1 + $0x588] sm:$0xff] }
 0x1a8   :  { %v1559_v22 = vadd.f32 %v11937_v62, %v19731_v23  ;;  %15423 = vmatpush3.bf16.msra.mxu0 %v15422_v13  ;;  %v15462_v23 = vpack.c.bf16 %v25883_v43, %v25882_v25  ;;  %v25886_v13 = vld [vmem:[#allocation29_spill] sm:$0xff]  ;;  %v15464_v62 = vpack.c.bf16 %v25888_v5, %v25887_v24  ;;  %v15468_v58 = vpack.c.bf16 %v25896_v31, %v25895_v17  ;;  %v25903_v25 = vld [vmem:[#allocation76_spill] sm:$0xff]  ;;  %v223_v43 = vld [vmem:[%s24464_s1 + $0x590] sm:$0xff] }
 0x1a9   :  { %15457 = vmatprep.subr.bf16.mxu0 %v15456_v55  ;;  %v25893_v55 = vld [vmem:[#allocation49_spill] sm:$0xff]  ;;  %v25905_v24 = vand.u32 4294901760, %v19503_v60  ;;  %v25909_v60 = vand.u32 4294901760, %v19529_v50  ;;  %v25910_v31 = vand.u32 4294901760, %v19531_v7  ;;  %v25914_v7 = vand.u32 4294901760, %v19552_v21 }
 0x1aa   :  { %v19838_v45 = vadd.f32 %v25877_v28, %v1559_v22  ;;  %15195 = vmatpush3.bf16.msra.mxu1 %v25878_v63  ;;  %v25884_v28 = vld [vmem:[#allocation39_spill] sm:$0xff]  ;;  %v25885_v22 = vld [vmem:[#allocation68_spill] sm:$0xff]  ;;  %v25894_v10 = vand.u32 4294901760, %v25893_v55  ;;  %v25898_v63 = vand.u32 4294901760, %v25827_v37 }
 0x1ab   :  { %15197 = vmatprep.subr.bf16.mxu1 %v25881_v11  ;;  %4625 = vmatmul.mubr.f32.vlgmr.msra.gmra.mrb[20].mxu0 %v19625_v38  ;;  %v205_v37 = vld [vmem:[%s24464_s1 + $0x500] sm:$0xff] }
 0x1ac   :  { %15459 = vmatpush3.bf16.msra.mxu0 %v15458_v16  ;;  %4899 = vmatprep.mubr.f32.mxu0 %v25884_v28  ;;  %v15466_v16 = vpack.c.bf16 %v25891_v20, %v25890_v61  ;;  %v15470_v49 = vpack.c.bf16 %v25899_v34, %v25898_v63  ;;  %v5014_v61 = vand.u32 4294901760, %v206_v52  ;;  %v207_v20 = vld [vmem:[%s24464_s1 + $0x510] sm:$0xff]  ;;  %v25906_v55 = vld [vmem:[#allocation20_spill] sm:$0xff]  ;;  %v5065_v63 = vand.u32 4294901760, %v223_v43 }
 0x1ad   :  { %15461 = vmatprep.subr.bf16.mxu0 %v15460_v42  ;;  %v25902_v42 = vand.u32 4294901760, %v19493_v47  ;;  %v5059_v47 = vand.u32 4294901760, %v221_v40  ;;  %v5068_v34 = vand.u32 4294901760, %v224_v9 }
 0x1ae   :  { %15199 = vmatpush3.bf16.msra.mxu1 %v25885_v22  ;;  %v25904_v22 = vand.u32 4294901760, %v19501_v59  ;;  %v25908_v59 = vand.u32 4294901760, %v19517_v48  ;;  %v25913_v48 = vand.u32 4294901760, %v19543_v12  ;;  %v209_v12 = vld [vmem:[%s24464_s1 + $0x520] sm:$0xff]  ;;  %v19981_v4 = vsub.f32 %v223_v43, %v5065_v63 }
 0x1af   :  { %15233 = vmatprep.subr.bf16.mxu1 %v25886_v13  ;;  %v15472_v11 = vpack.c.bf16 %v25902_v42, %v25901_v46  ;;  %v226_v46 = vld [vmem:[%s24464_s1 + $0x5a8] sm:$0xff]  ;;  %v25911_v42 = vld [vmem:[#allocation19_spill] sm:$0xff] }
 0x1b0   :  { %15463 = vmatpush3.bf16.msra.mxu0 %v15462_v23  ;;  %v5062_v23 = vand.u32 4294901760, %v222_v56  ;;  %v15474_v5 = vpack.c.bf16 %v25905_v24, %v25904_v22  ;;  %v25916_v24 = vand.u32 4294901760, %v19596_v27 }
 0x1b1   :  { %3625 = vmatmul.mubr.f32.vlgmr.msra.gmra.mrb[24].mxu1 %v25889_v44  ;;  %15465 = vmatprep.subr.bf16.mxu0 %v15464_v62  ;;  %v5011_v62 = vand.u32 4294901760, %v205_v37 }
 0x1b2   :  { %15235 = vmatpush3.bf16.msra.mxu1 %v25892_v0  ;;  %3867 = vmatprep.mubr.f32.mxu1 %v25894_v10  ;;  %v25907_v10 = vand.u32 4294901760, %v19515_v35  ;;  %v25912_v35 = vand.u32 4294901760, %v19541_v29  ;;  %v19950_v21 = vpack.c.bf16 %v5062_v23, %v5059_v47 }
 0x1b3   :  { %15237 = vmatprep.subr.bf16.mxu1 %v25897_v1 }
 0x1b4   :  { %15467 = vmatpush3.bf16.msra.mxu0 %v15466_v16  ;;  %v208_v16 = vld [vmem:[%s24464_s1 + $0x518] sm:$0xff]  ;;  %v15476_v17 = vpack.c.bf16 %v25908_v59, %v25907_v10  ;;  %v15480_v50 = vpack.c.bf16 %v25913_v48, %v25912_v35  ;;  %v25917_v10 = vand.u32 4294901760, %v19606_v8  ;;  %25920 = vst [vmem:[#allocation72_spill] sm:$0xff] %v19950_v21  ;;  %v5017_v35 = vand.u32 4294901760, %v207_v20  ;;  %v210_v8 = vld [vmem:[%s24464_s1 + $0x528] sm:$0xff] }
 0x1b5   :  { %15469 = vmatprep.subr.bf16.mxu0 %v15468_v58  ;;  %v15478_v58 = vpack.c.bf16 %v25910_v31, %v25909_v60  ;;  %v25918_v60 = vand.u32 4294901760, %v19621_v54  ;;  %v25919_v31 = vand.u32 4294901760, %v19645_v18  ;;  %v5020_v27 = vand.u32 4294901760, %v208_v16  ;;  %v227_v18 = vld [vmem:[%s24464_s1 + $0x5b0] sm:$0xff]  ;;  %v228_v54 = vld [vmem:[%s24464_s1 + $0x5b8] sm:$0xff] }
 0x1b6   :  { %15239 = vmatpush3.bf16.msra.mxu1 %v25900_v39  ;;  %v19939_v59 = vpack.c.bf16 %v25917_v10, %v25916_v24  ;;  %v19963_v48 = vsub.f32 %v222_v56, %v5062_v23  ;;  %v212_v24 = vld [vmem:[%s24464_s1 + $0x538] sm:$0xff]  ;;  %v25922_v10 = vld [vmem:[#allocation22_spill] sm:$0xff]  ;;  %v19978_v56 = vpack.c.bf16 %v5068_v34, %v5065_v63  ;;  %v5023_v23 = vand.u32 4294901760, %v209_v12 }
 0x1b7   :  { %15241 = vmatprep.subr.bf16.mxu1 %v25903_v25  ;;  %v19945_v29 = vpack.c.bf16 %v25919_v31, %v25918_v60  ;;  %v19974_v60 = vsub.f32 %v205_v37, %v5011_v62  ;;  %v25924_v31 = vld [vmem:[#allocation55_spill] sm:$0xff]  ;;  %v5026_v19 = vand.u32 4294901760, %v210_v8  ;;  %v5077_v14 = vand.u32 4294901760, %v227_v18  ;;  %v230_v37 = vld [vmem:[%s24464_s1 + $0x5c8] sm:$0xff] }
 0x1b8   :  { %15471 = vmatpush3.bf16.msra.mxu0 %v15470_v49  ;;  %v225_v49 = vld [vmem:[%s24464_s1 + $0x5a0] sm:$0xff]  ;;  %25923 = vst [vmem:[#allocation51_spill] sm:$0xff] %v19978_v56  ;;  %v5080_v3 = vand.u32 4294901760, %v228_v54  ;;  %v5032_v2 = vand.u32 4294901760, %v212_v24  ;;  %v19995_v63 = vsub.f32 %v207_v20, %v5017_v35  ;;  %v19997_v57 = vsub.f32 %v208_v16, %v5020_v27  ;;  %v214_v20 = vld [vmem:[%s24464_s1 + $0x548] sm:$0xff] }
 0x1b9   :  { %15473 = vmatprep.subr.bf16.mxu0 %v15472_v11  ;;  %v25915_v11 = vand.u32 4294901760, %v19569_v32  ;;  %v19952_v32 = vsub.f32 %v221_v40, %v5059_v47  ;;  %v5071_v40 = vand.u32 4294901760, %v225_v49  ;;  %v5074_v47 = vand.u32 4294901760, %v226_v46  ;;  %v17042_v16 = vld [vmem:[%s24463_s0 + $0x14] ss:$48 sps:$4 sm:$0xff]  }
 0x1ba   :  { %15243 = vmatpush3.bf16.msra.mxu1 %v25906_v55  ;;  %v5086_v28 = vand.u32 4294901760, %v230_v37  ;;  %v20052_v51 = vsub.f32 %v212_v24, %v5032_v2 }
 0x1bb   :  { %15245 = vmatprep.subr.bf16.mxu1 %v25911_v42  ;;  %v19933_v22 = vpack.c.bf16 %v25915_v11, %v25914_v7  ;;  %v19965_v7 = vpack.c.bf16 %v5014_v61, %v5011_v62  ;;  %v211_v11 = vld [vmem:[%s24464_s1 + $0x530] sm:$0xff]  ;;  %v19989_v62 = vsub.f32 %v224_v9, %v5068_v34  ;;  %v19999_v53 = vpack.c.bf16 %v5074_v47, %v5071_v40 }
 0x1bc   :  { %15475 = vmatpush3.bf16.msra.mxu0 %v15474_v5  ;;  %v19976_v5 = vsub.f32 %v206_v52, %v5014_v61  ;;  %v19991_v61 = vpack.c.bf16 %v5020_v27, %v5017_v35  ;;  %v20002_v36 = vsub.f32 %v225_v49, %v5071_v40  ;;  %v20004_v9 = vsub.f32 %v226_v46, %v5074_v47  ;;  %v231_v27 = vld [vmem:[%s24464_s1 + $0x5d0] sm:$0xff] }
 0x1bd   :  { %25921 = vst [vmem:[#allocation46_spill] sm:$0xff] %v19965_v7  ;;  %15477 = vmatprep.subr.bf16.mxu0 %v15476_v17  ;;  %v5029_v17 = vand.u32 4294901760, %v211_v11  ;;  %25927 = vst [vmem:[#allocation23_spill] sm:$0xff] %v19999_v53  ;;  %v5083_v34 = vand.u32 4294901760, %v229_v6  ;;  %v20016_v49 = vpack.c.bf16 %v5026_v19, %v5023_v23  ;;  %v20018_v46 = vsub.f32 %v209_v12, %v5023_v23  ;;  %v17043_v40 = vld [vmem:[%s24463_s0 + $0x74] ss:$48 sps:$4 sm:$0xff]  }
 0x1be   :  { %15247 = vmatpush3.bf16.msra.mxu1 %v25922_v10  ;;  %v12250_v38 = vpop.f32.mrb[8].mxu0  ;;  %25925 = vst [vmem:[#allocation61_spill] sm:$0xff] %v19991_v61  ;;  %v20022_v35 = vpack.c.bf16 %v5080_v3, %v5077_v14  ;;  %v216_v23 = vld [vmem:[%s24464_s1 + $0x558] sm:$0xff]  ;;  %25937 = vst [vmem:[#allocation60_spill] sm:$0xff] %v20052_v51  ;;  %v217_v10 = vld [vmem:[%s24464_s1 + $0x560] sm:$0xff] }
 0x1bf   :  { %15249 = vmatprep.subr.bf16.mxu1 %v25924_v31  ;;  %v12251_v52 = vpop.f32.mrb[9].mxu0  ;;  %25930 = vst [vmem:[#allocation53_spill] sm:$0xff] %v20016_v49  ;;  %v20034_v33 = vpack.c.bf16 %v5032_v2, %v5029_v17  ;;  %v20036_v12 = vsub.f32 %v211_v11, %v5029_v17  ;;  %v25939_v31 = vld [vmem:[#allocation5_spill] sm:$0xff] }
 0x1c0   :  { %v19993_v43 = vadd.f32 %v12251_v52, %v12250_v38  ;;  %15479 = vmatpush3.bf16.msra.mxu0 %v15478_v58  ;;  %v213_v38 = vld [vmem:[%s24464_s1 + $0x540] sm:$0xff]  ;;  %v25929_v58 = vld [vmem:[#allocation27_spill] sm:$0xff]  ;;  %25931 = vst [vmem:[#allocation54_spill] sm:$0xff] %v20022_v35  ;;  %v20030_v52 = vsub.f32 %v227_v18, %v5077_v14  ;;  %v5038_v18 = vand.u32 4294901760, %v214_v20  ;;  %v218_v51 = vld [vmem:[%s24464_s1 + $0x568] sm:$0xff] }
 0x1c1   :  { %15481 = vmatprep.subr.bf16.mxu0 %v15480_v50  ;;  %v20020_v50 = vsub.f32 %v210_v8, %v5026_v19  ;;  %25933 = vst [vmem:[#allocation59_spill] sm:$0xff] %v20034_v33  ;;  %25934 = vst [vmem:[#allocation58_spill] sm:$0xff] %v20036_v12  ;;  %v232_v19 = vld [vmem:[%s24464_s1 + $0x5d8] sm:$0xff]  ;;  %v215_v8 = vld [vmem:[%s24464_s1 + $0x550] sm:$0xff] }
 0x1c2   :  { %25926 = vst [vmem:[#allocation67_spill] sm:$0xff] %v19993_v43  ;;  %15251 = vmatpush3.bf16.msra.mxu1 %v25928_v41  ;;  %v20032_v43 = vsub.f32 %v228_v54, %v5080_v3  ;;  %v5035_v3 = vand.u32 4294901760, %v213_v38  ;;  %v25935_v54 = vld [vmem:[#allocation25_spill] sm:$0xff]  ;;  %v5089_v41 = vand.u32 4294901760, %v231_v27 }
 0x1c3   :  { %15253 = vmatprep.subr.bf16.mxu1 %v25929_v58  ;;  %v549_v11 = vrot.slane %v17042_v16, %v25935_v54  ;;  %v563_v17 = vrot.slane %v17043_v40, %v25935_v54  ;;  %v20054_v58 = vpack.c.bf16 %v5086_v28, %v5083_v34  ;;  %v234_v16 = vld [vmem:[%s24464_s1 + $0x5e8] sm:$0xff]  ;;  %v5092_v40 = vand.u32 4294901760, %v232_v19 }
 0x1c4   :  { %v12005_v47 = vpop.f32.mrb[12].mxu1  ;;  %25932 = vst [vmem:[#allocation56_spill] sm:$0xff] %v20032_v43  ;;  %15483 = vmatpush3.bf16.msra.mxu0 %v19933_v22  ;;  %v233_v22 = vld [vmem:[%s24464_s1 + $0x5e0] sm:$0xff]  ;;  %v20075_v12 = vpack.c.bf16 %v5038_v18, %v5035_v3  ;;  %v20077_v43 = vsub.f32 %v213_v38, %v5035_v3  ;;  %v5047_v3 = vand.u32 4294901760, %v217_v10 }
 0x1c5   :  { %v12006_v14 = vpop.f32.mrb[13].mxu1  ;;  %15485 = vmatprep.subr.bf16.mxu0 %v19939_v59  ;;  %25938 = vst [vmem:[#allocation62_spill] sm:$0xff] %v20054_v58  ;;  %v567_v54 = vcombine.high %v549_v11, %v563_v17  ;;  %v20064_v59 = vsub.f32 %v229_v6, %v5083_v34  ;;  %v5095_v24 = vand.u32 4294901760, %v233_v22  ;;  %v25943_v34 = vld [vmem:[#allocation48_spill] sm:$0xff]  ;;  %v5050_v6 = vand.u32 4294901760, %v218_v51 }
 0x1c6   :  { %v12007_v44 = vadd.f32 %v12006_v14, %v12005_v47  ;;  %15255 = vmatpush3.bf16.msra.mxu1 %v25936_v30  ;;  %v5041_v47 = vand.u32 4294901760, %v215_v8  ;;  %v5044_v14 = vand.u32 4294901760, %v216_v23  ;;  %v5098_v30 = vand.u32 4294901760, %v234_v16  ;;  %25941 = vst [vmem:[#allocation64_spill] sm:$0xff] %v20075_v12 }
 0x1c7   :  { %15257 = vmatprep.subr.bf16.mxu1 %v25939_v31  ;;  %25940 = vst [vmem:[#allocation63_spill] sm:$0xff] %v20064_v59  ;;  %v20073_v31 = vsub.f32 %v230_v37, %v5086_v28  ;;  %v20085_v59 = vsub.f32 %v214_v20, %v5038_v18  ;;  %v25945_v28 = vld [vmem:[#allocation50_spill] sm:$0xff]  ;;  %v20091_v37 = vpack.c.bf16 %v5092_v40, %v5089_v41 }
 0x1c8   :  { %v1903_v2 = vadd.f32 %v12007_v44, %v19838_v45  ;;  %15487 = vmatpush3.bf16.msra.mxu0 %v19945_v29  ;;  %v25942_v45 = vld [vmem:[#allocation10_spill] sm:$0xff]  ;;  %v20088_v29 = vand.u32 4294901760, %v567_v54  ;;  %v20093_v38 = vpack.c.bf16 %v5044_v14, %v5041_v47  ;;  %v20100_v20 = vpack.c.bf16 %v5098_v30, %v5095_v24 }
 0x1c9   :  { %15521 = vmatprep.subr.bf16.mxu0 %v19950_v21  ;;  %25946 = vst [vmem:[#allocation65_spill] sm:$0xff] %v20091_v37  ;;  %v20102_v18 = vcombine.low %v549_v11, %v563_v17  ;;  %v20105_v42 = vsub.f32 %v215_v8, %v5041_v47  ;;  %v20107_v21 = vsub.f32 %v216_v23, %v5044_v14  ;;  %v236_v8 = vld [vmem:[%s24464_s1 + $0x5f8] sm:$0xff]  ;;  %v20126_v23 = vld [vmem:[%s24464_s1 + $0x570] sm:$0xff]  ;;  %v25951_v17 = vand.u32 4294901760, %v19963_v48 }
 0x1ca   :  { %v20081_v44 = vadd.f32 %v25942_v45, %v1903_v2  ;;  %15259 = vmatpush3.bf16.msra.mxu1 %v25943_v34  ;;  %25944 = vst [vmem:[#allocation43_spill] sm:$0xff] %v20088_v29  ;;  %25947 = vst [vmem:[#allocation66_spill] sm:$0xff] %v20093_v38  ;;  %v20096_v2 = vsub.f32 %v231_v27, %v5089_v41  ;;  %v20098_v45 = vsub.f32 %v232_v19, %v5092_v40  ;;  %v25950_v19 = vld [vmem:[#allocation74_spill] sm:$0xff] }
 0x1cb   :  { %15261 = vmatprep.subr.bf16.mxu1 %v25945_v28  ;;  %4901 = vmatmul.mubr.f32.vlgmr.msra.gmra.mrb[22].mxu0 %v19599_v15  ;;  %25948 = vst [vmem:[#allocation68_spill] sm:$0xff] %v20100_v20  ;;  %v235_v28 = vld [vmem:[%s24464_s1 + $0x5f0] sm:$0xff]  ;;  %v25949_v15 = vand.u32 4294901760, %v19952_v32  ;;  %v20118_v11 = vsub.f32 %v233_v22, %v5095_v24  ;;  %v20132_v40 = vsub.f32 %v567_v54, %v20088_v29 }
 0x1cc   :  { %15523 = vmatpush3.bf16.msra.mxu0 %v19965_v7  ;;  %v20136_v22 = vsub.f32 %v234_v16, %v5098_v30  ;;  %v20138_v14 = vpack.c.bf16 %v5050_v6, %v5047_v3  ;;  %v20140_v24 = vsub.f32 %v217_v10, %v5047_v3  ;;  %v20142_v27 = vsub.f32 %v218_v51, %v5050_v6  ;;  %v25954_v47 = vld [vmem:[#allocation78_spill] sm:$0xff] }
 0x1cd   :  { %v5238_v41 = vsub.f32 %v19952_v32, %v25949_v15  ;;  %15525 = vmatprep.subr.bf16.mxu0 %v19978_v56  ;;  %v5245_v15 = vsub.f32 %v19963_v48, %v25951_v17  ;;  %25952 = vst [vmem:[#allocation29_spill] sm:$0xff] %v20132_v40  ;;  %v220_v56 = vld [vmem:[%s24464_s1 + $0x578] sm:$0xff]  ;;  %v5101_v17 = vand.u32 4294901760, %v235_v28  ;;  %v24837_v29 = vand.u32 4294901760, %v20132_v40 }
 0x1ce   :  { %15263 = vmatpush3.bf16.msra.mxu1 %v25950_v19  ;;  %25953 = vst [vmem:[#allocation73_spill] sm:$0xff] %v20138_v14  ;;  %v25955_v19 = vand.u32 4294901760, %v25954_v47  ;;  %v5104_v30 = vand.u32 4294901760, %v236_v8  ;;  %v25956_v51 = vand.u32 4294901760, %v19974_v60  ;;  %v25957_v16 = vand.u32 4294901760, %v19976_v5 }
 0x1cf   :  { %15297 = vmatprep.subr.bf16.mxu1 %v25886_v13  ;;  %v5239_v7 = vand.u32 4294901760, %v5238_v41  ;;  %v5246_v54 = vand.u32 4294901760, %v5245_v15  ;;  %v5053_v13 = vand.u32 4294901760, %v20126_v23  ;;  %v5056_v3 = vand.u32 4294901760, %v220_v56 }
 0x1d0   :  { %15527 = vmatpush3.bf16.msra.mxu0 %v19991_v61  ;;  %v5126_v10 = vsub.f32 %v19974_v60, %v25956_v51  ;;  %v5133_v6 = vsub.f32 %v19976_v5, %v25957_v16  ;;  %v24841_v15 = vand.u32 4294901760, %v19981_v4  ;;  %v20168_v47 = vsub.f32 %v235_v28, %v5101_v17 }
 0x1d1   :  { %3871 = vmatmul.mubr.f32.vlgmr.msra.gmra.mrb[26].mxu1 %v25955_v19  ;;  %v20160_v41 = vpack.c.bf16 %v5246_v54, %v5239_v7  ;;  %v5109_v19 = vsub.f32 %v20132_v40, %v24837_v29  ;;  %15529 = vmatprep.subr.bf16.mxu0 %v19999_v53  ;;  %v24842_v54 = vand.u32 4294901760, %v19995_v63  ;;  %v24843_v29 = vand.u32 4294901760, %v19997_v57 }
 0x1d2   :  { %15299 = vmatpush3.bf16.msra.mxu1 %v25892_v0  ;;  %4141 = vmatprep.mubr.f32.mxu1 %v25858_v26  ;;  %v5127_v51 = vand.u32 4294901760, %v5126_v10  ;;  %v5134_v16 = vand.u32 4294901760, %v5133_v6  ;;  %v24840_v0 = vand.u32 4294901760, %v19989_v62  ;;  %v5252_v7 = vsub.f32 %v19981_v4, %v24841_v15 }
 0x1d3   :  { %25958 = vst [vmem:[#allocation49_spill] sm:$0xff] %v20160_v41  ;;  %15301 = vmatprep.subr.bf16.mxu1 %v25897_v1  ;;  %v5110_v26 = vand.u32 4294901760, %v5109_v19  ;;  %v20177_v1 = vpack.c.bf16 %v5104_v30, %v5101_v17  ;;  %v20182_v28 = vand.u32 4294901760, %v20102_v18  ;;  %v20189_v6 = vsub.f32 %v236_v8, %v5104_v30  ;;  %v26077_v41 = vld [vmem:[#allocation31_spill] sm:$0xff] }
 0x1d4   :  { %15531 = vmatpush3.bf16.msra.mxu0 %v20016_v49  ;;  %v20179_v53 = vpack.c.bf16 %v5134_v16, %v5127_v51  ;;  %v5259_v10 = vsub.f32 %v19989_v62, %v24840_v0  ;;  %v5253_v19 = vand.u32 4294901760, %v5252_v7  ;;  %v5140_v17 = vsub.f32 %v19995_v63, %v24842_v54 }
 0x1d5   :  { %25959 = vst [vmem:[#allocation69_spill] sm:$0xff] %v20177_v1  ;;  %25961 = vst [vmem:[#allocation76_spill] sm:$0xff] %v20182_v28  ;;  %15533 = vmatprep.subr.bf16.mxu0 %v20022_v35  ;;  %v5147_v51 = vsub.f32 %v19997_v57, %v24843_v29  ;;  %v20198_v16 = vpack.c.bf16 %v5056_v3, %v5053_v13  ;;  %5111 = vmatprep.mubr.f32.mxu0 %v5110_v26  ;;  %v24844_v8 = vand.u32 4294901760, %v20004_v9 }
 0x1d6   :  { %25960 = vst [vmem:[#allocation75_spill] sm:$0xff] %v20179_v53  ;;  %15303 = vmatpush3.bf16.msra.mxu1 %v25900_v39  ;;  %v5260_v0 = vand.u32 4294901760, %v5259_v10  ;;  %v24845_v39 = vand.u32 4294901760, %v20002_v36  ;;  %v5141_v30 = vand.u32 4294901760, %v5140_v17  ;;  %v24848_v15 = vand.u32 4294901760, %v20018_v46 }
 0x1d7   :  { %15305 = vmatprep.subr.bf16.mxu1 %v25903_v25  ;;  %25962 = vst [vmem:[#allocation20_spill] sm:$0xff] %v20198_v16  ;;  %v5148_v7 = vand.u32 4294901760, %v5147_v51  ;;  %v24853_v54 = vand.u32 4294901760, %v20020_v50  ;;  %v20207_v29 = vsub.f32 %v20102_v18, %v20182_v28  ;;  %v5273_v10 = vsub.f32 %v20004_v9, %v24844_v8  ;;  %v25966_v51 = vld [vmem:[#allocation19_spill] sm:$0xff] }
 0x1d8   :  { %15535 = vmatpush3.bf16.msra.mxu0 %v20034_v33  ;;  %v20209_v25 = vpack.c.bf16 %v5260_v0, %v5253_v19  ;;  %v5266_v26 = vsub.f32 %v20002_v36, %v24845_v39  ;;  %v5154_v18 = vsub.f32 %v20018_v46, %v24848_v15  ;;  %v24854_v19 = vand.u32 4294901760, %v20030_v52  ;;  %v25967_v33 = vld [vmem:[#allocation56_spill] sm:$0xff] }
 0x1d9   :  { %25963 = vst [vmem:[#allocation10_spill] sm:$0xff] %v20207_v29  ;;  %15537 = vmatprep.subr.bf16.mxu0 %v20054_v58  ;;  %v20219_v17 = vpack.c.bf16 %v5148_v7, %v5141_v30  ;;  %v5161_v0 = vsub.f32 %v20020_v50, %v24853_v54  ;;  %v20230_v8 = vsub.f32 %v20126_v23, %v5053_v13  ;;  %v5274_v30 = vand.u32 4294901760, %v5273_v10  ;;  %v25969_v23 = vld [vmem:[#allocation58_spill] sm:$0xff]  ;;  %v25970_v13 = vld [vmem:[#allocation60_spill] sm:$0xff] }
 0x1da   :  { %25964 = vst [vmem:[#allocation48_spill] sm:$0xff] %v20209_v25  ;;  %15307 = vmatpush3.bf16.msra.mxu1 %v25906_v55  ;;  %v20232_v55 = vsub.f32 %v220_v56, %v5056_v3  ;;  %v5267_v39 = vand.u32 4294901760, %v5266_v26  ;;  %v5155_v7 = vand.u32 4294901760, %v5154_v18  ;;  %v5280_v15 = vsub.f32 %v20030_v52, %v24854_v19  ;;  %v25971_v26 = vld [vmem:[#allocation22_spill] sm:$0xff] }
 0x1db   :  { %25965 = vst [vmem:[#allocation78_spill] sm:$0xff] %v20219_v17  ;;  %15309 = vmatprep.subr.bf16.mxu1 %v25966_v51  ;;  %v5162_v58 = vand.u32 4294901760, %v5161_v0  ;;  %v24859_v35 = vand.u32 4294901760, %v25967_v33  ;;  %v24862_v56 = vand.u32 4294901760, %v25969_v23  ;;  %v24865_v3 = vand.u32 4294901760, %v25970_v13  ;;  %v25973_v51 = vld [vmem:[#allocation55_spill] sm:$0xff] }
 0x1dc   :  { %15539 = vmatpush3.bf16.msra.mxu0 %v20075_v12  ;;  %v20241_v54 = vpack.c.bf16 %v5274_v30, %v5267_v39  ;;  %v5281_v0 = vand.u32 4294901760, %v5280_v15  ;;  %v24870_v12 = vand.u32 4294901760, %v20077_v43  ;;  %v26069_v17 = vld [vmem:[#allocation24_spill] sm:$0xff] }
 0x1dd   :  { %15541 = vmatprep.subr.bf16.mxu0 %v20091_v37  ;;  %v20248_v18 = vpack.c.bf16 %v5162_v58, %v5155_v7  ;;  %v5287_v19 = vsub.f32 %v25967_v33, %v24859_v35  ;;  %v5168_v30 = vsub.f32 %v25969_v23, %v24862_v56  ;;  %v25974_v37 = vld [vmem:[#allocation63_spill] sm:$0xff]  ;;  %v24867_v58 = vand.u32 4294901760, %v20073_v31 }
 0x1de   :  { %25968 = vst [vmem:[#allocation19_spill] sm:$0xff] %v20241_v54  ;;  %15311 = vmatpush3.bf16.msra.mxu1 %v25971_v26  ;;  %v12320_v39 = vpop.f32.mrb[10].mxu0  ;;  %v5175_v26 = vsub.f32 %v25970_v13, %v24865_v3  ;;  %v24866_v10 = vand.u32 4294901760, %v25974_v37  ;;  %v24873_v35 = vand.u32 4294901760, %v20085_v59 }
 0x1df   :  { %25972 = vst [vmem:[#allocation56_spill] sm:$0xff] %v20248_v18  ;;  %15313 = vmatprep.subr.bf16.mxu1 %v25973_v51  ;;  %v12321_v15 = vpop.f32.mrb[11].mxu0  ;;  %v5288_v7 = vand.u32 4294901760, %v5287_v19  ;;  %v5169_v56 = vand.u32 4294901760, %v5168_v30  ;;  %v25976_v18 = vld [vmem:[#allocation57_spill] sm:$0xff]  ;;  %v5301_v51 = vsub.f32 %v20073_v31, %v24867_v58  ;;  %v25980_v58 = vand.u32 4294901760, %v20207_v29 }
 0x1e0   :  { %v20265_v49 = vadd.f32 %v12321_v15, %v12320_v39  ;;  %15543 = vmatpush3.bf16.msra.mxu0 %v20093_v38  ;;  %v5176_v61 = vand.u32 4294901760, %v5175_v26  ;;  %v5294_v3 = vsub.f32 %v25974_v37, %v24866_v10  ;;  %v5182_v39 = vsub.f32 %v20077_v43, %v24870_v12  ;;  %v25978_v26 = vld [vmem:[#allocation27_spill] sm:$0xff] }
 0x1e1   :  { %15545 = vmatprep.subr.bf16.mxu0 %v20100_v20  ;;  %v20273_v19 = vpack.c.bf16 %v5288_v7, %v5281_v0  ;;  %v15586_v15 = vpack.c.bf16 %v19976_v5, %v19974_v60  ;;  %v5189_v0 = vsub.f32 %v20085_v59, %v24873_v35  ;;  %v5115_v20 = vsub.f32 %v20207_v29, %v25980_v58  ;;  %v25983_v58 = vld [vmem:[#allocation26_spill] sm:$0xff] }
 0x1e2   :  { %25975 = vst [vmem:[#allocation58_spill] sm:$0xff] %v20265_v49  ;;  %15315 = vmatpush3.bf16.msra.mxu1 %v25976_v18  ;;  %v20285_v18 = vpack.c.bf16 %v5176_v61, %v5169_v56  ;;  %v5295_v10 = vand.u32 4294901760, %v5294_v3  ;;  %v5302_v12 = vand.u32 4294901760, %v5301_v51  ;;  %v5183_v38 = vand.u32 4294901760, %v5182_v39 }
 0x1e3   :  { %25977 = vst [vmem:[#allocation60_spill] sm:$0xff] %v20273_v19  ;;  %15317 = vmatprep.subr.bf16.mxu1 %v25978_v26  ;;  %v25981_v30 = vand.u32 4294901760, %v20096_v2  ;;  %v5190_v61 = vand.u32 4294901760, %v5189_v0  ;;  %v25982_v56 = vand.u32 4294901760, %v20098_v45  ;;  %v24878_v35 = vand.u32 4294901760, %v20105_v42  ;;  %v25985_v0 = vld [vmem:[#allocation5_spill] sm:$0xff] }
 0x1e4   :  { %25979 = vst [vmem:[#allocation22_spill] sm:$0xff] %v20285_v18  ;;  %v12075_v7 = vpop.f32.mrb[14].mxu1  ;;  %15547 = vmatpush3.bf16.msra.mxu0 %v20138_v14  ;;  %v15588_v51 = vpack.c.bf16 %v19989_v62, %v19981_v4  ;;  %v20306_v39 = vpack.c.bf16 %v5302_v12, %v5295_v10  ;;  %v24883_v12 = vand.u32 4294901760, %v20118_v11  ;;  %v24879_v10 = vand.u32 4294901760, %v20136_v22 }
 0x1e5   :  { %v5308_v26 = vsub.f32 %v20096_v2, %v25981_v30  ;;  %v12076_v19 = vpop.f32.mrb[15].mxu1  ;;  %v5315_v3 = vsub.f32 %v20098_v45, %v25982_v56  ;;  %15549 = vmatprep.subr.bf16.mxu0 %v20177_v1  ;;  %v20309_v14 = vpack.c.bf16 %v5190_v61, %v5183_v38  ;;  %v5196_v18 = vsub.f32 %v20105_v42, %v24878_v35 }
 0x1e6   :  { %v12077_v54 = vadd.f32 %v12076_v19, %v12075_v7  ;;  %15319 = vmatpush3.bf16.msra.mxu1 %v25983_v58  ;;  %25984 = vst [vmem:[#allocation55_spill] sm:$0xff] %v20306_v39  ;;  %v25987_v19 = vand.u32 4294901760, %v20107_v21  ;;  %v5116_v1 = vand.u32 4294901760, %v5115_v20  ;;  %v5322_v20 = vsub.f32 %v20118_v11, %v24883_v12 }
 0x1e7   :  { %v5309_v30 = vand.u32 4294901760, %v5308_v26  ;;  %15321 = vmatprep.subr.bf16.mxu1 %v25985_v0  ;;  %25986 = vst [vmem:[#allocation63_spill] sm:$0xff] %v20309_v14  ;;  %v5316_v56 = vand.u32 4294901760, %v5315_v3  ;;  %v5197_v26 = vand.u32 4294901760, %v5196_v18  ;;  %v24880_v3 = vand.u32 4294901760, %v20140_v24  ;;  %v25989_v0 = vld [vmem:[#allocation15_spill] sm:$0xff] }
 0x1e8   :  { %v5203_v7 = vsub.f32 %v20107_v21, %v25987_v19  ;;  %v2149_v58 = vadd.f32 %v12077_v54, %v20081_v44  ;;  %15551 = vmatpush3.bf16.msra.mxu0 %v20198_v16  ;;  %v25990_v44 = vpack.c.bf16 %v19963_v48, %v19952_v32  ;;  %v5329_v54 = vsub.f32 %v20136_v22, %v24879_v10  ;;  %v25998_v16 = vld [vmem:[#allocation41_spill] sm:$0xff] }
 0x1e9   :  { %v20321_v38 = vpack.c.bf16 %v5316_v56, %v5309_v30  ;;  %v24881_v18 = vand.u32 4294901760, %v20142_v27  ;;  %v25991_v30 = vld [vmem:[#allocation50_spill] sm:$0xff]  ;;  %v15590_v56 = vpack.c.bf16 %v19997_v57, %v19995_v63  ;;  %v5210_v19 = vsub.f32 %v20140_v24, %v24880_v3 }
 0x1ea   :  { %v5204_v61 = vand.u32 4294901760, %v5203_v7  ;;  %v20325_v35 = vadd.f32 %v25989_v0, %v2149_v58  ;;  %15323 = vmatpush3.bf16.msra.mxu1 %v25943_v34  ;;  %15585 = vmatprep.subr.bf16.mxu0 %v25990_v44  ;;  %v5323_v7 = vand.u32 4294901760, %v5322_v20  ;;  %v5330_v58 = vand.u32 4294901760, %v5329_v54  ;;  %v25993_v3 = vld [vmem:[#allocation74_spill] sm:$0xff] }
 0x1eb   :  { %25988 = vst [vmem:[#allocation57_spill] sm:$0xff] %v20321_v38  ;;  %15325 = vmatprep.subr.bf16.mxu1 %v25991_v30  ;;  %5117 = vmatmul.mubr.f32.vlgmr.msra.gmra.mrb[24].mxu0 %v5116_v1  ;;  %v5217_v0 = vsub.f32 %v20142_v27, %v24881_v18  ;;  %v24882_v44 = vand.u32 4294901760, %v20168_v47  ;;  %v5211_v30 = vand.u32 4294901760, %v5210_v19  ;;  %v24884_v10 = vand.u32 4294901760, %v20189_v6 }
 0x1ec   :  { %v20341_v34 = vpack.c.bf16 %v5204_v61, %v5197_v26  ;;  %15587 = vmatpush3.bf16.msra.mxu0 %v15586_v15  ;;  %v24888_v26 = vand.u32 4294901760, %v20230_v8  ;;  %v24889_v61 = vand.u32 4294901760, %v20232_v55  ;;  %5484 = vmatprep.mubr.f32.mxu0 %v20132_v40  ;;  %v20355_v1 = vpack.c.bf16 %v5330_v58, %v5323_v7  ;;  %v25995_v15 = vld [vmem:[#allocation8_spill] sm:$0xff]  ;;  %v25999_v40 = vld [vmem:[#allocation39_spill] sm:$0xff] }
 0x1ed   :  { %15589 = vmatprep.subr.bf16.mxu0 %v15588_v51  ;;  %v5218_v20 = vand.u32 4294901760, %v5217_v0  ;;  %v5336_v54 = vsub.f32 %v20168_v47, %v24882_v44  ;;  %v15592_v19 = vpack.c.bf16 %v20004_v9, %v20002_v36  ;;  %v5343_v18 = vsub.f32 %v20189_v6, %v24884_v10  ;;  %v25997_v0 = vld [vmem:[#allocation52_spill] sm:$0xff] }
 0x1ee   :  { %25992 = vst [vmem:[#allocation27_spill] sm:$0xff] %v20341_v34  ;;  %15327 = vmatpush3.bf16.msra.mxu1 %v25993_v3  ;;  %25994 = vst [vmem:[#allocation26_spill] sm:$0xff] %v20355_v1  ;;  %v5224_v51 = vsub.f32 %v20230_v8, %v24888_v26  ;;  %v5231_v3 = vsub.f32 %v20232_v55, %v24889_v61  ;;  %v15596_v26 = vpack.c.bf16 %v25967_v33, %v20030_v52  ;;  %v26000_v61 = vld [vmem:[#allocation80_spill] sm:$0xff] }
 0x1ef   :  { %15361 = vmatprep.subr.bf16.mxu1 %v25995_v15  ;;  %v20372_v7 = vpack.c.bf16 %v5218_v20, %v5211_v30  ;;  %v5337_v58 = vand.u32 4294901760, %v5336_v54  ;;  %v15594_v15 = vpack.c.bf16 %v20020_v50, %v20018_v46  ;;  %v5344_v44 = vand.u32 4294901760, %v5343_v18  ;;  %v26004_v54 = vld [vmem:[#allocation14_spill] sm:$0xff]  ;;  %v261_v34 = vld [vmem:[%s24464_s1 + $0x6c0] sm:$0xff] }
 0x1f0   :  { %15591 = vmatpush3.bf16.msra.mxu0 %v15590_v56  ;;  %v5225_v12 = vand.u32 4294901760, %v5224_v51  ;;  %v5232_v10 = vand.u32 4294901760, %v5231_v3  ;;  %v15598_v18 = vpack.c.bf16 %v25970_v13, %v25969_v23  ;;  %v26003_v56 = vld [vmem:[#allocation82_spill] sm:$0xff]  ;;  %v15608_v51 = vpack.c.bf16 %v20136_v22, %v20118_v11  ;;  %v26008_v3 = vld [vmem:[#allocation28_spill] sm:$0xff] }
 0x1f1   :  { %25996 = vst [vmem:[#allocation5_spill] sm:$0xff] %v20372_v7  ;;  %4143 = vmatmul.mubr.f32.vlgmr.msra.gmra.mrb[28].mxu1 %v25997_v0  ;;  %15593 = vmatprep.subr.bf16.mxu0 %v15592_v19  ;;  %v20382_v30 = vpack.c.bf16 %v5344_v44, %v5337_v58  ;;  %v26005_v44 = vld [vmem:[#allocation33_spill] sm:$0xff]  ;;  %v26007_v19 = vld [vmem:[#allocation42_spill] sm:$0xff] }
 0x1f2   :  { %15363 = vmatpush3.bf16.msra.mxu1 %v25998_v16  ;;  %4485 = vmatprep.mubr.f32.mxu1 %v25999_v40  ;;  %v20384_v20 = vpack.c.bf16 %v5232_v10, %v5225_v12  ;;  %v15600_v16 = vpack.c.bf16 %v20073_v31, %v25974_v37  ;;  %v15604_v12 = vpack.c.bf16 %v20098_v45, %v20096_v2  ;;  %v26006_v10 = vld [vmem:[#allocation17_spill] sm:$0xff] }
 0x1f3   :  { %15365 = vmatprep.subr.bf16.mxu1 %v26000_v61  ;;  %26001 = vst [vmem:[#allocation15_spill] sm:$0xff] %v20382_v30  ;;  %v15602_v61 = vpack.c.bf16 %v20085_v59, %v20077_v43 }
 0x1f4   :  { %26002 = vst [vmem:[#allocation50_spill] sm:$0xff] %v20384_v20  ;;  %15595 = vmatpush3.bf16.msra.mxu0 %v15594_v15  ;;  %v26018_v20 = vld [vmem:[#allocation77_spill] sm:$0xff] }
 0x1f5   :  { %15597 = vmatprep.subr.bf16.mxu0 %v15596_v26  ;;  %v15606_v26 = vpack.c.bf16 %v20107_v21, %v20105_v42 }
 0x1f6   :  { %15367 = vmatpush3.bf16.msra.mxu1 %v26003_v56  ;;  %v26010_v56 = vld [vmem:[#allocation34_spill] sm:$0xff] }
 0x1f7   :  { %15369 = vmatprep.subr.bf16.mxu1 %v26004_v54  ;;  %v26011_v54 = vld [vmem:[#allocation35_spill] sm:$0xff] }
 0x1f8   :  { %15599 = vmatpush3.bf16.msra.mxu0 %v15598_v18  ;;  %v15610_v18 = vpack.c.bf16 %v20142_v27, %v20140_v24 }
 0x1f9   :  { %15601 = vmatprep.subr.bf16.mxu0 %v15600_v16  ;;  %v15612_v16 = vpack.c.bf16 %v20189_v6, %v20168_v47 }
 0x1fa   :  { %15371 = vmatpush3.bf16.msra.mxu1 %v26005_v44 }
 0x1fb   :  { %15373 = vmatprep.subr.bf16.mxu1 %v26006_v10 }
 0x1fc   :  { %15603 = vmatpush3.bf16.msra.mxu0 %v15602_v61 }
 0x1fd   :  { %15605 = vmatprep.subr.bf16.mxu0 %v15604_v12  ;;  %v15614_v12 = vpack.c.bf16 %v20232_v55, %v20230_v8 }
 0x1fe   :  { %15375 = vmatpush3.bf16.msra.mxu1 %v26007_v19  ;;  %v12390_v58 = vpop.f32.mrb[12].mxu0  ;;  %v26012_v19 = vld [vmem:[#allocation36_spill] sm:$0xff] }
 0x1ff   :  { %15377 = vmatprep.subr.bf16.mxu1 %v26008_v3  ;;  %v12391_v0 = vpop.f32.mrb[13].mxu0  ;;  %v26014_v3 = vand.u32 4294901760, %v19963_v48  ;;  %v26021_v48 = vand.u32 4294901760, %v19989_v62  ;;  %v26029_v62 = vand.u32 4294901760, %v20004_v9  ;;  %v26038_v9 = vld [vmem:[#allocation38_spill] sm:$0xff] }
 0x200   :  { %v20404_v15 = vadd.f32 %v12391_v0, %v12390_v58  ;;  %15607 = vmatpush3.bf16.msra.mxu0 %v15606_v26  ;;  %v26013_v26 = vand.u32 4294901760, %v19952_v32  ;;  %v26015_v58 = vld [vmem:[#allocation37_spill] sm:$0xff]  ;;  %v26020_v32 = vand.u32 4294901760, %v19981_v4  ;;  %v26028_v4 = vand.u32 4294901760, %v20002_v36 }
 0x201   :  { %15609 = vmatprep.subr.bf16.mxu0 %v15608_v51  ;;  %v26037_v36 = vand.u32 4294901760, %v25967_v33  ;;  %v26042_v33 = vand.u32 4294901760, %v25974_v37  ;;  %v256_v37 = vld [vmem:[%s24464_s1 + $0x698] sm:$0xff] }
 0x202   :  { %26009 = vst [vmem:[#allocation74_spill] sm:$0xff] %v20404_v15  ;;  %15379 = vmatpush3.bf16.msra.mxu1 %v26010_v56  ;;  %v15648_v51 = vpack.c.bf16 %v26014_v3, %v26013_v26  ;;  %v26016_v56 = vand.u32 4294901760, %v19974_v60  ;;  %v26023_v60 = vand.u32 4294901760, %v19995_v63  ;;  %v15656_v26 = vpack.c.bf16 %v26029_v62, %v26028_v4  ;;  %v26030_v3 = vld [vmem:[#allocation32_spill] sm:$0xff] }
 0x203   :  { %15381 = vmatprep.subr.bf16.mxu1 %v26011_v54  ;;  %v26031_v63 = vand.u32 4294901760, %v20018_v46  ;;  %v26040_v46 = vand.u32 4294901760, %v25970_v13  ;;  %v238_v13 = vld [vmem:[%s24464_s1 + $0x608] sm:$0xff]  ;;  %v26046_v4 = vand.u32 4294901760, %v20085_v59  ;;  %v26050_v59 = vand.u32 4294901760, %v20105_v42 }
 0x204   :  { %v12145_v61 = vpop.f32.mrb[16].mxu1  ;;  %15611 = vmatpush3.bf16.msra.mxu0 %v15610_v18  ;;  %v26017_v18 = vand.u32 4294901760, %v19976_v5  ;;  %v26024_v5 = vand.u32 4294901760, %v19997_v57  ;;  %v26032_v57 = vand.u32 4294901760, %v20020_v50 }
 0x205   :  { %v12146_v44 = vpop.f32.mrb[17].mxu1  ;;  %15613 = vmatprep.subr.bf16.mxu0 %v15612_v16  ;;  %v15652_v16 = vpack.c.bf16 %v26021_v48, %v26020_v32  ;;  %v253_v32 = vld [vmem:[%s24464_s1 + $0x680] sm:$0xff]  ;;  %v26041_v48 = vld [vmem:[#allocation47_spill] sm:$0xff] }
 0x206   :  { %v12147_v10 = vadd.f32 %v12146_v44, %v12145_v61  ;;  %15383 = vmatpush3.bf16.msra.mxu1 %v26012_v19  ;;  %v15650_v54 = vpack.c.bf16 %v26017_v18, %v26016_v56  ;;  %v26019_v44 = vld [vmem:[#allocation40_spill] sm:$0xff]  ;;  %v26022_v19 = vld [vmem:[#allocation18_spill] sm:$0xff]  ;;  %v26036_v18 = vand.u32 4294901760, %v20030_v52  ;;  %v254_v52 = vld [vmem:[%s24464_s1 + $0x688] sm:$0xff] }
 0x207   :  { %15385 = vmatprep.subr.bf16.mxu1 %v26015_v58  ;;  %v26033_v58 = vld [vmem:[#allocation45_spill] sm:$0xff] }
 0x208   :  { %v2421_v0 = vadd.f32 %v12147_v10, %v20325_v35  ;;  %15615 = vmatpush3.bf16.msra.mxu0 %v15614_v12  ;;  %v15654_v35 = vpack.c.bf16 %v26024_v5, %v26023_v60  ;;  %v26026_v12 = vld [vmem:[#allocation44_spill] sm:$0xff]  ;;  %v26027_v10 = vld [vmem:[#allocation71_spill] sm:$0xff]  ;;  %v255_v5 = vld [vmem:[%s24464_s1 + $0x690] sm:$0xff] }
 0x209   :  { %15649 = vmatprep.subr.bf16.mxu0 %v15648_v51  ;;  %v15658_v51 = vpack.c.bf16 %v26032_v57, %v26031_v63  ;;  %v26044_v60 = vld [vmem:[#allocation11_spill] sm:$0xff]  ;;  %v5876_v63 = vand.u32 4294901760, %v238_v13  ;;  %v239_v57 = vld [vmem:[%s24464_s1 + $0x610] sm:$0xff] }
 0x20a   :  { %v20426_v61 = vadd.f32 %v26018_v20, %v2421_v0  ;;  %15387 = vmatpush3.bf16.msra.mxu1 %v26019_v44  ;;  %v26025_v20 = vld [vmem:[#allocation43_spill] sm:$0xff]  ;;  %v26039_v44 = vand.u32 4294901760, %v25969_v23  ;;  %v237_v23 = vld [vmem:[%s24464_s1 + $0x600] sm:$0xff] }
 0x20b   :  { %15389 = vmatprep.subr.bf16.mxu1 %v26022_v19  ;;  %5487 = vmatmul.mubr.f32.vlgmr.msra.gmra.mrb[26].mxu0 %v20207_v29  ;;  %v26034_v0 = vld [vmem:[#allocation7_spill] sm:$0xff] }
 0x20c   :  { %15651 = vmatpush3.bf16.msra.mxu0 %v15650_v54  ;;  %5761 = vmatprep.mubr.f32.mxu0 %v26025_v20  ;;  %v26035_v56 = vand.u32 4294901760, %v26034_v0  ;;  %v15660_v54 = vpack.c.bf16 %v26037_v36, %v26036_v18  ;;  %v15662_v50 = vpack.c.bf16 %v26040_v46, %v26039_v44  ;;  %v26047_v0 = vld [vmem:[#allocation12_spill] sm:$0xff]  ;;  %v26051_v36 = vand.u32 4294901760, %v20107_v21 }
 0x20d   :  { %15653 = vmatprep.subr.bf16.mxu0 %v15652_v16  ;;  %v26043_v16 = vand.u32 4294901760, %v20073_v31  ;;  %v5921_v31 = vand.u32 4294901760, %v253_v32  ;;  %v5927_v44 = vand.u32 4294901760, %v255_v5  ;;  %v5930_v46 = vand.u32 4294901760, %v256_v37 }
 0x20e   :  { %15391 = vmatpush3.bf16.msra.mxu1 %v26026_v12  ;;  %v26045_v12 = vand.u32 4294901760, %v20077_v43  ;;  %v26049_v43 = vand.u32 4294901760, %v20098_v45  ;;  %v26054_v45 = vand.u32 4294901760, %v20136_v22  ;;  %v26055_v21 = vand.u32 4294901760, %v20140_v24  ;;  %v241_v22 = vld [vmem:[%s24464_s1 + $0x620] sm:$0xff] }
 0x20f   :  { %15425 = vmatprep.subr.bf16.mxu1 %v26027_v10  ;;  %v15664_v19 = vpack.c.bf16 %v26043_v16, %v26042_v33  ;;  %v258_v33 = vld [vmem:[%s24464_s1 + $0x6a8] sm:$0xff]  ;;  %v20569_v30 = vsub.f32 %v255_v5, %v5927_v44 }
 0x210   :  { %15655 = vmatpush3.bf16.msra.mxu0 %v15654_v35  ;;  %v5924_v35 = vand.u32 4294901760, %v254_v52  ;;  %v15666_v62 = vpack.c.bf16 %v26046_v4, %v26045_v12  ;;  %v26052_v16 = vld [vmem:[#allocation13_spill] sm:$0xff]  ;;  %v26057_v4 = vand.u32 4294901760, %v20168_v47 }
 0x211   :  { %4487 = vmatmul.mubr.f32.vlgmr.msra.gmra.mrb[30].mxu1 %v26030_v3  ;;  %15657 = vmatprep.subr.bf16.mxu0 %v15656_v26  ;;  %v5873_v26 = vand.u32 4294901760, %v237_v23 }
 0x212   :  { %15427 = vmatpush3.bf16.msra.mxu1 %v26033_v58  ;;  %4729 = vmatprep.mubr.f32.mxu1 %v26035_v56  ;;  %v26048_v56 = vand.u32 4294901760, %v20096_v2  ;;  %v26053_v2 = vand.u32 4294901760, %v20118_v11  ;;  %v20538_v24 = vpack.c.bf16 %v5924_v35, %v5921_v31 }
 0x213   :  { %15429 = vmatprep.subr.bf16.mxu1 %v26038_v9 }
 0x214   :  { %15659 = vmatpush3.bf16.msra.mxu0 %v15658_v51  ;;  %v240_v51 = vld [vmem:[%s24464_s1 + $0x618] sm:$0xff]  ;;  %v15668_v18 = vpack.c.bf16 %v26049_v43, %v26048_v56  ;;  %v15672_v42 = vpack.c.bf16 %v26054_v45, %v26053_v2  ;;  %v26058_v56 = vand.u32 4294901760, %v20189_v6  ;;  %26061 = vst [vmem:[#allocation8_spill] sm:$0xff] %v20538_v24  ;;  %v5879_v2 = vand.u32 4294901760, %v239_v57  ;;  %v242_v6 = vld [vmem:[%s24464_s1 + $0x628] sm:$0xff] }
 0x215   :  { %15661 = vmatprep.subr.bf16.mxu0 %v15660_v54  ;;  %v15670_v54 = vpack.c.bf16 %v26051_v36, %v26050_v59  ;;  %v26059_v59 = vand.u32 4294901760, %v20230_v8  ;;  %v26060_v36 = vand.u32 4294901760, %v20232_v55  ;;  %v5882_v47 = vand.u32 4294901760, %v240_v51  ;;  %v259_v8 = vld [vmem:[%s24464_s1 + $0x6b0] sm:$0xff]  ;;  %v260_v55 = vld [vmem:[%s24464_s1 + $0x6b8] sm:$0xff] }
 0x216   :  { %15431 = vmatpush3.bf16.msra.mxu1 %v26041_v48  ;;  %v20527_v43 = vpack.c.bf16 %v26058_v56, %v26057_v4  ;;  %v20551_v45 = vsub.f32 %v254_v52, %v5924_v35  ;;  %v244_v4 = vld [vmem:[%s24464_s1 + $0x638] sm:$0xff]  ;;  %v26063_v56 = vld [vmem:[#allocation16_spill] sm:$0xff]  ;;  %v20566_v52 = vpack.c.bf16 %v5930_v46, %v5927_v44  ;;  %v5885_v35 = vand.u32 4294901760, %v241_v22 }
 0x217   :  { %15433 = vmatprep.subr.bf16.mxu1 %v26044_v60  ;;  %v20533_v11 = vpack.c.bf16 %v26060_v36, %v26059_v59  ;;  %v20562_v59 = vsub.f32 %v237_v23, %v5873_v26  ;;  %v26065_v36 = vld [vmem:[#allocation21_spill] sm:$0xff]  ;;  %v5888_v7 = vand.u32 4294901760, %v242_v6  ;;  %v5939_v15 = vand.u32 4294901760, %v259_v8 }
 0x218   :  { %15663 = vmatpush3.bf16.msra.mxu0 %v15662_v50  ;;  %v257_v50 = vld [vmem:[%s24464_s1 + $0x6a0] sm:$0xff]  ;;  %26064 = vst [vmem:[#allocation41_spill] sm:$0xff] %v20566_v52  ;;  %v5942_v1 = vand.u32 4294901760, %v260_v55  ;;  %v262_v23 = vld [vmem:[%s24464_s1 + $0x6c8] sm:$0xff]  ;;  %v5894_v38 = vand.u32 4294901760, %v244_v4  ;;  %v20583_v44 = vsub.f32 %v239_v57, %v5879_v2  ;;  %v20585_v14 = vsub.f32 %v240_v51, %v5882_v47 }
 0x219   :  { %15665 = vmatprep.subr.bf16.mxu0 %v15664_v19  ;;  %v26056_v19 = vand.u32 4294901760, %v20142_v27  ;;  %v20540_v27 = vsub.f32 %v253_v32, %v5921_v31  ;;  %v5933_v32 = vand.u32 4294901760, %v257_v50  ;;  %v5936_v31 = vand.u32 4294901760, %v258_v33  ;;  %v246_v57 = vld [vmem:[%s24464_s1 + $0x648] sm:$0xff] }
 0x21a   :  { %15435 = vmatpush3.bf16.msra.mxu1 %v26047_v0  ;;  %v5948_v20 = vand.u32 4294901760, %v262_v23  ;;  %v17044_v51 = vld [vmem:[%s24463_s0 + $0x18] ss:$48 sps:$4 sm:$0xff]   ;;  %v20640_v49 = vsub.f32 %v244_v4, %v5894_v38 }
 0x21b   :  { %15437 = vmatprep.subr.bf16.mxu1 %v26052_v16  ;;  %v20521_v12 = vpack.c.bf16 %v26056_v19, %v26055_v21  ;;  %v20553_v21 = vpack.c.bf16 %v5876_v63, %v5873_v26  ;;  %v243_v19 = vld [vmem:[%s24464_s1 + $0x630] sm:$0xff]  ;;  %v20577_v26 = vsub.f32 %v256_v37, %v5930_v46  ;;  %v20587_v39 = vpack.c.bf16 %v5936_v31, %v5933_v32 }
 0x21c   :  { %15667 = vmatpush3.bf16.msra.mxu0 %v15666_v62  ;;  %v20564_v62 = vsub.f32 %v238_v13, %v5876_v63  ;;  %v20579_v63 = vpack.c.bf16 %v5882_v47, %v5879_v2  ;;  %v20590_v25 = vsub.f32 %v257_v50, %v5933_v32  ;;  %v20592_v37 = vsub.f32 %v258_v33, %v5936_v31  ;;  %v263_v47 = vld [vmem:[%s24464_s1 + $0x6d0] sm:$0xff]  ;;  %v17046_v32 = vld [vmem:[%s24463_s0 + $0x78] ss:$48 sps:$4 sm:$0xff]  }
 0x21d   :  { %26062 = vst [vmem:[#allocation52_spill] sm:$0xff] %v20553_v21  ;;  %15669 = vmatprep.subr.bf16.mxu0 %v15668_v18  ;;  %v5891_v18 = vand.u32 4294901760, %v243_v19  ;;  %26068 = vst [vmem:[#allocation82_spill] sm:$0xff] %v20587_v39  ;;  %v5945_v46 = vand.u32 4294901760, %v261_v34  ;;  %v20604_v50 = vpack.c.bf16 %v5888_v7, %v5885_v35  ;;  %v20606_v33 = vsub.f32 %v241_v22, %v5885_v35  ;;  %v248_v35 = vld [vmem:[%s24464_s1 + $0x658] sm:$0xff] }
 0x21e   :  { %15439 = vmatpush3.bf16.msra.mxu1 %v26063_v56  ;;  %v12460_v29 = vpop.f32.mrb[14].mxu0  ;;  %26066 = vst [vmem:[#allocation39_spill] sm:$0xff] %v20579_v63  ;;  %v20610_v2 = vpack.c.bf16 %v5942_v1, %v5939_v15  ;;  %26078 = vst [vmem:[#allocation34_spill] sm:$0xff] %v20640_v49  ;;  %v249_v56 = vld [vmem:[%s24464_s1 + $0x660] sm:$0xff]  ;;  %v250_v49 = vld [vmem:[%s24464_s1 + $0x668] sm:$0xff] }
 0x21f   :  { %15441 = vmatprep.subr.bf16.mxu1 %v26065_v36  ;;  %v12461_v13 = vpop.f32.mrb[15].mxu0  ;;  %26071 = vst [vmem:[#allocation14_spill] sm:$0xff] %v20604_v50  ;;  %v20622_v53 = vpack.c.bf16 %v5894_v38, %v5891_v18  ;;  %v20624_v22 = vsub.f32 %v243_v19, %v5891_v18  ;;  %v26080_v36 = vld [vmem:[#allocation6_spill] sm:$0xff] }
 0x220   :  { %v20581_v5 = vadd.f32 %v12461_v13, %v12460_v29  ;;  %15671 = vmatpush3.bf16.msra.mxu0 %v15670_v54  ;;  %v245_v29 = vld [vmem:[%s24464_s1 + $0x640] sm:$0xff]  ;;  %v26070_v54 = vld [vmem:[#allocation70_spill] sm:$0xff]  ;;  %26072 = vst [vmem:[#allocation33_spill] sm:$0xff] %v20610_v2  ;;  %v20618_v13 = vsub.f32 %v259_v8, %v5939_v15  ;;  %v5900_v8 = vand.u32 4294901760, %v246_v57 }
 0x221   :  { %15673 = vmatprep.subr.bf16.mxu0 %v15672_v42  ;;  %v20608_v42 = vsub.f32 %v242_v6, %v5888_v7  ;;  %26074 = vst [vmem:[#allocation42_spill] sm:$0xff] %v20622_v53  ;;  %26075 = vst [vmem:[#allocation28_spill] sm:$0xff] %v20624_v22  ;;  %v264_v7 = vld [vmem:[%s24464_s1 + $0x6d8] sm:$0xff]  ;;  %v247_v6 = vld [vmem:[%s24464_s1 + $0x650] sm:$0xff] }
 0x222   :  { %26067 = vst [vmem:[#allocation80_spill] sm:$0xff] %v20581_v5  ;;  %15443 = vmatpush3.bf16.msra.mxu1 %v26069_v17  ;;  %v20620_v5 = vsub.f32 %v260_v55, %v5942_v1  ;;  %v5897_v1 = vand.u32 4294901760, %v245_v29  ;;  %v26076_v55 = vld [vmem:[#allocation25_spill] sm:$0xff]  ;;  %v5951_v17 = vand.u32 4294901760, %v263_v47 }
 0x223   :  { %15445 = vmatprep.subr.bf16.mxu1 %v26070_v54  ;;  %v578_v19 = vrot.slane %v17044_v51, %v26076_v55  ;;  %v592_v18 = vrot.slane %v17046_v32, %v26076_v55  ;;  %v20642_v54 = vpack.c.bf16 %v5948_v20, %v5945_v46  ;;  %v266_v51 = vld [vmem:[%s24464_s1 + $0x6e8] sm:$0xff]  ;;  %v5954_v32 = vand.u32 4294901760, %v264_v7 }
 0x224   :  { %v12215_v31 = vpop.f32.mrb[18].mxu1  ;;  %26073 = vst [vmem:[#allocation17_spill] sm:$0xff] %v20620_v5  ;;  %15675 = vmatpush3.bf16.msra.mxu0 %v20521_v12  ;;  %v265_v12 = vld [vmem:[%s24464_s1 + $0x6e0] sm:$0xff]  ;;  %v20663_v22 = vpack.c.bf16 %v5900_v8, %v5897_v1  ;;  %v20665_v5 = vsub.f32 %v245_v29, %v5897_v1  ;;  %v5909_v1 = vand.u32 4294901760, %v249_v56 }
 0x225   :  { %v12216_v15 = vpop.f32.mrb[19].mxu1  ;;  %15677 = vmatprep.subr.bf16.mxu0 %v20527_v43  ;;  %26079 = vst [vmem:[#allocation35_spill] sm:$0xff] %v20642_v54  ;;  %v601_v55 = vcombine.high %v578_v19, %v592_v18  ;;  %v20652_v43 = vsub.f32 %v261_v34, %v5945_v46  ;;  %v5957_v4 = vand.u32 4294901760, %v265_v12  ;;  %v26084_v46 = vld [vmem:[#allocation30_spill] sm:$0xff]  ;;  %v5912_v34 = vand.u32 4294901760, %v250_v49 }
 0x226   :  { %v12217_v3 = vadd.f32 %v12216_v15, %v12215_v31  ;;  %15447 = vmatpush3.bf16.msra.mxu1 %v26077_v41  ;;  %v5903_v31 = vand.u32 4294901760, %v247_v6  ;;  %v5906_v15 = vand.u32 4294901760, %v248_v35  ;;  %v5960_v41 = vand.u32 4294901760, %v266_v51  ;;  %26082 = vst [vmem:[#allocation37_spill] sm:$0xff] %v20663_v22 }
 0x227   :  { %15449 = vmatprep.subr.bf16.mxu1 %v26080_v36  ;;  %26081 = vst [vmem:[#allocation36_spill] sm:$0xff] %v20652_v43  ;;  %v20661_v36 = vsub.f32 %v262_v23, %v5948_v20  ;;  %v20673_v43 = vsub.f32 %v246_v57, %v5900_v8  ;;  %v26086_v20 = vld [vmem:[#allocation9_spill] sm:$0xff]  ;;  %v20679_v23 = vpack.c.bf16 %v5954_v32, %v5951_v17 }
 0x228   :  { %v2765_v38 = vadd.f32 %v12217_v3, %v20426_v61  ;;  %15679 = vmatpush3.bf16.msra.mxu0 %v20533_v11  ;;  %v26083_v61 = vld [vmem:[#allocation67_spill] sm:$0xff]  ;;  %v20676_v11 = vand.u32 4294901760, %v601_v55  ;;  %v20681_v29 = vpack.c.bf16 %v5906_v15, %v5903_v31  ;;  %v20688_v57 = vpack.c.bf16 %v5960_v41, %v5957_v4 }
 0x229   :  { %15713 = vmatprep.subr.bf16.mxu0 %v20538_v24  ;;  %26087 = vst [vmem:[#allocation40_spill] sm:$0xff] %v20679_v23  ;;  %v20690_v8 = vcombine.low %v578_v19, %v592_v18  ;;  %v20693_v16 = vsub.f32 %v247_v6, %v5903_v31  ;;  %v20695_v24 = vsub.f32 %v248_v35, %v5906_v15  ;;  %v268_v6 = vld [vmem:[%s24464_s1 + $0x6f8] sm:$0xff]  ;;  %v20714_v35 = vld [vmem:[%s24464_s1 + $0x670] sm:$0xff]  ;;  %v26092_v18 = vand.u32 4294901760, %v20551_v45  ;;  %v26095_v31 = vld [vmem:[#allocation81_spill] sm:$0xff] }
 0x22a   :  { %v20669_v3 = vadd.f32 %v26083_v61, %v2765_v38  ;;  %15451 = vmatpush3.bf16.msra.mxu1 %v26084_v46  ;;  %26085 = vst [vmem:[#allocation77_spill] sm:$0xff] %v20676_v11  ;;  %26088 = vst [vmem:[#allocation18_spill] sm:$0xff] %v20681_v29  ;;  %v20684_v38 = vsub.f32 %v263_v47, %v5951_v17  ;;  %v20686_v61 = vsub.f32 %v264_v7, %v5954_v32  ;;  %v26091_v7 = vld [vmem:[#allocation79_spill] sm:$0xff] }
 0x22b   :  { %15453 = vmatprep.subr.bf16.mxu1 %v26086_v20  ;;  %5763 = vmatmul.mubr.f32.vlgmr.msra.gmra.mrb[28].mxu0 %v20182_v28  ;;  %26089 = vst [vmem:[#allocation44_spill] sm:$0xff] %v20688_v57  ;;  %v267_v20 = vld [vmem:[%s24464_s1 + $0x6f0] sm:$0xff]  ;;  %v26090_v28 = vand.u32 4294901760, %v20540_v27  ;;  %v20706_v19 = vsub.f32 %v265_v12, %v5957_v4  ;;  %v20720_v32 = vsub.f32 %v601_v55, %v20676_v11 }
 0x22c   :  { %15715 = vmatpush3.bf16.msra.mxu0 %v20553_v21  ;;  %v20724_v12 = vsub.f32 %v266_v51, %v5960_v41  ;;  %v20726_v15 = vpack.c.bf16 %v5912_v34, %v5909_v1  ;;  %v20728_v4 = vsub.f32 %v249_v56, %v5909_v1  ;;  %v20730_v47 = vsub.f32 %v250_v49, %v5912_v34 }
 0x22d   :  { %v6100_v17 = vsub.f32 %v20540_v27, %v26090_v28  ;;  %15717 = vmatprep.subr.bf16.mxu0 %v20566_v52  ;;  %v6107_v28 = vsub.f32 %v20551_v45, %v26092_v18  ;;  %26093 = vst [vmem:[#allocation71_spill] sm:$0xff] %v20720_v32  ;;  %v252_v52 = vld [vmem:[%s24464_s1 + $0x678] sm:$0xff]  ;;  %v5963_v18 = vand.u32 4294901760, %v267_v20  ;;  %v24906_v11 = vand.u32 4294901760, %v20720_v32 }
 0x22e   :  { %15455 = vmatpush3.bf16.msra.mxu1 %v26091_v7  ;;  %26094 = vst [vmem:[#allocation45_spill] sm:$0xff] %v20726_v15  ;;  %v26096_v7 = vand.u32 4294901760, %v26095_v31  ;;  %v5966_v41 = vand.u32 4294901760, %v268_v6  ;;  %v26097_v49 = vand.u32 4294901760, %v20562_v59  ;;  %v26098_v51 = vand.u32 4294901760, %v20564_v62 }
 0x22f   :  { %15489 = vmatprep.subr.bf16.mxu1 %v26027_v10  ;;  %v6101_v21 = vand.u32 4294901760, %v6100_v17  ;;  %v6108_v55 = vand.u32 4294901760, %v6107_v28  ;;  %v5915_v10 = vand.u32 4294901760, %v20714_v35  ;;  %v5918_v1 = vand.u32 4294901760, %v252_v52 }
 0x230   :  { %15719 = vmatpush3.bf16.msra.mxu0 %v20579_v63  ;;  %v5988_v56 = vsub.f32 %v20562_v59, %v26097_v49  ;;  %v5995_v34 = vsub.f32 %v20564_v62, %v26098_v51  ;;  %v24910_v28 = vand.u32 4294901760, %v20569_v30  ;;  %v20756_v31 = vsub.f32 %v267_v20, %v5963_v18 }
 0x231   :  { %4733 = vmatmul.mubr.f32.vlgmr.msra.gmra.mrb[32].mxu1 %v26096_v7  ;;  %v20748_v17 = vpack.c.bf16 %v6108_v55, %v6101_v21  ;;  %v5971_v7 = vsub.f32 %v20720_v32, %v24906_v11  ;;  %15721 = vmatprep.subr.bf16.mxu0 %v20587_v39  ;;  %v24911_v55 = vand.u32 4294901760, %v20583_v44  ;;  %v24912_v11 = vand.u32 4294901760, %v20585_v14 }
 0x232   :  { %15491 = vmatpush3.bf16.msra.mxu1 %v26033_v58  ;;  %5003 = vmatprep.mubr.f32.mxu1 %v25999_v40  ;;  %v5989_v49 = vand.u32 4294901760, %v5988_v56  ;;  %v5996_v51 = vand.u32 4294901760, %v5995_v34  ;;  %v24909_v58 = vand.u32 4294901760, %v20577_v26  ;;  %v6114_v21 = vsub.f32 %v20569_v30, %v24910_v28 }
 0x233   :  { %26099 = vst [vmem:[#allocation7_spill] sm:$0xff] %v20748_v17  ;;  %15493 = vmatprep.subr.bf16.mxu1 %v26038_v9  ;;  %v5972_v40 = vand.u32 4294901760, %v5971_v7  ;;  %v20765_v9 = vpack.c.bf16 %v5966_v41, %v5963_v18  ;;  %v20770_v20 = vand.u32 4294901760, %v20690_v8  ;;  %v20777_v34 = vsub.f32 %v268_v6, %v5966_v41  ;;  %v26218_v17 = vld [vmem:[#allocation66_spill] sm:$0xff] }
 0x234   :  { %15723 = vmatpush3.bf16.msra.mxu0 %v20604_v50  ;;  %v20767_v39 = vpack.c.bf16 %v5996_v51, %v5989_v49  ;;  %v6121_v56 = vsub.f32 %v20577_v26, %v24909_v58  ;;  %v6115_v7 = vand.u32 4294901760, %v6114_v21  ;;  %v6002_v18 = vsub.f32 %v20583_v44, %v24911_v55 }
 0x235   :  { %26100 = vst [vmem:[#allocation38_spill] sm:$0xff] %v20765_v9  ;;  %26102 = vst [vmem:[#allocation11_spill] sm:$0xff] %v20770_v20  ;;  %15725 = vmatprep.subr.bf16.mxu0 %v20610_v2  ;;  %v6009_v49 = vsub.f32 %v20585_v14, %v24912_v11  ;;  %v20786_v51 = vpack.c.bf16 %v5918_v1, %v5915_v10  ;;  %5973 = vmatprep.mubr.f32.mxu0 %v5972_v40  ;;  %v24913_v6 = vand.u32 4294901760, %v20592_v37 }
 0x236   :  { %26101 = vst [vmem:[#allocation47_spill] sm:$0xff] %v20767_v39  ;;  %15495 = vmatpush3.bf16.msra.mxu1 %v26041_v48  ;;  %v6122_v58 = vand.u32 4294901760, %v6121_v56  ;;  %v24914_v48 = vand.u32 4294901760, %v20590_v25  ;;  %v6003_v41 = vand.u32 4294901760, %v6002_v18  ;;  %v24917_v28 = vand.u32 4294901760, %v20606_v33 }
 0x237   :  { %15497 = vmatprep.subr.bf16.mxu1 %v26044_v60  ;;  %26103 = vst [vmem:[#allocation12_spill] sm:$0xff] %v20786_v51  ;;  %v6010_v21 = vand.u32 4294901760, %v6009_v49  ;;  %v24922_v55 = vand.u32 4294901760, %v20608_v42  ;;  %v20795_v11 = vsub.f32 %v20690_v8, %v20770_v20  ;;  %v6135_v56 = vsub.f32 %v20592_v37, %v24913_v6  ;;  %v26107_v49 = vld [vmem:[#allocation13_spill] sm:$0xff] }
 0x238   :  { %15727 = vmatpush3.bf16.msra.mxu0 %v20622_v53  ;;  %v20797_v60 = vpack.c.bf16 %v6122_v58, %v6115_v7  ;;  %v6128_v40 = vsub.f32 %v20590_v25, %v24914_v48  ;;  %v6016_v8 = vsub.f32 %v20606_v33, %v24917_v28  ;;  %v24923_v7 = vand.u32 4294901760, %v20618_v13  ;;  %v26108_v53 = vld [vmem:[#allocation17_spill] sm:$0xff] }
 0x239   :  { %26104 = vst [vmem:[#allocation67_spill] sm:$0xff] %v20795_v11  ;;  %15729 = vmatprep.subr.bf16.mxu0 %v20642_v54  ;;  %v20807_v18 = vpack.c.bf16 %v6010_v21, %v6003_v41  ;;  %v6023_v58 = vsub.f32 %v20608_v42, %v24922_v55  ;;  %v20818_v6 = vsub.f32 %v20714_v35, %v5915_v10  ;;  %v6136_v41 = vand.u32 4294901760, %v6135_v56  ;;  %v26110_v35 = vld [vmem:[#allocation28_spill] sm:$0xff]  ;;  %v26111_v10 = vld [vmem:[#allocation34_spill] sm:$0xff] }
 0x23a   :  { %26105 = vst [vmem:[#allocation30_spill] sm:$0xff] %v20797_v60  ;;  %15499 = vmatpush3.bf16.msra.mxu1 %v26047_v0  ;;  %v20820_v0 = vsub.f32 %v252_v52, %v5918_v1  ;;  %v6129_v48 = vand.u32 4294901760, %v6128_v40  ;;  %v6017_v21 = vand.u32 4294901760, %v6016_v8  ;;  %v6142_v28 = vsub.f32 %v20618_v13, %v24923_v7  ;;  %v26112_v40 = vld [vmem:[#allocation16_spill] sm:$0xff] }
 0x23b   :  { %26106 = vst [vmem:[#allocation81_spill] sm:$0xff] %v20807_v18  ;;  %15501 = vmatprep.subr.bf16.mxu1 %v26107_v49  ;;  %v6024_v54 = vand.u32 4294901760, %v6023_v58  ;;  %v24928_v2 = vand.u32 4294901760, %v26108_v53  ;;  %v24931_v52 = vand.u32 4294901760, %v26110_v35  ;;  %v24934_v1 = vand.u32 4294901760, %v26111_v10  ;;  %v26114_v49 = vld [vmem:[#allocation21_spill] sm:$0xff] }
 0x23c   :  { %15731 = vmatpush3.bf16.msra.mxu0 %v20663_v22  ;;  %v20829_v55 = vpack.c.bf16 %v6136_v41, %v6129_v48  ;;  %v6143_v58 = vand.u32 4294901760, %v6142_v28  ;;  %v24939_v22 = vand.u32 4294901760, %v20665_v5  ;;  %v26210_v18 = vld [vmem:[#allocation64_spill] sm:$0xff] }
 0x23d   :  { %15733 = vmatprep.subr.bf16.mxu0 %v20679_v23  ;;  %v20836_v8 = vpack.c.bf16 %v6024_v54, %v6017_v21  ;;  %v6149_v7 = vsub.f32 %v26108_v53, %v24928_v2  ;;  %v6030_v41 = vsub.f32 %v26110_v35, %v24931_v52  ;;  %v26115_v23 = vld [vmem:[#allocation36_spill] sm:$0xff]  ;;  %v24936_v54 = vand.u32 4294901760, %v20661_v36 }
 0x23e   :  { %26109 = vst [vmem:[#allocation13_spill] sm:$0xff] %v20829_v55  ;;  %15503 = vmatpush3.bf16.msra.mxu1 %v26112_v40  ;;  %v12530_v48 = vpop.f32.mrb[16].mxu0  ;;  %v6037_v40 = vsub.f32 %v26111_v10, %v24934_v1  ;;  %v24935_v56 = vand.u32 4294901760, %v26115_v23  ;;  %v24942_v2 = vand.u32 4294901760, %v20673_v43 }
 0x23f   :  { %26113 = vst [vmem:[#allocation17_spill] sm:$0xff] %v20836_v8  ;;  %15505 = vmatprep.subr.bf16.mxu1 %v26114_v49  ;;  %v12531_v28 = vpop.f32.mrb[17].mxu0  ;;  %v6150_v21 = vand.u32 4294901760, %v6149_v7  ;;  %v6031_v52 = vand.u32 4294901760, %v6030_v41  ;;  %v26117_v8 = vld [vmem:[#allocation24_spill] sm:$0xff]  ;;  %v6163_v49 = vsub.f32 %v20661_v36, %v24936_v54  ;;  %v26121_v54 = vand.u32 4294901760, %v20795_v11 }
 0x240   :  { %v20853_v50 = vadd.f32 %v12531_v28, %v12530_v48  ;;  %15735 = vmatpush3.bf16.msra.mxu0 %v20681_v29  ;;  %v6038_v63 = vand.u32 4294901760, %v6037_v40  ;;  %v6156_v1 = vsub.f32 %v26115_v23, %v24935_v56  ;;  %v6044_v48 = vsub.f32 %v20665_v5, %v24939_v22  ;;  %v26119_v40 = vld [vmem:[#allocation70_spill] sm:$0xff] }
 0x241   :  { %15737 = vmatprep.subr.bf16.mxu0 %v20688_v57  ;;  %v20861_v7 = vpack.c.bf16 %v6150_v21, %v6143_v58  ;;  %v15778_v28 = vpack.c.bf16 %v20564_v62, %v20562_v59  ;;  %v6051_v58 = vsub.f32 %v20673_v43, %v24942_v2  ;;  %v5977_v57 = vsub.f32 %v20795_v11, %v26121_v54  ;;  %v26124_v54 = vld [vmem:[#allocation31_spill] sm:$0xff] }
 0x242   :  { %26116 = vst [vmem:[#allocation28_spill] sm:$0xff] %v20853_v50  ;;  %15507 = vmatpush3.bf16.msra.mxu1 %v26117_v8  ;;  %v20873_v8 = vpack.c.bf16 %v6038_v63, %v6031_v52  ;;  %v6157_v56 = vand.u32 4294901760, %v6156_v1  ;;  %v6164_v22 = vand.u32 4294901760, %v6163_v49  ;;  %v6045_v29 = vand.u32 4294901760, %v6044_v48 }
 0x243   :  { %26118 = vst [vmem:[#allocation34_spill] sm:$0xff] %v20861_v7  ;;  %15509 = vmatprep.subr.bf16.mxu1 %v26119_v40  ;;  %v26122_v41 = vand.u32 4294901760, %v20684_v38  ;;  %v6052_v63 = vand.u32 4294901760, %v6051_v58  ;;  %v26123_v52 = vand.u32 4294901760, %v20686_v61  ;;  %v24947_v2 = vand.u32 4294901760, %v20693_v16  ;;  %v26126_v58 = vld [vmem:[#allocation6_spill] sm:$0xff] }
 0x244   :  { %26120 = vst [vmem:[#allocation16_spill] sm:$0xff] %v20873_v8  ;;  %v12285_v21 = vpop.f32.mrb[20].mxu1  ;;  %15739 = vmatpush3.bf16.msra.mxu0 %v20726_v15  ;;  %v15780_v49 = vpack.c.bf16 %v20577_v26, %v20569_v30  ;;  %v20894_v48 = vpack.c.bf16 %v6164_v22, %v6157_v56  ;;  %v24952_v22 = vand.u32 4294901760, %v20706_v19  ;;  %v24948_v56 = vand.u32 4294901760, %v20724_v12 }
 0x245   :  { %v6170_v40 = vsub.f32 %v20684_v38, %v26122_v41  ;;  %v12286_v7 = vpop.f32.mrb[21].mxu1  ;;  %v6177_v1 = vsub.f32 %v20686_v61, %v26123_v52  ;;  %15741 = vmatprep.subr.bf16.mxu0 %v20765_v9  ;;  %v20897_v15 = vpack.c.bf16 %v6052_v63, %v6045_v29  ;;  %v6058_v8 = vsub.f32 %v20693_v16, %v24947_v2 }
 0x246   :  { %v12287_v55 = vadd.f32 %v12286_v7, %v12285_v21  ;;  %15511 = vmatpush3.bf16.msra.mxu1 %v26124_v54  ;;  %26125 = vst [vmem:[#allocation21_spill] sm:$0xff] %v20894_v48  ;;  %v26128_v7 = vand.u32 4294901760, %v20695_v24  ;;  %v5978_v9 = vand.u32 4294901760, %v5977_v57  ;;  %v6184_v57 = vsub.f32 %v20706_v19, %v24952_v22 }
 0x247   :  { %v6171_v41 = vand.u32 4294901760, %v6170_v40  ;;  %15513 = vmatprep.subr.bf16.mxu1 %v26126_v58  ;;  %26127 = vst [vmem:[#allocation36_spill] sm:$0xff] %v20897_v15  ;;  %v6178_v52 = vand.u32 4294901760, %v6177_v1  ;;  %v6059_v40 = vand.u32 4294901760, %v6058_v8  ;;  %v24949_v1 = vand.u32 4294901760, %v20728_v4  ;;  %v26130_v58 = vld [vmem:[#allocation58_spill] sm:$0xff] }
 0x248   :  { %v6065_v21 = vsub.f32 %v20695_v24, %v26128_v7  ;;  %v3011_v54 = vadd.f32 %v12287_v55, %v20669_v3  ;;  %15743 = vmatpush3.bf16.msra.mxu0 %v20786_v51  ;;  %v26131_v3 = vpack.c.bf16 %v20551_v45, %v20540_v27  ;;  %v6191_v55 = vsub.f32 %v20724_v12, %v24948_v56  ;;  %v26139_v51 = vld [vmem:[#allocation75_spill] sm:$0xff] }
 0x249   :  { %v20909_v29 = vpack.c.bf16 %v6178_v52, %v6171_v41  ;;  %v24950_v8 = vand.u32 4294901760, %v20730_v47  ;;  %v26132_v41 = vld [vmem:[#allocation9_spill] sm:$0xff]  ;;  %v15782_v52 = vpack.c.bf16 %v20585_v14, %v20583_v44  ;;  %v6072_v7 = vsub.f32 %v20728_v4, %v24949_v1  ;;  %v26134_v1 = vld [vmem:[#allocation79_spill] sm:$0xff] }
 0x24a   :  { %v6066_v63 = vand.u32 4294901760, %v6065_v21  ;;  %v20913_v2 = vadd.f32 %v26130_v58, %v3011_v54  ;;  %15515 = vmatpush3.bf16.msra.mxu1 %v26084_v46  ;;  %15777 = vmatprep.subr.bf16.mxu0 %v26131_v3  ;;  %v6185_v21 = vand.u32 4294901760, %v6184_v57  ;;  %v6192_v54 = vand.u32 4294901760, %v6191_v55 }
 0x24b   :  { %26129 = vst [vmem:[#allocation24_spill] sm:$0xff] %v20909_v29  ;;  %15517 = vmatprep.subr.bf16.mxu1 %v26132_v41  ;;  %5979 = vmatmul.mubr.f32.vlgmr.msra.gmra.mrb[30].mxu0 %v5978_v9  ;;  %v6079_v58 = vsub.f32 %v20730_v47, %v24950_v8  ;;  %v24951_v3 = vand.u32 4294901760, %v20756_v31  ;;  %v6073_v41 = vand.u32 4294901760, %v6072_v7  ;;  %v24953_v56 = vand.u32 4294901760, %v20777_v34 }
 0x24c   :  { %v20929_v46 = vpack.c.bf16 %v6066_v63, %v6059_v40  ;;  %15779 = vmatpush3.bf16.msra.mxu0 %v15778_v28  ;;  %v24957_v40 = vand.u32 4294901760, %v20818_v6  ;;  %v24958_v63 = vand.u32 4294901760, %v20820_v0  ;;  %6346 = vmatprep.mubr.f32.mxu0 %v20720_v32  ;;  %v20943_v9 = vpack.c.bf16 %v6192_v54, %v6185_v21  ;;  %v26136_v28 = vld [vmem:[#allocation49_spill] sm:$0xff]  ;;  %v26140_v32 = vld [vmem:[#allocation43_spill] sm:$0xff] }
 0x24d   :  { %15781 = vmatprep.subr.bf16.mxu0 %v15780_v49  ;;  %v6080_v57 = vand.u32 4294901760, %v6079_v58  ;;  %v6198_v55 = vsub.f32 %v20756_v31, %v24951_v3  ;;  %v15784_v7 = vpack.c.bf16 %v20592_v37, %v20590_v25  ;;  %v6205_v8 = vsub.f32 %v20777_v34, %v24953_v56  ;;  %v26138_v58 = vld [vmem:[#allocation32_spill] sm:$0xff] }
 0x24e   :  { %26133 = vst [vmem:[#allocation70_spill] sm:$0xff] %v20929_v46  ;;  %15519 = vmatpush3.bf16.msra.mxu1 %v26134_v1  ;;  %26135 = vst [vmem:[#allocation31_spill] sm:$0xff] %v20943_v9  ;;  %v6086_v49 = vsub.f32 %v20818_v6, %v24957_v40  ;;  %v6093_v1 = vsub.f32 %v20820_v0, %v24958_v63  ;;  %v15788_v40 = vpack.c.bf16 %v26108_v53, %v20618_v13  ;;  %v26141_v63 = vld [vmem:[#allocation48_spill] sm:$0xff] }
 0x24f   :  { %15553 = vmatprep.subr.bf16.mxu1 %v26136_v28  ;;  %v20960_v21 = vpack.c.bf16 %v6080_v57, %v6073_v41  ;;  %v6199_v54 = vand.u32 4294901760, %v6198_v55  ;;  %v15786_v28 = vpack.c.bf16 %v20608_v42, %v20606_v33  ;;  %v6206_v3 = vand.u32 4294901760, %v6205_v8  ;;  %v26145_v55 = vld [vmem:[#allocation19_spill] sm:$0xff]  ;;  %v293_v46 = vld [vmem:[%s24464_s1 + $0x7c0] sm:$0xff] }
 0x250   :  { %15783 = vmatpush3.bf16.msra.mxu0 %v15782_v52  ;;  %v6087_v22 = vand.u32 4294901760, %v6086_v49  ;;  %v6094_v56 = vand.u32 4294901760, %v6093_v1  ;;  %v15790_v8 = vpack.c.bf16 %v26111_v10, %v26110_v35  ;;  %v26144_v52 = vld [vmem:[#allocation78_spill] sm:$0xff]  ;;  %v15800_v49 = vpack.c.bf16 %v20724_v12, %v20706_v19  ;;  %v26149_v1 = vld [vmem:[#allocation55_spill] sm:$0xff] }
 0x251   :  { %26137 = vst [vmem:[#allocation6_spill] sm:$0xff] %v20960_v21  ;;  %5005 = vmatmul.mubr.f32.vlgmr.msra.gmra.mrb[34].mxu1 %v26138_v58  ;;  %15785 = vmatprep.subr.bf16.mxu0 %v15784_v7  ;;  %v20970_v41 = vpack.c.bf16 %v6206_v3, %v6199_v54  ;;  %v26146_v3 = vld [vmem:[#allocation56_spill] sm:$0xff]  ;;  %v26148_v7 = vld [vmem:[#allocation22_spill] sm:$0xff] }
 0x252   :  { %15555 = vmatpush3.bf16.msra.mxu1 %v26139_v51  ;;  %5347 = vmatprep.mubr.f32.mxu1 %v26140_v32  ;;  %v20972_v57 = vpack.c.bf16 %v6094_v56, %v6087_v22  ;;  %v15792_v51 = vpack.c.bf16 %v20661_v36, %v26115_v23  ;;  %v15796_v22 = vpack.c.bf16 %v20686_v61, %v20684_v38  ;;  %v26147_v56 = vld [vmem:[#allocation60_spill] sm:$0xff] }
 0x253   :  { %15557 = vmatprep.subr.bf16.mxu1 %v26141_v63  ;;  %26142 = vst [vmem:[#allocation58_spill] sm:$0xff] %v20970_v41  ;;  %v15794_v63 = vpack.c.bf16 %v20673_v43, %v20665_v5 }
 0x254   :  { %26143 = vst [vmem:[#allocation9_spill] sm:$0xff] %v20972_v57  ;;  %15787 = vmatpush3.bf16.msra.mxu0 %v15786_v28  ;;  %v26159_v57 = vld [vmem:[#allocation74_spill] sm:$0xff] }
 0x255   :  { %15789 = vmatprep.subr.bf16.mxu0 %v15788_v40  ;;  %v15798_v40 = vpack.c.bf16 %v20695_v24, %v20693_v16 }
 0x256   :  { %15559 = vmatpush3.bf16.msra.mxu1 %v26144_v52  ;;  %v26151_v52 = vld [vmem:[#allocation63_spill] sm:$0xff] }
 0x257   :  { %15561 = vmatprep.subr.bf16.mxu1 %v26145_v55  ;;  %v26152_v55 = vld [vmem:[#allocation57_spill] sm:$0xff] }
 0x258   :  { %15791 = vmatpush3.bf16.msra.mxu0 %v15790_v8  ;;  %v15802_v8 = vpack.c.bf16 %v20730_v47, %v20728_v4 }
 0x259   :  { %15793 = vmatprep.subr.bf16.mxu0 %v15792_v51  ;;  %v15804_v51 = vpack.c.bf16 %v20777_v34, %v20756_v31 }
 0x25a   :  { %15563 = vmatpush3.bf16.msra.mxu1 %v26146_v3 }
 0x25b   :  { %15565 = vmatprep.subr.bf16.mxu1 %v26147_v56 }
 0x25c   :  { %15795 = vmatpush3.bf16.msra.mxu0 %v15794_v63 }
 0x25d   :  { %15797 = vmatprep.subr.bf16.mxu0 %v15796_v22  ;;  %v15806_v22 = vpack.c.bf16 %v20820_v0, %v20818_v6 }
 0x25e   :  { %15567 = vmatpush3.bf16.msra.mxu1 %v26148_v7  ;;  %v12600_v54 = vpop.f32.mrb[18].mxu0  ;;  %v26153_v7 = vld [vmem:[#allocation27_spill] sm:$0xff] }
 0x25f   :  { %15569 = vmatprep.subr.bf16.mxu1 %v26149_v1  ;;  %v12601_v58 = vpop.f32.mrb[19].mxu0  ;;  %v26155_v1 = vand.u32 4294901760, %v20551_v45  ;;  %v26162_v45 = vand.u32 4294901760, %v20577_v26  ;;  %v26170_v26 = vand.u32 4294901760, %v20592_v37  ;;  %v26179_v37 = vld [vmem:[#allocation51_spill] sm:$0xff] }
 0x260   :  { %v20992_v28 = vadd.f32 %v12601_v58, %v12600_v54  ;;  %15799 = vmatpush3.bf16.msra.mxu0 %v15798_v40  ;;  %v26154_v40 = vand.u32 4294901760, %v20540_v27  ;;  %v26156_v54 = vld [vmem:[#allocation26_spill] sm:$0xff]  ;;  %v26161_v27 = vand.u32 4294901760, %v20569_v30  ;;  %v26169_v30 = vand.u32 4294901760, %v20590_v25 }
 0x261   :  { %15801 = vmatprep.subr.bf16.mxu0 %v15800_v49  ;;  %v26178_v25 = vand.u32 4294901760, %v26108_v53  ;;  %v26183_v53 = vand.u32 4294901760, %v26115_v23  ;;  %v288_v23 = vld [vmem:[%s24464_s1 + $0x798] sm:$0xff] }
 0x262   :  { %26150 = vst [vmem:[#allocation79_spill] sm:$0xff] %v20992_v28  ;;  %15571 = vmatpush3.bf16.msra.mxu1 %v26151_v52  ;;  %v15840_v49 = vpack.c.bf16 %v26155_v1, %v26154_v40  ;;  %v26157_v52 = vand.u32 4294901760, %v20562_v59  ;;  %v26164_v59 = vand.u32 4294901760, %v20583_v44  ;;  %v15848_v40 = vpack.c.bf16 %v26170_v26, %v26169_v30  ;;  %v26171_v1 = vld [vmem:[#allocation76_spill] sm:$0xff] }
 0x263   :  { %15573 = vmatprep.subr.bf16.mxu1 %v26152_v55  ;;  %v26172_v44 = vand.u32 4294901760, %v20606_v33  ;;  %v26181_v33 = vand.u32 4294901760, %v26111_v10  ;;  %v270_v10 = vld [vmem:[%s24464_s1 + $0x708] sm:$0xff]  ;;  %v26187_v30 = vand.u32 4294901760, %v20673_v43  ;;  %v26191_v43 = vand.u32 4294901760, %v20693_v16 }
 0x264   :  { %v12355_v63 = vpop.f32.mrb[22].mxu1  ;;  %15803 = vmatpush3.bf16.msra.mxu0 %v15802_v8  ;;  %v26158_v8 = vand.u32 4294901760, %v20564_v62  ;;  %v26165_v62 = vand.u32 4294901760, %v20585_v14  ;;  %v26173_v14 = vand.u32 4294901760, %v20608_v42 }
 0x265   :  { %v12356_v3 = vpop.f32.mrb[23].mxu1  ;;  %15805 = vmatprep.subr.bf16.mxu0 %v15804_v51  ;;  %v15844_v51 = vpack.c.bf16 %v26162_v45, %v26161_v27  ;;  %v285_v27 = vld [vmem:[%s24464_s1 + $0x780] sm:$0xff]  ;;  %v26182_v45 = vld [vmem:[#allocation61_spill] sm:$0xff] }
 0x266   :  { %v12357_v56 = vadd.f32 %v12356_v3, %v12355_v63  ;;  %15575 = vmatpush3.bf16.msra.mxu1 %v26153_v7  ;;  %v15842_v55 = vpack.c.bf16 %v26158_v8, %v26157_v52  ;;  %v26160_v3 = vld [vmem:[#allocation5_spill] sm:$0xff]  ;;  %v26163_v7 = vld [vmem:[#allocation15_spill] sm:$0xff]  ;;  %v26177_v8 = vand.u32 4294901760, %v20618_v13 }
 0x267   :  { %15577 = vmatprep.subr.bf16.mxu1 %v26156_v54  ;;  %v26174_v54 = vld [vmem:[#allocation46_spill] sm:$0xff]  ;;  %v286_v13 = vld [vmem:[%s24464_s1 + $0x788] sm:$0xff] }
 0x268   :  { %v3283_v58 = vadd.f32 %v12357_v56, %v20913_v2  ;;  %15807 = vmatpush3.bf16.msra.mxu0 %v15806_v22  ;;  %v15846_v2 = vpack.c.bf16 %v26165_v62, %v26164_v59  ;;  %v26167_v22 = vld [vmem:[#allocation50_spill] sm:$0xff]  ;;  %v26168_v56 = vld [vmem:[#allocation72_spill] sm:$0xff]  ;;  %v26185_v59 = vld [vmem:[#allocation23_spill] sm:$0xff] }
 0x269   :  { %15841 = vmatprep.subr.bf16.mxu0 %v15840_v49  ;;  %v15850_v49 = vpack.c.bf16 %v26173_v14, %v26172_v44  ;;  %v287_v62 = vld [vmem:[%s24464_s1 + $0x790] sm:$0xff]  ;;  %v6738_v44 = vand.u32 4294901760, %v270_v10 }
 0x26a   :  { %v21014_v63 = vadd.f32 %v26159_v57, %v3283_v58  ;;  %15579 = vmatpush3.bf16.msra.mxu1 %v26160_v3  ;;  %v26166_v57 = vld [vmem:[#allocation77_spill] sm:$0xff]  ;;  %v26180_v3 = vand.u32 4294901760, %v26110_v35  ;;  %v269_v35 = vld [vmem:[%s24464_s1 + $0x700] sm:$0xff]  ;;  %v271_v14 = vld [vmem:[%s24464_s1 + $0x710] sm:$0xff] }
 0x26b   :  { %15581 = vmatprep.subr.bf16.mxu1 %v26163_v7  ;;  %6349 = vmatmul.mubr.f32.vlgmr.msra.gmra.mrb[32].mxu0 %v20795_v11  ;;  %v26175_v58 = vld [vmem:[#allocation29_spill] sm:$0xff] }
 0x26c   :  { %15843 = vmatpush3.bf16.msra.mxu0 %v15842_v55  ;;  %6623 = vmatprep.mubr.f32.mxu0 %v26166_v57  ;;  %v26176_v52 = vand.u32 4294901760, %v26175_v58  ;;  %v15852_v55 = vpack.c.bf16 %v26178_v25, %v26177_v8  ;;  %v15854_v42 = vpack.c.bf16 %v26181_v33, %v26180_v3  ;;  %v26188_v58 = vld [vmem:[#allocation53_spill] sm:$0xff]  ;;  %v26192_v25 = vand.u32 4294901760, %v20695_v24 }
 0x26d   :  { %15845 = vmatprep.subr.bf16.mxu0 %v15844_v51  ;;  %v26184_v51 = vand.u32 4294901760, %v20661_v36  ;;  %v6783_v36 = vand.u32 4294901760, %v285_v27  ;;  %v6789_v3 = vand.u32 4294901760, %v287_v62  ;;  %v6792_v33 = vand.u32 4294901760, %v288_v23 }
 0x26e   :  { %15583 = vmatpush3.bf16.msra.mxu1 %v26167_v22  ;;  %v26186_v22 = vand.u32 4294901760, %v20665_v5  ;;  %v26190_v5 = vand.u32 4294901760, %v20686_v61  ;;  %v26195_v61 = vand.u32 4294901760, %v20724_v12  ;;  %v26196_v24 = vand.u32 4294901760, %v20728_v4  ;;  %v273_v12 = vld [vmem:[%s24464_s1 + $0x720] sm:$0xff] }
 0x26f   :  { %15617 = vmatprep.subr.bf16.mxu1 %v26168_v56  ;;  %v15856_v7 = vpack.c.bf16 %v26184_v51, %v26183_v53  ;;  %v290_v53 = vld [vmem:[%s24464_s1 + $0x7a8] sm:$0xff]  ;;  %v26193_v51 = vld [vmem:[#allocation54_spill] sm:$0xff]  ;;  %v21157_v41 = vsub.f32 %v287_v62, %v6789_v3 }
 0x270   :  { %15847 = vmatpush3.bf16.msra.mxu0 %v15846_v2  ;;  %v6786_v2 = vand.u32 4294901760, %v286_v13  ;;  %v15858_v26 = vpack.c.bf16 %v26187_v30, %v26186_v22  ;;  %v26198_v30 = vand.u32 4294901760, %v20756_v31 }
 0x271   :  { %5349 = vmatmul.mubr.f32.vlgmr.msra.gmra.mrb[36].mxu1 %v26171_v1  ;;  %15849 = vmatprep.subr.bf16.mxu0 %v15848_v40  ;;  %v6735_v40 = vand.u32 4294901760, %v269_v35 }
 0x272   :  { %15619 = vmatpush3.bf16.msra.mxu1 %v26174_v54  ;;  %5591 = vmatprep.mubr.f32.mxu1 %v26176_v52  ;;  %v26189_v52 = vand.u32 4294901760, %v20684_v38  ;;  %v26194_v38 = vand.u32 4294901760, %v20706_v19  ;;  %v21126_v4 = vpack.c.bf16 %v6786_v2, %v6783_v36 }
 0x273   :  { %15621 = vmatprep.subr.bf16.mxu1 %v26179_v37 }
 0x274   :  { %15851 = vmatpush3.bf16.msra.mxu0 %v15850_v49  ;;  %v272_v49 = vld [vmem:[%s24464_s1 + $0x718] sm:$0xff]  ;;  %v15860_v8 = vpack.c.bf16 %v26190_v5, %v26189_v52  ;;  %v15864_v16 = vpack.c.bf16 %v26195_v61, %v26194_v38  ;;  %v26199_v52 = vand.u32 4294901760, %v20777_v34  ;;  %26202 = vst [vmem:[#allocation49_spill] sm:$0xff] %v21126_v4  ;;  %v6741_v38 = vand.u32 4294901760, %v271_v14  ;;  %v274_v34 = vld [vmem:[%s24464_s1 + $0x728] sm:$0xff] }
 0x275   :  { %15853 = vmatprep.subr.bf16.mxu0 %v15852_v55  ;;  %v15862_v55 = vpack.c.bf16 %v26192_v25, %v26191_v43  ;;  %v26200_v43 = vand.u32 4294901760, %v20818_v6  ;;  %v26201_v25 = vand.u32 4294901760, %v20820_v0  ;;  %v6744_v31 = vand.u32 4294901760, %v272_v49  ;;  %v291_v6 = vld [vmem:[%s24464_s1 + $0x7b0] sm:$0xff]  ;;  %v292_v0 = vld [vmem:[%s24464_s1 + $0x7b8] sm:$0xff] }
 0x276   :  { %15623 = vmatpush3.bf16.msra.mxu1 %v26182_v45  ;;  %v21115_v5 = vpack.c.bf16 %v26199_v52, %v26198_v30  ;;  %v21139_v61 = vsub.f32 %v286_v13, %v6786_v2  ;;  %v276_v30 = vld [vmem:[%s24464_s1 + $0x738] sm:$0xff]  ;;  %v21154_v13 = vpack.c.bf16 %v6792_v33, %v6789_v3  ;;  %v6747_v2 = vand.u32 4294901760, %v273_v12 }
 0x277   :  { %15625 = vmatprep.subr.bf16.mxu1 %v26185_v59  ;;  %v21121_v19 = vpack.c.bf16 %v26201_v25, %v26200_v43  ;;  %v26204_v52 = vld [vmem:[#allocation59_spill] sm:$0xff]  ;;  %v21150_v43 = vsub.f32 %v269_v35, %v6735_v40  ;;  %v26206_v25 = vld [vmem:[#allocation62_spill] sm:$0xff]  ;;  %v6750_v21 = vand.u32 4294901760, %v274_v34  ;;  %v6801_v28 = vand.u32 4294901760, %v291_v6  ;;  %v294_v35 = vld [vmem:[%s24464_s1 + $0x7c8] sm:$0xff] }
 0x278   :  { %15855 = vmatpush3.bf16.msra.mxu0 %v15854_v42  ;;  %v289_v42 = vld [vmem:[%s24464_s1 + $0x7a0] sm:$0xff]  ;;  %26205 = vst [vmem:[#allocation75_spill] sm:$0xff] %v21154_v13  ;;  %v6804_v9 = vand.u32 4294901760, %v292_v0  ;;  %v6756_v29 = vand.u32 4294901760, %v276_v30  ;;  %v21171_v3 = vsub.f32 %v271_v14, %v6741_v38  ;;  %v21173_v15 = vsub.f32 %v272_v49, %v6744_v31  ;;  %v278_v14 = vld [vmem:[%s24464_s1 + $0x748] sm:$0xff] }
 0x279   :  { %15857 = vmatprep.subr.bf16.mxu0 %v15856_v7  ;;  %v26197_v7 = vand.u32 4294901760, %v20730_v47  ;;  %v21128_v47 = vsub.f32 %v285_v27, %v6783_v36  ;;  %v6795_v27 = vand.u32 4294901760, %v289_v42  ;;  %v6798_v36 = vand.u32 4294901760, %v290_v53  ;;  %v17048_v49 = vld [vmem:[%s24463_s0 + $0x1c] ss:$48 sps:$4 sm:$0xff]  }
 0x27a   :  { %15627 = vmatpush3.bf16.msra.mxu1 %v26188_v58  ;;  %v6810_v57 = vand.u32 4294901760, %v294_v35  ;;  %v21228_v50 = vsub.f32 %v276_v30, %v6756_v29 }
 0x27b   :  { %15629 = vmatprep.subr.bf16.mxu1 %v26193_v51  ;;  %v21109_v22 = vpack.c.bf16 %v26197_v7, %v26196_v24  ;;  %v21141_v24 = vpack.c.bf16 %v6738_v44, %v6735_v40  ;;  %v275_v7 = vld [vmem:[%s24464_s1 + $0x730] sm:$0xff]  ;;  %v21165_v40 = vsub.f32 %v288_v23, %v6792_v33  ;;  %v21175_v48 = vpack.c.bf16 %v6798_v36, %v6795_v27 }
 0x27c   :  { %15859 = vmatpush3.bf16.msra.mxu0 %v15858_v26  ;;  %v21152_v26 = vsub.f32 %v270_v10, %v6738_v44  ;;  %v21167_v44 = vpack.c.bf16 %v6744_v31, %v6741_v38  ;;  %v21178_v60 = vsub.f32 %v289_v42, %v6795_v27  ;;  %v21180_v23 = vsub.f32 %v290_v53, %v6798_v36  ;;  %v295_v31 = vld [vmem:[%s24464_s1 + $0x7d0] sm:$0xff]  ;;  %v17049_v27 = vld [vmem:[%s24463_s0 + $0x7c] ss:$48 sps:$4 sm:$0xff]  }
 0x27d   :  { %26203 = vst [vmem:[#allocation32_spill] sm:$0xff] %v21141_v24  ;;  %15861 = vmatprep.subr.bf16.mxu0 %v15860_v8  ;;  %v6753_v8 = vand.u32 4294901760, %v275_v7  ;;  %26209 = vst [vmem:[#allocation78_spill] sm:$0xff] %v21175_v48  ;;  %v6807_v33 = vand.u32 4294901760, %v293_v46  ;;  %v21192_v42 = vpack.c.bf16 %v6750_v21, %v6747_v2  ;;  %v21194_v53 = vsub.f32 %v273_v12, %v6747_v2  ;;  %v280_v2 = vld [vmem:[%s24464_s1 + $0x758] sm:$0xff] }
 0x27e   :  { %15631 = vmatpush3.bf16.msra.mxu1 %v26204_v52  ;;  %v12670_v11 = vpop.f32.mrb[20].mxu0  ;;  %26207 = vst [vmem:[#allocation43_spill] sm:$0xff] %v21167_v44  ;;  %v21198_v38 = vpack.c.bf16 %v6804_v9, %v6801_v28  ;;  %26219 = vst [vmem:[#allocation63_spill] sm:$0xff] %v21228_v50  ;;  %v281_v52 = vld [vmem:[%s24464_s1 + $0x760] sm:$0xff]  ;;  %v282_v50 = vld [vmem:[%s24464_s1 + $0x768] sm:$0xff] }
 0x27f   :  { %15633 = vmatprep.subr.bf16.mxu1 %v26206_v25  ;;  %v12671_v10 = vpop.f32.mrb[21].mxu0  ;;  %26212 = vst [vmem:[#allocation19_spill] sm:$0xff] %v21192_v42  ;;  %v21210_v39 = vpack.c.bf16 %v6756_v29, %v6753_v8  ;;  %v21212_v12 = vsub.f32 %v275_v7, %v6753_v8  ;;  %v26221_v25 = vld [vmem:[#allocation68_spill] sm:$0xff] }
 0x280   :  { %v21169_v62 = vadd.f32 %v12671_v10, %v12670_v11  ;;  %15863 = vmatpush3.bf16.msra.mxu0 %v15862_v55  ;;  %v277_v11 = vld [vmem:[%s24464_s1 + $0x740] sm:$0xff]  ;;  %v26211_v55 = vld [vmem:[#allocation65_spill] sm:$0xff]  ;;  %26213 = vst [vmem:[#allocation56_spill] sm:$0xff] %v21198_v38  ;;  %v21206_v10 = vsub.f32 %v291_v6, %v6801_v28  ;;  %v6762_v6 = vand.u32 4294901760, %v278_v14 }
 0x281   :  { %15865 = vmatprep.subr.bf16.mxu0 %v15864_v16  ;;  %v21196_v16 = vsub.f32 %v274_v34, %v6750_v21  ;;  %26215 = vst [vmem:[#allocation22_spill] sm:$0xff] %v21210_v39  ;;  %26216 = vst [vmem:[#allocation55_spill] sm:$0xff] %v21212_v12  ;;  %v296_v21 = vld [vmem:[%s24464_s1 + $0x7d8] sm:$0xff]  ;;  %v279_v34 = vld [vmem:[%s24464_s1 + $0x750] sm:$0xff] }
 0x282   :  { %26208 = vst [vmem:[#allocation48_spill] sm:$0xff] %v21169_v62  ;;  %15635 = vmatpush3.bf16.msra.mxu1 %v26210_v18  ;;  %v21208_v62 = vsub.f32 %v292_v0, %v6804_v9  ;;  %v6759_v9 = vand.u32 4294901760, %v277_v11  ;;  %v26217_v0 = vld [vmem:[#allocation25_spill] sm:$0xff]  ;;  %v6813_v18 = vand.u32 4294901760, %v295_v31 }
 0x283   :  { %15637 = vmatprep.subr.bf16.mxu1 %v26211_v55  ;;  %v585_v7 = vrot.slane %v17048_v49, %v26217_v0  ;;  %v599_v8 = vrot.slane %v17049_v27, %v26217_v0  ;;  %v21230_v55 = vpack.c.bf16 %v6810_v57, %v6807_v33  ;;  %v298_v49 = vld [vmem:[%s24464_s1 + $0x7e8] sm:$0xff]  ;;  %v6816_v27 = vand.u32 4294901760, %v296_v21 }
 0x284   :  { %v12425_v36 = vpop.f32.mrb[24].mxu1  ;;  %26214 = vst [vmem:[#allocation60_spill] sm:$0xff] %v21208_v62  ;;  %15867 = vmatpush3.bf16.msra.mxu0 %v21109_v22  ;;  %v297_v22 = vld [vmem:[%s24464_s1 + $0x7e0] sm:$0xff]  ;;  %v21251_v12 = vpack.c.bf16 %v6762_v6, %v6759_v9  ;;  %v21253_v62 = vsub.f32 %v277_v11, %v6759_v9  ;;  %v6771_v9 = vand.u32 4294901760, %v281_v52 }
 0x285   :  { %v12426_v28 = vpop.f32.mrb[25].mxu1  ;;  %15869 = vmatprep.subr.bf16.mxu0 %v21115_v5  ;;  %26220 = vst [vmem:[#allocation57_spill] sm:$0xff] %v21230_v55  ;;  %v603_v0 = vcombine.high %v585_v7, %v599_v8  ;;  %v21240_v5 = vsub.f32 %v293_v46, %v6807_v33  ;;  %v6819_v30 = vand.u32 4294901760, %v297_v22  ;;  %v26225_v33 = vld [vmem:[#allocation73_spill] sm:$0xff]  ;;  %v6774_v46 = vand.u32 4294901760, %v282_v50 }
 0x286   :  { %v12427_v1 = vadd.f32 %v12426_v28, %v12425_v36  ;;  %15639 = vmatpush3.bf16.msra.mxu1 %v26218_v17  ;;  %v6765_v36 = vand.u32 4294901760, %v279_v34  ;;  %v6768_v28 = vand.u32 4294901760, %v280_v2  ;;  %v6822_v17 = vand.u32 4294901760, %v298_v49  ;;  %26223 = vst [vmem:[#allocation26_spill] sm:$0xff] %v21251_v12 }
 0x287   :  { %15641 = vmatprep.subr.bf16.mxu1 %v26221_v25  ;;  %26222 = vst [vmem:[#allocation27_spill] sm:$0xff] %v21240_v5  ;;  %v21249_v25 = vsub.f32 %v294_v35, %v6810_v57  ;;  %v21261_v5 = vsub.f32 %v278_v14, %v6762_v6  ;;  %v26227_v57 = vld [vmem:[#allocation69_spill] sm:$0xff]  ;;  %v21267_v35 = vpack.c.bf16 %v6816_v27, %v6813_v18 }
 0x288   :  { %v3627_v29 = vadd.f32 %v12427_v1, %v21014_v63  ;;  %15871 = vmatpush3.bf16.msra.mxu0 %v21121_v19  ;;  %v26224_v63 = vld [vmem:[#allocation80_spill] sm:$0xff]  ;;  %v21264_v19 = vand.u32 4294901760, %v603_v0  ;;  %v21269_v11 = vpack.c.bf16 %v6768_v28, %v6765_v36  ;;  %v21276_v14 = vpack.c.bf16 %v6822_v17, %v6819_v30 }
 0x289   :  { %15905 = vmatprep.subr.bf16.mxu0 %v21126_v4  ;;  %26228 = vst [vmem:[#allocation5_spill] sm:$0xff] %v21267_v35  ;;  %v21278_v6 = vcombine.low %v585_v7, %v599_v8  ;;  %v21281_v51 = vsub.f32 %v279_v34, %v6765_v36  ;;  %v21283_v4 = vsub.f32 %v280_v2, %v6768_v28  ;;  %v300_v34 = vld [vmem:[%s24464_s1 + $0x7f8] sm:$0xff]  ;;  %v21302_v2 = vld [vmem:[%s24464_s1 + $0x770] sm:$0xff]  ;;  %v26233_v8 = vand.u32 4294901760, %v21139_v61 }
 0x28a   :  { %v21257_v1 = vadd.f32 %v26224_v63, %v3627_v29  ;;  %15643 = vmatpush3.bf16.msra.mxu1 %v26225_v33  ;;  %26226 = vst [vmem:[#allocation74_spill] sm:$0xff] %v21264_v19  ;;  %26229 = vst [vmem:[#allocation15_spill] sm:$0xff] %v21269_v11  ;;  %v21272_v29 = vsub.f32 %v295_v31, %v6813_v18  ;;  %v21274_v63 = vsub.f32 %v296_v21, %v6816_v27  ;;  %v26232_v21 = vld [vmem:[#allocation20_spill] sm:$0xff]  ;;  %v26236_v36 = vld [vmem:[#allocation10_spill] sm:$0xff] }
 0x28b   :  { %15645 = vmatprep.subr.bf16.mxu1 %v26227_v57  ;;  %6625 = vmatmul.mubr.f32.vlgmr.msra.gmra.mrb[34].mxu0 %v20770_v20  ;;  %26230 = vst [vmem:[#allocation50_spill] sm:$0xff] %v21276_v14  ;;  %v299_v57 = vld [vmem:[%s24464_s1 + $0x7f0] sm:$0xff]  ;;  %v26231_v20 = vand.u32 4294901760, %v21128_v47  ;;  %v21294_v7 = vsub.f32 %v297_v22, %v6819_v30  ;;  %v21308_v27 = vsub.f32 %v603_v0, %v21264_v19 }
 0x28c   :  { %15907 = vmatpush3.bf16.msra.mxu0 %v21141_v24  ;;  %v21312_v22 = vsub.f32 %v298_v49, %v6822_v17  ;;  %v21314_v28 = vpack.c.bf16 %v6774_v46, %v6771_v9  ;;  %v21316_v30 = vsub.f32 %v281_v52, %v6771_v9  ;;  %v21318_v31 = vsub.f32 %v282_v50, %v6774_v46 }
 0x28d   :  { %v6962_v18 = vsub.f32 %v21128_v47, %v26231_v20  ;;  %15909 = vmatprep.subr.bf16.mxu0 %v21154_v13  ;;  %v6969_v20 = vsub.f32 %v21139_v61, %v26233_v8  ;;  %26234 = vst [vmem:[#allocation72_spill] sm:$0xff] %v21308_v27  ;;  %v284_v13 = vld [vmem:[%s24464_s1 + $0x778] sm:$0xff]  ;;  %v6825_v8 = vand.u32 4294901760, %v299_v57  ;;  %v24975_v19 = vand.u32 4294901760, %v21308_v27 }
 0x28e   :  { %15647 = vmatpush3.bf16.msra.mxu1 %v26232_v21  ;;  %26235 = vst [vmem:[#allocation46_spill] sm:$0xff] %v21314_v28  ;;  %v26237_v21 = vand.u32 4294901760, %v26236_v36  ;;  %v6828_v17 = vand.u32 4294901760, %v300_v34  ;;  %v26238_v50 = vand.u32 4294901760, %v21150_v43  ;;  %v26239_v49 = vand.u32 4294901760, %v21152_v26 }
 0x28f   :  { %15681 = vmatprep.subr.bf16.mxu1 %v26168_v56  ;;  %v6963_v24 = vand.u32 4294901760, %v6962_v18  ;;  %v6970_v0 = vand.u32 4294901760, %v6969_v20  ;;  %v6777_v56 = vand.u32 4294901760, %v21302_v2  ;;  %v6780_v9 = vand.u32 4294901760, %v284_v13 }
 0x290   :  { %15911 = vmatpush3.bf16.msra.mxu0 %v21167_v44  ;;  %v6850_v52 = vsub.f32 %v21150_v43, %v26238_v50  ;;  %v6857_v46 = vsub.f32 %v21152_v26, %v26239_v49  ;;  %v24979_v20 = vand.u32 4294901760, %v21157_v41  ;;  %v21344_v36 = vsub.f32 %v299_v57, %v6825_v8 }
 0x291   :  { %5595 = vmatmul.mubr.f32.vlgmr.msra.gmra.mrb[38].mxu1 %v26237_v21  ;;  %v21336_v18 = vpack.c.bf16 %v6970_v0, %v6963_v24  ;;  %v6833_v21 = vsub.f32 %v21308_v27, %v24975_v19  ;;  %15913 = vmatprep.subr.bf16.mxu0 %v21175_v48  ;;  %v24980_v0 = vand.u32 4294901760, %v21171_v3  ;;  %v24981_v19 = vand.u32 4294901760, %v21173_v15 }
 0x292   :  { %15683 = vmatpush3.bf16.msra.mxu1 %v26174_v54  ;;  %5865 = vmatprep.mubr.f32.mxu1 %v26140_v32  ;;  %v6851_v50 = vand.u32 4294901760, %v6850_v52  ;;  %v6858_v49 = vand.u32 4294901760, %v6857_v46  ;;  %v24978_v54 = vand.u32 4294901760, %v21165_v40  ;;  %v6976_v24 = vsub.f32 %v21157_v41, %v24979_v20 }
 0x293   :  { %26240 = vst [vmem:[#allocation29_spill] sm:$0xff] %v21336_v18  ;;  %15685 = vmatprep.subr.bf16.mxu1 %v26179_v37  ;;  %v6834_v32 = vand.u32 4294901760, %v6833_v21  ;;  %v21353_v37 = vpack.c.bf16 %v6828_v17, %v6825_v8  ;;  %v21358_v57 = vand.u32 4294901760, %v21278_v6  ;;  %v21365_v46 = vsub.f32 %v300_v34, %v6828_v17  ;;  %v26359_v18 = vld [vmem:[#allocation18_spill] sm:$0xff] }
 0x294   :  { %15915 = vmatpush3.bf16.msra.mxu0 %v21192_v42  ;;  %v21355_v48 = vpack.c.bf16 %v6858_v49, %v6851_v50  ;;  %v6983_v52 = vsub.f32 %v21165_v40, %v24978_v54  ;;  %v6977_v21 = vand.u32 4294901760, %v6976_v24  ;;  %v6864_v8 = vsub.f32 %v21171_v3, %v24980_v0 }
 0x295   :  { %26241 = vst [vmem:[#allocation51_spill] sm:$0xff] %v21353_v37  ;;  %26243 = vst [vmem:[#allocation23_spill] sm:$0xff] %v21358_v57  ;;  %15917 = vmatprep.subr.bf16.mxu0 %v21198_v38  ;;  %v6871_v50 = vsub.f32 %v21173_v15, %v24981_v19  ;;  %v21374_v49 = vpack.c.bf16 %v6780_v9, %v6777_v56  ;;  %6835 = vmatprep.mubr.f32.mxu0 %v6834_v32  ;;  %v24982_v34 = vand.u32 4294901760, %v21180_v23 }
 0x296   :  { %26242 = vst [vmem:[#allocation61_spill] sm:$0xff] %v21355_v48  ;;  %15687 = vmatpush3.bf16.msra.mxu1 %v26182_v45  ;;  %v6984_v54 = vand.u32 4294901760, %v6983_v52  ;;  %v24983_v45 = vand.u32 4294901760, %v21178_v60  ;;  %v6865_v17 = vand.u32 4294901760, %v6864_v8  ;;  %v24986_v20 = vand.u32 4294901760, %v21194_v53 }
 0x297   :  { %15689 = vmatprep.subr.bf16.mxu1 %v26185_v59  ;;  %26244 = vst [vmem:[#allocation53_spill] sm:$0xff] %v21374_v49  ;;  %v6872_v24 = vand.u32 4294901760, %v6871_v50  ;;  %v24991_v0 = vand.u32 4294901760, %v21196_v16  ;;  %v21383_v19 = vsub.f32 %v21278_v6, %v21358_v57  ;;  %v6997_v52 = vsub.f32 %v21180_v23, %v24982_v34  ;;  %v26248_v50 = vld [vmem:[#allocation54_spill] sm:$0xff] }
 0x298   :  { %15919 = vmatpush3.bf16.msra.mxu0 %v21210_v39  ;;  %v21385_v59 = vpack.c.bf16 %v6984_v54, %v6977_v21  ;;  %v6990_v32 = vsub.f32 %v21178_v60, %v24983_v45  ;;  %v6878_v6 = vsub.f32 %v21194_v53, %v24986_v20  ;;  %v24992_v21 = vand.u32 4294901760, %v21206_v10  ;;  %v26249_v39 = vld [vmem:[#allocation60_spill] sm:$0xff] }
 0x299   :  { %26245 = vst [vmem:[#allocation80_spill] sm:$0xff] %v21383_v19  ;;  %15921 = vmatprep.subr.bf16.mxu0 %v21230_v55  ;;  %v21395_v8 = vpack.c.bf16 %v6872_v24, %v6865_v17  ;;  %v6885_v54 = vsub.f32 %v21196_v16, %v24991_v0  ;;  %v21406_v34 = vsub.f32 %v21302_v2, %v6777_v56  ;;  %v6998_v17 = vand.u32 4294901760, %v6997_v52  ;;  %v26251_v2 = vld [vmem:[#allocation55_spill] sm:$0xff] }
 0x29a   :  { %26246 = vst [vmem:[#allocation73_spill] sm:$0xff] %v21385_v59  ;;  %15691 = vmatpush3.bf16.msra.mxu1 %v26188_v58  ;;  %v21408_v58 = vsub.f32 %v284_v13, %v6780_v9  ;;  %v6991_v45 = vand.u32 4294901760, %v6990_v32  ;;  %v6879_v24 = vand.u32 4294901760, %v6878_v6  ;;  %v7004_v20 = vsub.f32 %v21206_v10, %v24992_v21  ;;  %v26252_v56 = vld [vmem:[#allocation63_spill] sm:$0xff] }
 0x29b   :  { %26247 = vst [vmem:[#allocation10_spill] sm:$0xff] %v21395_v8  ;;  %15693 = vmatprep.subr.bf16.mxu1 %v26248_v50  ;;  %v6886_v55 = vand.u32 4294901760, %v6885_v54  ;;  %v24997_v38 = vand.u32 4294901760, %v26249_v39  ;;  %v25000_v13 = vand.u32 4294901760, %v26251_v2  ;;  %v25003_v9 = vand.u32 4294901760, %v26252_v56  ;;  %v26253_v32 = vld [vmem:[#allocation59_spill] sm:$0xff] }
 0x29c   :  { %15923 = vmatpush3.bf16.msra.mxu0 %v21251_v12  ;;  %v21417_v0 = vpack.c.bf16 %v6998_v17, %v6991_v45  ;;  %v7005_v54 = vand.u32 4294901760, %v7004_v20  ;;  %v26255_v50 = vld [vmem:[#allocation62_spill] sm:$0xff]  ;;  %v25008_v12 = vand.u32 4294901760, %v21253_v62  ;;  %v26351_v8 = vld [vmem:[#allocation37_spill] sm:$0xff] }
 0x29d   :  { %15925 = vmatprep.subr.bf16.mxu0 %v21267_v35  ;;  %v21424_v6 = vpack.c.bf16 %v6886_v55, %v6879_v24  ;;  %v7011_v21 = vsub.f32 %v26249_v39, %v24997_v38  ;;  %v6892_v17 = vsub.f32 %v26251_v2, %v25000_v13  ;;  %v26256_v35 = vld [vmem:[#allocation27_spill] sm:$0xff]  ;;  %v25005_v55 = vand.u32 4294901760, %v21249_v25 }
 0x29e   :  { %26250 = vst [vmem:[#allocation54_spill] sm:$0xff] %v21417_v0  ;;  %15695 = vmatpush3.bf16.msra.mxu1 %v26253_v32  ;;  %v12740_v45 = vpop.f32.mrb[22].mxu0  ;;  %v6899_v32 = vsub.f32 %v26252_v56, %v25003_v9  ;;  %v25004_v52 = vand.u32 4294901760, %v26256_v35  ;;  %v25011_v38 = vand.u32 4294901760, %v21261_v5 }
 0x29f   :  { %26254 = vst [vmem:[#allocation60_spill] sm:$0xff] %v21424_v6  ;;  %15697 = vmatprep.subr.bf16.mxu1 %v26255_v50  ;;  %v12741_v20 = vpop.f32.mrb[23].mxu0  ;;  %v7012_v24 = vand.u32 4294901760, %v7011_v21  ;;  %v6893_v13 = vand.u32 4294901760, %v6892_v17  ;;  %v26258_v6 = vld [vmem:[#allocation64_spill] sm:$0xff]  ;;  %v7025_v50 = vsub.f32 %v21249_v25, %v25005_v55  ;;  %v26262_v55 = vand.u32 4294901760, %v21383_v19 }
 0x2a0   :  { %v21441_v42 = vadd.f32 %v12741_v20, %v12740_v45  ;;  %15927 = vmatpush3.bf16.msra.mxu0 %v21269_v11  ;;  %v6900_v44 = vand.u32 4294901760, %v6899_v32  ;;  %v7018_v9 = vsub.f32 %v26256_v35, %v25004_v52  ;;  %v6906_v45 = vsub.f32 %v21253_v62, %v25008_v12  ;;  %v26260_v32 = vld [vmem:[#allocation65_spill] sm:$0xff] }
 0x2a1   :  { %15929 = vmatprep.subr.bf16.mxu0 %v21276_v14  ;;  %v21449_v21 = vpack.c.bf16 %v7012_v24, %v7005_v54  ;;  %v15970_v20 = vpack.c.bf16 %v21152_v26, %v21150_v43  ;;  %v6913_v54 = vsub.f32 %v21261_v5, %v25011_v38  ;;  %v6839_v14 = vsub.f32 %v21383_v19, %v26262_v55  ;;  %v26265_v55 = vld [vmem:[#allocation66_spill] sm:$0xff] }
 0x2a2   :  { %26257 = vst [vmem:[#allocation55_spill] sm:$0xff] %v21441_v42  ;;  %15699 = vmatpush3.bf16.msra.mxu1 %v26258_v6  ;;  %v21461_v6 = vpack.c.bf16 %v6900_v44, %v6893_v13  ;;  %v7019_v52 = vand.u32 4294901760, %v7018_v9  ;;  %v7026_v12 = vand.u32 4294901760, %v7025_v50  ;;  %v6907_v11 = vand.u32 4294901760, %v6906_v45 }
 0x2a3   :  { %26259 = vst [vmem:[#allocation63_spill] sm:$0xff] %v21449_v21  ;;  %15701 = vmatprep.subr.bf16.mxu1 %v26260_v32  ;;  %v26263_v17 = vand.u32 4294901760, %v21272_v29  ;;  %v6914_v44 = vand.u32 4294901760, %v6913_v54  ;;  %v26264_v13 = vand.u32 4294901760, %v21274_v63  ;;  %v25016_v38 = vand.u32 4294901760, %v21281_v51  ;;  %v26267_v54 = vld [vmem:[#allocation68_spill] sm:$0xff] }
 0x2a4   :  { %26261 = vst [vmem:[#allocation59_spill] sm:$0xff] %v21461_v6  ;;  %v12495_v24 = vpop.f32.mrb[26].mxu1  ;;  %15931 = vmatpush3.bf16.msra.mxu0 %v21314_v28  ;;  %v15972_v50 = vpack.c.bf16 %v21165_v40, %v21157_v41  ;;  %v21482_v45 = vpack.c.bf16 %v7026_v12, %v7019_v52  ;;  %v25021_v12 = vand.u32 4294901760, %v21294_v7  ;;  %v25017_v52 = vand.u32 4294901760, %v21312_v22 }
 0x2a5   :  { %v7032_v32 = vsub.f32 %v21272_v29, %v26263_v17  ;;  %v12496_v21 = vpop.f32.mrb[27].mxu1  ;;  %v7039_v9 = vsub.f32 %v21274_v63, %v26264_v13  ;;  %15933 = vmatprep.subr.bf16.mxu0 %v21353_v37  ;;  %v21485_v28 = vpack.c.bf16 %v6914_v44, %v6907_v11  ;;  %v6920_v6 = vsub.f32 %v21281_v51, %v25016_v38 }
 0x2a6   :  { %v12497_v0 = vadd.f32 %v12496_v21, %v12495_v24  ;;  %15703 = vmatpush3.bf16.msra.mxu1 %v26265_v55  ;;  %26266 = vst [vmem:[#allocation62_spill] sm:$0xff] %v21482_v45  ;;  %v26269_v21 = vand.u32 4294901760, %v21283_v4  ;;  %v6840_v37 = vand.u32 4294901760, %v6839_v14  ;;  %v7046_v14 = vsub.f32 %v21294_v7, %v25021_v12 }
 0x2a7   :  { %v7033_v17 = vand.u32 4294901760, %v7032_v32  ;;  %15705 = vmatprep.subr.bf16.mxu1 %v26267_v54  ;;  %26268 = vst [vmem:[#allocation27_spill] sm:$0xff] %v21485_v28  ;;  %v7040_v13 = vand.u32 4294901760, %v7039_v9  ;;  %v6921_v32 = vand.u32 4294901760, %v6920_v6  ;;  %v25018_v9 = vand.u32 4294901760, %v21316_v30  ;;  %v26271_v54 = vld [vmem:[#allocation28_spill] sm:$0xff] }
 0x2a8   :  { %v6927_v24 = vsub.f32 %v21283_v4, %v26269_v21  ;;  %v3873_v55 = vadd.f32 %v12497_v0, %v21257_v1  ;;  %15935 = vmatpush3.bf16.msra.mxu0 %v21374_v49  ;;  %v26272_v1 = vpack.c.bf16 %v21139_v61, %v21128_v47  ;;  %v7053_v0 = vsub.f32 %v21312_v22, %v25017_v52  ;;  %v26280_v49 = vld [vmem:[#allocation47_spill] sm:$0xff] }
 0x2a9   :  { %v21497_v11 = vpack.c.bf16 %v7040_v13, %v7033_v17  ;;  %v25019_v6 = vand.u32 4294901760, %v21318_v31  ;;  %v26273_v17 = vld [vmem:[#allocation69_spill] sm:$0xff]  ;;  %v15974_v13 = vpack.c.bf16 %v21173_v15, %v21171_v3  ;;  %v6934_v21 = vsub.f32 %v21316_v30, %v25018_v9  ;;  %v26275_v9 = vld [vmem:[#allocation20_spill] sm:$0xff] }
 0x2aa   :  { %v6928_v44 = vand.u32 4294901760, %v6927_v24  ;;  %v21501_v38 = vadd.f32 %v26271_v54, %v3873_v55  ;;  %15707 = vmatpush3.bf16.msra.mxu1 %v26225_v33  ;;  %15969 = vmatprep.subr.bf16.mxu0 %v26272_v1  ;;  %v7047_v24 = vand.u32 4294901760, %v7046_v14  ;;  %v7054_v55 = vand.u32 4294901760, %v7053_v0 }
 0x2ab   :  { %26270 = vst [vmem:[#allocation64_spill] sm:$0xff] %v21497_v11  ;;  %15709 = vmatprep.subr.bf16.mxu1 %v26273_v17  ;;  %6841 = vmatmul.mubr.f32.vlgmr.msra.gmra.mrb[36].mxu0 %v6840_v37  ;;  %v6941_v54 = vsub.f32 %v21318_v31, %v25019_v6  ;;  %v25020_v1 = vand.u32 4294901760, %v21344_v36  ;;  %v6935_v17 = vand.u32 4294901760, %v6934_v21  ;;  %v25022_v52 = vand.u32 4294901760, %v21365_v46 }
 0x2ac   :  { %v21517_v33 = vpack.c.bf16 %v6928_v44, %v6921_v32  ;;  %15971 = vmatpush3.bf16.msra.mxu0 %v15970_v20  ;;  %v25026_v32 = vand.u32 4294901760, %v21406_v34  ;;  %v25027_v44 = vand.u32 4294901760, %v21408_v58  ;;  %7208 = vmatprep.mubr.f32.mxu0 %v21308_v27  ;;  %v21531_v37 = vpack.c.bf16 %v7054_v55, %v7047_v24  ;;  %v26277_v20 = vld [vmem:[#allocation7_spill] sm:$0xff]  ;;  %v26281_v27 = vld [vmem:[#allocation77_spill] sm:$0xff] }
 0x2ad   :  { %15973 = vmatprep.subr.bf16.mxu0 %v15972_v50  ;;  %v6942_v14 = vand.u32 4294901760, %v6941_v54  ;;  %v7060_v0 = vsub.f32 %v21344_v36, %v25020_v1  ;;  %v15976_v21 = vpack.c.bf16 %v21180_v23, %v21178_v60  ;;  %v7067_v6 = vsub.f32 %v21365_v46, %v25022_v52  ;;  %v26279_v54 = vld [vmem:[#allocation76_spill] sm:$0xff] }
 0x2ae   :  { %26274 = vst [vmem:[#allocation65_spill] sm:$0xff] %v21517_v33  ;;  %15711 = vmatpush3.bf16.msra.mxu1 %v26275_v9  ;;  %26276 = vst [vmem:[#allocation66_spill] sm:$0xff] %v21531_v37  ;;  %v6948_v50 = vsub.f32 %v21406_v34, %v25026_v32  ;;  %v6955_v9 = vsub.f32 %v21408_v58, %v25027_v44  ;;  %v15980_v32 = vpack.c.bf16 %v26249_v39, %v21206_v10  ;;  %v26282_v44 = vld [vmem:[#allocation30_spill] sm:$0xff]  ;;  %v325_v33 = vld [vmem:[%s24464_s1 + $0x8c0] sm:$0xff] }
 0x2af   :  { %15745 = vmatprep.subr.bf16.mxu1 %v26277_v20  ;;  %v21548_v24 = vpack.c.bf16 %v6942_v14, %v6935_v17  ;;  %v7061_v55 = vand.u32 4294901760, %v7060_v0  ;;  %v15978_v20 = vpack.c.bf16 %v21196_v16, %v21194_v53  ;;  %v7068_v1 = vand.u32 4294901760, %v7067_v6  ;;  %v26286_v0 = vld [vmem:[#allocation13_spill] sm:$0xff] }
 0x2b0   :  { %15975 = vmatpush3.bf16.msra.mxu0 %v15974_v13  ;;  %v6949_v12 = vand.u32 4294901760, %v6948_v50  ;;  %v6956_v52 = vand.u32 4294901760, %v6955_v9  ;;  %v15982_v6 = vpack.c.bf16 %v26252_v56, %v26251_v2  ;;  %v26285_v13 = vld [vmem:[#allocation81_spill] sm:$0xff]  ;;  %v15992_v50 = vpack.c.bf16 %v21312_v22, %v21294_v7 }
 0x2b1   :  { %26278 = vst [vmem:[#allocation68_spill] sm:$0xff] %v21548_v24  ;;  %5867 = vmatmul.mubr.f32.vlgmr.msra.gmra.mrb[40].mxu1 %v26279_v54  ;;  %15977 = vmatprep.subr.bf16.mxu0 %v15976_v21  ;;  %v21558_v17 = vpack.c.bf16 %v7068_v1, %v7061_v55  ;;  %v26287_v1 = vld [vmem:[#allocation17_spill] sm:$0xff]  ;;  %v26289_v21 = vld [vmem:[#allocation16_spill] sm:$0xff] }
 0x2b2   :  { %15747 = vmatpush3.bf16.msra.mxu1 %v26280_v49  ;;  %6209 = vmatprep.mubr.f32.mxu1 %v26281_v27  ;;  %v21560_v14 = vpack.c.bf16 %v6956_v52, %v6949_v12  ;;  %v15984_v49 = vpack.c.bf16 %v21249_v25, %v26256_v35  ;;  %v15988_v12 = vpack.c.bf16 %v21274_v63, %v21272_v29  ;;  %v26288_v52 = vld [vmem:[#allocation34_spill] sm:$0xff]  ;;  %v26290_v9 = vld [vmem:[#allocation21_spill] sm:$0xff] }
 0x2b3   :  { %15749 = vmatprep.subr.bf16.mxu1 %v26282_v44  ;;  %26283 = vst [vmem:[#allocation28_spill] sm:$0xff] %v21558_v17  ;;  %v15986_v44 = vpack.c.bf16 %v21261_v5, %v21253_v62 }
 0x2b4   :  { %26284 = vst [vmem:[#allocation69_spill] sm:$0xff] %v21560_v14  ;;  %15979 = vmatpush3.bf16.msra.mxu0 %v15978_v20  ;;  %v26300_v14 = vld [vmem:[#allocation79_spill] sm:$0xff] }
 0x2b5   :  { %15981 = vmatprep.subr.bf16.mxu0 %v15980_v32  ;;  %v15990_v32 = vpack.c.bf16 %v21283_v4, %v21281_v51 }
 0x2b6   :  { %15751 = vmatpush3.bf16.msra.mxu1 %v26285_v13  ;;  %v26292_v13 = vld [vmem:[#allocation36_spill] sm:$0xff] }
 0x2b7   :  { %15753 = vmatprep.subr.bf16.mxu1 %v26286_v0  ;;  %v26293_v0 = vld [vmem:[#allocation24_spill] sm:$0xff] }
 0x2b8   :  { %15983 = vmatpush3.bf16.msra.mxu0 %v15982_v6  ;;  %v15994_v6 = vpack.c.bf16 %v21318_v31, %v21316_v30 }
 0x2b9   :  { %15985 = vmatprep.subr.bf16.mxu0 %v15984_v49  ;;  %v15996_v49 = vpack.c.bf16 %v21365_v46, %v21344_v36 }
 0x2ba   :  { %15755 = vmatpush3.bf16.msra.mxu1 %v26287_v1 }
 0x2bb   :  { %15757 = vmatprep.subr.bf16.mxu1 %v26288_v52 }
 0x2bc   :  { %15987 = vmatpush3.bf16.msra.mxu0 %v15986_v44 }
 0x2bd   :  { %15989 = vmatprep.subr.bf16.mxu0 %v15988_v12  ;;  %v15998_v12 = vpack.c.bf16 %v21408_v58, %v21406_v34 }
 0x2be   :  { %15759 = vmatpush3.bf16.msra.mxu1 %v26289_v21  ;;  %v12810_v55 = vpop.f32.mrb[24].mxu0  ;;  %v26294_v21 = vld [vmem:[#allocation70_spill] sm:$0xff] }
 0x2bf   :  { %15761 = vmatprep.subr.bf16.mxu1 %v26290_v9  ;;  %v12811_v54 = vpop.f32.mrb[25].mxu0  ;;  %v26296_v9 = vand.u32 4294901760, %v21139_v61  ;;  %v26303_v61 = vand.u32 4294901760, %v21165_v40  ;;  %v26311_v40 = vand.u32 4294901760, %v21180_v23  ;;  %v26320_v23 = vld [vmem:[#allocation41_spill] sm:$0xff] }
 0x2c0   :  { %v21580_v20 = vadd.f32 %v12811_v54, %v12810_v55  ;;  %15991 = vmatpush3.bf16.msra.mxu0 %v15990_v32  ;;  %v26295_v32 = vand.u32 4294901760, %v21128_v47  ;;  %v26297_v55 = vld [vmem:[#allocation31_spill] sm:$0xff]  ;;  %v26302_v47 = vand.u32 4294901760, %v21157_v41  ;;  %v26310_v41 = vand.u32 4294901760, %v21178_v60 }
 0x2c1   :  { %15993 = vmatprep.subr.bf16.mxu0 %v15992_v50  ;;  %v26319_v60 = vand.u32 4294901760, %v26249_v39  ;;  %v26324_v39 = vand.u32 4294901760, %v26256_v35  ;;  %v320_v35 = vld [vmem:[%s24464_s1 + $0x898] sm:$0xff] }
 0x2c2   :  { %26291 = vst [vmem:[#allocation20_spill] sm:$0xff] %v21580_v20  ;;  %15763 = vmatpush3.bf16.msra.mxu1 %v26292_v13  ;;  %v16032_v50 = vpack.c.bf16 %v26296_v9, %v26295_v32  ;;  %v26298_v13 = vand.u32 4294901760, %v21150_v43  ;;  %v26305_v43 = vand.u32 4294901760, %v21171_v3  ;;  %v16040_v32 = vpack.c.bf16 %v26311_v40, %v26310_v41  ;;  %v26312_v9 = vld [vmem:[#allocation11_spill] sm:$0xff] }
 0x2c3   :  { %15765 = vmatprep.subr.bf16.mxu1 %v26293_v0  ;;  %v26313_v3 = vand.u32 4294901760, %v21194_v53  ;;  %v26322_v53 = vand.u32 4294901760, %v26252_v56  ;;  %v302_v56 = vld [vmem:[%s24464_s1 + $0x808] sm:$0xff]  ;;  %v26328_v41 = vand.u32 4294901760, %v21261_v5  ;;  %v26332_v5 = vand.u32 4294901760, %v21281_v51 }
 0x2c4   :  { %v12565_v44 = vpop.f32.mrb[28].mxu1  ;;  %15995 = vmatpush3.bf16.msra.mxu0 %v15994_v6  ;;  %v26299_v6 = vand.u32 4294901760, %v21152_v26  ;;  %v26306_v26 = vand.u32 4294901760, %v21173_v15  ;;  %v26314_v15 = vand.u32 4294901760, %v21196_v16 }
 0x2c5   :  { %v12566_v1 = vpop.f32.mrb[29].mxu1  ;;  %15997 = vmatprep.subr.bf16.mxu0 %v15996_v49  ;;  %v16036_v49 = vpack.c.bf16 %v26303_v61, %v26302_v47  ;;  %v317_v47 = vld [vmem:[%s24464_s1 + $0x880] sm:$0xff]  ;;  %v26323_v61 = vld [vmem:[#allocation39_spill] sm:$0xff] }
 0x2c6   :  { %v12567_v52 = vadd.f32 %v12566_v1, %v12565_v44  ;;  %15767 = vmatpush3.bf16.msra.mxu1 %v26294_v21  ;;  %v16034_v0 = vpack.c.bf16 %v26299_v6, %v26298_v13  ;;  %v26301_v1 = vld [vmem:[#allocation6_spill] sm:$0xff]  ;;  %v26318_v6 = vand.u32 4294901760, %v21206_v10  ;;  %v318_v10 = vld [vmem:[%s24464_s1 + $0x888] sm:$0xff] }
 0x2c7   :  { %15769 = vmatprep.subr.bf16.mxu1 %v26297_v55  ;;  %v26304_v21 = vld [vmem:[#allocation58_spill] sm:$0xff]  ;;  %v26315_v55 = vld [vmem:[#allocation52_spill] sm:$0xff] }
 0x2c8   :  { %v4145_v54 = vadd.f32 %v12567_v52, %v21501_v38  ;;  %15999 = vmatpush3.bf16.msra.mxu0 %v15998_v12  ;;  %v16038_v38 = vpack.c.bf16 %v26306_v26, %v26305_v43  ;;  %v26308_v12 = vld [vmem:[#allocation9_spill] sm:$0xff]  ;;  %v26309_v52 = vld [vmem:[#allocation8_spill] sm:$0xff]  ;;  %v26326_v43 = vld [vmem:[#allocation82_spill] sm:$0xff] }
 0x2c9   :  { %16033 = vmatprep.subr.bf16.mxu0 %v16032_v50  ;;  %v16042_v50 = vpack.c.bf16 %v26314_v15, %v26313_v3  ;;  %v319_v26 = vld [vmem:[%s24464_s1 + $0x890] sm:$0xff]  ;;  %v7600_v3 = vand.u32 4294901760, %v302_v56 }
 0x2ca   :  { %v21602_v44 = vadd.f32 %v26300_v14, %v4145_v54  ;;  %15771 = vmatpush3.bf16.msra.mxu1 %v26301_v1  ;;  %v26307_v14 = vld [vmem:[#allocation74_spill] sm:$0xff]  ;;  %v26316_v54 = vld [vmem:[#allocation71_spill] sm:$0xff]  ;;  %v26321_v1 = vand.u32 4294901760, %v26251_v2  ;;  %v301_v2 = vld [vmem:[%s24464_s1 + $0x800] sm:$0xff] }
 0x2cb   :  { %15773 = vmatprep.subr.bf16.mxu1 %v26304_v21  ;;  %7211 = vmatmul.mubr.f32.vlgmr.msra.gmra.mrb[38].mxu0 %v21383_v19  ;;  %v26317_v13 = vand.u32 4294901760, %v26316_v54  ;;  %v303_v15 = vld [vmem:[%s24464_s1 + $0x810] sm:$0xff] }
 0x2cc   :  { %16035 = vmatpush3.bf16.msra.mxu0 %v16034_v0  ;;  %7485 = vmatprep.mubr.f32.mxu0 %v26307_v14  ;;  %v16044_v0 = vpack.c.bf16 %v26319_v60, %v26318_v6  ;;  %v16046_v16 = vpack.c.bf16 %v26322_v53, %v26321_v1  ;;  %v26329_v54 = vld [vmem:[#allocation14_spill] sm:$0xff]  ;;  %v26333_v60 = vand.u32 4294901760, %v21283_v4  ;;  %v7651_v1 = vand.u32 4294901760, %v319_v26 }
 0x2cd   :  { %16037 = vmatprep.subr.bf16.mxu0 %v16036_v49  ;;  %v26325_v49 = vand.u32 4294901760, %v21249_v25  ;;  %v7645_v25 = vand.u32 4294901760, %v317_v47  ;;  %v7654_v53 = vand.u32 4294901760, %v320_v35  ;;  %v26337_v4 = vand.u32 4294901760, %v21316_v30 }
 0x2ce   :  { %15775 = vmatpush3.bf16.msra.mxu1 %v26308_v12  ;;  %v26327_v12 = vand.u32 4294901760, %v21253_v62  ;;  %v26331_v62 = vand.u32 4294901760, %v21274_v63  ;;  %v26336_v63 = vand.u32 4294901760, %v21312_v22  ;;  %v305_v22 = vld [vmem:[%s24464_s1 + $0x820] sm:$0xff]  ;;  %v21745_v17 = vsub.f32 %v319_v26, %v7651_v1 }
 0x2cf   :  { %15809 = vmatprep.subr.bf16.mxu1 %v26309_v52  ;;  %v16048_v21 = vpack.c.bf16 %v26325_v49, %v26324_v39  ;;  %v322_v39 = vld [vmem:[%s24464_s1 + $0x8a8] sm:$0xff] }
 0x2d0   :  { %16039 = vmatpush3.bf16.msra.mxu0 %v16038_v38  ;;  %v7648_v38 = vand.u32 4294901760, %v318_v10  ;;  %v16050_v40 = vpack.c.bf16 %v26328_v41, %v26327_v12  ;;  %v26334_v49 = vld [vmem:[#allocation33_spill] sm:$0xff]  ;;  %v26339_v41 = vand.u32 4294901760, %v21344_v36 }
 0x2d1   :  { %6211 = vmatmul.mubr.f32.vlgmr.msra.gmra.mrb[42].mxu1 %v26312_v9  ;;  %16041 = vmatprep.subr.bf16.mxu0 %v16040_v32  ;;  %v7597_v32 = vand.u32 4294901760, %v301_v2 }
 0x2d2   :  { %15811 = vmatpush3.bf16.msra.mxu1 %v26315_v55  ;;  %6453 = vmatprep.mubr.f32.mxu1 %v26317_v13  ;;  %v26330_v13 = vand.u32 4294901760, %v21272_v29  ;;  %v26335_v29 = vand.u32 4294901760, %v21294_v7  ;;  %v21714_v30 = vpack.c.bf16 %v7648_v38, %v7645_v25 }
 0x2d3   :  { %15813 = vmatprep.subr.bf16.mxu1 %v26320_v23 }
 0x2d4   :  { %16043 = vmatpush3.bf16.msra.mxu0 %v16042_v50  ;;  %v304_v50 = vld [vmem:[%s24464_s1 + $0x818] sm:$0xff]  ;;  %v16052_v6 = vpack.c.bf16 %v26331_v62, %v26330_v13  ;;  %v16056_v51 = vpack.c.bf16 %v26336_v63, %v26335_v29  ;;  %v26340_v13 = vand.u32 4294901760, %v21365_v46  ;;  %26343 = vst [vmem:[#allocation7_spill] sm:$0xff] %v21714_v30  ;;  %v7603_v29 = vand.u32 4294901760, %v303_v15  ;;  %v306_v46 = vld [vmem:[%s24464_s1 + $0x828] sm:$0xff] }
 0x2d5   :  { %16045 = vmatprep.subr.bf16.mxu0 %v16044_v0  ;;  %v16054_v0 = vpack.c.bf16 %v26333_v60, %v26332_v5  ;;  %v26341_v5 = vand.u32 4294901760, %v21406_v34  ;;  %v26342_v60 = vand.u32 4294901760, %v21408_v58  ;;  %v7606_v36 = vand.u32 4294901760, %v304_v50  ;;  %v323_v34 = vld [vmem:[%s24464_s1 + $0x8b0] sm:$0xff]  ;;  %v324_v58 = vld [vmem:[%s24464_s1 + $0x8b8] sm:$0xff] }
 0x2d6   :  { %15815 = vmatpush3.bf16.msra.mxu1 %v26323_v61  ;;  %v21703_v62 = vpack.c.bf16 %v26340_v13, %v26339_v41  ;;  %v21727_v63 = vsub.f32 %v318_v10, %v7648_v38  ;;  %v308_v41 = vld [vmem:[%s24464_s1 + $0x838] sm:$0xff]  ;;  %v26345_v13 = vld [vmem:[#allocation42_spill] sm:$0xff]  ;;  %v21742_v10 = vpack.c.bf16 %v7654_v53, %v7651_v1  ;;  %v7609_v38 = vand.u32 4294901760, %v305_v22 }
 0x2d7   :  { %15817 = vmatprep.subr.bf16.mxu1 %v26326_v43  ;;  %v21709_v7 = vpack.c.bf16 %v26342_v60, %v26341_v5  ;;  %v21738_v5 = vsub.f32 %v301_v2, %v7597_v32  ;;  %v26347_v60 = vld [vmem:[#allocation35_spill] sm:$0xff]  ;;  %v7612_v24 = vand.u32 4294901760, %v306_v46  ;;  %v7663_v20 = vand.u32 4294901760, %v323_v34  ;;  %v326_v2 = vld [vmem:[%s24464_s1 + $0x8c8] sm:$0xff] }
 0x2d8   :  { %16047 = vmatpush3.bf16.msra.mxu0 %v16046_v16  ;;  %v321_v16 = vld [vmem:[%s24464_s1 + $0x8a0] sm:$0xff]  ;;  %26346 = vst [vmem:[#allocation47_spill] sm:$0xff] %v21742_v10  ;;  %v7666_v37 = vand.u32 4294901760, %v324_v58  ;;  %v7618_v11 = vand.u32 4294901760, %v308_v41  ;;  %v21759_v1 = vsub.f32 %v303_v15, %v7603_v29  ;;  %v21761_v28 = vsub.f32 %v304_v50, %v7606_v36  ;;  %v310_v15 = vld [vmem:[%s24464_s1 + $0x848] sm:$0xff] }
 0x2d9   :  { %16049 = vmatprep.subr.bf16.mxu0 %v16048_v21  ;;  %v26338_v21 = vand.u32 4294901760, %v21318_v31  ;;  %v21716_v31 = vsub.f32 %v317_v47, %v7645_v25  ;;  %v7657_v47 = vand.u32 4294901760, %v321_v16  ;;  %v7660_v25 = vand.u32 4294901760, %v322_v39  ;;  %v17050_v50 = vld [vmem:[%s24463_s0 + $0x20] ss:$48 sps:$4 sm:$0xff]  }
 0x2da   :  { %15819 = vmatpush3.bf16.msra.mxu1 %v26329_v54  ;;  %v7672_v14 = vand.u32 4294901760, %v326_v2  ;;  %v21816_v42 = vsub.f32 %v308_v41, %v7618_v11 }
 0x2db   :  { %15821 = vmatprep.subr.bf16.mxu1 %v26334_v49  ;;  %v21697_v12 = vpack.c.bf16 %v26338_v21, %v26337_v4  ;;  %v21729_v4 = vpack.c.bf16 %v7600_v3, %v7597_v32  ;;  %v307_v21 = vld [vmem:[%s24464_s1 + $0x830] sm:$0xff]  ;;  %v21753_v32 = vsub.f32 %v320_v35, %v7654_v53  ;;  %v21763_v45 = vpack.c.bf16 %v7660_v25, %v7657_v47 }
 0x2dc   :  { %16051 = vmatpush3.bf16.msra.mxu0 %v16050_v40  ;;  %v21740_v40 = vsub.f32 %v302_v56, %v7600_v3  ;;  %v21755_v3 = vpack.c.bf16 %v7606_v36, %v7603_v29  ;;  %v21766_v59 = vsub.f32 %v321_v16, %v7657_v47  ;;  %v21768_v35 = vsub.f32 %v322_v39, %v7660_v25  ;;  %v327_v36 = vld [vmem:[%s24464_s1 + $0x8d0] sm:$0xff] }
 0x2dd   :  { %26344 = vst [vmem:[#allocation76_spill] sm:$0xff] %v21729_v4  ;;  %16053 = vmatprep.subr.bf16.mxu0 %v16052_v6  ;;  %v7615_v6 = vand.u32 4294901760, %v307_v21  ;;  %26350 = vst [vmem:[#allocation81_spill] sm:$0xff] %v21763_v45  ;;  %v7669_v53 = vand.u32 4294901760, %v325_v33  ;;  %v21780_v16 = vpack.c.bf16 %v7612_v24, %v7609_v38  ;;  %v21782_v39 = vsub.f32 %v305_v22, %v7609_v38  ;;  %v17052_v47 = vld [vmem:[%s24463_s0 + $0x80] ss:$48 sps:$4 sm:$0xff]  }
 0x2de   :  { %15823 = vmatpush3.bf16.msra.mxu1 %v26345_v13  ;;  %v12880_v19 = vpop.f32.mrb[26].mxu0  ;;  %26348 = vst [vmem:[#allocation77_spill] sm:$0xff] %v21755_v3  ;;  %v21786_v29 = vpack.c.bf16 %v7666_v37, %v7663_v20  ;;  %v312_v38 = vld [vmem:[%s24464_s1 + $0x858] sm:$0xff]  ;;  %26360 = vst [vmem:[#allocation36_spill] sm:$0xff] %v21816_v42  ;;  %v313_v13 = vld [vmem:[%s24464_s1 + $0x860] sm:$0xff] }
 0x2df   :  { %15825 = vmatprep.subr.bf16.mxu1 %v26347_v60  ;;  %v12881_v56 = vpop.f32.mrb[27].mxu0  ;;  %26353 = vst [vmem:[#allocation13_spill] sm:$0xff] %v21780_v16  ;;  %v21798_v48 = vpack.c.bf16 %v7618_v11, %v7615_v6  ;;  %v21800_v22 = vsub.f32 %v307_v21, %v7615_v6  ;;  %v26362_v60 = vld [vmem:[#allocation44_spill] sm:$0xff]  ;;  %v314_v42 = vld [vmem:[%s24464_s1 + $0x868] sm:$0xff] }
 0x2e0   :  { %v21757_v26 = vadd.f32 %v12881_v56, %v12880_v19  ;;  %16055 = vmatpush3.bf16.msra.mxu0 %v16054_v0  ;;  %v309_v19 = vld [vmem:[%s24464_s1 + $0x840] sm:$0xff]  ;;  %26354 = vst [vmem:[#allocation17_spill] sm:$0xff] %v21786_v29  ;;  %v21794_v56 = vsub.f32 %v323_v34, %v7663_v20  ;;  %v7624_v34 = vand.u32 4294901760, %v310_v15 }
 0x2e1   :  { %16057 = vmatprep.subr.bf16.mxu0 %v16056_v51  ;;  %v26352_v0 = vld [vmem:[#allocation40_spill] sm:$0xff]  ;;  %v21784_v51 = vsub.f32 %v306_v46, %v7612_v24  ;;  %26356 = vst [vmem:[#allocation16_spill] sm:$0xff] %v21798_v48  ;;  %26357 = vst [vmem:[#allocation21_spill] sm:$0xff] %v21800_v22  ;;  %v328_v24 = vld [vmem:[%s24464_s1 + $0x8d8] sm:$0xff] }
 0x2e2   :  { %26349 = vst [vmem:[#allocation30_spill] sm:$0xff] %v21757_v26  ;;  %15827 = vmatpush3.bf16.msra.mxu1 %v26351_v8  ;;  %v21796_v26 = vsub.f32 %v324_v58, %v7666_v37  ;;  %v311_v46 = vld [vmem:[%s24464_s1 + $0x850] sm:$0xff]  ;;  %v7621_v37 = vand.u32 4294901760, %v309_v19  ;;  %v26358_v58 = vld [vmem:[#allocation25_spill] sm:$0xff]  ;;  %v7675_v8 = vand.u32 4294901760, %v327_v36 }
 0x2e3   :  { %15829 = vmatprep.subr.bf16.mxu1 %v26352_v0  ;;  %v614_v21 = vrot.slane %v17050_v50, %v26358_v58  ;;  %v628_v6 = vrot.slane %v17052_v47, %v26358_v58  ;;  %v21818_v0 = vpack.c.bf16 %v7672_v14, %v7669_v53  ;;  %v330_v50 = vld [vmem:[%s24464_s1 + $0x8e8] sm:$0xff]  ;;  %v7678_v47 = vand.u32 4294901760, %v328_v24 }
 0x2e4   :  { %v12635_v25 = vpop.f32.mrb[30].mxu1  ;;  %26355 = vst [vmem:[#allocation34_spill] sm:$0xff] %v21796_v26  ;;  %16059 = vmatpush3.bf16.msra.mxu0 %v21697_v12  ;;  %v329_v12 = vld [vmem:[%s24464_s1 + $0x8e0] sm:$0xff]  ;;  %v21839_v22 = vpack.c.bf16 %v7624_v34, %v7621_v37  ;;  %v21841_v26 = vsub.f32 %v309_v19, %v7621_v37  ;;  %v7633_v37 = vand.u32 4294901760, %v313_v13 }
 0x2e5   :  { %v12636_v20 = vpop.f32.mrb[31].mxu1  ;;  %16061 = vmatprep.subr.bf16.mxu0 %v21703_v62  ;;  %26361 = vst [vmem:[#allocation24_spill] sm:$0xff] %v21818_v0  ;;  %v637_v58 = vcombine.high %v614_v21, %v628_v6  ;;  %v21828_v62 = vsub.f32 %v325_v33, %v7669_v53  ;;  %v7681_v41 = vand.u32 4294901760, %v329_v12  ;;  %v26366_v53 = vld [vmem:[#allocation45_spill] sm:$0xff]  ;;  %v7636_v33 = vand.u32 4294901760, %v314_v42 }
 0x2e6   :  { %v12637_v9 = vadd.f32 %v12636_v20, %v12635_v25  ;;  %15831 = vmatpush3.bf16.msra.mxu1 %v26359_v18  ;;  %v7627_v25 = vand.u32 4294901760, %v311_v46  ;;  %v7630_v20 = vand.u32 4294901760, %v312_v38  ;;  %v7684_v18 = vand.u32 4294901760, %v330_v50  ;;  %26364 = vst [vmem:[#allocation31_spill] sm:$0xff] %v21839_v22 }
 0x2e7   :  { %15833 = vmatprep.subr.bf16.mxu1 %v26362_v60  ;;  %26363 = vst [vmem:[#allocation70_spill] sm:$0xff] %v21828_v62  ;;  %v21837_v60 = vsub.f32 %v326_v2, %v7672_v14  ;;  %v21849_v62 = vsub.f32 %v310_v15, %v7624_v34  ;;  %v26368_v14 = vld [vmem:[#allocation38_spill] sm:$0xff]  ;;  %v21855_v2 = vpack.c.bf16 %v7678_v47, %v7675_v8 }
 0x2e8   :  { %v4489_v11 = vadd.f32 %v12637_v9, %v21602_v44  ;;  %16063 = vmatpush3.bf16.msra.mxu0 %v21709_v7  ;;  %v26365_v44 = vld [vmem:[#allocation48_spill] sm:$0xff]  ;;  %v21852_v7 = vand.u32 4294901760, %v637_v58  ;;  %v21857_v19 = vpack.c.bf16 %v7630_v20, %v7627_v25  ;;  %v21864_v15 = vpack.c.bf16 %v7684_v18, %v7681_v41 }
 0x2e9   :  { %16097 = vmatprep.subr.bf16.mxu0 %v21714_v30  ;;  %26369 = vst [vmem:[#allocation6_spill] sm:$0xff] %v21855_v2  ;;  %v21866_v34 = vcombine.low %v614_v21, %v628_v6  ;;  %v21869_v49 = vsub.f32 %v311_v46, %v7627_v25  ;;  %v21871_v30 = vsub.f32 %v312_v38, %v7630_v20  ;;  %v332_v46 = vld [vmem:[%s24464_s1 + $0x8f8] sm:$0xff]  ;;  %v21890_v38 = vld [vmem:[%s24464_s1 + $0x870] sm:$0xff]  ;;  %v26374_v6 = vand.u32 4294901760, %v21727_v63 }
 0x2ea   :  { %v21845_v9 = vadd.f32 %v26365_v44, %v4489_v11  ;;  %15835 = vmatpush3.bf16.msra.mxu1 %v26366_v53  ;;  %26367 = vst [vmem:[#allocation79_spill] sm:$0xff] %v21852_v7  ;;  %26370 = vst [vmem:[#allocation58_spill] sm:$0xff] %v21857_v19  ;;  %v21860_v11 = vsub.f32 %v327_v36, %v7675_v8  ;;  %v21862_v44 = vsub.f32 %v328_v24, %v7678_v47  ;;  %v26373_v24 = vld [vmem:[#allocation12_spill] sm:$0xff]  ;;  %v26377_v25 = vld [vmem:[#allocation67_spill] sm:$0xff] }
 0x2eb   :  { %15837 = vmatprep.subr.bf16.mxu1 %v26368_v14  ;;  %7487 = vmatmul.mubr.f32.vlgmr.msra.gmra.mrb[40].mxu0 %v21358_v57  ;;  %26371 = vst [vmem:[#allocation9_spill] sm:$0xff] %v21864_v15  ;;  %v331_v14 = vld [vmem:[%s24464_s1 + $0x8f0] sm:$0xff]  ;;  %v26372_v57 = vand.u32 4294901760, %v21716_v31  ;;  %v21882_v21 = vsub.f32 %v329_v12, %v7681_v41  ;;  %v21896_v47 = vsub.f32 %v637_v58, %v21852_v7 }
 0x2ec   :  { %16099 = vmatpush3.bf16.msra.mxu0 %v21729_v4  ;;  %v21900_v12 = vsub.f32 %v330_v50, %v7684_v18  ;;  %v21902_v20 = vpack.c.bf16 %v7636_v33, %v7633_v37  ;;  %v21904_v41 = vsub.f32 %v313_v13, %v7633_v37  ;;  %v21906_v36 = vsub.f32 %v314_v42, %v7636_v33 }
 0x2ed   :  { %v7824_v8 = vsub.f32 %v21716_v31, %v26372_v57  ;;  %16101 = vmatprep.subr.bf16.mxu0 %v21742_v10  ;;  %v7831_v57 = vsub.f32 %v21727_v63, %v26374_v6  ;;  %26375 = vst [vmem:[#allocation8_spill] sm:$0xff] %v21896_v47  ;;  %v316_v10 = vld [vmem:[%s24464_s1 + $0x878] sm:$0xff]  ;;  %v7687_v6 = vand.u32 4294901760, %v331_v14  ;;  %v25044_v7 = vand.u32 4294901760, %v21896_v47 }
 0x2ee   :  { %15839 = vmatpush3.bf16.msra.mxu1 %v26373_v24  ;;  %26376 = vst [vmem:[#allocation52_spill] sm:$0xff] %v21902_v20  ;;  %v26378_v24 = vand.u32 4294901760, %v26377_v25  ;;  %v7690_v18 = vand.u32 4294901760, %v332_v46  ;;  %v26379_v42 = vand.u32 4294901760, %v21738_v5  ;;  %v26380_v50 = vand.u32 4294901760, %v21740_v40 }
 0x2ef   :  { %15873 = vmatprep.subr.bf16.mxu1 %v26309_v52  ;;  %v7825_v4 = vand.u32 4294901760, %v7824_v8  ;;  %v7832_v58 = vand.u32 4294901760, %v7831_v57  ;;  %v7639_v52 = vand.u32 4294901760, %v21890_v38  ;;  %v7642_v37 = vand.u32 4294901760, %v316_v10 }
 0x2f0   :  { %16103 = vmatpush3.bf16.msra.mxu0 %v21755_v3  ;;  %v7712_v13 = vsub.f32 %v21738_v5, %v26379_v42  ;;  %v7719_v33 = vsub.f32 %v21740_v40, %v26380_v50  ;;  %v25048_v57 = vand.u32 4294901760, %v21745_v17  ;;  %v21932_v25 = vsub.f32 %v331_v14, %v7687_v6 }
 0x2f1   :  { %6457 = vmatmul.mubr.f32.vlgmr.msra.gmra.mrb[44].mxu1 %v26378_v24  ;;  %v21924_v8 = vpack.c.bf16 %v7832_v58, %v7825_v4  ;;  %v7695_v24 = vsub.f32 %v21896_v47, %v25044_v7  ;;  %16105 = vmatprep.subr.bf16.mxu0 %v21763_v45  ;;  %v25049_v58 = vand.u32 4294901760, %v21759_v1  ;;  %v25050_v7 = vand.u32 4294901760, %v21761_v28 }
 0x2f2   :  { %15875 = vmatpush3.bf16.msra.mxu1 %v26315_v55  ;;  %6727 = vmatprep.mubr.f32.mxu1 %v26281_v27  ;;  %v7713_v42 = vand.u32 4294901760, %v7712_v13  ;;  %v7720_v50 = vand.u32 4294901760, %v7719_v33  ;;  %v25047_v55 = vand.u32 4294901760, %v21753_v32  ;;  %v7838_v4 = vsub.f32 %v21745_v17, %v25048_v57 }
 0x2f3   :  { %26381 = vst [vmem:[#allocation71_spill] sm:$0xff] %v21924_v8  ;;  %15877 = vmatprep.subr.bf16.mxu1 %v26320_v23  ;;  %v7696_v27 = vand.u32 4294901760, %v7695_v24  ;;  %v21941_v23 = vpack.c.bf16 %v7690_v18, %v7687_v6  ;;  %v21946_v14 = vand.u32 4294901760, %v21866_v34  ;;  %v21953_v33 = vsub.f32 %v332_v46, %v7690_v18  ;;  %v26500_v8 = vld [vmem:[#allocation15_spill] sm:$0xff] }
 0x2f4   :  { %16107 = vmatpush3.bf16.msra.mxu0 %v21780_v16  ;;  %v21943_v45 = vpack.c.bf16 %v7720_v50, %v7713_v42  ;;  %v7845_v13 = vsub.f32 %v21753_v32, %v25047_v55  ;;  %v7839_v24 = vand.u32 4294901760, %v7838_v4  ;;  %v7726_v6 = vsub.f32 %v21759_v1, %v25049_v58 }
 0x2f5   :  { %26382 = vst [vmem:[#allocation41_spill] sm:$0xff] %v21941_v23  ;;  %26384 = vst [vmem:[#allocation82_spill] sm:$0xff] %v21946_v14  ;;  %16109 = vmatprep.subr.bf16.mxu0 %v21786_v29  ;;  %v7733_v42 = vsub.f32 %v21761_v28, %v25050_v7  ;;  %v21962_v50 = vpack.c.bf16 %v7642_v37, %v7639_v52  ;;  %7697 = vmatprep.mubr.f32.mxu0 %v7696_v27  ;;  %v25051_v46 = vand.u32 4294901760, %v21768_v35 }
 0x2f6   :  { %26383 = vst [vmem:[#allocation39_spill] sm:$0xff] %v21943_v45  ;;  %15879 = vmatpush3.bf16.msra.mxu1 %v26323_v61  ;;  %v7846_v55 = vand.u32 4294901760, %v7845_v13  ;;  %v25052_v61 = vand.u32 4294901760, %v21766_v59  ;;  %v7727_v18 = vand.u32 4294901760, %v7726_v6  ;;  %v25055_v57 = vand.u32 4294901760, %v21782_v39 }
 0x2f7   :  { %15881 = vmatprep.subr.bf16.mxu1 %v26326_v43  ;;  %26385 = vst [vmem:[#allocation14_spill] sm:$0xff] %v21962_v50  ;;  %v7734_v4 = vand.u32 4294901760, %v7733_v42  ;;  %v25060_v58 = vand.u32 4294901760, %v21784_v51  ;;  %v21971_v7 = vsub.f32 %v21866_v34, %v21946_v14  ;;  %v7859_v13 = vsub.f32 %v21768_v35, %v25051_v46  ;;  %v26389_v42 = vld [vmem:[#allocation33_spill] sm:$0xff] }
 0x2f8   :  { %16111 = vmatpush3.bf16.msra.mxu0 %v21798_v48  ;;  %v21973_v43 = vpack.c.bf16 %v7846_v55, %v7839_v24  ;;  %v7852_v27 = vsub.f32 %v21766_v59, %v25052_v61  ;;  %v7740_v34 = vsub.f32 %v21782_v39, %v25055_v57  ;;  %v25061_v24 = vand.u32 4294901760, %v21794_v56  ;;  %v26390_v48 = vld [vmem:[#allocation34_spill] sm:$0xff] }
 0x2f9   :  { %26386 = vst [vmem:[#allocation48_spill] sm:$0xff] %v21971_v7  ;;  %16113 = vmatprep.subr.bf16.mxu0 %v21818_v0  ;;  %v21983_v6 = vpack.c.bf16 %v7734_v4, %v7727_v18  ;;  %v7747_v55 = vsub.f32 %v21784_v51, %v25060_v58  ;;  %v21994_v46 = vsub.f32 %v21890_v38, %v7639_v52  ;;  %v7860_v18 = vand.u32 4294901760, %v7859_v13  ;;  %v26392_v38 = vld [vmem:[#allocation21_spill] sm:$0xff]  ;;  %v26393_v52 = vld [vmem:[#allocation36_spill] sm:$0xff] }
 0x2fa   :  { %26387 = vst [vmem:[#allocation45_spill] sm:$0xff] %v21973_v43  ;;  %15883 = vmatpush3.bf16.msra.mxu1 %v26329_v54  ;;  %v21996_v54 = vsub.f32 %v316_v10, %v7642_v37  ;;  %v7853_v61 = vand.u32 4294901760, %v7852_v27  ;;  %v7741_v4 = vand.u32 4294901760, %v7740_v34  ;;  %v7866_v57 = vsub.f32 %v21794_v56, %v25061_v24  ;;  %v26394_v27 = vld [vmem:[#allocation42_spill] sm:$0xff] }
 0x2fb   :  { %26388 = vst [vmem:[#allocation67_spill] sm:$0xff] %v21983_v6  ;;  %15885 = vmatprep.subr.bf16.mxu1 %v26389_v42  ;;  %v7748_v0 = vand.u32 4294901760, %v7747_v55  ;;  %v25066_v29 = vand.u32 4294901760, %v26390_v48  ;;  %v25069_v10 = vand.u32 4294901760, %v26392_v38  ;;  %v25072_v37 = vand.u32 4294901760, %v26393_v52  ;;  %v26396_v42 = vld [vmem:[#allocation35_spill] sm:$0xff] }
 0x2fc   :  { %16115 = vmatpush3.bf16.msra.mxu0 %v21839_v22  ;;  %v22005_v58 = vpack.c.bf16 %v7860_v18, %v7853_v61  ;;  %v7867_v55 = vand.u32 4294901760, %v7866_v57  ;;  %v25077_v22 = vand.u32 4294901760, %v21841_v26  ;;  %v26492_v6 = vld [vmem:[#allocation26_spill] sm:$0xff] }
 0x2fd   :  { %16117 = vmatprep.subr.bf16.mxu0 %v21855_v2  ;;  %v22012_v34 = vpack.c.bf16 %v7748_v0, %v7741_v4  ;;  %v7873_v24 = vsub.f32 %v26390_v48, %v25066_v29  ;;  %v7754_v18 = vsub.f32 %v26392_v38, %v25069_v10  ;;  %v26397_v2 = vld [vmem:[#allocation70_spill] sm:$0xff]  ;;  %v25074_v0 = vand.u32 4294901760, %v21837_v60 }
 0x2fe   :  { %26391 = vst [vmem:[#allocation33_spill] sm:$0xff] %v22005_v58  ;;  %15887 = vmatpush3.bf16.msra.mxu1 %v26394_v27  ;;  %v12950_v61 = vpop.f32.mrb[28].mxu0  ;;  %v7761_v27 = vsub.f32 %v26393_v52, %v25072_v37  ;;  %v25073_v13 = vand.u32 4294901760, %v26397_v2  ;;  %v25080_v29 = vand.u32 4294901760, %v21849_v62 }
 0x2ff   :  { %26395 = vst [vmem:[#allocation34_spill] sm:$0xff] %v22012_v34  ;;  %15889 = vmatprep.subr.bf16.mxu1 %v26396_v42  ;;  %v12951_v57 = vpop.f32.mrb[29].mxu0  ;;  %v7874_v4 = vand.u32 4294901760, %v7873_v24  ;;  %v7755_v10 = vand.u32 4294901760, %v7754_v18  ;;  %v26399_v34 = vld [vmem:[#allocation37_spill] sm:$0xff]  ;;  %v7887_v42 = vsub.f32 %v21837_v60, %v25074_v0  ;;  %v26403_v0 = vand.u32 4294901760, %v21971_v7 }
 0x300   :  { %v22029_v16 = vadd.f32 %v12951_v57, %v12950_v61  ;;  %16119 = vmatpush3.bf16.msra.mxu0 %v21857_v19  ;;  %v7762_v3 = vand.u32 4294901760, %v7761_v27  ;;  %v7880_v37 = vsub.f32 %v26397_v2, %v25073_v13  ;;  %v7768_v61 = vsub.f32 %v21841_v26, %v25077_v22  ;;  %v26401_v27 = vld [vmem:[#allocation40_spill] sm:$0xff] }
 0x301   :  { %16121 = vmatprep.subr.bf16.mxu0 %v21864_v15  ;;  %v22037_v24 = vpack.c.bf16 %v7874_v4, %v7867_v55  ;;  %v16162_v57 = vpack.c.bf16 %v21740_v40, %v21738_v5  ;;  %v7775_v55 = vsub.f32 %v21849_v62, %v25080_v29  ;;  %v7701_v15 = vsub.f32 %v21971_v7, %v26403_v0  ;;  %v26406_v0 = vld [vmem:[#allocation18_spill] sm:$0xff] }
 0x302   :  { %26398 = vst [vmem:[#allocation21_spill] sm:$0xff] %v22029_v16  ;;  %15891 = vmatpush3.bf16.msra.mxu1 %v26399_v34  ;;  %v22049_v34 = vpack.c.bf16 %v7762_v3, %v7755_v10  ;;  %v7881_v13 = vand.u32 4294901760, %v7880_v37  ;;  %v7888_v22 = vand.u32 4294901760, %v7887_v42  ;;  %v7769_v19 = vand.u32 4294901760, %v7768_v61 }
 0x303   :  { %26400 = vst [vmem:[#allocation36_spill] sm:$0xff] %v22037_v24  ;;  %15893 = vmatprep.subr.bf16.mxu1 %v26401_v27  ;;  %v26404_v18 = vand.u32 4294901760, %v21860_v11  ;;  %v7776_v3 = vand.u32 4294901760, %v7775_v55  ;;  %v26405_v10 = vand.u32 4294901760, %v21862_v44  ;;  %v25085_v29 = vand.u32 4294901760, %v21869_v49  ;;  %v26408_v55 = vld [vmem:[#allocation44_spill] sm:$0xff] }
 0x304   :  { %26402 = vst [vmem:[#allocation42_spill] sm:$0xff] %v22049_v34  ;;  %v12705_v4 = vpop.f32.mrb[32].mxu1  ;;  %16123 = vmatpush3.bf16.msra.mxu0 %v21902_v20  ;;  %v16164_v42 = vpack.c.bf16 %v21753_v32, %v21745_v17  ;;  %v22070_v61 = vpack.c.bf16 %v7888_v22, %v7881_v13  ;;  %v25090_v22 = vand.u32 4294901760, %v21882_v21  ;;  %v25086_v13 = vand.u32 4294901760, %v21900_v12 }
 0x305   :  { %v7894_v27 = vsub.f32 %v21860_v11, %v26404_v18  ;;  %v12706_v24 = vpop.f32.mrb[33].mxu1  ;;  %v7901_v37 = vsub.f32 %v21862_v44, %v26405_v10  ;;  %16125 = vmatprep.subr.bf16.mxu0 %v21941_v23  ;;  %v22073_v20 = vpack.c.bf16 %v7776_v3, %v7769_v19  ;;  %v7782_v34 = vsub.f32 %v21869_v49, %v25085_v29 }
 0x306   :  { %v12707_v58 = vadd.f32 %v12706_v24, %v12705_v4  ;;  %15895 = vmatpush3.bf16.msra.mxu1 %v26406_v0  ;;  %26407 = vst [vmem:[#allocation35_spill] sm:$0xff] %v22070_v61  ;;  %v26410_v24 = vand.u32 4294901760, %v21871_v30  ;;  %v7702_v23 = vand.u32 4294901760, %v7701_v15  ;;  %v7908_v15 = vsub.f32 %v21882_v21, %v25090_v22 }
 0x307   :  { %v7895_v18 = vand.u32 4294901760, %v7894_v27  ;;  %15897 = vmatprep.subr.bf16.mxu1 %v26408_v55  ;;  %26409 = vst [vmem:[#allocation70_spill] sm:$0xff] %v22073_v20  ;;  %v7902_v10 = vand.u32 4294901760, %v7901_v37  ;;  %v7783_v27 = vand.u32 4294901760, %v7782_v34  ;;  %v25087_v37 = vand.u32 4294901760, %v21904_v41  ;;  %v26412_v55 = vld [vmem:[#allocation55_spill] sm:$0xff] }
 0x308   :  { %v7789_v4 = vsub.f32 %v21871_v30, %v26410_v24  ;;  %v4735_v0 = vadd.f32 %v12707_v58, %v21845_v9  ;;  %16127 = vmatpush3.bf16.msra.mxu0 %v21962_v50  ;;  %v26413_v9 = vpack.c.bf16 %v21727_v63, %v21716_v31  ;;  %v7915_v58 = vsub.f32 %v21900_v12, %v25086_v13  ;;  %v26421_v50 = vld [vmem:[#allocation61_spill] sm:$0xff] }
 0x309   :  { %v22085_v19 = vpack.c.bf16 %v7902_v10, %v7895_v18  ;;  %v25088_v34 = vand.u32 4294901760, %v21906_v36  ;;  %v26414_v18 = vld [vmem:[#allocation38_spill] sm:$0xff]  ;;  %v16166_v10 = vpack.c.bf16 %v21761_v28, %v21759_v1  ;;  %v7796_v24 = vsub.f32 %v21904_v41, %v25087_v37  ;;  %v26416_v37 = vld [vmem:[#allocation12_spill] sm:$0xff] }
 0x30a   :  { %v7790_v3 = vand.u32 4294901760, %v7789_v4  ;;  %v22089_v29 = vadd.f32 %v26412_v55, %v4735_v0  ;;  %15899 = vmatpush3.bf16.msra.mxu1 %v26366_v53  ;;  %16161 = vmatprep.subr.bf16.mxu0 %v26413_v9  ;;  %v7909_v4 = vand.u32 4294901760, %v7908_v15  ;;  %v7916_v0 = vand.u32 4294901760, %v7915_v58 }
 0x30b   :  { %26411 = vst [vmem:[#allocation37_spill] sm:$0xff] %v22085_v19  ;;  %15901 = vmatprep.subr.bf16.mxu1 %v26414_v18  ;;  %7703 = vmatmul.mubr.f32.vlgmr.msra.gmra.mrb[42].mxu0 %v7702_v23  ;;  %v7803_v55 = vsub.f32 %v21906_v36, %v25088_v34  ;;  %v25089_v9 = vand.u32 4294901760, %v21932_v25  ;;  %v7797_v18 = vand.u32 4294901760, %v7796_v24  ;;  %v25091_v13 = vand.u32 4294901760, %v21953_v33 }
 0x30c   :  { %v22105_v53 = vpack.c.bf16 %v7790_v3, %v7783_v27  ;;  %16163 = vmatpush3.bf16.msra.mxu0 %v16162_v57  ;;  %v25095_v27 = vand.u32 4294901760, %v21994_v46  ;;  %v25096_v3 = vand.u32 4294901760, %v21996_v54  ;;  %8070 = vmatprep.mubr.f32.mxu0 %v21896_v47  ;;  %v22119_v23 = vpack.c.bf16 %v7916_v0, %v7909_v4  ;;  %v26418_v57 = vld [vmem:[#allocation29_spill] sm:$0xff]  ;;  %v26422_v47 = vld [vmem:[#allocation74_spill] sm:$0xff] }
 0x30d   :  { %16165 = vmatprep.subr.bf16.mxu0 %v16164_v42  ;;  %v7804_v15 = vand.u32 4294901760, %v7803_v55  ;;  %v7922_v58 = vsub.f32 %v21932_v25, %v25089_v9  ;;  %v16168_v24 = vpack.c.bf16 %v21768_v35, %v21766_v59  ;;  %v7929_v34 = vsub.f32 %v21953_v33, %v25091_v13  ;;  %v26420_v55 = vld [vmem:[#allocation11_spill] sm:$0xff] }
 0x30e   :  { %26415 = vst [vmem:[#allocation40_spill] sm:$0xff] %v22105_v53  ;;  %15903 = vmatpush3.bf16.msra.mxu1 %v26416_v37  ;;  %26417 = vst [vmem:[#allocation18_spill] sm:$0xff] %v22119_v23  ;;  %v7810_v42 = vsub.f32 %v21994_v46, %v25095_v27  ;;  %v7817_v37 = vsub.f32 %v21996_v54, %v25096_v3  ;;  %v16172_v27 = vpack.c.bf16 %v26390_v48, %v21794_v56  ;;  %v26423_v3 = vld [vmem:[#allocation73_spill] sm:$0xff]  ;;  %v357_v53 = vld [vmem:[%s24464_s1 + $0x9c0] sm:$0xff] }
 0x30f   :  { %15937 = vmatprep.subr.bf16.mxu1 %v26418_v57  ;;  %v22136_v4 = vpack.c.bf16 %v7804_v15, %v7797_v18  ;;  %v7923_v0 = vand.u32 4294901760, %v7922_v58  ;;  %v16170_v57 = vpack.c.bf16 %v21784_v51, %v21782_v39  ;;  %v7930_v9 = vand.u32 4294901760, %v7929_v34  ;;  %v26427_v58 = vld [vmem:[#allocation54_spill] sm:$0xff] }
 0x310   :  { %16167 = vmatpush3.bf16.msra.mxu0 %v16166_v10  ;;  %v7811_v22 = vand.u32 4294901760, %v7810_v42  ;;  %v7818_v13 = vand.u32 4294901760, %v7817_v37  ;;  %v16174_v34 = vpack.c.bf16 %v26393_v52, %v26392_v38  ;;  %v26426_v10 = vld [vmem:[#allocation10_spill] sm:$0xff]  ;;  %v16184_v42 = vpack.c.bf16 %v21900_v12, %v21882_v21 }
 0x311   :  { %26419 = vst [vmem:[#allocation44_spill] sm:$0xff] %v22136_v4  ;;  %6729 = vmatmul.mubr.f32.vlgmr.msra.gmra.mrb[46].mxu1 %v26420_v55  ;;  %16169 = vmatprep.subr.bf16.mxu0 %v16168_v24  ;;  %v22146_v18 = vpack.c.bf16 %v7930_v9, %v7923_v0  ;;  %v26428_v9 = vld [vmem:[#allocation60_spill] sm:$0xff]  ;;  %v26430_v24 = vld [vmem:[#allocation59_spill] sm:$0xff]  ;;  %v26431_v37 = vld [vmem:[#allocation62_spill] sm:$0xff] }
 0x312   :  { %15939 = vmatpush3.bf16.msra.mxu1 %v26421_v50  ;;  %7071 = vmatprep.mubr.f32.mxu1 %v26422_v47  ;;  %v22148_v15 = vpack.c.bf16 %v7818_v13, %v7811_v22  ;;  %v16176_v50 = vpack.c.bf16 %v21837_v60, %v26397_v2  ;;  %v16180_v22 = vpack.c.bf16 %v21862_v44, %v21860_v11  ;;  %v26429_v13 = vld [vmem:[#allocation63_spill] sm:$0xff] }
 0x313   :  { %15941 = vmatprep.subr.bf16.mxu1 %v26423_v3  ;;  %26424 = vst [vmem:[#allocation55_spill] sm:$0xff] %v22146_v18  ;;  %v16178_v3 = vpack.c.bf16 %v21849_v62, %v21841_v26 }
 0x314   :  { %26425 = vst [vmem:[#allocation38_spill] sm:$0xff] %v22148_v15  ;;  %16171 = vmatpush3.bf16.msra.mxu0 %v16170_v57  ;;  %v26441_v15 = vld [vmem:[#allocation20_spill] sm:$0xff] }
 0x315   :  { %16173 = vmatprep.subr.bf16.mxu0 %v16172_v27  ;;  %v16182_v27 = vpack.c.bf16 %v21871_v30, %v21869_v49 }
 0x316   :  { %15943 = vmatpush3.bf16.msra.mxu1 %v26426_v10  ;;  %v26433_v10 = vld [vmem:[#allocation27_spill] sm:$0xff] }
 0x317   :  { %15945 = vmatprep.subr.bf16.mxu1 %v26427_v58  ;;  %v26434_v58 = vld [vmem:[#allocation64_spill] sm:$0xff] }
 0x318   :  { %16175 = vmatpush3.bf16.msra.mxu0 %v16174_v34  ;;  %v16186_v34 = vpack.c.bf16 %v21906_v36, %v21904_v41 }
 0x319   :  { %16177 = vmatprep.subr.bf16.mxu0 %v16176_v50  ;;  %v16188_v50 = vpack.c.bf16 %v21953_v33, %v21932_v25 }
 0x31a   :  { %15947 = vmatpush3.bf16.msra.mxu1 %v26428_v9 }
 0x31b   :  { %15949 = vmatprep.subr.bf16.mxu1 %v26429_v13 }
 0x31c   :  { %16179 = vmatpush3.bf16.msra.mxu0 %v16178_v3 }
 0x31d   :  { %16181 = vmatprep.subr.bf16.mxu0 %v16180_v22  ;;  %v16190_v22 = vpack.c.bf16 %v21996_v54, %v21994_v46 }
 0x31e   :  { %15951 = vmatpush3.bf16.msra.mxu1 %v26430_v24  ;;  %v13020_v0 = vpop.f32.mrb[30].mxu0  ;;  %v26435_v24 = vld [vmem:[#allocation65_spill] sm:$0xff] }
 0x31f   :  { %15953 = vmatprep.subr.bf16.mxu1 %v26431_v37  ;;  %v13021_v55 = vpop.f32.mrb[31].mxu0  ;;  %v26437_v37 = vand.u32 4294901760, %v21727_v63  ;;  %v26444_v63 = vand.u32 4294901760, %v21753_v32  ;;  %v26452_v32 = vand.u32 4294901760, %v21768_v35  ;;  %v26461_v35 = vld [vmem:[#allocation75_spill] sm:$0xff] }
 0x320   :  { %v22168_v57 = vadd.f32 %v13021_v55, %v13020_v0  ;;  %16183 = vmatpush3.bf16.msra.mxu0 %v16182_v27  ;;  %v26436_v27 = vand.u32 4294901760, %v21716_v31  ;;  %v26438_v0 = vld [vmem:[#allocation66_spill] sm:$0xff]  ;;  %v26443_v31 = vand.u32 4294901760, %v21745_v17  ;;  %v26451_v17 = vand.u32 4294901760, %v21766_v59 }
 0x321   :  { %16185 = vmatprep.subr.bf16.mxu0 %v16184_v42  ;;  %v26460_v59 = vand.u32 4294901760, %v26390_v48  ;;  %v26465_v48 = vand.u32 4294901760, %v26397_v2  ;;  %v352_v2 = vld [vmem:[%s24464_s1 + $0x998] sm:$0xff] }
 0x322   :  { %26432 = vst [vmem:[#allocation12_spill] sm:$0xff] %v22168_v57  ;;  %15955 = vmatpush3.bf16.msra.mxu1 %v26433_v10  ;;  %v16224_v42 = vpack.c.bf16 %v26437_v37, %v26436_v27  ;;  %v26439_v10 = vand.u32 4294901760, %v21738_v5  ;;  %v26446_v5 = vand.u32 4294901760, %v21759_v1  ;;  %v16232_v27 = vpack.c.bf16 %v26452_v32, %v26451_v17  ;;  %v26453_v37 = vld [vmem:[#allocation23_spill] sm:$0xff] }
 0x323   :  { %15957 = vmatprep.subr.bf16.mxu1 %v26434_v58  ;;  %v26454_v1 = vand.u32 4294901760, %v21782_v39  ;;  %v26463_v39 = vand.u32 4294901760, %v26393_v52  ;;  %v334_v52 = vld [vmem:[%s24464_s1 + $0x908] sm:$0xff]  ;;  %v26469_v17 = vand.u32 4294901760, %v21849_v62  ;;  %v26473_v62 = vand.u32 4294901760, %v21869_v49 }
 0x324   :  { %v12775_v3 = vpop.f32.mrb[34].mxu1  ;;  %16187 = vmatpush3.bf16.msra.mxu0 %v16186_v34  ;;  %v26440_v34 = vand.u32 4294901760, %v21740_v40  ;;  %v26447_v40 = vand.u32 4294901760, %v21761_v28  ;;  %v26455_v28 = vand.u32 4294901760, %v21784_v51 }
 0x325   :  { %v12776_v9 = vpop.f32.mrb[35].mxu1  ;;  %16189 = vmatprep.subr.bf16.mxu0 %v16188_v50  ;;  %v16228_v50 = vpack.c.bf16 %v26444_v63, %v26443_v31  ;;  %v349_v31 = vld [vmem:[%s24464_s1 + $0x980] sm:$0xff]  ;;  %v26464_v63 = vld [vmem:[#allocation43_spill] sm:$0xff] }
 0x326   :  { %v12777_v13 = vadd.f32 %v12776_v9, %v12775_v3  ;;  %15959 = vmatpush3.bf16.msra.mxu1 %v26435_v24  ;;  %v16226_v58 = vpack.c.bf16 %v26440_v34, %v26439_v10  ;;  %v26442_v9 = vld [vmem:[#allocation68_spill] sm:$0xff]  ;;  %v26459_v34 = vand.u32 4294901760, %v21794_v56  ;;  %v350_v56 = vld [vmem:[%s24464_s1 + $0x988] sm:$0xff] }
 0x327   :  { %15961 = vmatprep.subr.bf16.mxu1 %v26438_v0  ;;  %v26445_v24 = vld [vmem:[#allocation28_spill] sm:$0xff] }
 0x328   :  { %v5007_v55 = vadd.f32 %v12777_v13, %v22089_v29  ;;  %16191 = vmatpush3.bf16.msra.mxu0 %v16190_v22  ;;  %v16230_v29 = vpack.c.bf16 %v26447_v40, %v26446_v5  ;;  %v26449_v22 = vld [vmem:[#allocation69_spill] sm:$0xff]  ;;  %v26456_v0 = vld [vmem:[#allocation32_spill] sm:$0xff]  ;;  %v26467_v5 = vld [vmem:[#allocation78_spill] sm:$0xff] }
 0x329   :  { %16225 = vmatprep.subr.bf16.mxu0 %v16224_v42  ;;  %v26450_v13 = vld [vmem:[#allocation49_spill] sm:$0xff]  ;;  %v16234_v42 = vpack.c.bf16 %v26455_v28, %v26454_v1  ;;  %v351_v40 = vld [vmem:[%s24464_s1 + $0x990] sm:$0xff]  ;;  %v8462_v1 = vand.u32 4294901760, %v334_v52 }
 0x32a   :  { %v22190_v3 = vadd.f32 %v26441_v15, %v5007_v55  ;;  %15963 = vmatpush3.bf16.msra.mxu1 %v26442_v9  ;;  %v26448_v15 = vld [vmem:[#allocation79_spill] sm:$0xff]  ;;  %v26457_v55 = vld [vmem:[#allocation72_spill] sm:$0xff]  ;;  %v26462_v9 = vand.u32 4294901760, %v26392_v38  ;;  %v335_v28 = vld [vmem:[%s24464_s1 + $0x910] sm:$0xff] }
 0x32b   :  { %15965 = vmatprep.subr.bf16.mxu1 %v26445_v24  ;;  %8073 = vmatmul.mubr.f32.vlgmr.msra.gmra.mrb[44].mxu0 %v21971_v7  ;;  %v26458_v10 = vand.u32 4294901760, %v26457_v55  ;;  %v333_v38 = vld [vmem:[%s24464_s1 + $0x900] sm:$0xff]  ;;  %v26470_v55 = vld [vmem:[#allocation19_spill] sm:$0xff] }
 0x32c   :  { %16227 = vmatpush3.bf16.msra.mxu0 %v16226_v58  ;;  %8347 = vmatprep.mubr.f32.mxu0 %v26448_v15  ;;  %v16236_v58 = vpack.c.bf16 %v26460_v59, %v26459_v34  ;;  %v16238_v51 = vpack.c.bf16 %v26463_v39, %v26462_v9  ;;  %v26474_v59 = vand.u32 4294901760, %v21871_v30  ;;  %v8513_v9 = vand.u32 4294901760, %v351_v40 }
 0x32d   :  { %16229 = vmatprep.subr.bf16.mxu0 %v16228_v50  ;;  %v26466_v50 = vand.u32 4294901760, %v21837_v60  ;;  %v8507_v60 = vand.u32 4294901760, %v349_v31  ;;  %v8516_v39 = vand.u32 4294901760, %v352_v2  ;;  %v26478_v30 = vand.u32 4294901760, %v21904_v41 }
 0x32e   :  { %15967 = vmatpush3.bf16.msra.mxu1 %v26449_v22  ;;  %v26468_v22 = vand.u32 4294901760, %v21841_v26  ;;  %v26472_v26 = vand.u32 4294901760, %v21862_v44  ;;  %v26477_v44 = vand.u32 4294901760, %v21900_v12  ;;  %v337_v12 = vld [vmem:[%s24464_s1 + $0x920] sm:$0xff]  ;;  %v22333_v18 = vsub.f32 %v351_v40, %v8513_v9 }
 0x32f   :  { %16001 = vmatprep.subr.bf16.mxu1 %v26450_v13  ;;  %v16240_v24 = vpack.c.bf16 %v26466_v50, %v26465_v48  ;;  %v354_v48 = vld [vmem:[%s24464_s1 + $0x9a8] sm:$0xff]  ;;  %v26475_v50 = vld [vmem:[#allocation56_spill] sm:$0xff] }
 0x330   :  { %16231 = vmatpush3.bf16.msra.mxu0 %v16230_v29  ;;  %v8510_v29 = vand.u32 4294901760, %v350_v56  ;;  %v16242_v32 = vpack.c.bf16 %v26469_v17, %v26468_v22  ;;  %v26480_v17 = vand.u32 4294901760, %v21932_v25 }
 0x331   :  { %7073 = vmatmul.mubr.f32.vlgmr.msra.gmra.mrb[48].mxu1 %v26453_v37  ;;  %16233 = vmatprep.subr.bf16.mxu0 %v16232_v27  ;;  %v8459_v27 = vand.u32 4294901760, %v333_v38 }
 0x332   :  { %16003 = vmatpush3.bf16.msra.mxu1 %v26456_v0  ;;  %7315 = vmatprep.mubr.f32.mxu1 %v26458_v10  ;;  %v26471_v10 = vand.u32 4294901760, %v21860_v11  ;;  %v26476_v11 = vand.u32 4294901760, %v21882_v21  ;;  %v22302_v41 = vpack.c.bf16 %v8510_v29, %v8507_v60 }
 0x333   :  { %16005 = vmatprep.subr.bf16.mxu1 %v26461_v35 }
 0x334   :  { %16235 = vmatpush3.bf16.msra.mxu0 %v16234_v42  ;;  %v336_v42 = vld [vmem:[%s24464_s1 + $0x918] sm:$0xff]  ;;  %v16244_v34 = vpack.c.bf16 %v26472_v26, %v26471_v10  ;;  %v16248_v49 = vpack.c.bf16 %v26477_v44, %v26476_v11  ;;  %v26481_v10 = vand.u32 4294901760, %v21953_v33  ;;  %26484 = vst [vmem:[#allocation29_spill] sm:$0xff] %v22302_v41  ;;  %v8465_v11 = vand.u32 4294901760, %v335_v28  ;;  %v338_v33 = vld [vmem:[%s24464_s1 + $0x928] sm:$0xff] }
 0x335   :  { %16237 = vmatprep.subr.bf16.mxu0 %v16236_v58  ;;  %v16246_v58 = vpack.c.bf16 %v26474_v59, %v26473_v62  ;;  %v26482_v62 = vand.u32 4294901760, %v21994_v46  ;;  %v26483_v59 = vand.u32 4294901760, %v21996_v54  ;;  %v8468_v25 = vand.u32 4294901760, %v336_v42  ;;  %v355_v46 = vld [vmem:[%s24464_s1 + $0x9b0] sm:$0xff]  ;;  %v356_v54 = vld [vmem:[%s24464_s1 + $0x9b8] sm:$0xff] }
 0x336   :  { %16007 = vmatpush3.bf16.msra.mxu1 %v26464_v63  ;;  %v22291_v26 = vpack.c.bf16 %v26481_v10, %v26480_v17  ;;  %v22315_v44 = vsub.f32 %v350_v56, %v8510_v29  ;;  %v340_v17 = vld [vmem:[%s24464_s1 + $0x938] sm:$0xff]  ;;  %v26486_v10 = vld [vmem:[#allocation22_spill] sm:$0xff]  ;;  %v22330_v56 = vpack.c.bf16 %v8516_v39, %v8513_v9  ;;  %v8471_v29 = vand.u32 4294901760, %v337_v12 }
 0x337   :  { %16009 = vmatprep.subr.bf16.mxu1 %v26467_v5  ;;  %v22297_v21 = vpack.c.bf16 %v26483_v59, %v26482_v62  ;;  %v22326_v62 = vsub.f32 %v333_v38, %v8459_v27  ;;  %v26488_v59 = vld [vmem:[#allocation57_spill] sm:$0xff]  ;;  %v8474_v4 = vand.u32 4294901760, %v338_v33  ;;  %v8525_v57 = vand.u32 4294901760, %v355_v46 }
 0x338   :  { %16239 = vmatpush3.bf16.msra.mxu0 %v16238_v51  ;;  %v353_v51 = vld [vmem:[%s24464_s1 + $0x9a0] sm:$0xff]  ;;  %26487 = vst [vmem:[#allocation61_spill] sm:$0xff] %v22330_v56  ;;  %v8528_v23 = vand.u32 4294901760, %v356_v54  ;;  %v358_v38 = vld [vmem:[%s24464_s1 + $0x9c8] sm:$0xff]  ;;  %v8480_v19 = vand.u32 4294901760, %v340_v17  ;;  %v22347_v9 = vsub.f32 %v335_v28, %v8465_v11  ;;  %v22349_v20 = vsub.f32 %v336_v42, %v8468_v25 }
 0x339   :  { %16241 = vmatprep.subr.bf16.mxu0 %v16240_v24  ;;  %v26479_v24 = vand.u32 4294901760, %v21906_v36  ;;  %v22304_v36 = vsub.f32 %v349_v31, %v8507_v60  ;;  %v8519_v31 = vand.u32 4294901760, %v353_v51  ;;  %v8522_v60 = vand.u32 4294901760, %v354_v48  ;;  %v342_v28 = vld [vmem:[%s24464_s1 + $0x948] sm:$0xff]  ;;  %v17054_v42 = vld [vmem:[%s24463_s0 + $0x24] ss:$48 sps:$4 sm:$0xff]  }
 0x33a   :  { %16011 = vmatpush3.bf16.msra.mxu1 %v26470_v55  ;;  %v8534_v15 = vand.u32 4294901760, %v358_v38  ;;  %v22404_v16 = vsub.f32 %v340_v17, %v8480_v19 }
 0x33b   :  { %16013 = vmatprep.subr.bf16.mxu1 %v26475_v50  ;;  %v22285_v22 = vpack.c.bf16 %v26479_v24, %v26478_v30  ;;  %v22317_v30 = vpack.c.bf16 %v8462_v1, %v8459_v27  ;;  %v339_v24 = vld [vmem:[%s24464_s1 + $0x930] sm:$0xff]  ;;  %v22341_v27 = vsub.f32 %v352_v2, %v8516_v39  ;;  %v22351_v61 = vpack.c.bf16 %v8522_v60, %v8519_v31 }
 0x33c   :  { %16243 = vmatpush3.bf16.msra.mxu0 %v16242_v32  ;;  %v22328_v32 = vsub.f32 %v334_v52, %v8462_v1  ;;  %v22343_v1 = vpack.c.bf16 %v8468_v25, %v8465_v11  ;;  %v22354_v43 = vsub.f32 %v353_v51, %v8519_v31  ;;  %v22356_v2 = vsub.f32 %v354_v48, %v8522_v60  ;;  %v359_v25 = vld [vmem:[%s24464_s1 + $0x9d0] sm:$0xff] }
 0x33d   :  { %26485 = vst [vmem:[#allocation11_spill] sm:$0xff] %v22317_v30  ;;  %16245 = vmatprep.subr.bf16.mxu0 %v16244_v34  ;;  %v8477_v34 = vand.u32 4294901760, %v339_v24  ;;  %26491 = vst [vmem:[#allocation10_spill] sm:$0xff] %v22351_v61  ;;  %v8531_v39 = vand.u32 4294901760, %v357_v53  ;;  %v22368_v51 = vpack.c.bf16 %v8474_v4, %v8471_v29  ;;  %v22370_v48 = vsub.f32 %v337_v12, %v8471_v29  ;;  %v17055_v31 = vld [vmem:[%s24463_s0 + $0x84] ss:$48 sps:$4 sm:$0xff]  }
 0x33e   :  { %16015 = vmatpush3.bf16.msra.mxu1 %v26486_v10  ;;  %v13090_v7 = vpop.f32.mrb[32].mxu0  ;;  %26489 = vst [vmem:[#allocation74_spill] sm:$0xff] %v22343_v1  ;;  %v22374_v11 = vpack.c.bf16 %v8528_v23, %v8525_v57  ;;  %v344_v29 = vld [vmem:[%s24464_s1 + $0x958] sm:$0xff]  ;;  %26501 = vst [vmem:[#allocation27_spill] sm:$0xff] %v22404_v16  ;;  %v345_v10 = vld [vmem:[%s24464_s1 + $0x960] sm:$0xff] }
 0x33f   :  { %16017 = vmatprep.subr.bf16.mxu1 %v26488_v59  ;;  %v13091_v52 = vpop.f32.mrb[33].mxu0  ;;  %26494 = vst [vmem:[#allocation54_spill] sm:$0xff] %v22368_v51  ;;  %v22386_v45 = vpack.c.bf16 %v8480_v19, %v8477_v34  ;;  %v22388_v12 = vsub.f32 %v339_v24, %v8477_v34  ;;  %v26503_v59 = vld [vmem:[#allocation50_spill] sm:$0xff]  ;;  %v346_v16 = vld [vmem:[%s24464_s1 + $0x968] sm:$0xff] }
 0x340   :  { %v22345_v40 = vadd.f32 %v13091_v52, %v13090_v7  ;;  %16247 = vmatpush3.bf16.msra.mxu0 %v16246_v58  ;;  %v341_v7 = vld [vmem:[%s24464_s1 + $0x940] sm:$0xff]  ;;  %v26493_v58 = vld [vmem:[#allocation5_spill] sm:$0xff]  ;;  %26495 = vst [vmem:[#allocation60_spill] sm:$0xff] %v22374_v11  ;;  %v22382_v52 = vsub.f32 %v355_v46, %v8525_v57  ;;  %v8486_v46 = vand.u32 4294901760, %v342_v28 }
 0x341   :  { %16249 = vmatprep.subr.bf16.mxu0 %v16248_v49  ;;  %v22372_v49 = vsub.f32 %v338_v33, %v8474_v4  ;;  %26497 = vst [vmem:[#allocation59_spill] sm:$0xff] %v22386_v45  ;;  %26498 = vst [vmem:[#allocation62_spill] sm:$0xff] %v22388_v12  ;;  %v360_v4 = vld [vmem:[%s24464_s1 + $0x9d8] sm:$0xff]  ;;  %v343_v33 = vld [vmem:[%s24464_s1 + $0x950] sm:$0xff] }
 0x342   :  { %26490 = vst [vmem:[#allocation73_spill] sm:$0xff] %v22345_v40  ;;  %16019 = vmatpush3.bf16.msra.mxu1 %v26492_v6  ;;  %v22384_v40 = vsub.f32 %v356_v54, %v8528_v23  ;;  %v8483_v23 = vand.u32 4294901760, %v341_v7  ;;  %v26499_v54 = vld [vmem:[#allocation25_spill] sm:$0xff]  ;;  %v8537_v6 = vand.u32 4294901760, %v359_v25 }
 0x343   :  { %16021 = vmatprep.subr.bf16.mxu1 %v26493_v58  ;;  %v621_v24 = vrot.slane %v17054_v42, %v26499_v54  ;;  %v635_v34 = vrot.slane %v17055_v31, %v26499_v54  ;;  %v22406_v58 = vpack.c.bf16 %v8534_v15, %v8531_v39  ;;  %v362_v42 = vld [vmem:[%s24464_s1 + $0x9e8] sm:$0xff]  ;;  %v8540_v31 = vand.u32 4294901760, %v360_v4 }
 0x344   :  { %v12845_v60 = vpop.f32.mrb[36].mxu1  ;;  %26496 = vst [vmem:[#allocation63_spill] sm:$0xff] %v22384_v40  ;;  %16251 = vmatpush3.bf16.msra.mxu0 %v22285_v22  ;;  %v361_v22 = vld [vmem:[%s24464_s1 + $0x9e0] sm:$0xff]  ;;  %v22427_v12 = vpack.c.bf16 %v8486_v46, %v8483_v23  ;;  %v22429_v40 = vsub.f32 %v341_v7, %v8483_v23  ;;  %v8495_v23 = vand.u32 4294901760, %v345_v10 }
 0x345   :  { %v12846_v57 = vpop.f32.mrb[37].mxu1  ;;  %16253 = vmatprep.subr.bf16.mxu0 %v22291_v26  ;;  %26502 = vst [vmem:[#allocation64_spill] sm:$0xff] %v22406_v58  ;;  %v639_v54 = vcombine.high %v621_v24, %v635_v34  ;;  %v22416_v26 = vsub.f32 %v357_v53, %v8531_v39  ;;  %v8543_v17 = vand.u32 4294901760, %v361_v22  ;;  %v26507_v39 = vld [vmem:[#allocation46_spill] sm:$0xff]  ;;  %v8498_v53 = vand.u32 4294901760, %v346_v16 }
 0x346   :  { %v12847_v37 = vadd.f32 %v12846_v57, %v12845_v60  ;;  %16023 = vmatpush3.bf16.msra.mxu1 %v26500_v8  ;;  %v8489_v60 = vand.u32 4294901760, %v343_v33  ;;  %v8492_v57 = vand.u32 4294901760, %v344_v29  ;;  %v8546_v8 = vand.u32 4294901760, %v362_v42  ;;  %26505 = vst [vmem:[#allocation66_spill] sm:$0xff] %v22427_v12 }
 0x347   :  { %16025 = vmatprep.subr.bf16.mxu1 %v26503_v59  ;;  %26504 = vst [vmem:[#allocation65_spill] sm:$0xff] %v22416_v26  ;;  %v22425_v59 = vsub.f32 %v358_v38, %v8534_v15  ;;  %v22437_v26 = vsub.f32 %v342_v28, %v8486_v46  ;;  %v26509_v15 = vld [vmem:[#allocation51_spill] sm:$0xff]  ;;  %v22443_v38 = vpack.c.bf16 %v8540_v31, %v8537_v6 }
 0x348   :  { %v5351_v19 = vadd.f32 %v12847_v37, %v22190_v3  ;;  %16255 = vmatpush3.bf16.msra.mxu0 %v22297_v21  ;;  %v26506_v3 = vld [vmem:[#allocation30_spill] sm:$0xff]  ;;  %v22440_v21 = vand.u32 4294901760, %v639_v54  ;;  %v22445_v7 = vpack.c.bf16 %v8492_v57, %v8489_v60  ;;  %v22452_v28 = vpack.c.bf16 %v8546_v8, %v8543_v17 }
 0x349   :  { %16289 = vmatprep.subr.bf16.mxu0 %v22302_v41  ;;  %26510 = vst [vmem:[#allocation68_spill] sm:$0xff] %v22443_v38  ;;  %v22454_v46 = vcombine.low %v621_v24, %v635_v34  ;;  %v22457_v50 = vsub.f32 %v343_v33, %v8489_v60  ;;  %v22459_v41 = vsub.f32 %v344_v29, %v8492_v57  ;;  %v364_v33 = vld [vmem:[%s24464_s1 + $0x9f8] sm:$0xff]  ;;  %v22478_v29 = vld [vmem:[%s24464_s1 + $0x970] sm:$0xff]  ;;  %v26515_v34 = vand.u32 4294901760, %v22315_v44  ;;  %v26518_v60 = vld [vmem:[#allocation80_spill] sm:$0xff] }
 0x34a   :  { %v22433_v37 = vadd.f32 %v26506_v3, %v5351_v19  ;;  %16027 = vmatpush3.bf16.msra.mxu1 %v26507_v39  ;;  %26508 = vst [vmem:[#allocation20_spill] sm:$0xff] %v22440_v21  ;;  %26511 = vst [vmem:[#allocation28_spill] sm:$0xff] %v22445_v7  ;;  %v22448_v19 = vsub.f32 %v359_v25, %v8537_v6  ;;  %v22450_v3 = vsub.f32 %v360_v4, %v8540_v31  ;;  %v26514_v4 = vld [vmem:[#allocation53_spill] sm:$0xff] }
 0x34b   :  { %16029 = vmatprep.subr.bf16.mxu1 %v26509_v15  ;;  %8349 = vmatmul.mubr.f32.vlgmr.msra.gmra.mrb[46].mxu0 %v21946_v14  ;;  %26512 = vst [vmem:[#allocation69_spill] sm:$0xff] %v22452_v28  ;;  %v363_v15 = vld [vmem:[%s24464_s1 + $0x9f0] sm:$0xff]  ;;  %v26513_v14 = vand.u32 4294901760, %v22304_v36  ;;  %v22470_v24 = vsub.f32 %v361_v22, %v8543_v17  ;;  %v22484_v31 = vsub.f32 %v639_v54, %v22440_v21 }
 0x34c   :  { %16291 = vmatpush3.bf16.msra.mxu0 %v22317_v30  ;;  %v22488_v22 = vsub.f32 %v362_v42, %v8546_v8  ;;  %v22490_v57 = vpack.c.bf16 %v8498_v53, %v8495_v23  ;;  %v22492_v17 = vsub.f32 %v345_v10, %v8495_v23  ;;  %v22494_v25 = vsub.f32 %v346_v16, %v8498_v53 }
 0x34d   :  { %v8686_v6 = vsub.f32 %v22304_v36, %v26513_v14  ;;  %16293 = vmatprep.subr.bf16.mxu0 %v22330_v56  ;;  %v8693_v14 = vsub.f32 %v22315_v44, %v26515_v34  ;;  %26516 = vst [vmem:[#allocation49_spill] sm:$0xff] %v22484_v31  ;;  %v348_v56 = vld [vmem:[%s24464_s1 + $0x978] sm:$0xff]  ;;  %v8549_v34 = vand.u32 4294901760, %v363_v15  ;;  %v25113_v21 = vand.u32 4294901760, %v22484_v31 }
 0x34e   :  { %16031 = vmatpush3.bf16.msra.mxu1 %v26514_v4  ;;  %26517 = vst [vmem:[#allocation32_spill] sm:$0xff] %v22490_v57  ;;  %v26519_v4 = vand.u32 4294901760, %v26518_v60  ;;  %v8552_v8 = vand.u32 4294901760, %v364_v33  ;;  %v26520_v16 = vand.u32 4294901760, %v22326_v62  ;;  %v26521_v42 = vand.u32 4294901760, %v22328_v32 }
 0x34f   :  { %16065 = vmatprep.subr.bf16.mxu1 %v26450_v13  ;;  %v8687_v30 = vand.u32 4294901760, %v8686_v6  ;;  %v8694_v54 = vand.u32 4294901760, %v8693_v14  ;;  %v8501_v13 = vand.u32 4294901760, %v22478_v29  ;;  %v8504_v23 = vand.u32 4294901760, %v348_v56 }
 0x350   :  { %16295 = vmatpush3.bf16.msra.mxu0 %v22343_v1  ;;  %v8574_v10 = vsub.f32 %v22326_v62, %v26520_v16  ;;  %v8581_v53 = vsub.f32 %v22328_v32, %v26521_v42  ;;  %v25117_v14 = vand.u32 4294901760, %v22333_v18  ;;  %v22520_v60 = vsub.f32 %v363_v15, %v8549_v34 }
 0x351   :  { %7319 = vmatmul.mubr.f32.vlgmr.msra.gmra.mrb[50].mxu1 %v26519_v4  ;;  %v22512_v6 = vpack.c.bf16 %v8694_v54, %v8687_v30  ;;  %v8557_v4 = vsub.f32 %v22484_v31, %v25113_v21  ;;  %16297 = vmatprep.subr.bf16.mxu0 %v22351_v61  ;;  %v25118_v54 = vand.u32 4294901760, %v22347_v9  ;;  %v25119_v21 = vand.u32 4294901760, %v22349_v20 }
 0x352   :  { %16067 = vmatpush3.bf16.msra.mxu1 %v26456_v0  ;;  %7589 = vmatprep.mubr.f32.mxu1 %v26422_v47  ;;  %v8575_v16 = vand.u32 4294901760, %v8574_v10  ;;  %v8582_v42 = vand.u32 4294901760, %v8581_v53  ;;  %v25116_v0 = vand.u32 4294901760, %v22341_v27  ;;  %v8700_v30 = vsub.f32 %v22333_v18, %v25117_v14 }
 0x353   :  { %26522 = vst [vmem:[#allocation72_spill] sm:$0xff] %v22512_v6  ;;  %16069 = vmatprep.subr.bf16.mxu1 %v26461_v35  ;;  %v8558_v47 = vand.u32 4294901760, %v8557_v4  ;;  %v22529_v35 = vpack.c.bf16 %v8552_v8, %v8549_v34  ;;  %v22534_v15 = vand.u32 4294901760, %v22454_v46  ;;  %v22541_v53 = vsub.f32 %v364_v33, %v8552_v8  ;;  %v26641_v6 = vld [vmem:[#allocation58_spill] sm:$0xff] }
 0x354   :  { %16299 = vmatpush3.bf16.msra.mxu0 %v22368_v51  ;;  %v22531_v61 = vpack.c.bf16 %v8582_v42, %v8575_v16  ;;  %v8707_v10 = vsub.f32 %v22341_v27, %v25116_v0  ;;  %v8701_v4 = vand.u32 4294901760, %v8700_v30  ;;  %v8588_v34 = vsub.f32 %v22347_v9, %v25118_v54 }
 0x355   :  { %26523 = vst [vmem:[#allocation75_spill] sm:$0xff] %v22529_v35  ;;  %26525 = vst [vmem:[#allocation78_spill] sm:$0xff] %v22534_v15  ;;  %16301 = vmatprep.subr.bf16.mxu0 %v22374_v11  ;;  %v8595_v16 = vsub.f32 %v22349_v20, %v25119_v21  ;;  %v22550_v42 = vpack.c.bf16 %v8504_v23, %v8501_v13  ;;  %8559 = vmatprep.mubr.f32.mxu0 %v8558_v47  ;;  %v25120_v33 = vand.u32 4294901760, %v22356_v2 }
 0x356   :  { %26524 = vst [vmem:[#allocation43_spill] sm:$0xff] %v22531_v61  ;;  %16071 = vmatpush3.bf16.msra.mxu1 %v26464_v63  ;;  %v8708_v0 = vand.u32 4294901760, %v8707_v10  ;;  %v25121_v63 = vand.u32 4294901760, %v22354_v43  ;;  %v8589_v8 = vand.u32 4294901760, %v8588_v34  ;;  %v25124_v14 = vand.u32 4294901760, %v22370_v48 }
 0x357   :  { %16073 = vmatprep.subr.bf16.mxu1 %v26467_v5  ;;  %26526 = vst [vmem:[#allocation19_spill] sm:$0xff] %v22550_v42  ;;  %v8596_v30 = vand.u32 4294901760, %v8595_v16  ;;  %v25129_v54 = vand.u32 4294901760, %v22372_v49  ;;  %v22559_v21 = vsub.f32 %v22454_v46, %v22534_v15  ;;  %v8721_v10 = vsub.f32 %v22356_v2, %v25120_v33  ;;  %v26530_v16 = vld [vmem:[#allocation56_spill] sm:$0xff] }
 0x358   :  { %16303 = vmatpush3.bf16.msra.mxu0 %v22386_v45  ;;  %v22561_v5 = vpack.c.bf16 %v8708_v0, %v8701_v4  ;;  %v8714_v47 = vsub.f32 %v22354_v43, %v25121_v63  ;;  %v8602_v46 = vsub.f32 %v22370_v48, %v25124_v14  ;;  %v25130_v4 = vand.u32 4294901760, %v22382_v52  ;;  %v26531_v45 = vld [vmem:[#allocation63_spill] sm:$0xff] }
 0x359   :  { %26527 = vst [vmem:[#allocation30_spill] sm:$0xff] %v22559_v21  ;;  %16305 = vmatprep.subr.bf16.mxu0 %v22406_v58  ;;  %v22571_v34 = vpack.c.bf16 %v8596_v30, %v8589_v8  ;;  %v8609_v0 = vsub.f32 %v22372_v49, %v25129_v54  ;;  %v22582_v33 = vsub.f32 %v22478_v29, %v8501_v13  ;;  %v8722_v8 = vand.u32 4294901760, %v8721_v10  ;;  %v26533_v29 = vld [vmem:[#allocation62_spill] sm:$0xff]  ;;  %v26534_v13 = vld [vmem:[#allocation27_spill] sm:$0xff] }
 0x35a   :  { %26528 = vst [vmem:[#allocation46_spill] sm:$0xff] %v22561_v5  ;;  %16075 = vmatpush3.bf16.msra.mxu1 %v26470_v55  ;;  %v22584_v55 = vsub.f32 %v348_v56, %v8504_v23  ;;  %v8715_v63 = vand.u32 4294901760, %v8714_v47  ;;  %v8603_v30 = vand.u32 4294901760, %v8602_v46  ;;  %v8728_v14 = vsub.f32 %v22382_v52, %v25130_v4  ;;  %v26535_v47 = vld [vmem:[#allocation22_spill] sm:$0xff] }
 0x35b   :  { %26529 = vst [vmem:[#allocation80_spill] sm:$0xff] %v22571_v34  ;;  %16077 = vmatprep.subr.bf16.mxu1 %v26530_v16  ;;  %v8610_v58 = vand.u32 4294901760, %v8609_v0  ;;  %v25135_v11 = vand.u32 4294901760, %v26531_v45  ;;  %v25138_v56 = vand.u32 4294901760, %v26533_v29  ;;  %v25141_v23 = vand.u32 4294901760, %v26534_v13  ;;  %v26537_v16 = vld [vmem:[#allocation57_spill] sm:$0xff] }
 0x35c   :  { %16307 = vmatpush3.bf16.msra.mxu0 %v22427_v12  ;;  %v22593_v54 = vpack.c.bf16 %v8722_v8, %v8715_v63  ;;  %v8729_v0 = vand.u32 4294901760, %v8728_v14  ;;  %v25146_v12 = vand.u32 4294901760, %v22429_v40  ;;  %v26633_v34 = vld [vmem:[#allocation31_spill] sm:$0xff] }
 0x35d   :  { %16309 = vmatprep.subr.bf16.mxu0 %v22443_v38  ;;  %v22600_v46 = vpack.c.bf16 %v8610_v58, %v8603_v30  ;;  %v8735_v4 = vsub.f32 %v26531_v45, %v25135_v11  ;;  %v8616_v8 = vsub.f32 %v26533_v29, %v25138_v56  ;;  %v26538_v38 = vld [vmem:[#allocation65_spill] sm:$0xff]  ;;  %v25143_v58 = vand.u32 4294901760, %v22425_v59 }
 0x35e   :  { %26532 = vst [vmem:[#allocation56_spill] sm:$0xff] %v22593_v54  ;;  %16079 = vmatpush3.bf16.msra.mxu1 %v26535_v47  ;;  %v13160_v63 = vpop.f32.mrb[34].mxu0  ;;  %v8623_v47 = vsub.f32 %v26534_v13, %v25141_v23  ;;  %v25142_v10 = vand.u32 4294901760, %v26538_v38  ;;  %v25149_v11 = vand.u32 4294901760, %v22437_v26 }
 0x35f   :  { %26536 = vst [vmem:[#allocation63_spill] sm:$0xff] %v22600_v46  ;;  %16081 = vmatprep.subr.bf16.mxu1 %v26537_v16  ;;  %v13161_v14 = vpop.f32.mrb[35].mxu0  ;;  %v8736_v30 = vand.u32 4294901760, %v8735_v4  ;;  %v8617_v56 = vand.u32 4294901760, %v8616_v8  ;;  %v26540_v46 = vld [vmem:[#allocation26_spill] sm:$0xff]  ;;  %v8749_v16 = vsub.f32 %v22425_v59, %v25143_v58  ;;  %v26544_v58 = vand.u32 4294901760, %v22559_v21 }
 0x360   :  { %v22617_v51 = vadd.f32 %v13161_v14, %v13160_v63  ;;  %16311 = vmatpush3.bf16.msra.mxu0 %v22445_v7  ;;  %v8624_v1 = vand.u32 4294901760, %v8623_v47  ;;  %v8742_v23 = vsub.f32 %v26538_v38, %v25142_v10  ;;  %v8630_v63 = vsub.f32 %v22429_v40, %v25146_v12  ;;  %v26542_v47 = vld [vmem:[#allocation5_spill] sm:$0xff] }
 0x361   :  { %16313 = vmatprep.subr.bf16.mxu0 %v22452_v28  ;;  %v22625_v4 = vpack.c.bf16 %v8736_v30, %v8729_v0  ;;  %v16354_v14 = vpack.c.bf16 %v22328_v32, %v22326_v62  ;;  %v8637_v0 = vsub.f32 %v22437_v26, %v25149_v11  ;;  %v8563_v28 = vsub.f32 %v22559_v21, %v26544_v58  ;;  %v26547_v58 = vld [vmem:[#allocation15_spill] sm:$0xff] }
 0x362   :  { %26539 = vst [vmem:[#allocation62_spill] sm:$0xff] %v22617_v51  ;;  %16083 = vmatpush3.bf16.msra.mxu1 %v26540_v46  ;;  %v22637_v46 = vpack.c.bf16 %v8624_v1, %v8617_v56  ;;  %v8743_v10 = vand.u32 4294901760, %v8742_v23  ;;  %v8750_v12 = vand.u32 4294901760, %v8749_v16  ;;  %v8631_v7 = vand.u32 4294901760, %v8630_v63 }
 0x363   :  { %26541 = vst [vmem:[#allocation27_spill] sm:$0xff] %v22625_v4  ;;  %16085 = vmatprep.subr.bf16.mxu1 %v26542_v47  ;;  %v26545_v8 = vand.u32 4294901760, %v22448_v19  ;;  %v8638_v1 = vand.u32 4294901760, %v8637_v0  ;;  %v26546_v56 = vand.u32 4294901760, %v22450_v3  ;;  %v25154_v11 = vand.u32 4294901760, %v22457_v50  ;;  %v26549_v0 = vld [vmem:[#allocation50_spill] sm:$0xff] }
 0x364   :  { %26543 = vst [vmem:[#allocation22_spill] sm:$0xff] %v22637_v46  ;;  %v12915_v30 = vpop.f32.mrb[38].mxu1  ;;  %16315 = vmatpush3.bf16.msra.mxu0 %v22490_v57  ;;  %v16356_v16 = vpack.c.bf16 %v22341_v27, %v22333_v18  ;;  %v22658_v63 = vpack.c.bf16 %v8750_v12, %v8743_v10  ;;  %v25159_v12 = vand.u32 4294901760, %v22470_v24  ;;  %v25155_v10 = vand.u32 4294901760, %v22488_v22 }
 0x365   :  { %v8756_v47 = vsub.f32 %v22448_v19, %v26545_v8  ;;  %v12916_v4 = vpop.f32.mrb[39].mxu1  ;;  %v8763_v23 = vsub.f32 %v22450_v3, %v26546_v56  ;;  %16317 = vmatprep.subr.bf16.mxu0 %v22529_v35  ;;  %v22661_v57 = vpack.c.bf16 %v8638_v1, %v8631_v7  ;;  %v8644_v46 = vsub.f32 %v22457_v50, %v25154_v11 }
 0x366   :  { %v12917_v54 = vadd.f32 %v12916_v4, %v12915_v30  ;;  %16087 = vmatpush3.bf16.msra.mxu1 %v26547_v58  ;;  %26548 = vst [vmem:[#allocation57_spill] sm:$0xff] %v22658_v63  ;;  %v26551_v4 = vand.u32 4294901760, %v22459_v41  ;;  %v8564_v35 = vand.u32 4294901760, %v8563_v28  ;;  %v8770_v28 = vsub.f32 %v22470_v24, %v25159_v12 }
 0x367   :  { %v8757_v8 = vand.u32 4294901760, %v8756_v47  ;;  %16089 = vmatprep.subr.bf16.mxu1 %v26549_v0  ;;  %26550 = vst [vmem:[#allocation65_spill] sm:$0xff] %v22661_v57  ;;  %v8764_v56 = vand.u32 4294901760, %v8763_v23  ;;  %v8645_v47 = vand.u32 4294901760, %v8644_v46  ;;  %v25156_v23 = vand.u32 4294901760, %v22492_v17  ;;  %v26553_v0 = vld [vmem:[#allocation21_spill] sm:$0xff] }
 0x368   :  { %v8651_v30 = vsub.f32 %v22459_v41, %v26551_v4  ;;  %v5597_v58 = vadd.f32 %v12917_v54, %v22433_v37  ;;  %16319 = vmatpush3.bf16.msra.mxu0 %v22550_v42  ;;  %v26554_v37 = vpack.c.bf16 %v22315_v44, %v22304_v36  ;;  %v8777_v54 = vsub.f32 %v22488_v22, %v25155_v10  ;;  %v26562_v42 = vld [vmem:[#allocation39_spill] sm:$0xff] }
 0x369   :  { %v22673_v7 = vpack.c.bf16 %v8764_v56, %v8757_v8  ;;  %v25157_v46 = vand.u32 4294901760, %v22494_v25  ;;  %v26555_v8 = vld [vmem:[#allocation51_spill] sm:$0xff]  ;;  %v16358_v56 = vpack.c.bf16 %v22349_v20, %v22347_v9  ;;  %v8658_v4 = vsub.f32 %v22492_v17, %v25156_v23  ;;  %v26557_v23 = vld [vmem:[#allocation53_spill] sm:$0xff] }
 0x36a   :  { %v8652_v1 = vand.u32 4294901760, %v8651_v30  ;;  %v22677_v11 = vadd.f32 %v26553_v0, %v5597_v58  ;;  %16091 = vmatpush3.bf16.msra.mxu1 %v26507_v39  ;;  %16353 = vmatprep.subr.bf16.mxu0 %v26554_v37  ;;  %v8771_v30 = vand.u32 4294901760, %v8770_v28  ;;  %v8778_v58 = vand.u32 4294901760, %v8777_v54 }
 0x36b   :  { %26552 = vst [vmem:[#allocation26_spill] sm:$0xff] %v22673_v7  ;;  %16093 = vmatprep.subr.bf16.mxu1 %v26555_v8  ;;  %8565 = vmatmul.mubr.f32.vlgmr.msra.gmra.mrb[48].mxu0 %v8564_v35  ;;  %v8665_v0 = vsub.f32 %v22494_v25, %v25157_v46  ;;  %v25158_v37 = vand.u32 4294901760, %v22520_v60  ;;  %v8659_v8 = vand.u32 4294901760, %v8658_v4  ;;  %v25160_v10 = vand.u32 4294901760, %v22541_v53 }
 0x36c   :  { %v22693_v39 = vpack.c.bf16 %v8652_v1, %v8645_v47  ;;  %16355 = vmatpush3.bf16.msra.mxu0 %v16354_v14  ;;  %v25164_v47 = vand.u32 4294901760, %v22582_v33  ;;  %v25165_v1 = vand.u32 4294901760, %v22584_v55  ;;  %8932 = vmatprep.mubr.f32.mxu0 %v22484_v31  ;;  %v22707_v35 = vpack.c.bf16 %v8778_v58, %v8771_v30  ;;  %v26559_v14 = vld [vmem:[#allocation71_spill] sm:$0xff] }
 0x36d   :  { %16357 = vmatprep.subr.bf16.mxu0 %v16356_v16  ;;  %v8666_v28 = vand.u32 4294901760, %v8665_v0  ;;  %v8784_v54 = vsub.f32 %v22520_v60, %v25158_v37  ;;  %v16360_v4 = vpack.c.bf16 %v22356_v2, %v22354_v43  ;;  %v8791_v46 = vsub.f32 %v22541_v53, %v25160_v10  ;;  %v26561_v0 = vld [vmem:[#allocation23_spill] sm:$0xff] }
 0x36e   :  { %26556 = vst [vmem:[#allocation5_spill] sm:$0xff] %v22693_v39  ;;  %16095 = vmatpush3.bf16.msra.mxu1 %v26557_v23  ;;  %26558 = vst [vmem:[#allocation15_spill] sm:$0xff] %v22707_v35  ;;  %v8672_v16 = vsub.f32 %v22582_v33, %v25164_v47  ;;  %v8679_v23 = vsub.f32 %v22584_v55, %v25165_v1  ;;  %v26563_v31 = vld [vmem:[#allocation79_spill] sm:$0xff]  ;;  %v16364_v47 = vpack.c.bf16 %v26531_v45, %v22382_v52  ;;  %v26564_v1 = vld [vmem:[#allocation45_spill] sm:$0xff] }
 0x36f   :  { %16129 = vmatprep.subr.bf16.mxu1 %v26559_v14  ;;  %v22724_v30 = vpack.c.bf16 %v8666_v28, %v8659_v8  ;;  %v8785_v58 = vand.u32 4294901760, %v8784_v54  ;;  %v16362_v14 = vpack.c.bf16 %v22372_v49, %v22370_v48  ;;  %v8792_v37 = vand.u32 4294901760, %v8791_v46  ;;  %v26568_v54 = vld [vmem:[#allocation33_spill] sm:$0xff]  ;;  %v389_v39 = vld [vmem:[%s24464_s1 + $0xac0] sm:$0xff] }
 0x370   :  { %16359 = vmatpush3.bf16.msra.mxu0 %v16358_v56  ;;  %v8673_v12 = vand.u32 4294901760, %v8672_v16  ;;  %v8680_v10 = vand.u32 4294901760, %v8679_v23  ;;  %v16366_v46 = vpack.c.bf16 %v26534_v13, %v26533_v29  ;;  %v26567_v56 = vld [vmem:[#allocation67_spill] sm:$0xff]  ;;  %v16376_v16 = vpack.c.bf16 %v22488_v22, %v22470_v24 }
 0x371   :  { %26560 = vst [vmem:[#allocation50_spill] sm:$0xff] %v22724_v30  ;;  %7591 = vmatmul.mubr.f32.vlgmr.msra.gmra.mrb[52].mxu1 %v26561_v0  ;;  %16361 = vmatprep.subr.bf16.mxu0 %v16360_v4  ;;  %v22734_v8 = vpack.c.bf16 %v8792_v37, %v8785_v58  ;;  %v26569_v37 = vld [vmem:[#allocation34_spill] sm:$0xff]  ;;  %v26572_v23 = vld [vmem:[#allocation35_spill] sm:$0xff] }
 0x372   :  { %16131 = vmatpush3.bf16.msra.mxu1 %v26562_v42  ;;  %7933 = vmatprep.mubr.f32.mxu1 %v26563_v31  ;;  %v22736_v28 = vpack.c.bf16 %v8680_v10, %v8673_v12  ;;  %v16368_v42 = vpack.c.bf16 %v22425_v59, %v26538_v38  ;;  %v16372_v12 = vpack.c.bf16 %v22450_v3, %v22448_v19  ;;  %v26570_v10 = vld [vmem:[#allocation36_spill] sm:$0xff]  ;;  %v26571_v4 = vld [vmem:[#allocation42_spill] sm:$0xff] }
 0x373   :  { %16133 = vmatprep.subr.bf16.mxu1 %v26564_v1  ;;  %26565 = vst [vmem:[#allocation21_spill] sm:$0xff] %v22734_v8  ;;  %v16370_v1 = vpack.c.bf16 %v22437_v26, %v22429_v40 }
 0x374   :  { %26566 = vst [vmem:[#allocation51_spill] sm:$0xff] %v22736_v28  ;;  %16363 = vmatpush3.bf16.msra.mxu0 %v16362_v14  ;;  %v26582_v28 = vld [vmem:[#allocation12_spill] sm:$0xff] }
 0x375   :  { %16365 = vmatprep.subr.bf16.mxu0 %v16364_v47  ;;  %v16374_v47 = vpack.c.bf16 %v22459_v41, %v22457_v50 }
 0x376   :  { %16135 = vmatpush3.bf16.msra.mxu1 %v26567_v56  ;;  %v26574_v56 = vld [vmem:[#allocation70_spill] sm:$0xff] }
 0x377   :  { %16137 = vmatprep.subr.bf16.mxu1 %v26568_v54  ;;  %v26575_v54 = vld [vmem:[#allocation37_spill] sm:$0xff] }
 0x378   :  { %16367 = vmatpush3.bf16.msra.mxu0 %v16366_v46  ;;  %v16378_v46 = vpack.c.bf16 %v22494_v25, %v22492_v17 }
 0x379   :  { %16369 = vmatprep.subr.bf16.mxu0 %v16368_v42  ;;  %v16380_v42 = vpack.c.bf16 %v22541_v53, %v22520_v60 }
 0x37a   :  { %16139 = vmatpush3.bf16.msra.mxu1 %v26569_v37 }
 0x37b   :  { %16141 = vmatprep.subr.bf16.mxu1 %v26570_v10 }
 0x37c   :  { %16371 = vmatpush3.bf16.msra.mxu0 %v16370_v1 }
 0x37d   :  { %16373 = vmatprep.subr.bf16.mxu0 %v16372_v12  ;;  %v16382_v12 = vpack.c.bf16 %v22584_v55, %v22582_v33 }
 0x37e   :  { %16143 = vmatpush3.bf16.msra.mxu1 %v26571_v4  ;;  %v13230_v58 = vpop.f32.mrb[36].mxu0  ;;  %v26576_v4 = vld [vmem:[#allocation40_spill] sm:$0xff] }
 0x37f   :  { %16145 = vmatprep.subr.bf16.mxu1 %v26572_v23  ;;  %v13231_v0 = vpop.f32.mrb[37].mxu0  ;;  %v26578_v23 = vand.u32 4294901760, %v22315_v44  ;;  %v26585_v44 = vand.u32 4294901760, %v22341_v27  ;;  %v26593_v27 = vand.u32 4294901760, %v22356_v2  ;;  %v26602_v2 = vld [vmem:[#allocation47_spill] sm:$0xff] }
 0x380   :  { %v22756_v14 = vadd.f32 %v13231_v0, %v13230_v58  ;;  %16375 = vmatpush3.bf16.msra.mxu0 %v16374_v47  ;;  %v26577_v47 = vand.u32 4294901760, %v22304_v36  ;;  %v26579_v58 = vld [vmem:[#allocation18_spill] sm:$0xff]  ;;  %v26584_v36 = vand.u32 4294901760, %v22333_v18  ;;  %v26592_v18 = vand.u32 4294901760, %v22354_v43 }
 0x381   :  { %16377 = vmatprep.subr.bf16.mxu0 %v16376_v16  ;;  %v26601_v43 = vand.u32 4294901760, %v26531_v45  ;;  %v26606_v45 = vand.u32 4294901760, %v26538_v38  ;;  %v384_v38 = vld [vmem:[%s24464_s1 + $0xa98] sm:$0xff] }
 0x382   :  { %26573 = vst [vmem:[#allocation53_spill] sm:$0xff] %v22756_v14  ;;  %16147 = vmatpush3.bf16.msra.mxu1 %v26574_v56  ;;  %v16416_v16 = vpack.c.bf16 %v26578_v23, %v26577_v47  ;;  %v26580_v56 = vand.u32 4294901760, %v22326_v62  ;;  %v26587_v62 = vand.u32 4294901760, %v22347_v9  ;;  %v16424_v47 = vpack.c.bf16 %v26593_v27, %v26592_v18  ;;  %v26594_v23 = vld [vmem:[#allocation82_spill] sm:$0xff] }
 0x383   :  { %16149 = vmatprep.subr.bf16.mxu1 %v26575_v54  ;;  %v26595_v9 = vand.u32 4294901760, %v22370_v48  ;;  %v26604_v48 = vand.u32 4294901760, %v26534_v13  ;;  %v366_v13 = vld [vmem:[%s24464_s1 + $0xa08] sm:$0xff]  ;;  %v26610_v18 = vand.u32 4294901760, %v22437_v26  ;;  %v26614_v26 = vand.u32 4294901760, %v22457_v50 }
 0x384   :  { %v12985_v1 = vpop.f32.mrb[40].mxu1  ;;  %16379 = vmatpush3.bf16.msra.mxu0 %v16378_v46  ;;  %v26581_v46 = vand.u32 4294901760, %v22328_v32  ;;  %v26588_v32 = vand.u32 4294901760, %v22349_v20  ;;  %v26596_v20 = vand.u32 4294901760, %v22372_v49 }
 0x385   :  { %v12986_v37 = vpop.f32.mrb[41].mxu1  ;;  %16381 = vmatprep.subr.bf16.mxu0 %v16380_v42  ;;  %v16420_v42 = vpack.c.bf16 %v26585_v44, %v26584_v36  ;;  %v381_v36 = vld [vmem:[%s24464_s1 + $0xa80] sm:$0xff]  ;;  %v26605_v44 = vld [vmem:[#allocation77_spill] sm:$0xff] }
 0x386   :  { %v12987_v10 = vadd.f32 %v12986_v37, %v12985_v1  ;;  %16151 = vmatpush3.bf16.msra.mxu1 %v26576_v4  ;;  %v16418_v54 = vpack.c.bf16 %v26581_v46, %v26580_v56  ;;  %v26583_v37 = vld [vmem:[#allocation44_spill] sm:$0xff]  ;;  %v26586_v4 = vld [vmem:[#allocation55_spill] sm:$0xff]  ;;  %v26600_v46 = vand.u32 4294901760, %v22382_v52  ;;  %v382_v52 = vld [vmem:[%s24464_s1 + $0xa88] sm:$0xff] }
 0x387   :  { %16153 = vmatprep.subr.bf16.mxu1 %v26579_v58  ;;  %v26597_v58 = vld [vmem:[#allocation76_spill] sm:$0xff] }
 0x388   :  { %v5869_v0 = vadd.f32 %v12987_v10, %v22677_v11  ;;  %16383 = vmatpush3.bf16.msra.mxu0 %v16382_v12  ;;  %v16422_v11 = vpack.c.bf16 %v26588_v32, %v26587_v62  ;;  %v26590_v12 = vld [vmem:[#allocation38_spill] sm:$0xff]  ;;  %v26591_v10 = vld [vmem:[#allocation7_spill] sm:$0xff]  ;;  %v26608_v62 = vld [vmem:[#allocation81_spill] sm:$0xff] }
 0x389   :  { %16417 = vmatprep.subr.bf16.mxu0 %v16416_v16  ;;  %v16426_v16 = vpack.c.bf16 %v26596_v20, %v26595_v9  ;;  %v383_v32 = vld [vmem:[%s24464_s1 + $0xa90] sm:$0xff]  ;;  %v9324_v9 = vand.u32 4294901760, %v366_v13 }
 0x38a   :  { %v22778_v1 = vadd.f32 %v26582_v28, %v5869_v0  ;;  %16155 = vmatpush3.bf16.msra.mxu1 %v26583_v37  ;;  %v26589_v28 = vld [vmem:[#allocation20_spill] sm:$0xff]  ;;  %v26603_v37 = vand.u32 4294901760, %v26533_v29  ;;  %v367_v20 = vld [vmem:[%s24464_s1 + $0xa10] sm:$0xff] }
 0x38b   :  { %16157 = vmatprep.subr.bf16.mxu1 %v26586_v4  ;;  %8935 = vmatmul.mubr.f32.vlgmr.msra.gmra.mrb[50].mxu0 %v22559_v21  ;;  %v26598_v0 = vld [vmem:[#allocation8_spill] sm:$0xff] }
 0x38c   :  { %16419 = vmatpush3.bf16.msra.mxu0 %v16418_v54  ;;  %9209 = vmatprep.mubr.f32.mxu0 %v26589_v28  ;;  %v26599_v56 = vand.u32 4294901760, %v26598_v0  ;;  %v16428_v54 = vpack.c.bf16 %v26601_v43, %v26600_v46  ;;  %v16430_v49 = vpack.c.bf16 %v26604_v48, %v26603_v37  ;;  %v365_v29 = vld [vmem:[%s24464_s1 + $0xa00] sm:$0xff]  ;;  %v26611_v0 = vld [vmem:[#allocation13_spill] sm:$0xff]  ;;  %v26615_v43 = vand.u32 4294901760, %v22459_v41 }
 0x38d   :  { %16421 = vmatprep.subr.bf16.mxu0 %v16420_v42  ;;  %v26607_v42 = vand.u32 4294901760, %v22425_v59  ;;  %v9369_v59 = vand.u32 4294901760, %v381_v36  ;;  %v9375_v37 = vand.u32 4294901760, %v383_v32  ;;  %v9378_v48 = vand.u32 4294901760, %v384_v38 }
 0x38e   :  { %16159 = vmatpush3.bf16.msra.mxu1 %v26590_v12  ;;  %v26609_v12 = vand.u32 4294901760, %v22429_v40  ;;  %v26613_v40 = vand.u32 4294901760, %v22450_v3  ;;  %v26618_v3 = vand.u32 4294901760, %v22488_v22  ;;  %v26619_v41 = vand.u32 4294901760, %v22492_v17  ;;  %v369_v22 = vld [vmem:[%s24464_s1 + $0xa20] sm:$0xff] }
 0x38f   :  { %16193 = vmatprep.subr.bf16.mxu1 %v26591_v10  ;;  %v16432_v4 = vpack.c.bf16 %v26607_v42, %v26606_v45  ;;  %v386_v45 = vld [vmem:[%s24464_s1 + $0xaa8] sm:$0xff]  ;;  %v22921_v8 = vsub.f32 %v383_v32, %v9375_v37 }
 0x390   :  { %16423 = vmatpush3.bf16.msra.mxu0 %v16422_v11  ;;  %v9372_v11 = vand.u32 4294901760, %v382_v52  ;;  %v16434_v27 = vpack.c.bf16 %v26610_v18, %v26609_v12  ;;  %v26616_v42 = vld [vmem:[#allocation17_spill] sm:$0xff]  ;;  %v26621_v18 = vand.u32 4294901760, %v22520_v60 }
 0x391   :  { %7935 = vmatmul.mubr.f32.vlgmr.msra.gmra.mrb[54].mxu1 %v26594_v23  ;;  %16425 = vmatprep.subr.bf16.mxu0 %v16424_v47  ;;  %v9321_v47 = vand.u32 4294901760, %v365_v29 }
 0x392   :  { %16195 = vmatpush3.bf16.msra.mxu1 %v26597_v58  ;;  %8177 = vmatprep.mubr.f32.mxu1 %v26599_v56  ;;  %v26612_v56 = vand.u32 4294901760, %v22448_v19  ;;  %v26617_v19 = vand.u32 4294901760, %v22470_v24  ;;  %v22890_v17 = vpack.c.bf16 %v9372_v11, %v9369_v59 }
 0x393   :  { %16197 = vmatprep.subr.bf16.mxu1 %v26602_v2 }
 0x394   :  { %16427 = vmatpush3.bf16.msra.mxu0 %v16426_v16  ;;  %v368_v16 = vld [vmem:[%s24464_s1 + $0xa18] sm:$0xff]  ;;  %v16436_v46 = vpack.c.bf16 %v26613_v40, %v26612_v56  ;;  %v16440_v50 = vpack.c.bf16 %v26618_v3, %v26617_v19  ;;  %v26622_v56 = vand.u32 4294901760, %v22541_v53  ;;  %26625 = vst [vmem:[#allocation71_spill] sm:$0xff] %v22890_v17  ;;  %v9327_v19 = vand.u32 4294901760, %v367_v20  ;;  %v370_v53 = vld [vmem:[%s24464_s1 + $0xa28] sm:$0xff] }
 0x395   :  { %16429 = vmatprep.subr.bf16.mxu0 %v16428_v54  ;;  %v16438_v54 = vpack.c.bf16 %v26615_v43, %v26614_v26  ;;  %v26623_v26 = vand.u32 4294901760, %v22582_v33  ;;  %v26624_v43 = vand.u32 4294901760, %v22584_v55  ;;  %v9330_v60 = vand.u32 4294901760, %v368_v16  ;;  %v387_v33 = vld [vmem:[%s24464_s1 + $0xab0] sm:$0xff]  ;;  %v388_v55 = vld [vmem:[%s24464_s1 + $0xab8] sm:$0xff] }
 0x396   :  { %16199 = vmatpush3.bf16.msra.mxu1 %v26605_v44  ;;  %v22879_v40 = vpack.c.bf16 %v26622_v56, %v26621_v18  ;;  %v22903_v3 = vsub.f32 %v382_v52, %v9372_v11  ;;  %v372_v18 = vld [vmem:[%s24464_s1 + $0xa38] sm:$0xff]  ;;  %v26627_v56 = vld [vmem:[#allocation16_spill] sm:$0xff]  ;;  %v22918_v52 = vpack.c.bf16 %v9378_v48, %v9375_v37  ;;  %v9333_v11 = vand.u32 4294901760, %v369_v22 }
 0x397   :  { %16201 = vmatprep.subr.bf16.mxu1 %v26608_v62  ;;  %v22885_v24 = vpack.c.bf16 %v26624_v43, %v26623_v26  ;;  %v22914_v26 = vsub.f32 %v365_v29, %v9321_v47  ;;  %v26629_v43 = vld [vmem:[#allocation24_spill] sm:$0xff]  ;;  %v9336_v30 = vand.u32 4294901760, %v370_v53  ;;  %v9387_v14 = vand.u32 4294901760, %v387_v33  ;;  %v390_v29 = vld [vmem:[%s24464_s1 + $0xac8] sm:$0xff] }
 0x398   :  { %16431 = vmatpush3.bf16.msra.mxu0 %v16430_v49  ;;  %v385_v49 = vld [vmem:[%s24464_s1 + $0xaa0] sm:$0xff]  ;;  %26628 = vst [vmem:[#allocation39_spill] sm:$0xff] %v22918_v52  ;;  %v9390_v35 = vand.u32 4294901760, %v388_v55  ;;  %v9342_v7 = vand.u32 4294901760, %v372_v18  ;;  %v22935_v37 = vsub.f32 %v367_v20, %v9327_v19  ;;  %v22937_v57 = vsub.f32 %v368_v16, %v9330_v60  ;;  %v374_v20 = vld [vmem:[%s24464_s1 + $0xa48] sm:$0xff] }
 0x399   :  { %16433 = vmatprep.subr.bf16.mxu0 %v16432_v4  ;;  %v26620_v4 = vand.u32 4294901760, %v22494_v25  ;;  %v22892_v25 = vsub.f32 %v381_v36, %v9369_v59  ;;  %v9381_v36 = vand.u32 4294901760, %v385_v49  ;;  %v9384_v59 = vand.u32 4294901760, %v386_v45  ;;  %v17056_v16 = vld [vmem:[%s24463_s0 + $0x28] ss:$48 sps:$4 sm:$0xff]  }
 0x39a   :  { %16203 = vmatpush3.bf16.msra.mxu1 %v26611_v0  ;;  %v9396_v28 = vand.u32 4294901760, %v390_v29  ;;  %v22992_v51 = vsub.f32 %v372_v18, %v9342_v7 }
 0x39b   :  { %16205 = vmatprep.subr.bf16.mxu1 %v26616_v42  ;;  %v22873_v12 = vpack.c.bf16 %v26620_v4, %v26619_v41  ;;  %v22905_v41 = vpack.c.bf16 %v9324_v9, %v9321_v47  ;;  %v371_v4 = vld [vmem:[%s24464_s1 + $0xa30] sm:$0xff]  ;;  %v22929_v47 = vsub.f32 %v384_v38, %v9378_v48  ;;  %v22939_v63 = vpack.c.bf16 %v9384_v59, %v9381_v36 }
 0x39c   :  { %16435 = vmatpush3.bf16.msra.mxu0 %v16434_v27  ;;  %v22916_v27 = vsub.f32 %v366_v13, %v9324_v9  ;;  %v22931_v9 = vpack.c.bf16 %v9330_v60, %v9327_v19  ;;  %v22942_v5 = vsub.f32 %v385_v49, %v9381_v36  ;;  %v22944_v38 = vsub.f32 %v386_v45, %v9384_v59  ;;  %v391_v60 = vld [vmem:[%s24464_s1 + $0xad0] sm:$0xff]  ;;  %v17058_v36 = vld [vmem:[%s24463_s0 + $0x88] ss:$48 sps:$4 sm:$0xff]  }
 0x39d   :  { %26626 = vst [vmem:[#allocation23_spill] sm:$0xff] %v22905_v41  ;;  %16437 = vmatprep.subr.bf16.mxu0 %v16436_v46  ;;  %v9339_v46 = vand.u32 4294901760, %v371_v4  ;;  %26632 = vst [vmem:[#allocation67_spill] sm:$0xff] %v22939_v63  ;;  %v9393_v48 = vand.u32 4294901760, %v389_v39  ;;  %v22956_v49 = vpack.c.bf16 %v9336_v30, %v9333_v11  ;;  %v22958_v45 = vsub.f32 %v369_v22, %v9333_v11  ;;  %v376_v11 = vld [vmem:[%s24464_s1 + $0xa58] sm:$0xff] }
 0x39e   :  { %16207 = vmatpush3.bf16.msra.mxu1 %v26627_v56  ;;  %v13300_v21 = vpop.f32.mrb[38].mxu0  ;;  %26630 = vst [vmem:[#allocation79_spill] sm:$0xff] %v22931_v9  ;;  %v22962_v19 = vpack.c.bf16 %v9390_v35, %v9387_v14  ;;  %26642 = vst [vmem:[#allocation70_spill] sm:$0xff] %v22992_v51  ;;  %v377_v56 = vld [vmem:[%s24464_s1 + $0xa60] sm:$0xff]  ;;  %v378_v51 = vld [vmem:[%s24464_s1 + $0xa68] sm:$0xff] }
 0x39f   :  { %16209 = vmatprep.subr.bf16.mxu1 %v26629_v43  ;;  %v13301_v13 = vpop.f32.mrb[39].mxu0  ;;  %26635 = vst [vmem:[#allocation33_spill] sm:$0xff] %v22956_v49  ;;  %v22974_v61 = vpack.c.bf16 %v9342_v7, %v9339_v46  ;;  %v22976_v22 = vsub.f32 %v371_v4, %v9339_v46  ;;  %v26644_v43 = vld [vmem:[#allocation9_spill] sm:$0xff] }
 0x3a0   :  { %v22933_v32 = vadd.f32 %v13301_v13, %v13300_v21  ;;  %16439 = vmatpush3.bf16.msra.mxu0 %v16438_v54  ;;  %v373_v21 = vld [vmem:[%s24464_s1 + $0xa40] sm:$0xff]  ;;  %v26634_v54 = vld [vmem:[#allocation6_spill] sm:$0xff]  ;;  %26636 = vst [vmem:[#allocation34_spill] sm:$0xff] %v22962_v19  ;;  %v22970_v13 = vsub.f32 %v387_v33, %v9387_v14  ;;  %v9348_v33 = vand.u32 4294901760, %v374_v20 }
 0x3a1   :  { %16441 = vmatprep.subr.bf16.mxu0 %v16440_v50  ;;  %v22960_v50 = vsub.f32 %v370_v53, %v9336_v30  ;;  %26638 = vst [vmem:[#allocation42_spill] sm:$0xff] %v22974_v61  ;;  %26639 = vst [vmem:[#allocation35_spill] sm:$0xff] %v22976_v22  ;;  %v392_v30 = vld [vmem:[%s24464_s1 + $0xad8] sm:$0xff]  ;;  %v375_v53 = vld [vmem:[%s24464_s1 + $0xa50] sm:$0xff] }
 0x3a2   :  { %26631 = vst [vmem:[#allocation45_spill] sm:$0xff] %v22933_v32  ;;  %16211 = vmatpush3.bf16.msra.mxu1 %v26633_v34  ;;  %v22972_v32 = vsub.f32 %v388_v55, %v9390_v35  ;;  %v9345_v35 = vand.u32 4294901760, %v373_v21  ;;  %v26640_v55 = vld [vmem:[#allocation25_spill] sm:$0xff]  ;;  %v9399_v34 = vand.u32 4294901760, %v391_v60 }
 0x3a3   :  { %16213 = vmatprep.subr.bf16.mxu1 %v26634_v54  ;;  %v650_v4 = vrot.slane %v17056_v16, %v26640_v55  ;;  %v664_v46 = vrot.slane %v17058_v36, %v26640_v55  ;;  %v22994_v54 = vpack.c.bf16 %v9396_v28, %v9393_v48  ;;  %v394_v16 = vld [vmem:[%s24464_s1 + $0xae8] sm:$0xff]  ;;  %v9402_v36 = vand.u32 4294901760, %v392_v30 }
 0x3a4   :  { %v13055_v59 = vpop.f32.mrb[42].mxu1  ;;  %26637 = vst [vmem:[#allocation36_spill] sm:$0xff] %v22972_v32  ;;  %16443 = vmatpush3.bf16.msra.mxu0 %v22873_v12  ;;  %v393_v12 = vld [vmem:[%s24464_s1 + $0xae0] sm:$0xff]  ;;  %v23015_v22 = vpack.c.bf16 %v9348_v33, %v9345_v35  ;;  %v23017_v32 = vsub.f32 %v373_v21, %v9345_v35  ;;  %v9357_v35 = vand.u32 4294901760, %v377_v56 }
 0x3a5   :  { %v13056_v14 = vpop.f32.mrb[43].mxu1  ;;  %16445 = vmatprep.subr.bf16.mxu0 %v22879_v40  ;;  %26643 = vst [vmem:[#allocation37_spill] sm:$0xff] %v22994_v54  ;;  %v673_v55 = vcombine.high %v650_v4, %v664_v46  ;;  %v23004_v40 = vsub.f32 %v389_v39, %v9393_v48  ;;  %v9405_v18 = vand.u32 4294901760, %v393_v12  ;;  %v26648_v48 = vld [vmem:[#allocation52_spill] sm:$0xff]  ;;  %v9360_v39 = vand.u32 4294901760, %v378_v51 }
 0x3a6   :  { %v13057_v23 = vadd.f32 %v13056_v14, %v13055_v59  ;;  %16215 = vmatpush3.bf16.msra.mxu1 %v26641_v6  ;;  %v9351_v59 = vand.u32 4294901760, %v375_v53  ;;  %v9354_v14 = vand.u32 4294901760, %v376_v11  ;;  %v9408_v6 = vand.u32 4294901760, %v394_v16  ;;  %26646 = vst [vmem:[#allocation18_spill] sm:$0xff] %v23015_v22 }
 0x3a7   :  { %16217 = vmatprep.subr.bf16.mxu1 %v26644_v43  ;;  %26645 = vst [vmem:[#allocation40_spill] sm:$0xff] %v23004_v40  ;;  %v23013_v43 = vsub.f32 %v390_v29, %v9396_v28  ;;  %v23025_v40 = vsub.f32 %v374_v20, %v9348_v33  ;;  %v26650_v28 = vld [vmem:[#allocation41_spill] sm:$0xff]  ;;  %v23031_v29 = vpack.c.bf16 %v9402_v36, %v9399_v34 }
 0x3a8   :  { %v6213_v7 = vadd.f32 %v13057_v23, %v22778_v1  ;;  %16447 = vmatpush3.bf16.msra.mxu0 %v22885_v24  ;;  %v26647_v1 = vld [vmem:[#allocation73_spill] sm:$0xff]  ;;  %v23028_v24 = vand.u32 4294901760, %v673_v55  ;;  %v23033_v21 = vpack.c.bf16 %v9354_v14, %v9351_v59  ;;  %v23040_v20 = vpack.c.bf16 %v9408_v6, %v9405_v18 }
 0x3a9   :  { %16481 = vmatprep.subr.bf16.mxu0 %v22890_v17  ;;  %26651 = vst [vmem:[#allocation44_spill] sm:$0xff] %v23031_v29  ;;  %v23042_v33 = vcombine.low %v650_v4, %v664_v46  ;;  %v23045_v42 = vsub.f32 %v375_v53, %v9351_v59  ;;  %v23047_v17 = vsub.f32 %v376_v11, %v9354_v14  ;;  %v396_v53 = vld [vmem:[%s24464_s1 + $0xaf8] sm:$0xff]  ;;  %v23066_v11 = vld [vmem:[%s24464_s1 + $0xa70] sm:$0xff]  ;;  %v26656_v46 = vand.u32 4294901760, %v22903_v3  ;;  %v26659_v59 = vld [vmem:[#allocation48_spill] sm:$0xff] }
 0x3aa   :  { %v23021_v23 = vadd.f32 %v26647_v1, %v6213_v7  ;;  %16219 = vmatpush3.bf16.msra.mxu1 %v26648_v48  ;;  %26649 = vst [vmem:[#allocation12_spill] sm:$0xff] %v23028_v24  ;;  %26652 = vst [vmem:[#allocation55_spill] sm:$0xff] %v23033_v21  ;;  %v23036_v7 = vsub.f32 %v391_v60, %v9399_v34  ;;  %v23038_v1 = vsub.f32 %v392_v30, %v9402_v36  ;;  %v26655_v30 = vld [vmem:[#allocation14_spill] sm:$0xff] }
 0x3ab   :  { %16221 = vmatprep.subr.bf16.mxu1 %v26650_v28  ;;  %9211 = vmatmul.mubr.f32.vlgmr.msra.gmra.mrb[52].mxu0 %v22534_v15  ;;  %26653 = vst [vmem:[#allocation38_spill] sm:$0xff] %v23040_v20  ;;  %v395_v28 = vld [vmem:[%s24464_s1 + $0xaf0] sm:$0xff]  ;;  %v26654_v15 = vand.u32 4294901760, %v22892_v25  ;;  %v23058_v4 = vsub.f32 %v393_v12, %v9405_v18  ;;  %v23072_v36 = vsub.f32 %v673_v55, %v23028_v24 }
 0x3ac   :  { %16483 = vmatpush3.bf16.msra.mxu0 %v22905_v41  ;;  %v23076_v12 = vsub.f32 %v394_v16, %v9408_v6  ;;  %v23078_v14 = vpack.c.bf16 %v9360_v39, %v9357_v35  ;;  %v23080_v18 = vsub.f32 %v377_v56, %v9357_v35  ;;  %v23082_v60 = vsub.f32 %v378_v51, %v9360_v39 }
 0x3ad   :  { %v9548_v34 = vsub.f32 %v22892_v25, %v26654_v15  ;;  %16485 = vmatprep.subr.bf16.mxu0 %v22918_v52  ;;  %v9555_v15 = vsub.f32 %v22903_v3, %v26656_v46  ;;  %26657 = vst [vmem:[#allocation7_spill] sm:$0xff] %v23072_v36  ;;  %v380_v52 = vld [vmem:[%s24464_s1 + $0xa78] sm:$0xff]  ;;  %v9411_v46 = vand.u32 4294901760, %v395_v28  ;;  %v25182_v24 = vand.u32 4294901760, %v23072_v36 }
 0x3ae   :  { %16223 = vmatpush3.bf16.msra.mxu1 %v26655_v30  ;;  %26658 = vst [vmem:[#allocation76_spill] sm:$0xff] %v23078_v14  ;;  %v26660_v30 = vand.u32 4294901760, %v26659_v59  ;;  %v9414_v6 = vand.u32 4294901760, %v396_v53  ;;  %v26661_v51 = vand.u32 4294901760, %v22914_v26  ;;  %v26662_v16 = vand.u32 4294901760, %v22916_v27 }
 0x3af   :  { %16257 = vmatprep.subr.bf16.mxu1 %v26591_v10  ;;  %v9549_v41 = vand.u32 4294901760, %v9548_v34  ;;  %v9556_v55 = vand.u32 4294901760, %v9555_v15  ;;  %v9363_v10 = vand.u32 4294901760, %v23066_v11  ;;  %v9366_v35 = vand.u32 4294901760, %v380_v52 }
 0x3b0   :  { %16487 = vmatpush3.bf16.msra.mxu0 %v22931_v9  ;;  %v9436_v56 = vsub.f32 %v22914_v26, %v26661_v51  ;;  %v9443_v39 = vsub.f32 %v22916_v27, %v26662_v16  ;;  %v25186_v15 = vand.u32 4294901760, %v22921_v8  ;;  %v23108_v59 = vsub.f32 %v395_v28, %v9411_v46 }
 0x3b1   :  { %8181 = vmatmul.mubr.f32.vlgmr.msra.gmra.mrb[56].mxu1 %v26660_v30  ;;  %v23100_v34 = vpack.c.bf16 %v9556_v55, %v9549_v41  ;;  %v9419_v30 = vsub.f32 %v23072_v36, %v25182_v24  ;;  %16489 = vmatprep.subr.bf16.mxu0 %v22939_v63  ;;  %v25187_v55 = vand.u32 4294901760, %v22935_v37  ;;  %v25188_v24 = vand.u32 4294901760, %v22937_v57 }
 0x3b2   :  { %16259 = vmatpush3.bf16.msra.mxu1 %v26597_v58  ;;  %8451 = vmatprep.mubr.f32.mxu1 %v26563_v31  ;;  %v9437_v51 = vand.u32 4294901760, %v9436_v56  ;;  %v9444_v16 = vand.u32 4294901760, %v9443_v39  ;;  %v25185_v58 = vand.u32 4294901760, %v22929_v47  ;;  %v9562_v41 = vsub.f32 %v22921_v8, %v25186_v15 }
 0x3b3   :  { %26663 = vst [vmem:[#allocation8_spill] sm:$0xff] %v23100_v34  ;;  %16261 = vmatprep.subr.bf16.mxu1 %v26602_v2  ;;  %v9420_v31 = vand.u32 4294901760, %v9419_v30  ;;  %v23117_v2 = vpack.c.bf16 %v9414_v6, %v9411_v46  ;;  %v23122_v28 = vand.u32 4294901760, %v23042_v33  ;;  %v23129_v39 = vsub.f32 %v396_v53, %v9414_v6  ;;  %v26782_v34 = vld [vmem:[#allocation28_spill] sm:$0xff] }
 0x3b4   :  { %16491 = vmatpush3.bf16.msra.mxu0 %v22956_v49  ;;  %v23119_v63 = vpack.c.bf16 %v9444_v16, %v9437_v51  ;;  %v9569_v56 = vsub.f32 %v22929_v47, %v25185_v58  ;;  %v9563_v30 = vand.u32 4294901760, %v9562_v41  ;;  %v9450_v46 = vsub.f32 %v22935_v37, %v25187_v55 }
 0x3b5   :  { %26664 = vst [vmem:[#allocation47_spill] sm:$0xff] %v23117_v2  ;;  %26666 = vst [vmem:[#allocation81_spill] sm:$0xff] %v23122_v28  ;;  %16493 = vmatprep.subr.bf16.mxu0 %v22962_v19  ;;  %v9457_v51 = vsub.f32 %v22937_v57, %v25188_v24  ;;  %v23138_v16 = vpack.c.bf16 %v9366_v35, %v9363_v10  ;;  %9421 = vmatprep.mubr.f32.mxu0 %v9420_v31  ;;  %v25189_v53 = vand.u32 4294901760, %v22944_v38 }
 0x3b6   :  { %26665 = vst [vmem:[#allocation77_spill] sm:$0xff] %v23119_v63  ;;  %16263 = vmatpush3.bf16.msra.mxu1 %v26605_v44  ;;  %v9570_v58 = vand.u32 4294901760, %v9569_v56  ;;  %v25190_v44 = vand.u32 4294901760, %v22942_v5  ;;  %v9451_v6 = vand.u32 4294901760, %v9450_v46  ;;  %v25193_v15 = vand.u32 4294901760, %v22958_v45 }
 0x3b7   :  { %16265 = vmatprep.subr.bf16.mxu1 %v26608_v62  ;;  %26667 = vst [vmem:[#allocation13_spill] sm:$0xff] %v23138_v16  ;;  %v9458_v41 = vand.u32 4294901760, %v9457_v51  ;;  %v25198_v55 = vand.u32 4294901760, %v22960_v50  ;;  %v23147_v24 = vsub.f32 %v23042_v33, %v23122_v28  ;;  %v9583_v56 = vsub.f32 %v22944_v38, %v25189_v53  ;;  %v26671_v51 = vld [vmem:[#allocation17_spill] sm:$0xff] }
 0x3b8   :  { %16495 = vmatpush3.bf16.msra.mxu0 %v22974_v61  ;;  %v23149_v62 = vpack.c.bf16 %v9570_v58, %v9563_v30  ;;  %v9576_v31 = vsub.f32 %v22942_v5, %v25190_v44  ;;  %v9464_v33 = vsub.f32 %v22958_v45, %v25193_v15  ;;  %v25199_v30 = vand.u32 4294901760, %v22970_v13  ;;  %v26672_v61 = vld [vmem:[#allocation36_spill] sm:$0xff] }
 0x3b9   :  { %26668 = vst [vmem:[#allocation73_spill] sm:$0xff] %v23147_v24  ;;  %16497 = vmatprep.subr.bf16.mxu0 %v22994_v54  ;;  %v23159_v46 = vpack.c.bf16 %v9458_v41, %v9451_v6  ;;  %v9471_v58 = vsub.f32 %v22960_v50, %v25198_v55  ;;  %v23170_v53 = vsub.f32 %v23066_v11, %v9363_v10  ;;  %v9584_v6 = vand.u32 4294901760, %v9583_v56  ;;  %v26674_v11 = vld [vmem:[#allocation35_spill] sm:$0xff]  ;;  %v26675_v10 = vld [vmem:[#allocation70_spill] sm:$0xff] }
 0x3ba   :  { %26669 = vst [vmem:[#allocation52_spill] sm:$0xff] %v23149_v62  ;;  %16267 = vmatpush3.bf16.msra.mxu1 %v26611_v0  ;;  %v23172_v0 = vsub.f32 %v380_v52, %v9366_v35  ;;  %v9577_v44 = vand.u32 4294901760, %v9576_v31  ;;  %v9465_v41 = vand.u32 4294901760, %v9464_v33  ;;  %v9590_v15 = vsub.f32 %v22970_v13, %v25199_v30  ;;  %v26676_v31 = vld [vmem:[#allocation16_spill] sm:$0xff] }
 0x3bb   :  { %26670 = vst [vmem:[#allocation48_spill] sm:$0xff] %v23159_v46  ;;  %16269 = vmatprep.subr.bf16.mxu1 %v26671_v51  ;;  %v9472_v54 = vand.u32 4294901760, %v9471_v58  ;;  %v25204_v19 = vand.u32 4294901760, %v26672_v61  ;;  %v25207_v52 = vand.u32 4294901760, %v26674_v11  ;;  %v25210_v35 = vand.u32 4294901760, %v26675_v10  ;;  %v26678_v51 = vld [vmem:[#allocation24_spill] sm:$0xff] }
 0x3bc   :  { %16499 = vmatpush3.bf16.msra.mxu0 %v23015_v22  ;;  %v23181_v55 = vpack.c.bf16 %v9584_v6, %v9577_v44  ;;  %v9591_v58 = vand.u32 4294901760, %v9590_v15  ;;  %v25215_v22 = vand.u32 4294901760, %v23017_v32  ;;  %v26774_v46 = vld [vmem:[#allocation66_spill] sm:$0xff] }
 0x3bd   :  { %16501 = vmatprep.subr.bf16.mxu0 %v23031_v29  ;;  %v23188_v33 = vpack.c.bf16 %v9472_v54, %v9465_v41  ;;  %v9597_v30 = vsub.f32 %v26672_v61, %v25204_v19  ;;  %v9478_v6 = vsub.f32 %v26674_v11, %v25207_v52  ;;  %v26679_v29 = vld [vmem:[#allocation40_spill] sm:$0xff]  ;;  %v25212_v54 = vand.u32 4294901760, %v23013_v43 }
 0x3be   :  { %26673 = vst [vmem:[#allocation17_spill] sm:$0xff] %v23181_v55  ;;  %16271 = vmatpush3.bf16.msra.mxu1 %v26676_v31  ;;  %v13370_v44 = vpop.f32.mrb[40].mxu0  ;;  %v9485_v31 = vsub.f32 %v26675_v10, %v25210_v35  ;;  %v25211_v56 = vand.u32 4294901760, %v26679_v29  ;;  %v25218_v19 = vand.u32 4294901760, %v23025_v40 }
 0x3bf   :  { %26677 = vst [vmem:[#allocation36_spill] sm:$0xff] %v23188_v33  ;;  %16273 = vmatprep.subr.bf16.mxu1 %v26678_v51  ;;  %v13371_v15 = vpop.f32.mrb[41].mxu0  ;;  %v9598_v41 = vand.u32 4294901760, %v9597_v30  ;;  %v9479_v52 = vand.u32 4294901760, %v9478_v6  ;;  %v26681_v33 = vld [vmem:[#allocation31_spill] sm:$0xff]  ;;  %v9611_v51 = vsub.f32 %v23013_v43, %v25212_v54  ;;  %v26685_v54 = vand.u32 4294901760, %v23147_v24 }
 0x3c0   :  { %v23205_v49 = vadd.f32 %v13371_v15, %v13370_v44  ;;  %16503 = vmatpush3.bf16.msra.mxu0 %v23033_v21  ;;  %v9486_v9 = vand.u32 4294901760, %v9485_v31  ;;  %v9604_v35 = vsub.f32 %v26679_v29, %v25211_v56  ;;  %v9492_v44 = vsub.f32 %v23017_v32, %v25215_v22  ;;  %v26683_v31 = vld [vmem:[#allocation6_spill] sm:$0xff] }
 0x3c1   :  { %16505 = vmatprep.subr.bf16.mxu0 %v23040_v20  ;;  %v23213_v30 = vpack.c.bf16 %v9598_v41, %v9591_v58  ;;  %v16546_v15 = vpack.c.bf16 %v22916_v27, %v22914_v26  ;;  %v9499_v58 = vsub.f32 %v23025_v40, %v25218_v19  ;;  %v9425_v20 = vsub.f32 %v23147_v24, %v26685_v54  ;;  %v26688_v54 = vld [vmem:[#allocation58_spill] sm:$0xff] }
 0x3c2   :  { %26680 = vst [vmem:[#allocation35_spill] sm:$0xff] %v23205_v49  ;;  %16275 = vmatpush3.bf16.msra.mxu1 %v26681_v33  ;;  %v23225_v33 = vpack.c.bf16 %v9486_v9, %v9479_v52  ;;  %v9605_v56 = vand.u32 4294901760, %v9604_v35  ;;  %v9612_v22 = vand.u32 4294901760, %v9611_v51  ;;  %v9493_v21 = vand.u32 4294901760, %v9492_v44 }
 0x3c3   :  { %26682 = vst [vmem:[#allocation70_spill] sm:$0xff] %v23213_v30  ;;  %16277 = vmatprep.subr.bf16.mxu1 %v26683_v31  ;;  %v26686_v6 = vand.u32 4294901760, %v23036_v7  ;;  %v9500_v9 = vand.u32 4294901760, %v9499_v58  ;;  %v26687_v52 = vand.u32 4294901760, %v23038_v1  ;;  %v25223_v19 = vand.u32 4294901760, %v23045_v42  ;;  %v26690_v58 = vld [vmem:[#allocation9_spill] sm:$0xff] }
 0x3c4   :  { %26684 = vst [vmem:[#allocation16_spill] sm:$0xff] %v23225_v33  ;;  %v13125_v41 = vpop.f32.mrb[44].mxu1  ;;  %16507 = vmatpush3.bf16.msra.mxu0 %v23078_v14  ;;  %v16548_v51 = vpack.c.bf16 %v22929_v47, %v22921_v8  ;;  %v23246_v44 = vpack.c.bf16 %v9612_v22, %v9605_v56  ;;  %v25228_v22 = vand.u32 4294901760, %v23058_v4  ;;  %v25224_v56 = vand.u32 4294901760, %v23076_v12 }
 0x3c5   :  { %v9618_v31 = vsub.f32 %v23036_v7, %v26686_v6  ;;  %v13126_v30 = vpop.f32.mrb[45].mxu1  ;;  %v9625_v35 = vsub.f32 %v23038_v1, %v26687_v52  ;;  %16509 = vmatprep.subr.bf16.mxu0 %v23117_v2  ;;  %v23249_v14 = vpack.c.bf16 %v9500_v9, %v9493_v21  ;;  %v9506_v33 = vsub.f32 %v23045_v42, %v25223_v19 }
 0x3c6   :  { %v13127_v55 = vadd.f32 %v13126_v30, %v13125_v41  ;;  %16279 = vmatpush3.bf16.msra.mxu1 %v26688_v54  ;;  %26689 = vst [vmem:[#allocation24_spill] sm:$0xff] %v23246_v44  ;;  %v26692_v30 = vand.u32 4294901760, %v23047_v17  ;;  %v9426_v2 = vand.u32 4294901760, %v9425_v20  ;;  %v9632_v20 = vsub.f32 %v23058_v4, %v25228_v22 }
 0x3c7   :  { %v9619_v6 = vand.u32 4294901760, %v9618_v31  ;;  %16281 = vmatprep.subr.bf16.mxu1 %v26690_v58  ;;  %26691 = vst [vmem:[#allocation40_spill] sm:$0xff] %v23249_v14  ;;  %v9626_v52 = vand.u32 4294901760, %v9625_v35  ;;  %v9507_v31 = vand.u32 4294901760, %v9506_v33  ;;  %v25225_v35 = vand.u32 4294901760, %v23080_v18  ;;  %v26694_v58 = vld [vmem:[#allocation62_spill] sm:$0xff] }
 0x3c8   :  { %v9513_v41 = vsub.f32 %v23047_v17, %v26692_v30  ;;  %v6459_v54 = vadd.f32 %v13127_v55, %v23021_v23  ;;  %16511 = vmatpush3.bf16.msra.mxu0 %v23138_v16  ;;  %v26695_v23 = vpack.c.bf16 %v22903_v3, %v22892_v25  ;;  %v9639_v55 = vsub.f32 %v23076_v12, %v25224_v56  ;;  %v26703_v16 = vld [vmem:[#allocation43_spill] sm:$0xff] }
 0x3c9   :  { %v23261_v21 = vpack.c.bf16 %v9626_v52, %v9619_v6  ;;  %v25226_v33 = vand.u32 4294901760, %v23082_v60  ;;  %v26696_v6 = vld [vmem:[#allocation41_spill] sm:$0xff]  ;;  %v16550_v52 = vpack.c.bf16 %v22937_v57, %v22935_v37  ;;  %v9520_v30 = vsub.f32 %v23080_v18, %v25225_v35  ;;  %v26698_v35 = vld [vmem:[#allocation14_spill] sm:$0xff] }
 0x3ca   :  { %v9514_v9 = vand.u32 4294901760, %v9513_v41  ;;  %v23265_v19 = vadd.f32 %v26694_v58, %v6459_v54  ;;  %16283 = vmatpush3.bf16.msra.mxu1 %v26648_v48  ;;  %16545 = vmatprep.subr.bf16.mxu0 %v26695_v23  ;;  %v9633_v41 = vand.u32 4294901760, %v9632_v20  ;;  %v9640_v54 = vand.u32 4294901760, %v9639_v55 }
 0x3cb   :  { %26693 = vst [vmem:[#allocation31_spill] sm:$0xff] %v23261_v21  ;;  %16285 = vmatprep.subr.bf16.mxu1 %v26696_v6  ;;  %9427 = vmatmul.mubr.f32.vlgmr.msra.gmra.mrb[54].mxu0 %v9426_v2  ;;  %v9527_v58 = vsub.f32 %v23082_v60, %v25226_v33  ;;  %v25227_v23 = vand.u32 4294901760, %v23108_v59  ;;  %v9521_v6 = vand.u32 4294901760, %v9520_v30  ;;  %v25229_v56 = vand.u32 4294901760, %v23129_v39 }
 0x3cc   :  { %v23281_v48 = vpack.c.bf16 %v9514_v9, %v9507_v31  ;;  %16547 = vmatpush3.bf16.msra.mxu0 %v16546_v15  ;;  %v25233_v31 = vand.u32 4294901760, %v23170_v53  ;;  %v25234_v9 = vand.u32 4294901760, %v23172_v0  ;;  %9794 = vmatprep.mubr.f32.mxu0 %v23072_v36  ;;  %v23295_v2 = vpack.c.bf16 %v9640_v54, %v9633_v41  ;;  %v26700_v15 = vld [vmem:[#allocation72_spill] sm:$0xff] }
 0x3cd   :  { %16549 = vmatprep.subr.bf16.mxu0 %v16548_v51  ;;  %v9528_v20 = vand.u32 4294901760, %v9527_v58  ;;  %v9646_v55 = vsub.f32 %v23108_v59, %v25227_v23  ;;  %v16552_v30 = vpack.c.bf16 %v22944_v38, %v22942_v5  ;;  %v9653_v33 = vsub.f32 %v23129_v39, %v25229_v56  ;;  %v26702_v58 = vld [vmem:[#allocation82_spill] sm:$0xff]  ;;  %v26704_v36 = vld [vmem:[#allocation20_spill] sm:$0xff] }
 0x3ce   :  { %26697 = vst [vmem:[#allocation6_spill] sm:$0xff] %v23281_v48  ;;  %16287 = vmatpush3.bf16.msra.mxu1 %v26698_v35  ;;  %26699 = vst [vmem:[#allocation58_spill] sm:$0xff] %v23295_v2  ;;  %v9534_v51 = vsub.f32 %v23170_v53, %v25233_v31  ;;  %v9541_v35 = vsub.f32 %v23172_v0, %v25234_v9  ;;  %v16556_v31 = vpack.c.bf16 %v26672_v61, %v22970_v13  ;;  %v26705_v9 = vld [vmem:[#allocation46_spill] sm:$0xff]  ;;  %v421_v48 = vld [vmem:[%s24464_s1 + $0xbc0] sm:$0xff] }
 0x3cf   :  { %16321 = vmatprep.subr.bf16.mxu1 %v26700_v15  ;;  %v23312_v41 = vpack.c.bf16 %v9528_v20, %v9521_v6  ;;  %v9647_v54 = vand.u32 4294901760, %v9646_v55  ;;  %v16554_v15 = vpack.c.bf16 %v22960_v50, %v22958_v45  ;;  %v9654_v23 = vand.u32 4294901760, %v9653_v33  ;;  %v26709_v55 = vld [vmem:[#allocation56_spill] sm:$0xff] }
 0x3d0   :  { %16551 = vmatpush3.bf16.msra.mxu0 %v16550_v52  ;;  %v9535_v22 = vand.u32 4294901760, %v9534_v51  ;;  %v9542_v56 = vand.u32 4294901760, %v9541_v35  ;;  %v16558_v33 = vpack.c.bf16 %v26675_v10, %v26674_v11  ;;  %v26708_v52 = vld [vmem:[#allocation80_spill] sm:$0xff]  ;;  %v16568_v51 = vpack.c.bf16 %v23076_v12, %v23058_v4  ;;  %v26713_v35 = vld [vmem:[#allocation57_spill] sm:$0xff] }
 0x3d1   :  { %26701 = vst [vmem:[#allocation9_spill] sm:$0xff] %v23312_v41  ;;  %8453 = vmatmul.mubr.f32.vlgmr.msra.gmra.mrb[58].mxu1 %v26702_v58  ;;  %16553 = vmatprep.subr.bf16.mxu0 %v16552_v30  ;;  %v23322_v6 = vpack.c.bf16 %v9654_v23, %v9647_v54  ;;  %v26710_v23 = vld [vmem:[#allocation63_spill] sm:$0xff]  ;;  %v26712_v30 = vld [vmem:[#allocation22_spill] sm:$0xff] }
 0x3d2   :  { %16323 = vmatpush3.bf16.msra.mxu1 %v26703_v16  ;;  %8795 = vmatprep.mubr.f32.mxu1 %v26704_v36  ;;  %v23324_v20 = vpack.c.bf16 %v9542_v56, %v9535_v22  ;;  %v16560_v16 = vpack.c.bf16 %v23013_v43, %v26679_v29  ;;  %v16564_v22 = vpack.c.bf16 %v23038_v1, %v23036_v7  ;;  %v26711_v56 = vld [vmem:[#allocation27_spill] sm:$0xff] }
 0x3d3   :  { %16325 = vmatprep.subr.bf16.mxu1 %v26705_v9  ;;  %26706 = vst [vmem:[#allocation62_spill] sm:$0xff] %v23322_v6  ;;  %v16562_v9 = vpack.c.bf16 %v23025_v40, %v23017_v32 }
 0x3d4   :  { %26707 = vst [vmem:[#allocation41_spill] sm:$0xff] %v23324_v20  ;;  %16555 = vmatpush3.bf16.msra.mxu0 %v16554_v15  ;;  %v26723_v20 = vld [vmem:[#allocation53_spill] sm:$0xff] }
 0x3d5   :  { %16557 = vmatprep.subr.bf16.mxu0 %v16556_v31  ;;  %v16566_v31 = vpack.c.bf16 %v23047_v17, %v23045_v42 }
 0x3d6   :  { %16327 = vmatpush3.bf16.msra.mxu1 %v26708_v52  ;;  %v26715_v52 = vld [vmem:[#allocation65_spill] sm:$0xff] }
 0x3d7   :  { %16329 = vmatprep.subr.bf16.mxu1 %v26709_v55  ;;  %v26716_v55 = vld [vmem:[#allocation26_spill] sm:$0xff] }
 0x3d8   :  { %16559 = vmatpush3.bf16.msra.mxu0 %v16558_v33  ;;  %v16570_v33 = vpack.c.bf16 %v23082_v60, %v23080_v18 }
 0x3d9   :  { %16561 = vmatprep.subr.bf16.mxu0 %v16560_v16  ;;  %v16572_v16 = vpack.c.bf16 %v23129_v39, %v23108_v59 }
 0x3da   :  { %16331 = vmatpush3.bf16.msra.mxu1 %v26710_v23 }
 0x3db   :  { %16333 = vmatprep.subr.bf16.mxu1 %v26711_v56 }
 0x3dc   :  { %16563 = vmatpush3.bf16.msra.mxu0 %v16562_v9 }
 0x3dd   :  { %16565 = vmatprep.subr.bf16.mxu0 %v16564_v22  ;;  %v16574_v22 = vpack.c.bf16 %v23172_v0, %v23170_v53 }
 0x3de   :  { %16335 = vmatpush3.bf16.msra.mxu1 %v26712_v30  ;;  %v13440_v54 = vpop.f32.mrb[42].mxu0  ;;  %v26717_v30 = vld [vmem:[#allocation5_spill] sm:$0xff] }
 0x3df   :  { %16337 = vmatprep.subr.bf16.mxu1 %v26713_v35  ;;  %v13441_v58 = vpop.f32.mrb[43].mxu0  ;;  %v26719_v35 = vand.u32 4294901760, %v22903_v3  ;;  %v26726_v3 = vand.u32 4294901760, %v22929_v47  ;;  %v26734_v47 = vand.u32 4294901760, %v22944_v38  ;;  %v26743_v38 = vld [vmem:[#allocation61_spill] sm:$0xff] }
 0x3e0   :  { %v23344_v15 = vadd.f32 %v13441_v58, %v13440_v54  ;;  %16567 = vmatpush3.bf16.msra.mxu0 %v16566_v31  ;;  %v26718_v31 = vand.u32 4294901760, %v22892_v25  ;;  %v26720_v54 = vld [vmem:[#allocation15_spill] sm:$0xff]  ;;  %v26725_v25 = vand.u32 4294901760, %v22921_v8  ;;  %v26733_v8 = vand.u32 4294901760, %v22942_v5 }
 0x3e1   :  { %16569 = vmatprep.subr.bf16.mxu0 %v16568_v51  ;;  %v26742_v5 = vand.u32 4294901760, %v26672_v61  ;;  %v26747_v61 = vand.u32 4294901760, %v26679_v29  ;;  %v416_v29 = vld [vmem:[%s24464_s1 + $0xb98] sm:$0xff] }
 0x3e2   :  { %26714 = vst [vmem:[#allocation14_spill] sm:$0xff] %v23344_v15  ;;  %16339 = vmatpush3.bf16.msra.mxu1 %v26715_v52  ;;  %v16608_v51 = vpack.c.bf16 %v26719_v35, %v26718_v31  ;;  %v26721_v52 = vand.u32 4294901760, %v22914_v26  ;;  %v26728_v26 = vand.u32 4294901760, %v22935_v37  ;;  %v16616_v31 = vpack.c.bf16 %v26734_v47, %v26733_v8  ;;  %v26735_v35 = vld [vmem:[#allocation78_spill] sm:$0xff] }
 0x3e3   :  { %16341 = vmatprep.subr.bf16.mxu1 %v26716_v55  ;;  %v26736_v37 = vand.u32 4294901760, %v22958_v45  ;;  %v26745_v45 = vand.u32 4294901760, %v26675_v10  ;;  %v398_v10 = vld [vmem:[%s24464_s1 + $0xb08] sm:$0xff]  ;;  %v26751_v8 = vand.u32 4294901760, %v23025_v40  ;;  %v26755_v40 = vand.u32 4294901760, %v23045_v42 }
 0x3e4   :  { %v13195_v9 = vpop.f32.mrb[46].mxu1  ;;  %16571 = vmatpush3.bf16.msra.mxu0 %v16570_v33  ;;  %v26722_v33 = vand.u32 4294901760, %v22916_v27  ;;  %v26729_v27 = vand.u32 4294901760, %v22937_v57  ;;  %v26737_v57 = vand.u32 4294901760, %v22960_v50 }
 0x3e5   :  { %v13196_v23 = vpop.f32.mrb[47].mxu1  ;;  %16573 = vmatprep.subr.bf16.mxu0 %v16572_v16  ;;  %v16612_v16 = vpack.c.bf16 %v26726_v3, %v26725_v25  ;;  %v413_v25 = vld [vmem:[%s24464_s1 + $0xb80] sm:$0xff]  ;;  %v26746_v3 = vld [vmem:[#allocation74_spill] sm:$0xff] }
 0x3e6   :  { %v13197_v56 = vadd.f32 %v13196_v23, %v13195_v9  ;;  %16343 = vmatpush3.bf16.msra.mxu1 %v26717_v30  ;;  %v16610_v55 = vpack.c.bf16 %v26722_v33, %v26721_v52  ;;  %v26724_v23 = vld [vmem:[#allocation50_spill] sm:$0xff]  ;;  %v26727_v30 = vld [vmem:[#allocation21_spill] sm:$0xff]  ;;  %v26741_v33 = vand.u32 4294901760, %v22970_v13 }
 0x3e7   :  { %16345 = vmatprep.subr.bf16.mxu1 %v26720_v54  ;;  %v26738_v54 = vld [vmem:[#allocation11_spill] sm:$0xff]  ;;  %v414_v13 = vld [vmem:[%s24464_s1 + $0xb88] sm:$0xff] }
 0x3e8   :  { %v6731_v58 = vadd.f32 %v13197_v56, %v23265_v19  ;;  %16575 = vmatpush3.bf16.msra.mxu0 %v16574_v22  ;;  %v16614_v19 = vpack.c.bf16 %v26729_v27, %v26728_v26  ;;  %v26731_v22 = vld [vmem:[#allocation51_spill] sm:$0xff]  ;;  %v26732_v56 = vld [vmem:[#allocation29_spill] sm:$0xff]  ;;  %v26749_v26 = vld [vmem:[#allocation10_spill] sm:$0xff] }
 0x3e9   :  { %16609 = vmatprep.subr.bf16.mxu0 %v16608_v51  ;;  %v16618_v51 = vpack.c.bf16 %v26737_v57, %v26736_v37  ;;  %v415_v27 = vld [vmem:[%s24464_s1 + $0xb90] sm:$0xff]  ;;  %v10186_v37 = vand.u32 4294901760, %v398_v10 }
 0x3ea   :  { %v23366_v9 = vadd.f32 %v26723_v20, %v6731_v58  ;;  %16347 = vmatpush3.bf16.msra.mxu1 %v26724_v23  ;;  %v26730_v20 = vld [vmem:[#allocation12_spill] sm:$0xff]  ;;  %v26739_v58 = vld [vmem:[#allocation49_spill] sm:$0xff]  ;;  %v26744_v23 = vand.u32 4294901760, %v26674_v11  ;;  %v399_v57 = vld [vmem:[%s24464_s1 + $0xb10] sm:$0xff] }
 0x3eb   :  { %16349 = vmatprep.subr.bf16.mxu1 %v26727_v30  ;;  %9797 = vmatmul.mubr.f32.vlgmr.msra.gmra.mrb[56].mxu0 %v23147_v24  ;;  %v26740_v52 = vand.u32 4294901760, %v26739_v58  ;;  %v397_v11 = vld [vmem:[%s24464_s1 + $0xb00] sm:$0xff]  ;;  %v26752_v58 = vld [vmem:[#allocation54_spill] sm:$0xff] }
 0x3ec   :  { %16611 = vmatpush3.bf16.msra.mxu0 %v16610_v55  ;;  %10071 = vmatprep.mubr.f32.mxu0 %v26730_v20  ;;  %v16620_v55 = vpack.c.bf16 %v26742_v5, %v26741_v33  ;;  %v16622_v50 = vpack.c.bf16 %v26745_v45, %v26744_v23  ;;  %v26756_v5 = vand.u32 4294901760, %v23047_v17  ;;  %v10237_v23 = vand.u32 4294901760, %v415_v27 }
 0x3ed   :  { %16613 = vmatprep.subr.bf16.mxu0 %v16612_v16  ;;  %v26748_v16 = vand.u32 4294901760, %v23013_v43  ;;  %v10231_v43 = vand.u32 4294901760, %v413_v25  ;;  %v10240_v45 = vand.u32 4294901760, %v416_v29  ;;  %v26760_v17 = vand.u32 4294901760, %v23080_v18 }
 0x3ee   :  { %16351 = vmatpush3.bf16.msra.mxu1 %v26731_v22  ;;  %v26750_v22 = vand.u32 4294901760, %v23017_v32  ;;  %v26754_v32 = vand.u32 4294901760, %v23038_v1  ;;  %v26759_v1 = vand.u32 4294901760, %v23076_v12  ;;  %v401_v12 = vld [vmem:[%s24464_s1 + $0xb20] sm:$0xff]  ;;  %v23509_v6 = vsub.f32 %v415_v27, %v10237_v23 }
 0x3ef   :  { %16385 = vmatprep.subr.bf16.mxu1 %v26732_v56  ;;  %v16624_v30 = vpack.c.bf16 %v26748_v16, %v26747_v61  ;;  %v418_v61 = vld [vmem:[%s24464_s1 + $0xba8] sm:$0xff]  ;;  %v26757_v16 = vld [vmem:[#allocation60_spill] sm:$0xff] }
 0x3f0   :  { %16615 = vmatpush3.bf16.msra.mxu0 %v16614_v19  ;;  %v10234_v19 = vand.u32 4294901760, %v414_v13  ;;  %v16626_v47 = vpack.c.bf16 %v26751_v8, %v26750_v22  ;;  %v26762_v8 = vand.u32 4294901760, %v23108_v59 }
 0x3f1   :  { %8797 = vmatmul.mubr.f32.vlgmr.msra.gmra.mrb[60].mxu1 %v26735_v35  ;;  %16617 = vmatprep.subr.bf16.mxu0 %v16616_v31  ;;  %v10183_v31 = vand.u32 4294901760, %v397_v11 }
 0x3f2   :  { %16387 = vmatpush3.bf16.msra.mxu1 %v26738_v54  ;;  %9039 = vmatprep.mubr.f32.mxu1 %v26740_v52  ;;  %v26753_v52 = vand.u32 4294901760, %v23036_v7  ;;  %v26758_v7 = vand.u32 4294901760, %v23058_v4  ;;  %v23478_v18 = vpack.c.bf16 %v10234_v19, %v10231_v43 }
 0x3f3   :  { %16389 = vmatprep.subr.bf16.mxu1 %v26743_v38 }
 0x3f4   :  { %16619 = vmatpush3.bf16.msra.mxu0 %v16618_v51  ;;  %v400_v51 = vld [vmem:[%s24464_s1 + $0xb18] sm:$0xff]  ;;  %v16628_v33 = vpack.c.bf16 %v26754_v32, %v26753_v52  ;;  %v16632_v42 = vpack.c.bf16 %v26759_v1, %v26758_v7  ;;  %v26763_v52 = vand.u32 4294901760, %v23129_v39  ;;  %26766 = vst [vmem:[#allocation72_spill] sm:$0xff] %v23478_v18  ;;  %v10189_v7 = vand.u32 4294901760, %v399_v57  ;;  %v402_v39 = vld [vmem:[%s24464_s1 + $0xb28] sm:$0xff] }
 0x3f5   :  { %16621 = vmatprep.subr.bf16.mxu0 %v16620_v55  ;;  %v16630_v55 = vpack.c.bf16 %v26756_v5, %v26755_v40  ;;  %v26764_v40 = vand.u32 4294901760, %v23170_v53  ;;  %v26765_v5 = vand.u32 4294901760, %v23172_v0  ;;  %v10192_v59 = vand.u32 4294901760, %v400_v51  ;;  %v419_v53 = vld [vmem:[%s24464_s1 + $0xbb0] sm:$0xff]  ;;  %v420_v0 = vld [vmem:[%s24464_s1 + $0xbb8] sm:$0xff] }
 0x3f6   :  { %16391 = vmatpush3.bf16.msra.mxu1 %v26746_v3  ;;  %v23467_v32 = vpack.c.bf16 %v26763_v52, %v26762_v8  ;;  %v23491_v1 = vsub.f32 %v414_v13, %v10234_v19  ;;  %v404_v8 = vld [vmem:[%s24464_s1 + $0xb38] sm:$0xff]  ;;  %v23506_v13 = vpack.c.bf16 %v10240_v45, %v10237_v23  ;;  %v10195_v19 = vand.u32 4294901760, %v401_v12 }
 0x3f7   :  { %16393 = vmatprep.subr.bf16.mxu1 %v26749_v26  ;;  %v23473_v4 = vpack.c.bf16 %v26765_v5, %v26764_v40  ;;  %v26768_v52 = vld [vmem:[#allocation59_spill] sm:$0xff]  ;;  %v23502_v40 = vsub.f32 %v397_v11, %v10183_v31  ;;  %v26770_v5 = vld [vmem:[#allocation64_spill] sm:$0xff]  ;;  %v10198_v41 = vand.u32 4294901760, %v402_v39  ;;  %v10249_v15 = vand.u32 4294901760, %v419_v53  ;;  %v422_v11 = vld [vmem:[%s24464_s1 + $0xbc8] sm:$0xff] }
 0x3f8   :  { %16623 = vmatpush3.bf16.msra.mxu0 %v16622_v50  ;;  %v417_v50 = vld [vmem:[%s24464_s1 + $0xba0] sm:$0xff]  ;;  %26769 = vst [vmem:[#allocation43_spill] sm:$0xff] %v23506_v13  ;;  %v10252_v2 = vand.u32 4294901760, %v420_v0  ;;  %v10204_v21 = vand.u32 4294901760, %v404_v8  ;;  %v23523_v23 = vsub.f32 %v399_v57, %v10189_v7  ;;  %v23525_v14 = vsub.f32 %v400_v51, %v10192_v59  ;;  %v406_v57 = vld [vmem:[%s24464_s1 + $0xb48] sm:$0xff] }
 0x3f9   :  { %16625 = vmatprep.subr.bf16.mxu0 %v16624_v30  ;;  %v26761_v30 = vand.u32 4294901760, %v23082_v60  ;;  %v23480_v60 = vsub.f32 %v413_v25, %v10231_v43  ;;  %v10243_v25 = vand.u32 4294901760, %v417_v50  ;;  %v10246_v43 = vand.u32 4294901760, %v418_v61  ;;  %v17060_v51 = vld [vmem:[%s24463_s0 + $0x2c] ss:$48 sps:$4 sm:$0xff]  }
 0x3fa   :  { %16395 = vmatpush3.bf16.msra.mxu1 %v26752_v58  ;;  %v10258_v20 = vand.u32 4294901760, %v422_v11  ;;  %v23580_v49 = vsub.f32 %v404_v8, %v10204_v21 }
 0x3fb   :  { %16397 = vmatprep.subr.bf16.mxu1 %v26757_v16  ;;  %v23461_v22 = vpack.c.bf16 %v26761_v30, %v26760_v17  ;;  %v23493_v17 = vpack.c.bf16 %v10186_v37, %v10183_v31  ;;  %v403_v30 = vld [vmem:[%s24464_s1 + $0xb30] sm:$0xff]  ;;  %v23517_v31 = vsub.f32 %v416_v29, %v10240_v45  ;;  %v23527_v44 = vpack.c.bf16 %v10246_v43, %v10243_v25 }
 0x3fc   :  { %16627 = vmatpush3.bf16.msra.mxu0 %v16626_v47  ;;  %v23504_v47 = vsub.f32 %v398_v10, %v10186_v37  ;;  %v23519_v37 = vpack.c.bf16 %v10192_v59, %v10189_v7  ;;  %v23530_v62 = vsub.f32 %v417_v50, %v10243_v25  ;;  %v23532_v29 = vsub.f32 %v418_v61, %v10246_v43  ;;  %v423_v59 = vld [vmem:[%s24464_s1 + $0xbd0] sm:$0xff]  ;;  %v17061_v25 = vld [vmem:[%s24463_s0 + $0x8c] ss:$48 sps:$4 sm:$0xff]  }
 0x3fd   :  { %26767 = vst [vmem:[#allocation82_spill] sm:$0xff] %v23493_v17  ;;  %16629 = vmatprep.subr.bf16.mxu0 %v16628_v33  ;;  %v10201_v33 = vand.u32 4294901760, %v403_v30  ;;  %26773 = vst [vmem:[#allocation80_spill] sm:$0xff] %v23527_v44  ;;  %v10255_v45 = vand.u32 4294901760, %v421_v48  ;;  %v23544_v50 = vpack.c.bf16 %v10198_v41, %v10195_v19  ;;  %v23546_v61 = vsub.f32 %v401_v12, %v10195_v19  ;;  %v408_v19 = vld [vmem:[%s24464_s1 + $0xb58] sm:$0xff] }
 0x3fe   :  { %16399 = vmatpush3.bf16.msra.mxu1 %v26768_v52  ;;  %v13510_v24 = vpop.f32.mrb[44].mxu0  ;;  %26771 = vst [vmem:[#allocation20_spill] sm:$0xff] %v23519_v37  ;;  %v23550_v7 = vpack.c.bf16 %v10252_v2, %v10249_v15  ;;  %26783 = vst [vmem:[#allocation65_spill] sm:$0xff] %v23580_v49  ;;  %v409_v52 = vld [vmem:[%s24464_s1 + $0xb60] sm:$0xff]  ;;  %v410_v49 = vld [vmem:[%s24464_s1 + $0xb68] sm:$0xff] }
 0x3ff   :  { %16401 = vmatprep.subr.bf16.mxu1 %v26770_v5  ;;  %v13511_v10 = vpop.f32.mrb[45].mxu0  ;;  %26776 = vst [vmem:[#allocation56_spill] sm:$0xff] %v23544_v50  ;;  %v23562_v63 = vpack.c.bf16 %v10204_v21, %v10201_v33  ;;  %v23564_v12 = vsub.f32 %v403_v30, %v10201_v33  ;;  %v26785_v5 = vld [vmem:[#allocation69_spill] sm:$0xff] }
 0x400   :  { %v23521_v27 = vadd.f32 %v13511_v10, %v13510_v24  ;;  %16631 = vmatpush3.bf16.msra.mxu0 %v16630_v55  ;;  %v405_v24 = vld [vmem:[%s24464_s1 + $0xb40] sm:$0xff]  ;;  %26777 = vst [vmem:[#allocation63_spill] sm:$0xff] %v23550_v7  ;;  %v23558_v10 = vsub.f32 %v419_v53, %v10249_v15  ;;  %v10210_v53 = vand.u32 4294901760, %v406_v57 }
 0x401   :  { %16633 = vmatprep.subr.bf16.mxu0 %v16632_v42  ;;  %v26775_v55 = vld [vmem:[#allocation68_spill] sm:$0xff]  ;;  %v23548_v42 = vsub.f32 %v402_v39, %v10198_v41  ;;  %26779 = vst [vmem:[#allocation22_spill] sm:$0xff] %v23562_v63  ;;  %26780 = vst [vmem:[#allocation57_spill] sm:$0xff] %v23564_v12  ;;  %v424_v41 = vld [vmem:[%s24464_s1 + $0xbd8] sm:$0xff] }
 0x402   :  { %26772 = vst [vmem:[#allocation46_spill] sm:$0xff] %v23521_v27  ;;  %16403 = vmatpush3.bf16.msra.mxu1 %v26774_v46  ;;  %v23560_v27 = vsub.f32 %v420_v0, %v10252_v2  ;;  %v407_v39 = vld [vmem:[%s24464_s1 + $0xb50] sm:$0xff]  ;;  %v10207_v2 = vand.u32 4294901760, %v405_v24  ;;  %v26781_v0 = vld [vmem:[#allocation25_spill] sm:$0xff]  ;;  %v10261_v46 = vand.u32 4294901760, %v423_v59 }
 0x403   :  { %16405 = vmatprep.subr.bf16.mxu1 %v26775_v55  ;;  %v657_v30 = vrot.slane %v17060_v51, %v26781_v0  ;;  %v671_v33 = vrot.slane %v17061_v25, %v26781_v0  ;;  %v23582_v55 = vpack.c.bf16 %v10258_v20, %v10255_v45  ;;  %v426_v51 = vld [vmem:[%s24464_s1 + $0xbe8] sm:$0xff]  ;;  %v10264_v25 = vand.u32 4294901760, %v424_v41 }
 0x404   :  { %v13265_v43 = vpop.f32.mrb[48].mxu1  ;;  %26778 = vst [vmem:[#allocation27_spill] sm:$0xff] %v23560_v27  ;;  %16635 = vmatpush3.bf16.msra.mxu0 %v23461_v22  ;;  %v425_v22 = vld [vmem:[%s24464_s1 + $0xbe0] sm:$0xff]  ;;  %v23603_v12 = vpack.c.bf16 %v10210_v53, %v10207_v2  ;;  %v23605_v27 = vsub.f32 %v405_v24, %v10207_v2  ;;  %v10219_v2 = vand.u32 4294901760, %v409_v52 }
 0x405   :  { %v13266_v15 = vpop.f32.mrb[49].mxu1  ;;  %16637 = vmatprep.subr.bf16.mxu0 %v23467_v32  ;;  %26784 = vst [vmem:[#allocation26_spill] sm:$0xff] %v23582_v55  ;;  %v675_v0 = vcombine.high %v657_v30, %v671_v33  ;;  %v23592_v32 = vsub.f32 %v421_v48, %v10255_v45  ;;  %v10267_v8 = vand.u32 4294901760, %v425_v22  ;;  %v26789_v45 = vld [vmem:[#allocation32_spill] sm:$0xff]  ;;  %v10222_v48 = vand.u32 4294901760, %v410_v49 }
 0x406   :  { %v13267_v35 = vadd.f32 %v13266_v15, %v13265_v43  ;;  %16407 = vmatpush3.bf16.msra.mxu1 %v26782_v34  ;;  %v10213_v43 = vand.u32 4294901760, %v407_v39  ;;  %v10216_v15 = vand.u32 4294901760, %v408_v19  ;;  %v10270_v34 = vand.u32 4294901760, %v426_v51  ;;  %26787 = vst [vmem:[#allocation15_spill] sm:$0xff] %v23603_v12 }
 0x407   :  { %16409 = vmatprep.subr.bf16.mxu1 %v26785_v5  ;;  %26786 = vst [vmem:[#allocation5_spill] sm:$0xff] %v23592_v32  ;;  %v23601_v5 = vsub.f32 %v422_v11, %v10258_v20  ;;  %v23613_v32 = vsub.f32 %v406_v57, %v10210_v53  ;;  %v26791_v20 = vld [vmem:[#allocation75_spill] sm:$0xff]  ;;  %v23619_v11 = vpack.c.bf16 %v10264_v25, %v10261_v46 }
 0x408   :  { %v7075_v21 = vadd.f32 %v13267_v35, %v23366_v9  ;;  %16639 = vmatpush3.bf16.msra.mxu0 %v23473_v4  ;;  %v26788_v9 = vld [vmem:[#allocation45_spill] sm:$0xff]  ;;  %v23616_v4 = vand.u32 4294901760, %v675_v0  ;;  %v23621_v24 = vpack.c.bf16 %v10216_v15, %v10213_v43  ;;  %v23628_v57 = vpack.c.bf16 %v10270_v34, %v10267_v8 }
 0x409   :  { %16673 = vmatprep.subr.bf16.mxu0 %v23478_v18  ;;  %26792 = vst [vmem:[#allocation50_spill] sm:$0xff] %v23619_v11  ;;  %v23630_v53 = vcombine.low %v657_v30, %v671_v33  ;;  %v23633_v16 = vsub.f32 %v407_v39, %v10213_v43  ;;  %v23635_v18 = vsub.f32 %v408_v19, %v10216_v15  ;;  %v428_v39 = vld [vmem:[%s24464_s1 + $0xbf8] sm:$0xff]  ;;  %v23654_v19 = vld [vmem:[%s24464_s1 + $0xb70] sm:$0xff]  ;;  %v26797_v33 = vand.u32 4294901760, %v23491_v1 }
 0x40a   :  { %v23609_v35 = vadd.f32 %v26788_v9, %v7075_v21  ;;  %16411 = vmatpush3.bf16.msra.mxu1 %v26789_v45  ;;  %26790 = vst [vmem:[#allocation53_spill] sm:$0xff] %v23616_v4  ;;  %26793 = vst [vmem:[#allocation21_spill] sm:$0xff] %v23621_v24  ;;  %v23624_v21 = vsub.f32 %v423_v59, %v10261_v46  ;;  %v23626_v9 = vsub.f32 %v424_v41, %v10264_v25  ;;  %v26796_v41 = vld [vmem:[#allocation19_spill] sm:$0xff]  ;;  %v26800_v43 = vld [vmem:[#allocation30_spill] sm:$0xff] }
 0x40b   :  { %16413 = vmatprep.subr.bf16.mxu1 %v26791_v20  ;;  %10073 = vmatmul.mubr.f32.vlgmr.msra.gmra.mrb[58].mxu0 %v23122_v28  ;;  %26794 = vst [vmem:[#allocation51_spill] sm:$0xff] %v23628_v57  ;;  %v427_v20 = vld [vmem:[%s24464_s1 + $0xbf0] sm:$0xff]  ;;  %v26795_v28 = vand.u32 4294901760, %v23480_v60  ;;  %v23646_v30 = vsub.f32 %v425_v22, %v10267_v8  ;;  %v23660_v25 = vsub.f32 %v675_v0, %v23616_v4 }
 0x40c   :  { %16675 = vmatpush3.bf16.msra.mxu0 %v23493_v17  ;;  %v23664_v22 = vsub.f32 %v426_v51, %v10270_v34  ;;  %v23666_v15 = vpack.c.bf16 %v10222_v48, %v10219_v2  ;;  %v23668_v8 = vsub.f32 %v409_v52, %v10219_v2  ;;  %v23670_v59 = vsub.f32 %v410_v49, %v10222_v48 }
 0x40d   :  { %v10410_v46 = vsub.f32 %v23480_v60, %v26795_v28  ;;  %16677 = vmatprep.subr.bf16.mxu0 %v23506_v13  ;;  %v10417_v28 = vsub.f32 %v23491_v1, %v26797_v33  ;;  %26798 = vst [vmem:[#allocation29_spill] sm:$0xff] %v23660_v25  ;;  %v412_v13 = vld [vmem:[%s24464_s1 + $0xb78] sm:$0xff]  ;;  %v10273_v33 = vand.u32 4294901760, %v427_v20  ;;  %v25250_v4 = vand.u32 4294901760, %v23660_v25 }
 0x40e   :  { %16415 = vmatpush3.bf16.msra.mxu1 %v26796_v41  ;;  %26799 = vst [vmem:[#allocation11_spill] sm:$0xff] %v23666_v15  ;;  %v26801_v41 = vand.u32 4294901760, %v26800_v43  ;;  %v10276_v34 = vand.u32 4294901760, %v428_v39  ;;  %v26802_v49 = vand.u32 4294901760, %v23502_v40  ;;  %v26803_v51 = vand.u32 4294901760, %v23504_v47 }
 0x40f   :  { %16449 = vmatprep.subr.bf16.mxu1 %v26732_v56  ;;  %v10411_v17 = vand.u32 4294901760, %v10410_v46  ;;  %v10418_v0 = vand.u32 4294901760, %v10417_v28  ;;  %v10225_v56 = vand.u32 4294901760, %v23654_v19  ;;  %v10228_v2 = vand.u32 4294901760, %v412_v13 }
 0x410   :  { %16679 = vmatpush3.bf16.msra.mxu0 %v23519_v37  ;;  %v10298_v52 = vsub.f32 %v23502_v40, %v26802_v49  ;;  %v10305_v48 = vsub.f32 %v23504_v47, %v26803_v51  ;;  %v25254_v28 = vand.u32 4294901760, %v23509_v6  ;;  %v23696_v43 = vsub.f32 %v427_v20, %v10273_v33 }
 0x411   :  { %9043 = vmatmul.mubr.f32.vlgmr.msra.gmra.mrb[62].mxu1 %v26801_v41  ;;  %v23688_v46 = vpack.c.bf16 %v10418_v0, %v10411_v17  ;;  %v10281_v41 = vsub.f32 %v23660_v25, %v25250_v4  ;;  %16681 = vmatprep.subr.bf16.mxu0 %v23527_v44  ;;  %v25255_v0 = vand.u32 4294901760, %v23523_v23  ;;  %v25256_v4 = vand.u32 4294901760, %v23525_v14 }
 0x412   :  { %16451 = vmatpush3.bf16.msra.mxu1 %v26738_v54  ;;  %9313 = vmatprep.mubr.f32.mxu1 %v26704_v36  ;;  %v10299_v49 = vand.u32 4294901760, %v10298_v52  ;;  %v10306_v51 = vand.u32 4294901760, %v10305_v48  ;;  %v25253_v54 = vand.u32 4294901760, %v23517_v31  ;;  %v10424_v17 = vsub.f32 %v23509_v6, %v25254_v28 }
 0x413   :  { %16453 = vmatprep.subr.bf16.mxu1 %v26743_v38  ;;  %v10282_v36 = vand.u32 4294901760, %v10281_v41  ;;  %v23705_v38 = vpack.c.bf16 %v10276_v34, %v10273_v33  ;;  %v23710_v20 = vand.u32 4294901760, %v23630_v53  ;;  %v23717_v48 = vsub.f32 %v428_v39, %v10276_v34 }
 0x414   :  { %16683 = vmatpush3.bf16.msra.mxu0 %v23544_v50  ;;  %v23707_v44 = vpack.c.bf16 %v10306_v51, %v10299_v49  ;;  %v10431_v52 = vsub.f32 %v23517_v31, %v25253_v54  ;;  %v10425_v41 = vand.u32 4294901760, %v10424_v17  ;;  %v10312_v33 = vsub.f32 %v23523_v23, %v25255_v0 }
 0x415   :  { %26804 = vst [vmem:[#allocation49_spill] sm:$0xff] %v23705_v38  ;;  %16685 = vmatprep.subr.bf16.mxu0 %v23550_v7  ;;  %v10319_v49 = vsub.f32 %v23525_v14, %v25256_v4  ;;  %v23726_v51 = vpack.c.bf16 %v10228_v2, %v10225_v56  ;;  %10283 = vmatprep.mubr.f32.mxu0 %v10282_v36  ;;  %v25257_v39 = vand.u32 4294901760, %v23532_v29  ;;  %v25261_v28 = vand.u32 4294901760, %v23546_v61 }
 0x416   :  { %16455 = vmatpush3.bf16.msra.mxu1 %v26746_v3  ;;  %v10432_v54 = vand.u32 4294901760, %v10431_v52  ;;  %v25258_v3 = vand.u32 4294901760, %v23530_v62  ;;  %v10313_v34 = vand.u32 4294901760, %v10312_v33  ;;  %v25266_v0 = vand.u32 4294901760, %v23548_v42 }
 0x417   :  { %16457 = vmatprep.subr.bf16.mxu1 %v26749_v26  ;;  %26805 = vst [vmem:[#allocation61_spill] sm:$0xff] %v23726_v51  ;;  %v10320_v17 = vand.u32 4294901760, %v10319_v49  ;;  %v23735_v4 = vsub.f32 %v23630_v53, %v23710_v20  ;;  %v10445_v52 = vsub.f32 %v23532_v29, %v25257_v39  ;;  %v10326_v53 = vsub.f32 %v23546_v61, %v25261_v28  ;;  %v26806_v49 = vld [vmem:[#allocation60_spill] sm:$0xff] }
 0x418   :  { %16687 = vmatpush3.bf16.msra.mxu0 %v23562_v63  ;;  %v23737_v26 = vpack.c.bf16 %v10432_v54, %v10425_v41  ;;  %v10438_v36 = vsub.f32 %v23530_v62, %v25258_v3  ;;  %v10333_v54 = vsub.f32 %v23548_v42, %v25266_v0  ;;  %v25267_v41 = vand.u32 4294901760, %v23558_v10  ;;  %v26807_v63 = vld [vmem:[#allocation27_spill] sm:$0xff] }
 0x419   :  { %16689 = vmatprep.subr.bf16.mxu0 %v23582_v55  ;;  %v23747_v33 = vpack.c.bf16 %v10320_v17, %v10313_v34  ;;  %v23758_v39 = vsub.f32 %v23654_v19, %v10225_v56  ;;  %v10446_v34 = vand.u32 4294901760, %v10445_v52  ;;  %v10327_v17 = vand.u32 4294901760, %v10326_v53  ;;  %v26809_v19 = vld [vmem:[#allocation57_spill] sm:$0xff] }
 0x41a   :  { %16459 = vmatpush3.bf16.msra.mxu1 %v26752_v58  ;;  %v23760_v58 = vsub.f32 %v412_v13, %v10228_v2  ;;  %v10439_v3 = vand.u32 4294901760, %v10438_v36  ;;  %v10334_v55 = vand.u32 4294901760, %v10333_v54  ;;  %v10452_v28 = vsub.f32 %v23558_v10, %v25267_v41  ;;  %v26810_v56 = vld [vmem:[#allocation65_spill] sm:$0xff]  ;;  %v26811_v36 = vld [vmem:[#allocation59_spill] sm:$0xff] }
 0x41b   :  { %16461 = vmatprep.subr.bf16.mxu1 %v26806_v49  ;;  %v25272_v7 = vand.u32 4294901760, %v26807_v63  ;;  %v25275_v13 = vand.u32 4294901760, %v26809_v19  ;;  %v25278_v2 = vand.u32 4294901760, %v26810_v56  ;;  %v26813_v49 = vld [vmem:[#allocation64_spill] sm:$0xff] }
 0x41c   :  { %16691 = vmatpush3.bf16.msra.mxu0 %v23603_v12  ;;  %v23769_v0 = vpack.c.bf16 %v10446_v34, %v10439_v3  ;;  %v23776_v53 = vpack.c.bf16 %v10334_v55, %v10327_v17  ;;  %v10453_v54 = vand.u32 4294901760, %v10452_v28  ;;  %v25280_v55 = vand.u32 4294901760, %v23601_v5 }
 0x41d   :  { %16693 = vmatprep.subr.bf16.mxu0 %v23619_v11  ;;  %v10459_v41 = vsub.f32 %v26807_v63, %v25272_v7  ;;  %v10340_v34 = vsub.f32 %v26809_v19, %v25275_v13  ;;  %v26814_v11 = vld [vmem:[#allocation5_spill] sm:$0xff]  ;;  %v25283_v12 = vand.u32 4294901760, %v23605_v27  ;;  %v25286_v7 = vand.u32 4294901760, %v23613_v32 }
 0x41e   :  { %26808 = vst [vmem:[#allocation74_spill] sm:$0xff] %v23769_v0  ;;  %16463 = vmatpush3.bf16.msra.mxu1 %v26811_v36  ;;  %26812 = vst [vmem:[#allocation10_spill] sm:$0xff] %v23776_v53  ;;  %v13580_v3 = vpop.f32.mrb[46].mxu0  ;;  %v10347_v36 = vsub.f32 %v26810_v56, %v25278_v2  ;;  %v25279_v52 = vand.u32 4294901760, %v26814_v11  ;;  %v26815_v53 = vld [vmem:[#allocation66_spill] sm:$0xff] }
 0x41f   :  { %16465 = vmatprep.subr.bf16.mxu1 %v26813_v49  ;;  %v13581_v28 = vpop.f32.mrb[47].mxu0  ;;  %v10460_v17 = vand.u32 4294901760, %v10459_v41  ;;  %v10341_v13 = vand.u32 4294901760, %v10340_v34  ;;  %v10473_v49 = vsub.f32 %v23601_v5, %v25280_v55  ;;  %v26819_v55 = vand.u32 4294901760, %v23735_v4 }
 0x420   :  { %v23793_v50 = vadd.f32 %v13581_v28, %v13580_v3  ;;  %16695 = vmatpush3.bf16.msra.mxu0 %v23621_v24  ;;  %v10348_v37 = vand.u32 4294901760, %v10347_v36  ;;  %v10466_v2 = vsub.f32 %v26814_v11, %v25279_v52  ;;  %v10354_v3 = vsub.f32 %v23605_v27, %v25283_v12  ;;  %v26817_v36 = vld [vmem:[#allocation68_spill] sm:$0xff] }
 0x421   :  { %16697 = vmatprep.subr.bf16.mxu0 %v23628_v57  ;;  %v23801_v41 = vpack.c.bf16 %v10460_v17, %v10453_v54  ;;  %v16738_v28 = vpack.c.bf16 %v23504_v47, %v23502_v40  ;;  %v10361_v54 = vsub.f32 %v23613_v32, %v25286_v7  ;;  %v10287_v57 = vsub.f32 %v23735_v4, %v26819_v55  ;;  %v26822_v55 = vld [vmem:[#allocation28_spill] sm:$0xff] }
 0x422   :  { %16467 = vmatpush3.bf16.msra.mxu1 %v26815_v53  ;;  %v23813_v53 = vpack.c.bf16 %v10348_v37, %v10341_v13  ;;  %v10467_v52 = vand.u32 4294901760, %v10466_v2  ;;  %v10474_v12 = vand.u32 4294901760, %v10473_v49  ;;  %v10355_v24 = vand.u32 4294901760, %v10354_v3 }
 0x423   :  { %26816 = vst [vmem:[#allocation54_spill] sm:$0xff] %v23801_v41  ;;  %16469 = vmatprep.subr.bf16.mxu1 %v26817_v36  ;;  %v26820_v34 = vand.u32 4294901760, %v23624_v21  ;;  %v10362_v37 = vand.u32 4294901760, %v10361_v54  ;;  %v26821_v13 = vand.u32 4294901760, %v23626_v9  ;;  %v25291_v7 = vand.u32 4294901760, %v23633_v16  ;;  %v26823_v54 = vld [vmem:[#allocation69_spill] sm:$0xff] }
 0x424   :  { %26818 = vst [vmem:[#allocation25_spill] sm:$0xff] %v23813_v53  ;;  %v13335_v17 = vpop.f32.mrb[50].mxu1  ;;  %16699 = vmatpush3.bf16.msra.mxu0 %v23666_v15  ;;  %v16740_v49 = vpack.c.bf16 %v23517_v31, %v23509_v6  ;;  %v23834_v3 = vpack.c.bf16 %v10474_v12, %v10467_v52  ;;  %v25296_v12 = vand.u32 4294901760, %v23646_v30  ;;  %v25292_v52 = vand.u32 4294901760, %v23664_v22 }
 0x425   :  { %v10480_v36 = vsub.f32 %v23624_v21, %v26820_v34  ;;  %v13336_v41 = vpop.f32.mrb[51].mxu1  ;;  %v10487_v2 = vsub.f32 %v23626_v9, %v26821_v13  ;;  %16701 = vmatprep.subr.bf16.mxu0 %v23705_v38  ;;  %v23837_v15 = vpack.c.bf16 %v10362_v37, %v10355_v24  ;;  %v10368_v53 = vsub.f32 %v23633_v16, %v25291_v7 }
 0x426   :  { %v13337_v0 = vadd.f32 %v13336_v41, %v13335_v17  ;;  %16471 = vmatpush3.bf16.msra.mxu1 %v26822_v55  ;;  %v26824_v41 = vand.u32 4294901760, %v23635_v18  ;;  %v10288_v38 = vand.u32 4294901760, %v10287_v57  ;;  %v10494_v57 = vsub.f32 %v23646_v30, %v25296_v12 }
 0x427   :  { %v10481_v34 = vand.u32 4294901760, %v10480_v36  ;;  %16473 = vmatprep.subr.bf16.mxu1 %v26823_v54  ;;  %v10488_v13 = vand.u32 4294901760, %v10487_v2  ;;  %v10369_v36 = vand.u32 4294901760, %v10368_v53  ;;  %v25293_v2 = vand.u32 4294901760, %v23668_v8  ;;  %v26825_v54 = vld [vmem:[#allocation35_spill] sm:$0xff] }
 0x428   :  { %v10375_v17 = vsub.f32 %v23635_v18, %v26824_v41  ;;  %v7321_v55 = vadd.f32 %v13337_v0, %v23609_v35  ;;  %16703 = vmatpush3.bf16.msra.mxu0 %v23726_v51  ;;  %v26826_v35 = vpack.c.bf16 %v23491_v1, %v23480_v60  ;;  %v10501_v0 = vsub.f32 %v23664_v22, %v25292_v52  ;;  %v26831_v51 = vld [vmem:[#allocation77_spill] sm:$0xff] }
 0x429   :  { %v23849_v24 = vpack.c.bf16 %v10488_v13, %v10481_v34  ;;  %v25294_v53 = vand.u32 4294901760, %v23670_v59  ;;  %v26827_v34 = vld [vmem:[#allocation75_spill] sm:$0xff]  ;;  %v16742_v13 = vpack.c.bf16 %v23525_v14, %v23523_v23  ;;  %v10382_v41 = vsub.f32 %v23668_v8, %v25293_v2 }
 0x42a   :  { %v10376_v37 = vand.u32 4294901760, %v10375_v17  ;;  %v23853_v7 = vadd.f32 %v26825_v54, %v7321_v55  ;;  %16475 = vmatpush3.bf16.msra.mxu1 %v26789_v45  ;;  %16737 = vmatprep.subr.bf16.mxu0 %v26826_v35  ;;  %v10495_v17 = vand.u32 4294901760, %v10494_v57  ;;  %v10502_v55 = vand.u32 4294901760, %v10501_v0  ;;  %v26828_v2 = vld [vmem:[#allocation19_spill] sm:$0xff] }
 0x42b   :  { %16477 = vmatprep.subr.bf16.mxu1 %v26827_v34  ;;  %10289 = vmatmul.mubr.f32.vlgmr.msra.gmra.mrb[60].mxu0 %v10288_v38  ;;  %v10389_v54 = vsub.f32 %v23670_v59, %v25294_v53  ;;  %v25295_v35 = vand.u32 4294901760, %v23696_v43  ;;  %v10383_v34 = vand.u32 4294901760, %v10382_v41  ;;  %v25297_v52 = vand.u32 4294901760, %v23717_v48 }
 0x42c   :  { %v23869_v45 = vpack.c.bf16 %v10376_v37, %v10369_v36  ;;  %16739 = vmatpush3.bf16.msra.mxu0 %v16738_v28  ;;  %v25301_v36 = vand.u32 4294901760, %v23758_v39  ;;  %v25302_v37 = vand.u32 4294901760, %v23760_v58  ;;  %10656 = vmatprep.mubr.f32.mxu0 %v23660_v25  ;;  %v23883_v38 = vpack.c.bf16 %v10502_v55, %v10495_v17  ;;  %v26829_v28 = vld [vmem:[#allocation8_spill] sm:$0xff] }
 0x42d   :  { %16741 = vmatprep.subr.bf16.mxu0 %v16740_v49  ;;  %v10390_v57 = vand.u32 4294901760, %v10389_v54  ;;  %v10508_v0 = vsub.f32 %v23696_v43, %v25295_v35  ;;  %v16744_v41 = vpack.c.bf16 %v23532_v29, %v23530_v62  ;;  %v10515_v53 = vsub.f32 %v23717_v48, %v25297_v52  ;;  %v26830_v54 = vld [vmem:[#allocation78_spill] sm:$0xff]  ;;  %v26832_v25 = vld [vmem:[#allocation12_spill] sm:$0xff] }
 0x42e   :  { %16479 = vmatpush3.bf16.msra.mxu1 %v26828_v2  ;;  %v10396_v49 = vsub.f32 %v23758_v39, %v25301_v36  ;;  %v10403_v2 = vsub.f32 %v23760_v58, %v25302_v37  ;;  %v16748_v36 = vpack.c.bf16 %v26807_v63, %v23558_v10  ;;  %v26833_v37 = vld [vmem:[#allocation52_spill] sm:$0xff] }
 0x42f   :  { %16513 = vmatprep.subr.bf16.mxu1 %v26829_v28  ;;  %v23900_v17 = vpack.c.bf16 %v10390_v57, %v10383_v34  ;;  %v10509_v55 = vand.u32 4294901760, %v10508_v0  ;;  %v16746_v28 = vpack.c.bf16 %v23548_v42, %v23546_v61  ;;  %v10516_v35 = vand.u32 4294901760, %v10515_v53  ;;  %v26836_v0 = vld [vmem:[#allocation17_spill] sm:$0xff] }
 0x430   :  { %16743 = vmatpush3.bf16.msra.mxu0 %v16742_v13  ;;  %v10397_v12 = vand.u32 4294901760, %v10396_v49  ;;  %v10404_v52 = vand.u32 4294901760, %v10403_v2  ;;  %v16750_v53 = vpack.c.bf16 %v26810_v56, %v26809_v19  ;;  %v26835_v13 = vld [vmem:[#allocation48_spill] sm:$0xff]  ;;  %v16760_v49 = vpack.c.bf16 %v23664_v22, %v23646_v30 }
 0x431   :  { %9315 = vmatmul.mubr.f32.vlgmr.msra.gmra.mrb[64].mxu1 %v26830_v54  ;;  %16745 = vmatprep.subr.bf16.mxu0 %v16744_v41  ;;  %v23910_v34 = vpack.c.bf16 %v10516_v35, %v10509_v55  ;;  %v26837_v35 = vld [vmem:[#allocation36_spill] sm:$0xff] }
 0x432   :  { %16515 = vmatpush3.bf16.msra.mxu1 %v26831_v51  ;;  %9657 = vmatprep.mubr.f32.mxu1 %v26832_v25  ;;  %v23912_v57 = vpack.c.bf16 %v10404_v52, %v10397_v12  ;;  %v16752_v51 = vpack.c.bf16 %v23601_v5, %v26814_v11  ;;  %v16756_v12 = vpack.c.bf16 %v23626_v9, %v23624_v21  ;;  %v26838_v52 = vld [vmem:[#allocation70_spill] sm:$0xff]  ;;  %v26839_v41 = vld [vmem:[#allocation16_spill] sm:$0xff] }
 0x433   :  { %16517 = vmatprep.subr.bf16.mxu1 %v26833_v37  ;;  %v16754_v37 = vpack.c.bf16 %v23613_v32, %v23605_v27  ;;  %v26840_v2 = vld [vmem:[#allocation24_spill] sm:$0xff] }
 0x434   :  { %26834 = vst [vmem:[#allocation45_spill] sm:$0xff] %v23912_v57  ;;  %16747 = vmatpush3.bf16.msra.mxu0 %v16746_v28  ;;  %v26849_v57 = vld [vmem:[#allocation14_spill] sm:$0xff] }
 0x435   :  { %16749 = vmatprep.subr.bf16.mxu0 %v16748_v36  ;;  %v16758_v36 = vpack.c.bf16 %v23635_v18, %v23633_v16 }
 0x436   :  { %16519 = vmatpush3.bf16.msra.mxu1 %v26835_v13  ;;  %v26841_v13 = vld [vmem:[#allocation40_spill] sm:$0xff] }
 0x437   :  { %16521 = vmatprep.subr.bf16.mxu1 %v26836_v0  ;;  %v26842_v0 = vld [vmem:[#allocation31_spill] sm:$0xff] }
 0x438   :  { %16751 = vmatpush3.bf16.msra.mxu0 %v16750_v53  ;;  %v16762_v53 = vpack.c.bf16 %v23670_v59, %v23668_v8 }
 0x439   :  { %16753 = vmatprep.subr.bf16.mxu0 %v16752_v51  ;;  %v16764_v51 = vpack.c.bf16 %v23717_v48, %v23696_v43 }
 0x43a   :  { %16523 = vmatpush3.bf16.msra.mxu1 %v26837_v35 }
 0x43b   :  { %16525 = vmatprep.subr.bf16.mxu1 %v26838_v52 }
 0x43c   :  { %16755 = vmatpush3.bf16.msra.mxu0 %v16754_v37 }
 0x43d   :  { %16757 = vmatprep.subr.bf16.mxu0 %v16756_v12  ;;  %v16766_v12 = vpack.c.bf16 %v23760_v58, %v23758_v39 }
 0x43e   :  { %16527 = vmatpush3.bf16.msra.mxu1 %v26839_v41  ;;  %v13650_v55 = vpop.f32.mrb[48].mxu0  ;;  %v26843_v41 = vld [vmem:[#allocation6_spill] sm:$0xff] }
 0x43f   :  { %16529 = vmatprep.subr.bf16.mxu1 %v26840_v2  ;;  %v13651_v54 = vpop.f32.mrb[49].mxu0  ;;  %v26845_v2 = vand.u32 4294901760, %v23491_v1  ;;  %v26852_v1 = vand.u32 4294901760, %v23517_v31  ;;  %v26860_v31 = vand.u32 4294901760, %v23532_v29  ;;  %v26869_v29 = vld [vmem:[#allocation39_spill] sm:$0xff] }
 0x440   :  { %v23932_v28 = vadd.f32 %v13651_v54, %v13650_v55  ;;  %16759 = vmatpush3.bf16.msra.mxu0 %v16758_v36  ;;  %v26844_v36 = vand.u32 4294901760, %v23480_v60  ;;  %v26846_v55 = vld [vmem:[#allocation58_spill] sm:$0xff]  ;;  %v26851_v60 = vand.u32 4294901760, %v23509_v6  ;;  %v26859_v6 = vand.u32 4294901760, %v23530_v62 }
 0x441   :  { %16761 = vmatprep.subr.bf16.mxu0 %v16760_v49  ;;  %v26868_v62 = vand.u32 4294901760, %v26807_v63  ;;  %v26876_v63 = vand.u32 4294901760, %v23605_v27  ;;  %v26884_v27 = vld [vmem:[#allocation42_spill] sm:$0xff] }
 0x442   :  { %16531 = vmatpush3.bf16.msra.mxu1 %v26841_v13  ;;  %v16800_v49 = vpack.c.bf16 %v26845_v2, %v26844_v36  ;;  %v26847_v13 = vand.u32 4294901760, %v23502_v40  ;;  %v26854_v40 = vand.u32 4294901760, %v23523_v23  ;;  %v16808_v36 = vpack.c.bf16 %v26860_v31, %v26859_v6  ;;  %v26861_v2 = vld [vmem:[#allocation81_spill] sm:$0xff] }
 0x443   :  { %16533 = vmatprep.subr.bf16.mxu1 %v26842_v0  ;;  %v26862_v23 = vand.u32 4294901760, %v23546_v61  ;;  %v26871_v61 = vand.u32 4294901760, %v26810_v56  ;;  %v26879_v56 = vand.u32 4294901760, %v23624_v21  ;;  %v26883_v6 = vand.u32 4294901760, %v23635_v18  ;;  %v26887_v21 = vld [vmem:[#allocation37_spill] sm:$0xff] }
 0x444   :  { %v13405_v37 = vpop.f32.mrb[52].mxu1  ;;  %16763 = vmatpush3.bf16.msra.mxu0 %v16762_v53  ;;  %v26848_v53 = vand.u32 4294901760, %v23504_v47  ;;  %v26855_v47 = vand.u32 4294901760, %v23525_v14  ;;  %v26863_v14 = vand.u32 4294901760, %v23548_v42  ;;  %v26889_v18 = vand.u32 4294901760, %v23670_v59 }
 0x445   :  { %v13406_v35 = vpop.f32.mrb[53].mxu1  ;;  %16765 = vmatprep.subr.bf16.mxu0 %v16764_v51  ;;  %v16804_v51 = vpack.c.bf16 %v26852_v1, %v26851_v60  ;;  %v26872_v60 = vld [vmem:[#allocation79_spill] sm:$0xff]  ;;  %v26873_v1 = vand.u32 4294901760, %v26814_v11  ;;  %v26881_v11 = vld [vmem:[#allocation34_spill] sm:$0xff] }
 0x446   :  { %v13407_v52 = vadd.f32 %v13406_v35, %v13405_v37  ;;  %16535 = vmatpush3.bf16.msra.mxu1 %v26843_v41  ;;  %v16802_v0 = vpack.c.bf16 %v26848_v53, %v26847_v13  ;;  %v26850_v35 = vld [vmem:[#allocation9_spill] sm:$0xff]  ;;  %v26853_v41 = vld [vmem:[#allocation62_spill] sm:$0xff]  ;;  %v26867_v53 = vand.u32 4294901760, %v23558_v10 }
 0x447   :  { %16537 = vmatprep.subr.bf16.mxu1 %v26846_v55  ;;  %v26864_v55 = vld [vmem:[#allocation23_spill] sm:$0xff] }
 0x448   :  { %v7593_v54 = vadd.f32 %v13407_v52, %v23853_v7  ;;  %16767 = vmatpush3.bf16.msra.mxu0 %v16766_v12  ;;  %v16806_v7 = vpack.c.bf16 %v26855_v47, %v26854_v40  ;;  %v26856_v12 = vld [vmem:[#allocation53_spill] sm:$0xff]  ;;  %v26858_v52 = vld [vmem:[#allocation71_spill] sm:$0xff]  ;;  %v26877_v40 = vand.u32 4294901760, %v23613_v32  ;;  %v26885_v32 = vand.u32 4294901760, %v23646_v30 }
 0x449   :  { %16801 = vmatprep.subr.bf16.mxu0 %v16800_v49  ;;  %v16810_v49 = vpack.c.bf16 %v26863_v14, %v26862_v23  ;;  %v26891_v30 = vand.u32 4294901760, %v23696_v43 }
 0x44a   :  { %v7705_v37 = vadd.f32 %v26849_v57, %v7593_v54  ;;  %16539 = vmatpush3.bf16.msra.mxu1 %v26850_v35  ;;  %v26857_v57 = vld [vmem:[#allocation41_spill] sm:$0xff]  ;;  %v26865_v54 = vld [vmem:[#allocation7_spill] sm:$0xff]  ;;  %v26870_v35 = vand.u32 4294901760, %v26809_v19  ;;  %v16818_v47 = vpack.c.bf16 %v26877_v40, %v26876_v63  ;;  %v26899_v63 = vld [vmem:[#allocation76_spill] sm:$0xff] }
 0x44b   :  { %16541 = vmatprep.subr.bf16.mxu1 %v26853_v41  ;;  %10659 = vmatmul.mubr.f32.vlgmr.msra.gmra.mrb[62].mxu0 %v23735_v4  ;;  %v26866_v13 = vand.u32 4294901760, %v26865_v54  ;;  %v26875_v41 = vld [vmem:[#allocation67_spill] sm:$0xff]  ;;  %v26878_v19 = vld [vmem:[#allocation33_spill] sm:$0xff] }
 0x44c   :  { %16803 = vmatpush3.bf16.msra.mxu0 %v16802_v0  ;;  %10933 = vmatprep.mubr.f32.mxu0 %v26856_v12  ;;  %v16812_v0 = vpack.c.bf16 %v26868_v62, %v26867_v53  ;;  %v16814_v42 = vpack.c.bf16 %v26871_v61, %v26870_v35  ;;  %v26893_v62 = vld [vmem:[#allocation44_spill] sm:$0xff]  ;;  %v26894_v61 = vand.u32 4294901760, %v23758_v39  ;;  %v26900_v40 = vld [vmem:[#allocation47_spill] sm:$0xff]  ;;  %v26901_v39 = vld [vmem:[#allocation13_spill] sm:$0xff] }
 0x44d   :  { %16805 = vmatprep.subr.bf16.mxu0 %v16804_v51  ;;  %v26874_v51 = vand.u32 4294901760, %v23601_v5  ;;  %v26882_v5 = vand.u32 4294901760, %v23633_v16  ;;  %v26888_v16 = vand.u32 4294901760, %v23668_v8  ;;  %v26895_v8 = vand.u32 4294901760, %v23760_v58  ;;  %v26902_v58 = vld [vmem:[#allocation73_spill] sm:$0xff] }
 0x44e   :  { %16543 = vmatpush3.bf16.msra.mxu1 %v26857_v57 }
 0x44f   :  { %16577 = vmatprep.subr.bf16.mxu1 %v26858_v52  ;;  %v16816_v10 = vpack.c.bf16 %v26874_v51, %v26873_v1  ;;  %v16822_v31 = vpack.c.bf16 %v26883_v6, %v26882_v5  ;;  %v16826_v54 = vpack.c.bf16 %v26889_v18, %v26888_v16  ;;  %v26896_v1 = vld [vmem:[#allocation55_spill] sm:$0xff]  ;;  %v26897_v51 = vld [vmem:[#allocation38_spill] sm:$0xff] }
 0x450   :  { %16807 = vmatpush3.bf16.msra.mxu0 %v16806_v7  ;;  %v26880_v7 = vand.u32 4294901760, %v23626_v9  ;;  %v26921_v16 = vld [vmem:[#allocation50_spill] sm:$0xff] }
 0x451   :  { %9659 = vmatmul.mubr.f32.vlgmr.msra.gmra.mrb[66].mxu1 %v26861_v2  ;;  %16809 = vmatprep.subr.bf16.mxu0 %v16808_v36  ;;  %v26886_v36 = vand.u32 4294901760, %v23664_v22  ;;  %v26892_v22 = vand.u32 4294901760, %v23717_v48  ;;  %v26898_v48 = vld [vmem:[#allocation46_spill] sm:$0xff] }
 0x452   :  { %16579 = vmatpush3.bf16.msra.mxu1 %v26864_v55  ;;  %9901 = vmatprep.mubr.f32.mxu1 %v26866_v13  ;;  %v16820_v57 = vpack.c.bf16 %v26880_v7, %v26879_v56  ;;  %v26890_v13 = vld [vmem:[#allocation18_spill] sm:$0xff] }
 0x453   :  { %16581 = vmatprep.subr.bf16.mxu1 %v26869_v29  ;;  %v16824_v23 = vpack.c.bf16 %v26886_v36, %v26885_v32  ;;  %v16828_v53 = vpack.c.bf16 %v26892_v22, %v26891_v30  ;;  %v26906_v7 = vld [vmem:[#allocation54_spill] sm:$0xff]  ;;  %v26922_v30 = vld [vmem:[#allocation21_spill] sm:$0xff]  ;;  %v26923_v22 = vld [vmem:[#allocation51_spill] sm:$0xff] }
 0x454   :  { %16811 = vmatpush3.bf16.msra.mxu0 %v16810_v49  ;;  %v26918_v32 = vld [vmem:[#allocation22_spill] sm:$0xff] }
 0x455   :  { %16813 = vmatprep.subr.bf16.mxu0 %v16812_v0  ;;  %v26919_v36 = vld [vmem:[#allocation26_spill] sm:$0xff] }
 0x456   :  { %16583 = vmatpush3.bf16.msra.mxu1 %v26872_v60 }
 0x457   :  { %16585 = vmatprep.subr.bf16.mxu1 %v26875_v41 }
 0x458   :  { %16815 = vmatpush3.bf16.msra.mxu0 %v16814_v42  ;;  %v16830_v42 = vpack.c.bf16 %v26895_v8, %v26894_v61  ;;  %v26926_v61 = vld [vmem:[#allocation61_spill] sm:$0xff]  ;;  %v26927_v8 = vand.u32 4294901760, %v23735_v4 }
 0x459   :  { %16817 = vmatprep.subr.bf16.mxu0 %v16816_v10 }
 0x45a   :  { %16587 = vmatpush3.bf16.msra.mxu1 %v26878_v19 }
 0x45b   :  { %16589 = vmatprep.subr.bf16.mxu1 %v26881_v11 }
 0x45c   :  { %16819 = vmatpush3.bf16.msra.mxu0 %v16818_v47  ;;  %v26903_v47 = vand.u32 4294901760, %v26902_v58 }
 0x45d   :  { %16821 = vmatprep.subr.bf16.mxu0 %v16820_v57  ;;  %v26907_v57 = vld [vmem:[#allocation25_spill] sm:$0xff] }
 0x45e   :  { %16591 = vmatpush3.bf16.msra.mxu1 %v26884_v27  ;;  %v13720_v9 = vpop.f32.mrb[50].mxu0 }
 0x45f   :  { %16593 = vmatprep.subr.bf16.mxu1 %v26887_v21  ;;  %v13721_v14 = vpop.f32.mrb[51].mxu0 }
 0x460   :  { %v24015_v49 = vadd.f32 %v13721_v14, %v13720_v9  ;;  %16823 = vmatpush3.bf16.msra.mxu0 %v16822_v31  ;;  %v26909_v31 = vld [vmem:[#allocation72_spill] sm:$0xff]  ;;  %v26920_v14 = vld [vmem:[#allocation15_spill] sm:$0xff] }
 0x461   :  { %16825 = vmatprep.subr.bf16.mxu0 %v16824_v23 }
 0x462   :  { %16595 = vmatpush3.bf16.msra.mxu1 %v26890_v13 }
 0x463   :  { %16597 = vmatprep.subr.bf16.mxu1 %v26893_v62 }
 0x464   :  { %v13475_v0 = vpop.f32.mrb[54].mxu1  ;;  %16827 = vmatpush3.bf16.msra.mxu0 %v16826_v54 }
 0x465   :  { %v13476_v35 = vpop.f32.mrb[55].mxu1  ;;  %16829 = vmatprep.subr.bf16.mxu0 %v16828_v53 }
 0x466   :  { %v13477_v59 = vadd.f32 %v13476_v35, %v13475_v0  ;;  %16599 = vmatpush3.bf16.msra.mxu1 %v26896_v1  ;;  %v26924_v0 = vld [vmem:[#allocation11_spill] sm:$0xff]  ;;  %v26925_v35 = vld [vmem:[#allocation49_spill] sm:$0xff] }
 0x467   :  { %16601 = vmatprep.subr.bf16.mxu1 %v26897_v51 }
 0x468   :  { %v7937_v43 = vadd.f32 %v13477_v59, %v7705_v37  ;;  %16831 = vmatpush3.bf16.msra.mxu0 %v16830_v42 }
 0x46a   :  { %v8075_v10 = vadd.f32 %v26898_v48, %v7937_v43  ;;  %16603 = vmatpush3.bf16.msra.mxu1 %v26899_v63 }
 0x46b   :  { %16605 = vmatprep.subr.bf16.mxu1 %v26900_v40  ;;  %10935 = vmatmul.mubr.f32.vlgmr.msra.gmra.mrb[64].mxu0 %v23710_v20 }
 0x46e   :  { %16607 = vmatpush3.bf16.msra.mxu1 %v26901_v39 }
 0x46f   :  { %16641 = vmatprep.subr.bf16.mxu1 %v26858_v52 }
 0x471   :  { %9905 = vmatmul.mubr.f32.vlgmr.msra.gmra.mrb[68].mxu1 %v26903_v47 }
 0x472   :  { %16643 = vmatpush3.bf16.msra.mxu1 %v26864_v55  ;;  %10175 = vmatprep.mubr.f32.mxu1 %v26832_v25 }
 0x473   :  { %16645 = vmatprep.subr.bf16.mxu1 %v26869_v29 }
 0x476   :  { %16647 = vmatpush3.bf16.msra.mxu1 %v26872_v60 }
 0x477   :  { %16649 = vmatprep.subr.bf16.mxu1 %v26875_v41 }
 0x47a   :  { %16651 = vmatpush3.bf16.msra.mxu1 %v26878_v19  ;;  %v26904_v19 = vld [vmem:[#allocation74_spill] sm:$0xff] }
 0x47b   :  { %16653 = vmatprep.subr.bf16.mxu1 %v26881_v11 }
 0x47e   :  { %16655 = vmatpush3.bf16.msra.mxu1 %v26884_v27  ;;  %v13790_v37 = vpop.f32.mrb[52].mxu0 }
 0x47f   :  { %16657 = vmatprep.subr.bf16.mxu1 %v26887_v21  ;;  %v13791_v52 = vpop.f32.mrb[53].mxu0 }
 0x480   :  { %v24050_v56 = vadd.f32 %v13791_v52, %v13790_v37 }
 0x482   :  { %16659 = vmatpush3.bf16.msra.mxu1 %v26890_v13 }
 0x483   :  { %16661 = vmatprep.subr.bf16.mxu1 %v26893_v62 }
 0x484   :  { %v13545_v25 = vpop.f32.mrb[56].mxu1 }
 0x485   :  { %v13546_v55 = vpop.f32.mrb[57].mxu1 }
 0x486   :  { %v13547_v29 = vadd.f32 %v13546_v55, %v13545_v25  ;;  %16663 = vmatpush3.bf16.msra.mxu1 %v26896_v1 }
 0x487   :  { %16665 = vmatprep.subr.bf16.mxu1 %v26897_v51 }
 0x488   :  { %v8183_v60 = vadd.f32 %v13547_v29, %v8075_v10 }
 0x48a   :  { %v8351_v41 = vadd.f32 %v23793_v50, %v8183_v60  ;;  %16667 = vmatpush3.bf16.msra.mxu1 %v26899_v63  ;;  %v26905_v50 = vld [vmem:[#allocation10_spill] sm:$0xff] }
 0x48b   :  { %16669 = vmatprep.subr.bf16.mxu1 %v26900_v40 }
 0x48e   :  { %16671 = vmatpush3.bf16.msra.mxu1 %v26901_v39 }
 0x48f   :  { %16705 = vmatprep.subr.bf16.mxu1 %v23688_v46 }
 0x491   :  { %10177 = vmatmul.mubr.f32.vlgmr.msra.gmra.mrb[70].mxu1 %v26861_v2 }
 0x492   :  { %16707 = vmatpush3.bf16.msra.mxu1 %v23707_v44  ;;  %10519 = vmatprep.mubr.f32.mxu1 %v26856_v12 }
 0x493   :  { %16709 = vmatprep.subr.bf16.mxu1 %v23737_v26 }
 0x496   :  { %16711 = vmatpush3.bf16.msra.mxu1 %v23747_v33 }
 0x497   :  { %16713 = vmatprep.subr.bf16.mxu1 %v26904_v19 }
 0x49a   :  { %16715 = vmatpush3.bf16.msra.mxu1 %v26905_v50  ;;  %v11046_v50 = vld [vmem:[%s24466_s3 + $0x8] sm:$0xff] }
 0x49b   :  { %16717 = vmatprep.subr.bf16.mxu1 %v26906_v7  ;;  %v11047_v7 = vld [vmem:[%s24466_s3 + $0x10] sm:$0xff] }
 0x49e   :  { %16719 = vmatpush3.bf16.msra.mxu1 %v26907_v57  ;;  %v13860_v46 = vpop.f32.mrb[54].mxu0  ;;  %v17087_v57 = vmov 0.0|0.0  }
 0x49f   :  { %16721 = vmatprep.subr.bf16.mxu1 %v23834_v3  ;;  %v13861_v2 = vpop.f32.mrb[55].mxu0  ;;  %v26908_v3 = vld [vmem:[#allocation45_spill] sm:$0xff]  ;;  %16864 = vmatprep.subr.bf16.mxu0 %v17087_v57 }
 0x4a0   :  { %v24071_v11 = vadd.f32 %v13861_v2, %v13860_v46  ;;  %v11072_v2 = vand.u32 4294901760, %v11046_v50 }
 0x4a2   :  { %16723 = vmatpush3.bf16.msra.mxu1 %v23837_v15  ;;  %v26910_v15 = vld [vmem:[#allocation82_spill] sm:$0xff] }
 0x4a3   :  { %16725 = vmatprep.subr.bf16.mxu1 %v23849_v24  ;;  %v26911_v24 = vld [vmem:[#allocation29_spill] sm:$0xff] }
 0x4a4   :  { %v13615_v44 = vpop.f32.mrb[58].mxu1  ;;  %v26912_v27 = vand.u32 4294901760, %v26911_v24 }
 0x4a5   :  { %v13616_v26 = vpop.f32.mrb[59].mxu1 }
 0x4a6   :  { %v13617_v33 = vadd.f32 %v13616_v26, %v13615_v44  ;;  %16727 = vmatpush3.bf16.msra.mxu1 %v23869_v45  ;;  %v26913_v45 = vld [vmem:[#allocation43_spill] sm:$0xff]  ;;  %v11075_v44 = vand.u32 4294901760, %v11047_v7  ;;  %v11049_v26 = vld [vmem:[%s24466_s3 + $0x20] sm:$0xff] }
 0x4a7   :  { %16729 = vmatprep.subr.bf16.mxu1 %v23883_v38  ;;  %v26914_v38 = vld [vmem:[#allocation20_spill] sm:$0xff] }
 0x4a8   :  { %v8455_v5 = vadd.f32 %v13617_v33, %v8351_v41  ;;  %v11050_v33 = vld [vmem:[%s24466_s3 + $0x28] sm:$0xff] }
 0x4aa   :  { %v8567_v6 = vadd.f32 %v23932_v28, %v8455_v5  ;;  %16731 = vmatpush3.bf16.msra.mxu1 %v23900_v17  ;;  %v26915_v28 = vld [vmem:[#allocation80_spill] sm:$0xff] }
 0x4ab   :  { %16733 = vmatprep.subr.bf16.mxu1 %v23910_v34  ;;  %v26916_v17 = vld [vmem:[#allocation56_spill] sm:$0xff]  ;;  %v26917_v34 = vld [vmem:[#allocation63_spill] sm:$0xff] }
 0x4ae   :  { %16735 = vmatpush3.bf16.msra.mxu1 %v26908_v3  ;;  %v11084_v3 = vand.u32 4294901760, %v11050_v33 }
 0x4af   :  { %16769 = vmatprep.subr.bf16.mxu1 %v26909_v31 }
 0x4b1   :  { %10521 = vmatmul.mubr.f32.vlgmr.msra.gmra.mrb[72].mxu1 %v23710_v20 }
 0x4b2   :  { %16771 = vmatpush3.bf16.msra.mxu1 %v26910_v15  ;;  %10763 = vmatprep.mubr.f32.mxu1 %v26912_v27 }
 0x4b3   :  { %16773 = vmatprep.subr.bf16.mxu1 %v26913_v45 }
 0x4b6   :  { %16775 = vmatpush3.bf16.msra.mxu1 %v26914_v38 }
 0x4b7   :  { %16777 = vmatprep.subr.bf16.mxu1 %v26915_v28 }
 0x4ba   :  { %16779 = vmatpush3.bf16.msra.mxu1 %v26916_v17 }
 0x4bb   :  { %16781 = vmatprep.subr.bf16.mxu1 %v26917_v34 }
 0x4be   :  { %16783 = vmatpush3.bf16.msra.mxu1 %v26918_v32  ;;  %v13930_v23 = vpop.f32.mrb[56].mxu0 }
 0x4bf   :  { %16785 = vmatprep.subr.bf16.mxu1 %v26919_v36  ;;  %v13931_v21 = vpop.f32.mrb[57].mxu0 }
 0x4c0   :  { %v13932_v9 = vadd.f32 %v13931_v21, %v13930_v23 }
 0x4c2   :  { %16787 = vmatpush3.bf16.msra.mxu1 %v26920_v14 }
 0x4c3   :  { %16789 = vmatprep.subr.bf16.mxu1 %v26921_v16 }
 0x4c4   :  { %v13685_v18 = vpop.f32.mrb[60].mxu1 }
 0x4c5   :  { %v13686_v54 = vpop.f32.mrb[61].mxu1 }
 0x4c6   :  { %v13687_v13 = vadd.f32 %v13686_v54, %v13685_v18  ;;  %16791 = vmatpush3.bf16.msra.mxu1 %v26922_v30 }
 0x4c7   :  { %16793 = vmatprep.subr.bf16.mxu1 %v26923_v22 }
 0x4c8   :  { %v8799_v53 = vadd.f32 %v13687_v13, %v8567_v6  ;;  %v11081_v6 = vand.u32 4294901760, %v11049_v26 }
 0x4ca   :  { %v8937_v62 = vadd.f32 %v24015_v49, %v8799_v53  ;;  %16795 = vmatpush3.bf16.msra.mxu1 %v26924_v0 }
 0x4cb   :  { %16797 = vmatprep.subr.bf16.mxu1 %v26925_v35 }
 0x4ce   :  { %16799 = vmatpush3.bf16.msra.mxu1 %v26926_v61 }
 0x4cf   :  { %16833 = vmatprep.subr.bf16.mxu1 %v26909_v31  ;;  %v11051_v31 = vld [vmem:[%s24466_s3 + $0x30] sm:$0xff] }
 0x4d1   :  { %10767 = vmatmul.mubr.f32.vlgmr.msra.gmra.mrb[74].mxu1 %v26927_v8  ;;  %v11055_v8 = vld [vmem:[%s24466_s3 + $0x50] sm:$0xff] }
 0x4d2   :  { %16835 = vmatpush3.bf16.msra.mxu1 %v26910_v15  ;;  %11037 = vmatprep.mubr.f32.mxu1 %v26856_v12  ;;  %v11052_v15 = vld [vmem:[%s24466_s3 + $0x38] sm:$0xff] }
 0x4d3   :  { %16837 = vmatprep.subr.bf16.mxu1 %v26913_v45  ;;  %v24158_v45 = vsub.f32 %v11046_v50, %v11072_v2  ;;  %v11090_v23 = vand.u32 4294901760, %v11052_v15 }
 0x4d6   :  { %16839 = vmatpush3.bf16.msra.mxu1 %v26914_v38  ;;  %v24160_v38 = vsub.f32 %v11047_v7, %v11075_v44 }
 0x4d7   :  { %16841 = vmatprep.subr.bf16.mxu1 %v26915_v28 }
 0x4da   :  { %16843 = vmatpush3.bf16.msra.mxu1 %v26916_v17  ;;  %v24164_v17 = vsub.f32 %v11049_v26, %v11081_v6 }
 0x4db   :  { %16845 = vmatprep.subr.bf16.mxu1 %v26917_v34 }
 0x4de   :  { %16847 = vmatpush3.bf16.msra.mxu1 %v26918_v32  ;;  %v14000_v4 = vpop.f32.mrb[58].mxu0  ;;  %v24169_v32 = vsub.f32 %v11050_v33, %v11084_v3  ;;  %v11176_v33 = vand.u32 4294901760, %v24160_v38 }
 0x4df   :  { %16849 = vmatprep.subr.bf16.mxu1 %v26919_v36  ;;  %v14001_v49 = vpop.f32.mrb[59].mxu0  ;;  %v11087_v36 = vand.u32 4294901760, %v11051_v31 }
 0x4e0   :  { %v24113_v42 = vadd.f32 %v14001_v49, %v14000_v4  ;;  %v11056_v4 = vld [vmem:[%s24466_s3 + $0x58] sm:$0xff] }
 0x4e1   :  { %v24172_v21 = vsub.f32 %v11051_v31, %v11087_v36  ;;  %v11177_v31 = vsub.f32 %v24160_v38, %v11176_v33 }
 0x4e2   :  { %16851 = vmatpush3.bf16.msra.mxu1 %v26920_v14  ;;  %v24177_v14 = vpack.c.bf16 %v11084_v3, %v11081_v6 }
 0x4e3   :  { %16853 = vmatprep.subr.bf16.mxu1 %v26921_v16  ;;  %v24181_v16 = vpack.c.bf16 %v11090_v23, %v11087_v36 }
 0x4e4   :  { %v13755_v12 = vpop.f32.mrb[62].mxu1 }
 0x4e5   :  { %v13756_v59 = vpop.f32.mrb[63].mxu1 }
 0x4e6   :  { %v13757_v1 = vadd.f32 %v13756_v59, %v13755_v12  ;;  %16855 = vmatpush3.bf16.msra.mxu1 %v26922_v30  ;;  %v11053_v30 = vld [vmem:[%s24466_s3 + $0x40] sm:$0xff]  ;;  %v11099_v12 = vand.u32 4294901760, %v11055_v8  ;;  %v11102_v59 = vand.u32 4294901760, %v11056_v4 }
 0x4e7   :  { %16857 = vmatprep.subr.bf16.mxu1 %v26923_v22  ;;  %v11054_v22 = vld [vmem:[%s24466_s3 + $0x48] sm:$0xff]  ;;  %v11093_v53 = vand.u32 4294901760, %v11053_v30 }
 0x4e8   :  { %v9045_v51 = vadd.f32 %v13757_v1, %v8937_v62  ;;  %v11096_v62 = vand.u32 4294901760, %v11054_v22 }
 0x4ea   :  { %v9213_v43 = vadd.f32 %v24050_v56, %v9045_v51  ;;  %16859 = vmatpush3.bf16.msra.mxu1 %v26924_v0  ;;  %v24204_v51 = vpack.c.bf16 %v11102_v59, %v11099_v12 }
 0x4eb   :  { %16861 = vmatprep.subr.bf16.mxu1 %v26925_v35  ;;  %v24194_v35 = vpack.c.bf16 %v11096_v62, %v11093_v53 }
 0x4ee   :  { %16863 = vmatpush3.bf16.msra.mxu1 %v26926_v61 }
 0x4f1   :  { %11039 = vmatmul.mubr.f32.vlgmr.msra.gmra.mrb[76].mxu1 %v23710_v20  ;;  %v11045_v20 = vld [vmem:[%s24466_s3] sm:$0xff] }
 0x4f2   :  { %v11069_v46 = vand.u32 4294901760, %v11045_v20 }
 0x4f4   :  { %v24154_v24 = vpack.c.bf16 %v11072_v2, %v11069_v46  ;;  %v24156_v27 = vsub.f32 %v11045_v20, %v11069_v46 }
 0x4f6   :  { %16866 = vmatpush3.bf16.msra.mxu0 %v24154_v24 }
 0x4f7   :  { %16867 = vmatprep.subr.bf16.mxu0 %v17087_v57 }
 0x4fe   :  { %v14070_v48 = vpop.f32.mrb[60].mxu0 }
 0x4ff   :  { %v14071_v10 = vpop.f32.mrb[61].mxu0 }
 0x500   :  { %v24124_v63 = vadd.f32 %v14071_v10, %v14070_v48  ;;  %v11058_v48 = vld [vmem:[%s24466_s3 + $0x68] sm:$0xff] }
 0x504   :  { %v13825_v40 = vpop.f32.mrb[64].mxu1 }
 0x505   :  { %v13826_v39 = vpop.f32.mrb[65].mxu1 }
 0x506   :  { %v13827_v58 = vadd.f32 %v13826_v39, %v13825_v40  ;;  %v11108_v39 = vand.u32 4294901760, %v11058_v48 }
 0x508   :  { %v9317_v47 = vadd.f32 %v13827_v58, %v9213_v43  ;;  %v11057_v43 = vld [vmem:[%s24466_s3 + $0x60] sm:$0xff]  ;;  %v24239_v50 = vsub.f32 %v11058_v48, %v11108_v39 }
 0x509   :  { %v11105_v40 = vand.u32 4294901760, %v11057_v43 }
 0x50a   :  { %v9429_v37 = vadd.f32 %v24071_v11, %v9317_v47  ;;  %v11048_v11 = vld [vmem:[%s24466_s3 + $0x18] sm:$0xff]  ;;  %v11059_v47 = vld [vmem:[%s24466_s3 + $0x70] sm:$0xff] }
 0x50b   :  { %v11078_v5 = vand.u32 4294901760, %v11048_v11  ;;  %v24217_v58 = vpack.c.bf16 %v11108_v39, %v11105_v40  ;;  %v24237_v20 = vsub.f32 %v11057_v43, %v11105_v40 }
 0x50d   :  { %v24162_v28 = vsub.f32 %v11048_v11, %v11078_v5  ;;  %v24167_v34 = vpack.c.bf16 %v11078_v5, %v11075_v44  ;;  %v17089_v44 = vmov 0.0  }
 0x50e   :  { %14382 = vmatprep.mubr.msk.f32.mxu0 %vm17088_vm0, %v17089_v44 }
 0x50f   :  { %16869 = vmatpush3.bf16.msra.mxu0 %v24167_v34  ;;  %v11183_v5 = vand.u32 4294901760, %v24162_v28 }
 0x510   :  { %16870 = vmatprep.subr.bf16.mxu0 %v17087_v57 }
 0x513   :  { %16872 = vmatpush3.bf16.msra.mxu0 %v24177_v14 }
 0x514   :  { %16873 = vmatprep.subr.bf16.mxu0 %v17087_v57 }
 0x517   :  { %16875 = vmatpush3.bf16.msra.mxu0 %v24181_v16 }
 0x518   :  { %16876 = vmatprep.subr.bf16.mxu0 %v17087_v57 }
 0x51b   :  { %16878 = vmatpush3.bf16.msra.mxu0 %v24194_v35 }
 0x51c   :  { %16879 = vmatprep.subr.bf16.mxu0 %v17087_v57 }
 0x51e   :  { %v14140_v52 = vpop.f32.mrb[62].mxu0 }
 0x51f   :  { %v14141_v56 = vpop.f32.mrb[63].mxu0  ;;  %16881 = vmatpush3.bf16.msra.mxu0 %v24204_v51 }
 0x520   :  { %v24127_v25 = vadd.f32 %v14141_v56, %v14140_v52  ;;  %16882 = vmatprep.subr.bf16.mxu0 %v17087_v57  ;;  %v11162_v56 = vand.u32 4294901760, %v24156_v27 }
 0x522   :  { %v11163_v11 = vsub.f32 %v24156_v27, %v11162_v56 }
 0x523   :  { %16884 = vmatpush3.bf16.msra.mxu0 %v24217_v58 }
 0x524   :  { %v13895_v55 = vpop.f32.mrb[66].mxu1  ;;  %16885 = vmatprep.subr.bf16.mxu0 %v17087_v57  ;;  %v11164_v6 = vand.u32 4294901760, %v11163_v11 }
 0x525   :  { %v13896_v29 = vpop.f32.mrb[67].mxu1 }
 0x526   :  { %v13897_v60 = vadd.f32 %v13896_v29, %v13895_v55  ;;  %v11169_v55 = vand.u32 4294901760, %v24158_v45  ;;  %v24229_v29 = vsub.f32 %v11053_v30, %v11093_v53  ;;  %v25313_v30 = vand.u32 4294901760, %v24169_v32 }
 0x528   :  { %v9661_v41 = vadd.f32 %v13897_v60, %v9429_v37  ;;  %v11060_v37 = vld [vmem:[%s24466_s3 + $0x78] sm:$0xff]  ;;  %v24231_v60 = vsub.f32 %v11054_v22, %v11096_v62  ;;  %v11170_v26 = vsub.f32 %v24158_v45, %v11169_v55  ;;  %v11198_v62 = vsub.f32 %v24169_v32, %v25313_v30 }
 0x529   :  { %v11114_v52 = vand.u32 4294901760, %v11060_v37  ;;  %v25310_v48 = vand.u32 4294901760, %v24229_v29 }
 0x52a   :  { %v9799_v19 = vadd.f32 %v13932_v9, %v9661_v41  ;;  %v24174_v9 = vsub.f32 %v11052_v15, %v11090_v23  ;;  %v24233_v41 = vsub.f32 %v11055_v8, %v11099_v12  ;;  %v11171_v3 = vand.u32 4294901760, %v11170_v26 }
 0x52b   :  { %v24245_v2 = vsub.f32 %v11060_v37, %v11114_v52  ;;  %v11184_v15 = vsub.f32 %v24162_v28, %v11183_v5  ;;  %v11178_v23 = vand.u32 4294901760, %v11177_v31  ;;  %v25309_v40 = vand.u32 4294901760, %v24231_v60 }
 0x52c   :  { %v24265_v36 = vpack.c.bf16 %v11171_v3, %v11164_v6  ;;  %v25311_v8 = vand.u32 4294901760, %v24174_v9  ;;  %v25308_v11 = vand.u32 4294901760, %v24233_v41 }
 0x52d   :  { %v11226_v37 = vsub.f32 %v24231_v60, %v25309_v40 }
 0x52e   :  { %v11212_v12 = vsub.f32 %v24174_v9, %v25311_v8 }
 0x530   :  { %v11213_v43 = vand.u32 4294901760, %v11212_v12 }
 0x53e   :  { %v14210_v18 = vpop.f32.mrb[64].mxu0 }
 0x53f   :  { %v14211_v54 = vpop.f32.mrb[65].mxu0 }
 0x540   :  { %v24186_v13 = vadd.f32 %v14211_v54, %v14210_v18  ;;  %v11185_v18 = vand.u32 4294901760, %v11184_v15  ;;  %v11190_v54 = vand.u32 4294901760, %v24164_v17  ;;  %v11233_v15 = vsub.f32 %v24233_v41, %v25308_v11 }
 0x542   :  { %v24269_v22 = vpack.c.bf16 %v11185_v18, %v11178_v23  ;;  %v11191_v53 = vsub.f32 %v24164_v17, %v11190_v54 }
 0x544   :  { %v13965_v0 = vpop.f32.mrb[68].mxu1 }
 0x545   :  { %v13966_v61 = vpop.f32.mrb[69].mxu1 }
 0x546   :  { %v13967_v49 = vadd.f32 %v13966_v61, %v13965_v0  ;;  %v11192_v0 = vand.u32 4294901760, %v11191_v53  ;;  %v25312_v61 = vand.u32 4294901760, %v24172_v21  ;;  %v11234_v53 = vand.u32 4294901760, %v11233_v15 }
 0x548   :  { %v9907_v1 = vadd.f32 %v13967_v49, %v9799_v19  ;;  %v24235_v19 = vsub.f32 %v11056_v4, %v11102_v59  ;;  %v11199_v4 = vand.u32 4294901760, %v11198_v62  ;;  %v11205_v49 = vsub.f32 %v24172_v21, %v25312_v61 }
 0x54a   :  { %v24213_v10 = vadd.f32 %v24113_v42, %v9907_v1  ;;  %v11111_v42 = vand.u32 4294901760, %v11059_v47  ;;  %v24285_v59 = vpack.c.bf16 %v11199_v4, %v11192_v0  ;;  %v11206_v1 = vand.u32 4294901760, %v11205_v49 }
 0x54b   :  { %v25307_v26 = vand.u32 4294901760, %v24235_v19  ;;  %v25306_v0 = vand.u32 4294901760, %v24237_v20  ;;  %v25305_v4 = vand.u32 4294901760, %v24239_v50 }
 0x54c   :  { %v24241_v7 = vpack.c.bf16 %v11114_v52, %v11111_v42  ;;  %v24243_v46 = vsub.f32 %v11059_v47, %v11111_v42  ;;  %v24289_v39 = vpack.c.bf16 %v11213_v43, %v11206_v1  ;;  %v11219_v47 = vsub.f32 %v24229_v29, %v25310_v48 }
 0x54d   :  { %v11227_v52 = vand.u32 4294901760, %v11226_v37  ;;  %v11240_v23 = vsub.f32 %v24235_v19, %v25307_v26  ;;  %v11247_v1 = vsub.f32 %v24237_v20, %v25306_v0  ;;  %v11254_v43 = vsub.f32 %v24239_v50, %v25305_v4 }
 0x54e   :  { %16887 = vmatpush3.bf16.msra.mxu0 %v24241_v7  ;;  %v11220_v42 = vand.u32 4294901760, %v11219_v47 }
 0x54f   :  { %16888 = vmatprep.subr.bf16.mxu0 %v17087_v57  ;;  %v11241_v62 = vand.u32 4294901760, %v11240_v23  ;;  %v11248_v37 = vand.u32 4294901760, %v11247_v1  ;;  %v16922_v1 = vpack.c.bf16 %v24174_v9, %v24172_v21 }
 0x550   :  { %v16901_v31 = vpack.c.bf16 %v11227_v52, %v11220_v42  ;;  %v11255_v42 = vand.u32 4294901760, %v11254_v43  ;;  %v25304_v52 = vand.u32 4294901760, %v24243_v46 }
 0x551   :  { %v16904_v12 = vpack.c.bf16 %v11241_v62, %v11234_v53  ;;  %v16916_v62 = vpack.c.bf16 %v24162_v28, %v24160_v38  ;;  %v26930_v38 = vand.u32 4294901760, %v24174_v9  ;;  %v26936_v9 = vand.u32 4294901760, %v24239_v50 }
 0x564   :  { %v14035_v6 = vpop.f32.mrb[70].mxu1 }
 0x565   :  { %v14036_v3 = vpop.f32.mrb[71].mxu1 }
 0x566   :  { %v14037_v18 = vadd.f32 %v14036_v3, %v14035_v6  ;;  %v25303_v6 = vand.u32 4294901760, %v24245_v2  ;;  %v16907_v3 = vpack.c.bf16 %v11255_v42, %v11248_v37  ;;  %v16925_v37 = vpack.c.bf16 %v24231_v60, %v24229_v29 }
 0x568   :  { %v10179_v49 = vadd.f32 %v14037_v18, %v24213_v10  ;;  %v11261_v10 = vsub.f32 %v24243_v46, %v25304_v52  ;;  %v11268_v15 = vsub.f32 %v24245_v2, %v25303_v6  ;;  %v16931_v6 = vpack.c.bf16 %v24239_v50, %v24237_v20 }
 0x569   :  { %v16934_v52 = vpack.c.bf16 %v24245_v2, %v24243_v46 }
 0x56a   :  { %v10291_v47 = vadd.f32 %v24124_v63, %v10179_v49  ;;  %v11262_v23 = vand.u32 4294901760, %v11261_v10  ;;  %v11269_v18 = vand.u32 4294901760, %v11268_v15  ;;  %v16913_v63 = vpack.c.bf16 %v24158_v45, %v24156_v27 }
 0x56b   :  { %v16919_v49 = vpack.c.bf16 %v24169_v32, %v24164_v17  ;;  %v26928_v27 = vand.u32 4294901760, %v24169_v32  ;;  %v26933_v17 = vand.u32 4294901760, %v24233_v41  ;;  %v26934_v32 = vand.u32 4294901760, %v24235_v19 }
 0x56c   :  { %v16910_v53 = vpack.c.bf16 %v11269_v18, %v11262_v23  ;;  %v16928_v23 = vpack.c.bf16 %v24235_v19, %v24233_v41 }
 0x56d   :  { %v16967_v45 = vpack.c.bf16 %v26928_v27, %v11190_v54  ;;  %v16976_v54 = vpack.c.bf16 %v26934_v32, %v26933_v17 }
 0x584   :  { %v14105_v43 = vpop.f32.mrb[72].mxu1 }
 0x585   :  { %v14106_v42 = vpop.f32.mrb[73].mxu1 }
 0x586   :  { %v14107_v10 = vadd.f32 %v14106_v42, %v14105_v43 }
 0x588   :  { %v10523_v15 = vadd.f32 %v14107_v10, %v10291_v47 }
 0x58a   :  { %v10661_v18 = vadd.f32 %v24127_v25, %v10523_v15 }
 0x5a4   :  { %v14175_v4 = vpop.f32.mrb[74].mxu1 }
 0x5a5   :  { %v14176_v0 = vpop.f32.mrb[75].mxu1 }
 0x5a6   :  { %v14177_v26 = vadd.f32 %v14176_v0, %v14175_v4 }
 0x5a8   :  { %v10769_v11 = vadd.f32 %v14177_v26, %v10661_v18 }
 0x5aa   :  { %v10937_v40 = vadd.f32 %v24186_v13, %v10769_v11  ;;  %v16961_v13 = vpack.c.bf16 %v11169_v55, %v11162_v56  ;;  %v26929_v56 = vand.u32 4294901760, %v24172_v21  ;;  %v26931_v55 = vand.u32 4294901760, %v24229_v29 }
 0x5ab   :  { %v26935_v21 = vand.u32 4294901760, %v24237_v20  ;;  %v26937_v29 = vand.u32 4294901760, %v24243_v46 }
 0x5ac   :  { %v16970_v28 = vpack.c.bf16 %v26930_v38, %v26929_v56 }
 0x5c4   :  { %v14245_v48 = vpop.f32.mrb[76].mxu1 }
 0x5c5   :  { %v14246_v43 = vpop.f32.mrb[77].mxu1 }
 0x5c6   :  { %v14247_v47 = vadd.f32 %v14246_v43, %v14245_v48 }
 0x5c8   :  { %v11041_v42 = vadd.f32 %v14247_v47, %v10937_v40 }
 0x5ca   :  { %v11044_v10 = vmax.f32 %v11041_v42, 0.0 }
 0x5cc   :  { %v24341_v8 = vand.u32 4294901760, %v11044_v10 }
 0x5ce   :  { %v11150_v25 = vsub.f32 %v11044_v10, %v24341_v8 }
 0x5d0   :  { %v11151_v15 = vand.u32 4294901760, %v11150_v25 }
 0x5d2   :  { %v11152_v61 = vsub.f32 %v11150_v25, %v11151_v15 }
 0x5d4   :  { %v11153_v30 = vand.u32 4294901760, %v11152_v61 }
 0x5d6   :  { %14383 = vmatmul.mubr.f32.vlgmr.msra.gmra.mrb[66].mxu0 %v11153_v30  ;;  %v16979_v30 = vpack.c.bf16 %v26936_v9, %v26935_v21 }
 0x5d7   :  { %16890 = vmatpush3.bf16.msra.mxu0 %v24265_v36  ;;  %14417 = vmatprep.mubr.msk.f32.mxu0 %vm17088_vm0, %v17089_v44  ;;  %v16964_v36 = vpack.c.bf16 %v11183_v5, %v11176_v33  ;;  %v26932_v33 = vand.u32 4294901760, %v24231_v60  ;;  %v26938_v60 = vand.u32 4294901760, %v24245_v2 }
 0x5d8   :  { %16891 = vmatprep.subr.bf16.mxu0 %v17087_v57 }
 0x5d9   :  { %v16973_v5 = vpack.c.bf16 %v26932_v33, %v26931_v55 }
 0x5db   :  { %16893 = vmatpush3.bf16.msra.mxu0 %v24269_v22  ;;  %v16982_v22 = vpack.c.bf16 %v26938_v60, %v26937_v29 }
 0x5dc   :  { %16894 = vmatprep.subr.bf16.mxu0 %v17087_v57 }
 0x5df   :  { %16896 = vmatpush3.bf16.msra.mxu0 %v24285_v59 }
 0x5e0   :  { %16897 = vmatprep.subr.bf16.mxu0 %v17087_v57 }
 0x5e3   :  { %16899 = vmatpush3.bf16.msra.mxu0 %v24289_v39 }
 0x5e4   :  { %16900 = vmatprep.subr.bf16.mxu0 %v17087_v57 }
 0x5e7   :  { %16902 = vmatpush3.bf16.msra.mxu0 %v16901_v31 }
 0x5e8   :  { %16903 = vmatprep.subr.bf16.mxu0 %v17087_v57 }
 0x5eb   :  { %16905 = vmatpush3.bf16.msra.mxu0 %v16904_v12 }
 0x5ec   :  { %16906 = vmatprep.subr.bf16.mxu0 %v17087_v57 }
 0x5ef   :  { %16908 = vmatpush3.bf16.msra.mxu0 %v16907_v3 }
 0x5f0   :  { %16909 = vmatprep.subr.bf16.mxu0 %v17087_v57 }
 0x5f3   :  { %16911 = vmatpush3.bf16.msra.mxu0 %v16910_v53 }
 0x5f4   :  { %16912 = vmatprep.subr.bf16.mxu0 %v17087_v57 }
 0x5f6   :  { %14418 = vmatmul.mubr.f32.vlgmr.msra.gmra.mrb[66].mxu0 %v24341_v8 }
 0x5f7   :  { %16914 = vmatpush3.bf16.msra.mxu0 %v16913_v63  ;;  %14452 = vmatprep.mubr.msk.f32.mxu0 %vm17088_vm0, %v17089_v44 }
 0x5f8   :  { %16915 = vmatprep.subr.bf16.mxu0 %v17087_v57 }
 0x5fb   :  { %16917 = vmatpush3.bf16.msra.mxu0 %v16916_v62 }
 0x5fc   :  { %16918 = vmatprep.subr.bf16.mxu0 %v17087_v57 }
 0x5ff   :  { %16920 = vmatpush3.bf16.msra.mxu0 %v16919_v49 }
 0x600   :  { %16921 = vmatprep.subr.bf16.mxu0 %v17087_v57 }
 0x603   :  { %16923 = vmatpush3.bf16.msra.mxu0 %v16922_v1 }
 0x604   :  { %16924 = vmatprep.subr.bf16.mxu0 %v17087_v57 }
 0x607   :  { %16926 = vmatpush3.bf16.msra.mxu0 %v16925_v37 }
 0x608   :  { %16927 = vmatprep.subr.bf16.mxu0 %v17087_v57 }
 0x60b   :  { %16929 = vmatpush3.bf16.msra.mxu0 %v16928_v23 }
 0x60c   :  { %16930 = vmatprep.subr.bf16.mxu0 %v17087_v57 }
 0x60f   :  { %16932 = vmatpush3.bf16.msra.mxu0 %v16931_v6 }
 0x610   :  { %16933 = vmatprep.subr.bf16.mxu0 %v17087_v57 }
 0x613   :  { %16935 = vmatpush3.bf16.msra.mxu0 %v16934_v52 }
 0x614   :  { %16936 = vmatprep.subr.bf16.mxu0 %v17087_v57 }
 0x616   :  { %14453 = vmatmul.mubr.f32.vlgmr.msra.gmra.mrb[66].mxu0 %v11150_v25 }
 0x617   :  { %16938 = vmatpush3.bf16.msra.mxu0 %v24154_v24  ;;  %14487 = vmatprep.mubr.msk.f32.mxu0 %vm17088_vm0, %v17089_v44 }
 0x618   :  { %16939 = vmatprep.subr.bf16.mxu0 %v17087_v57 }
 0x61b   :  { %16941 = vmatpush3.bf16.msra.mxu0 %v24167_v34 }
 0x61c   :  { %16942 = vmatprep.subr.bf16.mxu0 %v17087_v57 }
 0x61f   :  { %16944 = vmatpush3.bf16.msra.mxu0 %v24177_v14 }
 0x620   :  { %16945 = vmatprep.subr.bf16.mxu0 %v17087_v57 }
 0x623   :  { %16947 = vmatpush3.bf16.msra.mxu0 %v24181_v16 }
 0x624   :  { %16948 = vmatprep.subr.bf16.mxu0 %v17087_v57 }
 0x627   :  { %16950 = vmatpush3.bf16.msra.mxu0 %v24194_v35 }
 0x628   :  { %16951 = vmatprep.subr.bf16.mxu0 %v17087_v57 }
 0x62b   :  { %16953 = vmatpush3.bf16.msra.mxu0 %v24204_v51 }
 0x62c   :  { %16954 = vmatprep.subr.bf16.mxu0 %v17087_v57 }
 0x62f   :  { %16956 = vmatpush3.bf16.msra.mxu0 %v24217_v58 }
 0x630   :  { %16957 = vmatprep.subr.bf16.mxu0 %v17087_v57 }
 0x633   :  { %16959 = vmatpush3.bf16.msra.mxu0 %v24241_v7 }
 0x634   :  { %16960 = vmatprep.subr.bf16.mxu0 %v17087_v57 }
 0x636   :  { %14488 = vmatmul.mubr.f32.vlgmr.msra.gmra.mrb[66].mxu0 %v11151_v15 }
 0x637   :  { %16962 = vmatpush3.bf16.msra.mxu0 %v16961_v13  ;;  %14522 = vmatprep.mubr.msk.f32.mxu0 %vm17088_vm0, %v17089_v44 }
 0x638   :  { %16963 = vmatprep.subr.bf16.mxu0 %v17087_v57 }
 0x63b   :  { %16965 = vmatpush3.bf16.msra.mxu0 %v16964_v36 }
 0x63c   :  { %16966 = vmatprep.subr.bf16.mxu0 %v17087_v57 }
 0x63f   :  { %16968 = vmatpush3.bf16.msra.mxu0 %v16967_v45 }
 0x640   :  { %16969 = vmatprep.subr.bf16.mxu0 %v17087_v57 }
 0x643   :  { %16971 = vmatpush3.bf16.msra.mxu0 %v16970_v28 }
 0x644   :  { %16972 = vmatprep.subr.bf16.mxu0 %v17087_v57 }
 0x647   :  { %16974 = vmatpush3.bf16.msra.mxu0 %v16973_v5 }
 0x648   :  { %16975 = vmatprep.subr.bf16.mxu0 %v17087_v57 }
 0x64b   :  { %16977 = vmatpush3.bf16.msra.mxu0 %v16976_v54 }
 0x64c   :  { %16978 = vmatprep.subr.bf16.mxu0 %v17087_v57 }
 0x64f   :  { %16980 = vmatpush3.bf16.msra.mxu0 %v16979_v30 }
 0x650   :  { %16981 = vmatprep.subr.bf16.mxu0 %v17087_v57 }
 0x653   :  { %16983 = vmatpush3.bf16.msra.mxu0 %v16982_v22 }
 0x654   :  { %16984 = vmatprep.subr.bf16.mxu0 %v17087_v57 }
 0x656   :  { %14523 = vmatmul.mubr.f32.vlgmr.msra.gmra.mrb[66].mxu0 %v24341_v8 }
 0x657   :  { %16986 = vmatpush3.bf16.msra.mxu0 %v24154_v24  ;;  %14557 = vmatprep.mubr.msk.f32.mxu0 %vm17088_vm0, %v17089_v44  ;;  %v11727_v24 = vld [vmem:[%s24467_s4] ss:$0 sm:$0xff] }
 0x658   :  { %16987 = vmatprep.subr.bf16.mxu0 %v17087_v57 }
 0x65b   :  { %16989 = vmatpush3.bf16.msra.mxu0 %v24167_v34 }
 0x65c   :  { %16990 = vmatprep.subr.bf16.mxu0 %v17087_v57 }
 0x65f   :  { %16992 = vmatpush3.bf16.msra.mxu0 %v24177_v14 }
 0x660   :  { %16993 = vmatprep.subr.bf16.mxu0 %v17087_v57 }
 0x663   :  { %16995 = vmatpush3.bf16.msra.mxu0 %v24181_v16 }
 0x664   :  { %16996 = vmatprep.subr.bf16.mxu0 %v17087_v57 }
 0x667   :  { %16998 = vmatpush3.bf16.msra.mxu0 %v24194_v35 }
 0x668   :  { %16999 = vmatprep.subr.bf16.mxu0 %v17087_v57 }
 0x66b   :  { %17001 = vmatpush3.bf16.msra.mxu0 %v24204_v51 }
 0x66c   :  { %17002 = vmatprep.subr.bf16.mxu0 %v17087_v57 }
 0x66f   :  { %17004 = vmatpush3.bf16.msra.mxu0 %v24217_v58 }
 0x670   :  { %17005 = vmatprep.subr.bf16.mxu0 %v17087_v57 }
 0x673   :  { %17007 = vmatpush3.bf16.msra.mxu0 %v24241_v7 }
 0x676   :  { %14558 = vmatmul.mubr.f32.vlgmr.msra.gmra.mrb[66].mxu0 %v24341_v8 }
 0x749   :  { %v11705_v34 = vpop.f32.mrb[66].mxu0 }
 0x74a   :  { %v17008_v14 = vadd.f32 %v11727_v24, %v11705_v34  ;;  %v14559_v16 = vpop.f32.mrb[67].mxu0 }
 0x74c   :  { %11709 = vst [vmem:[#allocation2] sm:$0xff] %v17008_v14 }
 0x74d   :  { %11714 = vsyncadd [#allocation3], 96  ;;  %s17090_s17 = smov [#allocation2]  }
 0x74e   :  { %s11715_s18 = sshll.u32 %s17090_s17, 4  ;;  %s11716_s18 = int_to_ptr.vmem [resolvable:$true] %s11715_s18 }
 0x74f   :  { %s17062_s19 = scalar_lea.vmem %s11716_s18, 32  ;;  %s17066_s20 = scalar_lea.vmem %s11716_s18, 128 }
 0x750   :  { %p17063_p0 = scmp.ne.s32.totalorder %s11716_s18, %s17062_s19  ;;  %p17067_p1 = scmp.lt.s32.totalorder %s11716_s18, %s11716_s18 }
 0x751   :  { %p17068_p2 = scmp.lt.s32.totalorder %s17066_s20, %s17062_s19 }
 0x753   :  { %p17069_p3 = por %p17068_p2, %p17067_p1 }
 0x755   :  { %p17070_p4 = pnand %p17069_p3, %p17063_p0 }
 0x757   :  { %17073 = shalt.err (!%p17070_p4)
}
 0x758   :  { %s17074_s4 = scalar_lea.hbm %s24468_s5, 32 }
 0x759   :  { %p17075_p5 = scmp.ne.s32.totalorder %s24468_s5, %s17074_s4  ;;  %p17078_p6 = scmp.lt.u32.totalorder %s17074_s4, %s24468_s5 }
 0x75b   :  { %p17080_p7 = pnand %p17078_p6, %p17075_p5 }
 0x75d   :  { %17083 = shalt.err (!%p17080_p7)
}
 0x75e   :  { %s17091_s26 = smov 32   ;;  %s17092_s27 = smov 2  }
 0x75f   :  { %11721 = dma.vmem_to_hbm [thread:$0]  %s11716_s18, 32, %s24468_s5, [#allocation3], %s17091_s26, %s17091_s26, %s17092_s27  }
 0x760   :  { %17084 = dma.done.wait [#allocation3], 128  }
 0x761   :  { %17085 = vsyncadd [#allocation3], 4294967168 }
 0x762   :  { %11725 = vsyncpa [#allocation3], 1 }

</bundles_post_ra>
